<compile_context>
chip_gen: v7x
topology: tpu7x:2x2x1
jax: 0.10.0
libtpu: 0.0.40
codegen_flags: <defaults>
</compile_context>

<pallas_src>
import jax
import jax.numpy as jnp
from jax.experimental import pallas as pl
from jax.experimental.pallas import tpu as pltpu


# ------------------------------------------------------------------ Pallas GEMM

def _round_up(x, m):
    return (x + m - 1) // m * m


def _gemm_bias_kernel(a_ref, b_ref, bias_ref, o_ref):
    """grid = (M_tiles, N_tiles, K_tiles); K (reduction) is the last grid axis.

    Accumulates directly into the f32 output block (resident across K) and fuses
    the bias add into the final-K epilogue.
    """
    @pl.when(pl.program_id(2) == 0)
    def _():
        o_ref[...] = jnp.zeros_like(o_ref)

    o_ref[...] += jnp.dot(a_ref[...], b_ref[...],
                          preferred_element_type=jnp.float32)

    @pl.when(pl.program_id(2) == pl.num_programs(2) - 1)
    def _():
        o_ref[...] = o_ref[...] + bias_ref[...]


def prep_gemm(w2d, bias):
    """Reshape/pad/cast a GEMM weight once at init.

    Returns a dict of ARRAYS ONLY (jit-safe pytree leaves):
      w : bf16 weight padded to (round_up(K,128), round_up(N,128))
      b : unpadded f32 bias of shape (N,)  -> N recovered statically from its shape
    """
    K, N = w2d.shape
    Kp = _round_up(K, 128)
    Np = _round_up(N, 128)
    wp = jnp.pad(w2d, ((0, Kp - K), (0, Np - N))).astype(jnp.bfloat16)
    return dict(w=wp, b=bias.astype(jnp.float32))


def _pick_tk(Kp):
    for cand in (512, 384, 256, 128):
        if Kp % cand == 0:
            return min(cand, Kp)
    return Kp  # unreachable: Kp is always a multiple of 128


def dense(a, wp):
    """(M,K) @ prepped-weight -> (M,N) f32 with fused bias.

    Large M goes through the tiled Pallas MXU kernel (bf16 in, f32 acc); tiny M
    (small-spatial conv blocks, channel-attention FCs) uses jnp.dot where the
    pallas_call fixed cost would dominate.
    """
    M, K = a.shape
    Kp, Np = wp['w'].shape              # static (array shape)
    N = wp['b'].shape[0]                # static (array shape)
    assert K <= Kp and N <= Np

    if M < 64:
        y = jnp.dot(a.astype(jnp.bfloat16), wp['w'][:K, :N],
                    preferred_element_type=jnp.float32)
        return y + wp['b']

    tm = min(256, _round_up(M, 16))
    Mp = _round_up(M, tm)
    tn = 256 if Np % 256 == 0 else 128
    tk = _pick_tk(Kp)

    a_p = jnp.pad(a.astype(jnp.bfloat16), ((0, Mp - M), (0, Kp - K)))
    bias_p = jnp.pad(wp['b'], (0, Np - N)).reshape(1, Np)

    out = pl.pallas_call(
        _gemm_bias_kernel,
        out_shape=jax.ShapeDtypeStruct((Mp, Np), jnp.float32),
        grid_spec=pltpu.PrefetchScalarGridSpec(
            num_scalar_prefetch=0,
            grid=(Mp // tm, Np // tn, Kp // tk),
            in_specs=[
                pl.BlockSpec((tm, tk), lambda i, j, k: (i, k)),
                pl.BlockSpec((tk, tn), lambda i, j, k: (k, j)),
                pl.BlockSpec((1, tn), lambda i, j, k: (0, j)),
            ],
            out_specs=pl.BlockSpec((tm, tn), lambda i, j, k: (i, j)),
        ),
        compiler_params=pltpu.CompilerParams(
            dimension_semantics=("parallel", "parallel", "arbitrary"),
            vmem_limit_bytes=32 * 1024 * 1024),
    )(a_p, wp['w'], bias_p)
    return out[:M, :N]


# ------------------------------------------------------------- NN building blocks

def conv3x3(x, wp):
    """x: (N,H,W,Cin) NHWC; prepped weight from (3,3,Cin,Cout). padding=1, stride=1.
    Bias is fused in the GEMM epilogue."""
    N, H, W, Cin = x.shape
    Cout = wp['b'].shape[0]
    xb = x.astype(jnp.bfloat16)                       # halve im2col bytes
    xpad = jnp.pad(xb, ((0, 0), (1, 1), (1, 1), (0, 0)))
    # TODO(synk): fold the 9 taps into the GEMM K reduction (tap-indexed index_map on
    # the padded input) instead of materializing bf16 im2col patches (9x act. bytes).
    cols = [xpad[:, di:di + H, dj:dj + W, :] for di in range(3) for dj in range(3)]
    patches = jnp.concatenate(cols, axis=-1).reshape(N * H * W, 9 * Cin)
    y = dense(patches, wp)
    return y.reshape(N, H, W, Cout)


def batchnorm(x, eps=1e-5):
    # Training-mode BatchNorm2d with weight=1, bias=0 (as set in __init__), f32.
    mean = jnp.mean(x, axis=(0, 1, 2), keepdims=True)
    var = jnp.var(x, axis=(0, 1, 2), keepdims=True)
    return (x - mean) * jax.lax.rsqrt(var + eps)


def conv_block(x, p):
    """conv_block_nested: relu(bn2(conv2(relu(bn1(conv1(x))))) + conv1(x))."""
    x1 = conv3x3(x, p['c1'])
    identity = x1
    h = jax.nn.relu(batchnorm(x1))
    h = conv3x3(h, p['c2'])
    return jax.nn.relu(batchnorm(h) + identity)


def maxpool2(x):
    N, H, W, C = x.shape
    return x.reshape(N, H // 2, 2, W // 2, 2, C).max(axis=(2, 4))


def up_apply(x, wp):
    """ConvTranspose2d(C, C, kernel=2, stride=2): non-overlapping per-tap matmul.
    Bias (pre-tiled over the 4 taps) is fused in the GEMM epilogue."""
    N, H, W, Cin = x.shape
    Cout = wp['b'].shape[0] // 4
    y = dense(x.reshape(N * H * W, Cin), wp)          # (M, 4*Cout)
    y = y.reshape(N, H, W, 2, 2, Cout).transpose(0, 1, 3, 2, 4, 5)
    return y.reshape(N, 2 * H, 2 * W, Cout)


def channel_attention(x, p):
    """sigmoid(fc2(relu(fc1(avgpool))) + fc2(relu(fc1(maxpool)))); tiny -> jnp.dot."""
    avg = jnp.mean(x, axis=(1, 2))   # (N, C)
    mx = jnp.max(x, axis=(1, 2))     # (N, C)

    def fc(v):
        h = jax.nn.relu(jnp.dot(v, p['w1'], preferred_element_type=jnp.float32))
        return jnp.dot(h, p['w2'], preferred_element_type=jnp.float32)

    out = fc(avg) + fc(mx)
    return jax.nn.sigmoid(out)[:, None, None, :]      # (N,1,1,C)


# ------------------------------------------------------------------- parameters

def init_params(key):
    filters = [32, 64, 128, 256, 512]
    keys = iter(jax.random.split(key, 256))
    params = {}

    def conv_prep(cin, cout, k=3):
        # kaiming_normal_(mode='fan_out', relu): std = sqrt(2 / (cout*k*k))
        std = (2.0 / (cout * k * k)) ** 0.5
        w = std * jax.random.normal(next(keys), (k, k, cin, cout), jnp.float32)
        b = jnp.zeros((cout,), jnp.float32)
        return prep_gemm(w.reshape(k * k * cin, cout), b)

    def block(cin, mid, cout):
        return dict(c1=conv_prep(cin, mid), c2=conv_prep(mid, cout))

    def up_p(c):
        std = 1.0 / (c * 4) ** 0.5
        w = std * jax.random.normal(next(keys), (c, 2, 2, c), jnp.float32)
        b = jnp.zeros((c,), jnp.float32)
        return prep_gemm(w.reshape(c, 4 * c), jnp.tile(b, 4))

    def fc_w(cin, cout):
        std = (2.0 / cout) ** 0.5
        return std * jax.random.normal(next(keys), (cin, cout), jnp.float32)

    f = filters
    params['conv0_0'] = block(3, f[0], f[0])
    params['conv1_0'] = block(f[0], f[1], f[1])
    params['conv2_0'] = block(f[1], f[2], f[2])
    params['conv3_0'] = block(f[2], f[3], f[3])
    params['conv4_0'] = block(f[3], f[4], f[4])

    params['conv0_1'] = block(f[0] * 2 + f[1], f[0], f[0])
    params['conv1_1'] = block(f[1] * 2 + f[2], f[1], f[1])
    params['conv2_1'] = block(f[2] * 2 + f[3], f[2], f[2])
    params['conv3_1'] = block(f[3] * 2 + f[4], f[3], f[3])

    params['conv0_2'] = block(f[0] * 3 + f[1], f[0], f[0])
    params['conv1_2'] = block(f[1] * 3 + f[2], f[1], f[1])
    params['conv2_2'] = block(f[2] * 3 + f[3], f[2], f[2])

    params['conv0_3'] = block(f[0] * 4 + f[1], f[0], f[0])
    params['conv1_3'] = block(f[1] * 4 + f[2], f[1], f[1])

    params['conv0_4'] = block(f[0] * 5 + f[1], f[0], f[0])

    params['Up1_0'] = up_p(f[1])
    params['Up2_0'] = up_p(f[2])
    params['Up3_0'] = up_p(f[3])
    params['Up4_0'] = up_p(f[4])
    params['Up1_1'] = up_p(f[1])
    params['Up2_1'] = up_p(f[2])
    params['Up3_1'] = up_p(f[3])
    params['Up1_2'] = up_p(f[1])
    params['Up2_2'] = up_p(f[2])
    params['Up1_3'] = up_p(f[1])

    params['ca'] = dict(w1=fc_w(f[0] * 4, (f[0] * 4) // 16),
                        w2=fc_w((f[0] * 4) // 16, f[0] * 4))
    params['ca1'] = dict(w1=fc_w(f[0], f[0] // 4),
                         w2=fc_w(f[0] // 4, f[0]))

    params['conv_final'] = dict(w=fc_w(f[0] * 4, 2),
                                b=jnp.zeros((2,), jnp.float32))
    return params


# --------------------------------------------------------------------- forward

@jax.jit
def snunet_forward(params, xA, xB):
    """xA, xB: (N,H,W,3) NHWC.  Returns (N,H,W,2) NHWC."""
    cb = lambda name, x: conv_block(x, params[name])
    upf = lambda name, x: up_apply(x, params[name])
    cat = lambda xs: jnp.concatenate(xs, axis=-1)

    # Image 1 - xA
    x0_0A = cb('conv0_0', xA)
    x1_0A = cb('conv1_0', maxpool2(x0_0A))
    x2_0A = cb('conv2_0', maxpool2(x1_0A))
    x3_0A = cb('conv3_0', maxpool2(x2_0A))
    # Image 2 - xB
    x0_0B = cb('conv0_0', xB)
    x1_0B = cb('conv1_0', maxpool2(x0_0B))
    x2_0B = cb('conv2_0', maxpool2(x1_0B))
    x3_0B = cb('conv3_0', maxpool2(x2_0B))
    x4_0B = cb('conv4_0', maxpool2(x3_0B))

    x0_1 = cb('conv0_1', cat([x0_0A, x0_0B, upf('Up1_0', x1_0B)]))
    x1_1 = cb('conv1_1', cat([x1_0A, x1_0B, upf('Up2_0', x2_0B)]))
    x0_2 = cb('conv0_2', cat([x0_0A, x0_0B, x0_1, upf('Up1_1', x1_1)]))
    x2_1 = cb('conv2_1', cat([x2_0A, x2_0B, upf('Up3_0', x3_0B)]))
    x1_2 = cb('conv1_2', cat([x1_0A, x1_0B, x1_1, upf('Up2_1', x2_1)]))
    x0_3 = cb('conv0_3', cat([x0_0A, x0_0B, x0_1, x0_2, upf('Up1_2', x1_2)]))
    x3_1 = cb('conv3_1', cat([x3_0A, x3_0B, upf('Up4_0', x4_0B)]))
    x2_2 = cb('conv2_2', cat([x2_0A, x2_0B, x2_1, upf('Up3_1', x3_1)]))
    x1_3 = cb('conv1_3', cat([x1_0A, x1_0B, x1_1, x1_2, upf('Up2_2', x2_2)]))
    x0_4 = cb('conv0_4', cat([x0_0A, x0_0B, x0_1, x0_2, x0_3, upf('Up1_3', x1_3)]))

    out = cat([x0_1, x0_2, x0_3, x0_4])                       # (N,H,W,128)
    Minter = channel_attention(out, params['ca'])             # (N,1,1,128)

    intra = x0_1 + x0_2 + x0_3 + x0_4                         # sum over stack dim
    ca1 = channel_attention(intra, params['ca1'])             # (N,1,1,32)
    Mintra = out + jnp.tile(ca1, (1, 1, 1, 4))                # ca1.repeat(1,4,1,1)

    gated = Minter * Mintra

    # conv_final: 1x1 conv (128 -> 2).  N=2 output columns: jnp.dot (no MXU padding).
    N, H, W, C = gated.shape
    y = jnp.dot(gated.reshape(N * H * W, C), params['conv_final']['w'],
                preferred_element_type=jnp.float32) + params['conv_final']['b']
    return y.reshape(N, H, W, 2)


# ------------------------------------------------------------------------ main

if __name__ == "__main__":
    key = jax.random.PRNGKey(0)
    kp, ka, kb = jax.random.split(key, 3)

    params = init_params(kp)

    # Inputs mirror the PyTorch NCHW convention: (batch=2, in_ch=3, 16, 16).
    xA_nchw = jax.random.normal(ka, (2, 3, 16, 16), jnp.float32)
    xB_nchw = jax.random.normal(kb, (2, 3, 16, 16), jnp.float32)

    xA = jnp.transpose(xA_nchw, (0, 2, 3, 1))   # -> NHWC
    xB = jnp.transpose(xB_nchw, (0, 2, 3, 1))

    out_nhwc = snunet_forward(params, xA, xB)
    out = jnp.transpose(out_nhwc, (0, 3, 1, 2))  # back to NCHW (2, 2, 16, 16)
    jax.block_until_ready(out)

    assert out.shape == (2, 2, 16, 16)
    print("KERNEL_OK")
</pallas_src>

<mosaic_0001>
module attributes {stable_mosaic.version = 11 : i64} {
  func.func @_gemm_bias_kernel(%arg0: i32, %arg1: i32, %arg2: i32, %arg3: memref<256x128xbf16, #tpu.memory_space<vmem>>, %arg4: memref<128x128xbf16, #tpu.memory_space<vmem>>, %arg5: memref<1x128xf32, #tpu.memory_space<vmem>>, %arg6: memref<256x128xf32, #tpu.memory_space<vmem>>) attributes {dimension_semantics = [#tpu.dimension_semantics<parallel>, #tpu.dimension_semantics<parallel>, #tpu.dimension_semantics<arbitrary>], iteration_bounds = array<i64: 2, 1, 1>, scalar_prefetch = 0 : i64, scratch_operands = 0 : i64, tpu.core_type = #tpu.core_type<tc>, window_params = [{transform_indices = @transform_0, window_bounds = array<i64: 256, 128>}, {transform_indices = @transform_1, window_bounds = array<i64: 128, 128>}, {transform_indices = @transform_2, window_bounds = array<i64: 1, 128>}, {transform_indices = @transform_3, window_bounds = array<i64: 256, 128>}]} {
    %c0_i32 = arith.constant 0 : i32
    %0 = arith.cmpi eq, %arg2, %c0_i32 : i32
    %1 = arith.extui %0 : i1 to i32
    %c0_i32_0 = arith.constant 0 : i32
    %2 = arith.cmpi ne, %1, %c0_i32_0 : i32
    scf.if %2 {
      %cst_10 = arith.constant 0.000000e+00 : f32
      %12 = vector.broadcast %cst_10 : f32 to vector<256x128xf32>
      %c0_11 = arith.constant 0 : index
      %c0_12 = arith.constant 0 : index
      %13 = vector.load %arg6[%c0_11, %c0_12] : memref<256x128xf32, #tpu.memory_space<vmem>>, vector<256x128xf32>
      tpu.vector_store %arg6[%c0_11, %c0_12], %12 {strides = array<i32>} : memref<256x128xf32, #tpu.memory_space<vmem>>, vector<256x128xf32>,
    } else {
    }
    %c0 = arith.constant 0 : index
    %c0_1 = arith.constant 0 : index
    %3 = vector.load %arg6[%c0, %c0_1] : memref<256x128xf32, #tpu.memory_space<vmem>>, vector<256x128xf32>
    %c0_2 = arith.constant 0 : index
    %c0_3 = arith.constant 0 : index
    %4 = vector.load %arg3[%c0_2, %c0_3] : memref<256x128xbf16, #tpu.memory_space<vmem>>, vector<256x128xbf16>
    %c0_4 = arith.constant 0 : index
    %c0_5 = arith.constant 0 : index
    %5 = vector.load %arg4[%c0_4, %c0_5] : memref<128x128xbf16, #tpu.memory_space<vmem>>, vector<128x128xbf16>
    %cst = arith.constant dense<0.000000e+00> : vector<256x128xf32>
    %6 = tpu.matmul %4, %5, %cst {dimension_numbers = #tpu.dot_dimension_numbers<[1], [0], [0], [1], [0, 0, 1, 1], [], []>} : vector<256x128xbf16>, vector<128x128xbf16>, vector<256x128xf32> -> vector<256x128xf32>
    %7 = arith.addf %3, %6 : vector<256x128xf32>
    %c0_6 = arith.constant 0 : index
    %c0_7 = arith.constant 0 : index
    %8 = vector.load %arg6[%c0_6, %c0_7] : memref<256x128xf32, #tpu.memory_space<vmem>>, vector<256x128xf32>
    tpu.vector_store %arg6[%c0_6, %c0_7], %7 {strides = array<i32>} : memref<256x128xf32, #tpu.memory_space<vmem>>, vector<256x128xf32>,
    %c0_i32_8 = arith.constant 0 : i32
    %9 = arith.cmpi eq, %arg2, %c0_i32_8 : i32
    %10 = arith.extui %9 : i1 to i32
    %c0_i32_9 = arith.constant 0 : i32
    %11 = arith.cmpi ne, %10, %c0_i32_9 : i32
    scf.if %11 {
      %c0_10 = arith.constant 0 : index
      %c0_11 = arith.constant 0 : index
      %12 = vector.load %arg6[%c0_10, %c0_11] : memref<256x128xf32, #tpu.memory_space<vmem>>, vector<256x128xf32>
      %c0_12 = arith.constant 0 : index
      %c0_13 = arith.constant 0 : index
      %13 = vector.load %arg5[%c0_12, %c0_13] : memref<1x128xf32, #tpu.memory_space<vmem>>, vector<1x128xf32>
      %14 = vector.broadcast %13 : vector<1x128xf32> to vector<256x128xf32>
      %15 = arith.addf %12, %14 : vector<256x128xf32>
      %c0_14 = arith.constant 0 : index
      %c0_15 = arith.constant 0 : index
      %16 = vector.load %arg6[%c0_14, %c0_15] : memref<256x128xf32, #tpu.memory_space<vmem>>, vector<256x128xf32>
      tpu.vector_store %arg6[%c0_14, %c0_15], %15 {strides = array<i32>} : memref<256x128xf32, #tpu.memory_space<vmem>>, vector<256x128xf32>,
    } else {
    }
    return
  }
  func.func @transform_0(%arg0: i32, %arg1: i32, %arg2: i32) -> (i32, i32) {
    %c0_i32 = arith.constant 0 : i32
    return %arg0, %arg2 : i32, i32
  }
  func.func @transform_1(%arg0: i32, %arg1: i32, %arg2: i32) -> (i32, i32) {
    %c0_i32 = arith.constant 0 : i32
    return %arg2, %arg1 : i32, i32
  }
  func.func @transform_2(%arg0: i32, %arg1: i32, %arg2: i32) -> (i32, i32) {
    %c0_i32 = arith.constant 0 : i32
    %c0_i32_0 = arith.constant 0 : i32
    return %c0_i32, %arg1 : i32, i32
  }
  func.func @transform_3(%arg0: i32, %arg1: i32, %arg2: i32) -> (i32, i32) {
    %c0_i32 = arith.constant 0 : i32
    return %arg0, %arg1 : i32, i32
  }
}

module attributes {stable_mosaic.version = 11 : i64} {
  func.func @_gemm_bias_kernel(%arg0: i32, %arg1: i32, %arg2: i32, %arg3: memref<256x128xbf16, #tpu.memory_space<vmem>>, %arg4: memref<128x128xbf16, #tpu.memory_space<vmem>>, %arg5: memref<1x128xf32, #tpu.memory_space<vmem>>, %arg6: memref<256x128xf32, #tpu.memory_space<vmem>>) attributes {dimension_semantics = [#tpu.dimension_semantics<parallel>, #tpu.dimension_semantics<parallel>, #tpu.dimension_semantics<arbitrary>], iteration_bounds = array<i64: 2, 1, 1>, scalar_prefetch = 0 : i64, scratch_operands = 0 : i64, tpu.core_type = #tpu.core_type<tc>, window_params = [{transform_indices = @transform_0, window_bounds = array<i64: 256, 128>}, {transform_indices = @transform_1, window_bounds = array<i64: 128, 128>}, {transform_indices = @transform_2, window_bounds = array<i64: 1, 128>}, {transform_indices = @transform_3, window_bounds = array<i64: 256, 128>}]} {
    %c0_i32 = arith.constant 0 : i32
    %0 = arith.cmpi eq, %arg2, %c0_i32 : i32
    %1 = arith.extui %0 : i1 to i32
    %c0_i32_0 = arith.constant 0 : i32
    %2 = arith.cmpi ne, %1, %c0_i32_0 : i32
    scf.if %2 {
      %cst_10 = arith.constant 0.000000e+00 : f32
      %12 = vector.broadcast %cst_10 : f32 to vector<256x128xf32>
      %c0_11 = arith.constant 0 : index
      %c0_12 = arith.constant 0 : index
      %13 = vector.load %arg6[%c0_11, %c0_12] : memref<256x128xf32, #tpu.memory_space<vmem>>, vector<256x128xf32>
      tpu.vector_store %arg6[%c0_11, %c0_12], %12 {strides = array<i32>} : memref<256x128xf32, #tpu.memory_space<vmem>>, vector<256x128xf32>,
    } else {
    }
    %c0 = arith.constant 0 : index
    %c0_1 = arith.constant 0 : index
    %3 = vector.load %arg6[%c0, %c0_1] : memref<256x128xf32, #tpu.memory_space<vmem>>, vector<256x128xf32>
    %c0_2 = arith.constant 0 : index
    %c0_3 = arith.constant 0 : index
    %4 = vector.load %arg3[%c0_2, %c0_3] : memref<256x128xbf16, #tpu.memory_space<vmem>>, vector<256x128xbf16>
    %c0_4 = arith.constant 0 : index
    %c0_5 = arith.constant 0 : index
    %5 = vector.load %arg4[%c0_4, %c0_5] : memref<128x128xbf16, #tpu.memory_space<vmem>>, vector<128x128xbf16>
    %cst = arith.constant dense<0.000000e+00> : vector<256x128xf32>
    %6 = tpu.matmul %4, %5, %cst {dimension_numbers = #tpu.dot_dimension_numbers<[1], [0], [0], [1], [0, 0, 1, 1], [], []>} : vector<256x128xbf16>, vector<128x128xbf16>, vector<256x128xf32> -> vector<256x128xf32>
    %7 = arith.addf %3, %6 : vector<256x128xf32>
    %c0_6 = arith.constant 0 : index
    %c0_7 = arith.constant 0 : index
    %8 = vector.load %arg6[%c0_6, %c0_7] : memref<256x128xf32, #tpu.memory_space<vmem>>, vector<256x128xf32>
    tpu.vector_store %arg6[%c0_6, %c0_7], %7 {strides = array<i32>} : memref<256x128xf32, #tpu.memory_space<vmem>>, vector<256x128xf32>,
    %c0_i32_8 = arith.constant 0 : i32
    %9 = arith.cmpi eq, %arg2, %c0_i32_8 : i32
    %10 = arith.extui %9 : i1 to i32
    %c0_i32_9 = arith.constant 0 : i32
    %11 = arith.cmpi ne, %10, %c0_i32_9 : i32
    scf.if %11 {
      %c0_10 = arith.constant 0 : index
      %c0_11 = arith.constant 0 : index
      %12 = vector.load %arg6[%c0_10, %c0_11] : memref<256x128xf32, #tpu.memory_space<vmem>>, vector<256x128xf32>
      %c0_12 = arith.constant 0 : index
      %c0_13 = arith.constant 0 : index
      %13 = vector.load %arg5[%c0_12, %c0_13] : memref<1x128xf32, #tpu.memory_space<vmem>>, vector<1x128xf32>
      %14 = vector.broadcast %13 : vector<1x128xf32> to vector<256x128xf32>
      %15 = arith.addf %12, %14 : vector<256x128xf32>
      %c0_14 = arith.constant 0 : index
      %c0_15 = arith.constant 0 : index
      %16 = vector.load %arg6[%c0_14, %c0_15] : memref<256x128xf32, #tpu.memory_space<vmem>>, vector<256x128xf32>
      tpu.vector_store %arg6[%c0_14, %c0_15], %15 {strides = array<i32>} : memref<256x128xf32, #tpu.memory_space<vmem>>, vector<256x128xf32>,
    } else {
    }
    return
  }
  func.func @transform_0(%arg0: i32, %arg1: i32, %arg2: i32) -> (i32, i32) {
    %c0_i32 = arith.constant 0 : i32
    return %arg0, %arg2 : i32, i32
  }
  func.func @transform_1(%arg0: i32, %arg1: i32, %arg2: i32) -> (i32, i32) {
    %c0_i32 = arith.constant 0 : i32
    return %arg2, %arg1 : i32, i32
  }
  func.func @transform_2(%arg0: i32, %arg1: i32, %arg2: i32) -> (i32, i32) {
    %c0_i32 = arith.constant 0 : i32
    %c0_i32_0 = arith.constant 0 : i32
    return %c0_i32, %arg1 : i32, i32
  }
  func.func @transform_3(%arg0: i32, %arg1: i32, %arg2: i32) -> (i32, i32) {
    %c0_i32 = arith.constant 0 : i32
    return %arg0, %arg1 : i32, i32
  }
}

module attributes {stable_mosaic.version = 11 : i64} {
  func.func @_gemm_bias_kernel(%arg0: i32, %arg1: i32, %arg2: i32, %arg3: memref<256x384xbf16, #tpu.memory_space<vmem>>, %arg4: memref<384x128xbf16, #tpu.memory_space<vmem>>, %arg5: memref<1x128xf32, #tpu.memory_space<vmem>>, %arg6: memref<256x128xf32, #tpu.memory_space<vmem>>) attributes {dimension_semantics = [#tpu.dimension_semantics<parallel>, #tpu.dimension_semantics<parallel>, #tpu.dimension_semantics<arbitrary>], iteration_bounds = array<i64: 2, 1, 1>, scalar_prefetch = 0 : i64, scratch_operands = 0 : i64, tpu.core_type = #tpu.core_type<tc>, window_params = [{transform_indices = @transform_0, window_bounds = array<i64: 256, 384>}, {transform_indices = @transform_1, window_bounds = array<i64: 384, 128>}, {transform_indices = @transform_2, window_bounds = array<i64: 1, 128>}, {transform_indices = @transform_3, window_bounds = array<i64: 256, 128>}]} {
    %c0_i32 = arith.constant 0 : i32
    %0 = arith.cmpi eq, %arg2, %c0_i32 : i32
    %1 = arith.extui %0 : i1 to i32
    %c0_i32_0 = arith.constant 0 : i32
    %2 = arith.cmpi ne, %1, %c0_i32_0 : i32
    scf.if %2 {
      %cst_10 = arith.constant 0.000000e+00 : f32
      %12 = vector.broadcast %cst_10 : f32 to vector<256x128xf32>
      %c0_11 = arith.constant 0 : index
      %c0_12 = arith.constant 0 : index
      %13 = vector.load %arg6[%c0_11, %c0_12] : memref<256x128xf32, #tpu.memory_space<vmem>>, vector<256x128xf32>
      tpu.vector_store %arg6[%c0_11, %c0_12], %12 {strides = array<i32>} : memref<256x128xf32, #tpu.memory_space<vmem>>, vector<256x128xf32>,
    } else {
    }
    %c0 = arith.constant 0 : index
    %c0_1 = arith.constant 0 : index
    %3 = vector.load %arg6[%c0, %c0_1] : memref<256x128xf32, #tpu.memory_space<vmem>>, vector<256x128xf32>
    %c0_2 = arith.constant 0 : index
    %c0_3 = arith.constant 0 : index
    %4 = vector.load %arg3[%c0_2, %c0_3] : memref<256x384xbf16, #tpu.memory_space<vmem>>, vector<256x384xbf16>
    %c0_4 = arith.constant 0 : index
    %c0_5 = arith.constant 0 : index
    %5 = vector.load %arg4[%c0_4, %c0_5] : memref<384x128xbf16, #tpu.memory_space<vmem>>, vector<384x128xbf16>
    %cst = arith.constant dense<0.000000e+00> : vector<256x128xf32>
    %6 = tpu.matmul %4, %5, %cst {dimension_numbers = #tpu.dot_dimension_numbers<[1], [0], [0], [1], [0, 0, 1, 1], [], []>} : vector<256x384xbf16>, vector<384x128xbf16>, vector<256x128xf32> -> vector<256x128xf32>
    %7 = arith.addf %3, %6 : vector<256x128xf32>
    %c0_6 = arith.constant 0 : index
    %c0_7 = arith.constant 0 : index
    %8 = vector.load %arg6[%c0_6, %c0_7] : memref<256x128xf32, #tpu.memory_space<vmem>>, vector<256x128xf32>
    tpu.vector_store %arg6[%c0_6, %c0_7], %7 {strides = array<i32>} : memref<256x128xf32, #tpu.memory_space<vmem>>, vector<256x128xf32>,
    %c0_i32_8 = arith.constant 0 : i32
    %9 = arith.cmpi eq, %arg2, %c0_i32_8 : i32
    %10 = arith.extui %9 : i1 to i32
    %c0_i32_9 = arith.constant 0 : i32
    %11 = arith.cmpi ne, %10, %c0_i32_9 : i32
    scf.if %11 {
      %c0_10 = arith.constant 0 : index
      %c0_11 = arith.constant 0 : index
      %12 = vector.load %arg6[%c0_10, %c0_11] : memref<256x128xf32, #tpu.memory_space<vmem>>, vector<256x128xf32>
      %c0_12 = arith.constant 0 : index
      %c0_13 = arith.constant 0 : index
      %13 = vector.load %arg5[%c0_12, %c0_13] : memref<1x128xf32, #tpu.memory_space<vmem>>, vector<1x128xf32>
      %14 = vector.broadcast %13 : vector<1x128xf32> to vector<256x128xf32>
      %15 = arith.addf %12, %14 : vector<256x128xf32>
      %c0_14 = arith.constant 0 : index
      %c0_15 = arith.constant 0 : index
      %16 = vector.load %arg6[%c0_14, %c0_15] : memref<256x128xf32, #tpu.memory_space<vmem>>, vector<256x128xf32>
      tpu.vector_store %arg6[%c0_14, %c0_15], %15 {strides = array<i32>} : memref<256x128xf32, #tpu.memory_space<vmem>>, vector<256x128xf32>,
    } else {
    }
    return
  }
  func.func @transform_0(%arg0: i32, %arg1: i32, %arg2: i32) -> (i32, i32) {
    %c0_i32 = arith.constant 0 : i32
    return %arg0, %arg2 : i32, i32
  }
  func.func @transform_1(%arg0: i32, %arg1: i32, %arg2: i32) -> (i32, i32) {
    %c0_i32 = arith.constant 0 : i32
    return %arg2, %arg1 : i32, i32
  }
  func.func @transform_2(%arg0: i32, %arg1: i32, %arg2: i32) -> (i32, i32) {
    %c0_i32 = arith.constant 0 : i32
    %c0_i32_0 = arith.constant 0 : i32
    return %c0_i32, %arg1 : i32, i32
  }
  func.func @transform_3(%arg0: i32, %arg1: i32, %arg2: i32) -> (i32, i32) {
    %c0_i32 = arith.constant 0 : i32
    return %arg0, %arg1 : i32, i32
  }
}

module attributes {stable_mosaic.version = 11 : i64} {
  func.func @_gemm_bias_kernel(%arg0: i32, %arg1: i32, %arg2: i32, %arg3: memref<128x384xbf16, #tpu.memory_space<vmem>>, %arg4: memref<384x128xbf16, #tpu.memory_space<vmem>>, %arg5: memref<1x128xf32, #tpu.memory_space<vmem>>, %arg6: memref<128x128xf32, #tpu.memory_space<vmem>>) attributes {dimension_semantics = [#tpu.dimension_semantics<parallel>, #tpu.dimension_semantics<parallel>, #tpu.dimension_semantics<arbitrary>], iteration_bounds = array<i64: 1, 1, 1>, scalar_prefetch = 0 : i64, scratch_operands = 0 : i64, tpu.core_type = #tpu.core_type<tc>, window_params = [{transform_indices = @transform_0, window_bounds = array<i64: 128, 384>}, {transform_indices = @transform_1, window_bounds = array<i64: 384, 128>}, {transform_indices = @transform_2, window_bounds = array<i64: 1, 128>}, {transform_indices = @transform_3, window_bounds = array<i64: 128, 128>}]} {
    %c0_i32 = arith.constant 0 : i32
    %0 = arith.cmpi eq, %arg2, %c0_i32 : i32
    %1 = arith.extui %0 : i1 to i32
    %c0_i32_0 = arith.constant 0 : i32
    %2 = arith.cmpi ne, %1, %c0_i32_0 : i32
    scf.if %2 {
      %cst_10 = arith.constant 0.000000e+00 : f32
      %12 = vector.broadcast %cst_10 : f32 to vector<128x128xf32>
      %c0_11 = arith.constant 0 : index
      %c0_12 = arith.constant 0 : index
      %13 = vector.load %arg6[%c0_11, %c0_12] : memref<128x128xf32, #tpu.memory_space<vmem>>, vector<128x128xf32>
      tpu.vector_store %arg6[%c0_11, %c0_12], %12 {strides = array<i32>} : memref<128x128xf32, #tpu.memory_space<vmem>>, vector<128x128xf32>,
    } else {
    }
    %c0 = arith.constant 0 : index
    %c0_1 = arith.constant 0 : index
    %3 = vector.load %arg6[%c0, %c0_1] : memref<128x128xf32, #tpu.memory_space<vmem>>, vector<128x128xf32>
    %c0_2 = arith.constant 0 : index
    %c0_3 = arith.constant 0 : index
    %4 = vector.load %arg3[%c0_2, %c0_3] : memref<128x384xbf16, #tpu.memory_space<vmem>>, vector<128x384xbf16>
    %c0_4 = arith.constant 0 : index
    %c0_5 = arith.constant 0 : index
    %5 = vector.load %arg4[%c0_4, %c0_5] : memref<384x128xbf16, #tpu.memory_space<vmem>>, vector<384x128xbf16>
    %cst = arith.constant dense<0.000000e+00> : vector<128x128xf32>
    %6 = tpu.matmul %4, %5, %cst {dimension_numbers = #tpu.dot_dimension_numbers<[1], [0], [0], [1], [0, 0, 1, 1], [], []>} : vector<128x384xbf16>, vector<384x128xbf16>, vector<128x128xf32> -> vector<128x128xf32>
    %7 = arith.addf %3, %6 : vector<128x128xf32>
    %c0_6 = arith.constant 0 : index
    %c0_7 = arith.constant 0 : index
    %8 = vector.load %arg6[%c0_6, %c0_7] : memref<128x128xf32, #tpu.memory_space<vmem>>, vector<128x128xf32>
    tpu.vector_store %arg6[%c0_6, %c0_7], %7 {strides = array<i32>} : memref<128x128xf32, #tpu.memory_space<vmem>>, vector<128x128xf32>,
    %c0_i32_8 = arith.constant 0 : i32
    %9 = arith.cmpi eq, %arg2, %c0_i32_8 : i32
    %10 = arith.extui %9 : i1 to i32
    %c0_i32_9 = arith.constant 0 : i32
    %11 = arith.cmpi ne, %10, %c0_i32_9 : i32
    scf.if %11 {
      %c0_10 = arith.constant 0 : index
      %c0_11 = arith.constant 0 : index
      %12 = vector.load %arg6[%c0_10, %c0_11] : memref<128x128xf32, #tpu.memory_space<vmem>>, vector<128x128xf32>
      %c0_12 = arith.constant 0 : index
      %c0_13 = arith.constant 0 : index
      %13 = vector.load %arg5[%c0_12, %c0_13] : memref<1x128xf32, #tpu.memory_space<vmem>>, vector<1x128xf32>
      %14 = vector.broadcast %13 : vector<1x128xf32> to vector<128x128xf32>
      %15 = arith.addf %12, %14 : vector<128x128xf32>
      %c0_14 = arith.constant 0 : index
      %c0_15 = arith.constant 0 : index
      %16 = vector.load %arg6[%c0_14, %c0_15] : memref<128x128xf32, #tpu.memory_space<vmem>>, vector<128x128xf32>
      tpu.vector_store %arg6[%c0_14, %c0_15], %15 {strides = array<i32>} : memref<128x128xf32, #tpu.memory_space<vmem>>, vector<128x128xf32>,
    } else {
    }
    return
  }
  func.func @transform_0(%arg0: i32, %arg1: i32, %arg2: i32) -> (i32, i32) {
    %c0_i32 = arith.constant 0 : i32
    return %arg0, %arg2 : i32, i32
  }
  func.func @transform_1(%arg0: i32, %arg1: i32, %arg2: i32) -> (i32, i32) {
    %c0_i32 = arith.constant 0 : i32
    return %arg2, %arg1 : i32, i32
  }
  func.func @transform_2(%arg0: i32, %arg1: i32, %arg2: i32) -> (i32, i32) {
    %c0_i32 = arith.constant 0 : i32
    %c0_i32_0 = arith.constant 0 : i32
    return %c0_i32, %arg1 : i32, i32
  }
  func.func @transform_3(%arg0: i32, %arg1: i32, %arg2: i32) -> (i32, i32) {
    %c0_i32 = arith.constant 0 : i32
    return %arg0, %arg1 : i32, i32
  }
}

module attributes {stable_mosaic.version = 11 : i64} {
  func.func @_gemm_bias_kernel(%arg0: i32, %arg1: i32, %arg2: i32, %arg3: memref<128x128xbf16, #tpu.memory_space<vmem>>, %arg4: memref<128x128xbf16, #tpu.memory_space<vmem>>, %arg5: memref<1x128xf32, #tpu.memory_space<vmem>>, %arg6: memref<128x128xf32, #tpu.memory_space<vmem>>) attributes {dimension_semantics = [#tpu.dimension_semantics<parallel>, #tpu.dimension_semantics<parallel>, #tpu.dimension_semantics<arbitrary>], iteration_bounds = array<i64: 1, 1, 5>, scalar_prefetch = 0 : i64, scratch_operands = 0 : i64, tpu.core_type = #tpu.core_type<tc>, window_params = [{transform_indices = @transform_0, window_bounds = array<i64: 128, 128>}, {transform_indices = @transform_1, window_bounds = array<i64: 128, 128>}, {transform_indices = @transform_2, window_bounds = array<i64: 1, 128>}, {transform_indices = @transform_3, window_bounds = array<i64: 128, 128>}]} {
    %c0_i32 = arith.constant 0 : i32
    %0 = arith.cmpi eq, %arg2, %c0_i32 : i32
    %1 = arith.extui %0 : i1 to i32
    %c0_i32_0 = arith.constant 0 : i32
    %2 = arith.cmpi ne, %1, %c0_i32_0 : i32
    scf.if %2 {
      %cst_9 = arith.constant 0.000000e+00 : f32
      %12 = vector.broadcast %cst_9 : f32 to vector<128x128xf32>
      %c0_10 = arith.constant 0 : index
      %c0_11 = arith.constant 0 : index
      %13 = vector.load %arg6[%c0_10, %c0_11] : memref<128x128xf32, #tpu.memory_space<vmem>>, vector<128x128xf32>
      tpu.vector_store %arg6[%c0_10, %c0_11], %12 {strides = array<i32>} : memref<128x128xf32, #tpu.memory_space<vmem>>, vector<128x128xf32>,
    } else {
    }
    %c0 = arith.constant 0 : index
    %c0_1 = arith.constant 0 : index
    %3 = vector.load %arg6[%c0, %c0_1] : memref<128x128xf32, #tpu.memory_space<vmem>>, vector<128x128xf32>
    %c0_2 = arith.constant 0 : index
    %c0_3 = arith.constant 0 : index
    %4 = vector.load %arg3[%c0_2, %c0_3] : memref<128x128xbf16, #tpu.memory_space<vmem>>, vector<128x128xbf16>
    %c0_4 = arith.constant 0 : index
    %c0_5 = arith.constant 0 : index
    %5 = vector.load %arg4[%c0_4, %c0_5] : memref<128x128xbf16, #tpu.memory_space<vmem>>, vector<128x128xbf16>
    %cst = arith.constant dense<0.000000e+00> : vector<128x128xf32>
    %6 = tpu.matmul %4, %5, %cst {dimension_numbers = #tpu.dot_dimension_numbers<[1], [0], [0], [1], [0, 0, 1, 1], [], []>} : vector<128x128xbf16>, vector<128x128xbf16>, vector<128x128xf32> -> vector<128x128xf32>
    %7 = arith.addf %3, %6 : vector<128x128xf32>
    %c0_6 = arith.constant 0 : index
    %c0_7 = arith.constant 0 : index
    %8 = vector.load %arg6[%c0_6, %c0_7] : memref<128x128xf32, #tpu.memory_space<vmem>>, vector<128x128xf32>
    tpu.vector_store %arg6[%c0_6, %c0_7], %7 {strides = array<i32>} : memref<128x128xf32, #tpu.memory_space<vmem>>, vector<128x128xf32>,
    %c4_i32 = arith.constant 4 : i32
    %9 = arith.cmpi eq, %arg2, %c4_i32 : i32
    %10 = arith.extui %9 : i1 to i32
    %c0_i32_8 = arith.constant 0 : i32
    %11 = arith.cmpi ne, %10, %c0_i32_8 : i32
    scf.if %11 {
      %c0_9 = arith.constant 0 : index
      %c0_10 = arith.constant 0 : index
      %12 = vector.load %arg6[%c0_9, %c0_10] : memref<128x128xf32, #tpu.memory_space<vmem>>, vector<128x128xf32>
      %c0_11 = arith.constant 0 : index
      %c0_12 = arith.constant 0 : index
      %13 = vector.load %arg5[%c0_11, %c0_12] : memref<1x128xf32, #tpu.memory_space<vmem>>, vector<1x128xf32>
      %14 = vector.broadcast %13 : vector<1x128xf32> to vector<128x128xf32>
      %15 = arith.addf %12, %14 : vector<128x128xf32>
      %c0_13 = arith.constant 0 : index
      %c0_14 = arith.constant 0 : index
      %16 = vector.load %arg6[%c0_13, %c0_14] : memref<128x128xf32, #tpu.memory_space<vmem>>, vector<128x128xf32>
      tpu.vector_store %arg6[%c0_13, %c0_14], %15 {strides = array<i32>} : memref<128x128xf32, #tpu.memory_space<vmem>>, vector<128x128xf32>,
    } else {
    }
    return
  }
  func.func @transform_0(%arg0: i32, %arg1: i32, %arg2: i32) -> (i32, i32) {
    %c0_i32 = arith.constant 0 : i32
    return %arg0, %arg2 : i32, i32
  }
  func.func @transform_1(%arg0: i32, %arg1: i32, %arg2: i32) -> (i32, i32) {
    %c0_i32 = arith.constant 0 : i32
    return %arg2, %arg1 : i32, i32
  }
  func.func @transform_2(%arg0: i32, %arg1: i32, %arg2: i32) -> (i32, i32) {
    %c0_i32 = arith.constant 0 : i32
    %c0_i32_0 = arith.constant 0 : i32
    return %c0_i32, %arg1 : i32, i32
  }
  func.func @transform_3(%arg0: i32, %arg1: i32, %arg2: i32) -> (i32, i32) {
    %c0_i32 = arith.constant 0 : i32
    return %arg0, %arg1 : i32, i32
  }
}

module attributes {stable_mosaic.version = 11 : i64} {
  func.func @_gemm_bias_kernel(%arg0: i32, %arg1: i32, %arg2: i32, %arg3: memref<128x128xbf16, #tpu.memory_space<vmem>>, %arg4: memref<128x256xbf16, #tpu.memory_space<vmem>>, %arg5: memref<1x256xf32, #tpu.memory_space<vmem>>, %arg6: memref<128x256xf32, #tpu.memory_space<vmem>>) attributes {dimension_semantics = [#tpu.dimension_semantics<parallel>, #tpu.dimension_semantics<parallel>, #tpu.dimension_semantics<arbitrary>], iteration_bounds = array<i64: 1, 1, 1>, scalar_prefetch = 0 : i64, scratch_operands = 0 : i64, tpu.core_type = #tpu.core_type<tc>, window_params = [{transform_indices = @transform_0, window_bounds = array<i64: 128, 128>}, {transform_indices = @transform_1, window_bounds = array<i64: 128, 256>}, {transform_indices = @transform_2, window_bounds = array<i64: 1, 256>}, {transform_indices = @transform_3, window_bounds = array<i64: 128, 256>}]} {
    %c0_i32 = arith.constant 0 : i32
    %0 = arith.cmpi eq, %arg2, %c0_i32 : i32
    %1 = arith.extui %0 : i1 to i32
    %c0_i32_0 = arith.constant 0 : i32
    %2 = arith.cmpi ne, %1, %c0_i32_0 : i32
    scf.if %2 {
      %cst_10 = arith.constant 0.000000e+00 : f32
      %12 = vector.broadcast %cst_10 : f32 to vector<128x256xf32>
      %c0_11 = arith.constant 0 : index
      %c0_12 = arith.constant 0 : index
      %13 = vector.load %arg6[%c0_11, %c0_12] : memref<128x256xf32, #tpu.memory_space<vmem>>, vector<128x256xf32>
      tpu.vector_store %arg6[%c0_11, %c0_12], %12 {strides = array<i32>} : memref<128x256xf32, #tpu.memory_space<vmem>>, vector<128x256xf32>,
    } else {
    }
    %c0 = arith.constant 0 : index
    %c0_1 = arith.constant 0 : index
    %3 = vector.load %arg6[%c0, %c0_1] : memref<128x256xf32, #tpu.memory_space<vmem>>, vector<128x256xf32>
    %c0_2 = arith.constant 0 : index
    %c0_3 = arith.constant 0 : index
    %4 = vector.load %arg3[%c0_2, %c0_3] : memref<128x128xbf16, #tpu.memory_space<vmem>>, vector<128x128xbf16>
    %c0_4 = arith.constant 0 : index
    %c0_5 = arith.constant 0 : index
    %5 = vector.load %arg4[%c0_4, %c0_5] : memref<128x256xbf16, #tpu.memory_space<vmem>>, vector<128x256xbf16>
    %cst = arith.constant dense<0.000000e+00> : vector<128x256xf32>
    %6 = tpu.matmul %4, %5, %cst {dimension_numbers = #tpu.dot_dimension_numbers<[1], [0], [0], [1], [0, 0, 1, 1], [], []>} : vector<128x128xbf16>, vector<128x256xbf16>, vector<128x256xf32> -> vector<128x256xf32>
    %7 = arith.addf %3, %6 : vector<128x256xf32>
    %c0_6 = arith.constant 0 : index
    %c0_7 = arith.constant 0 : index
    %8 = vector.load %arg6[%c0_6, %c0_7] : memref<128x256xf32, #tpu.memory_space<vmem>>, vector<128x256xf32>
    tpu.vector_store %arg6[%c0_6, %c0_7], %7 {strides = array<i32>} : memref<128x256xf32, #tpu.memory_space<vmem>>, vector<128x256xf32>,
    %c0_i32_8 = arith.constant 0 : i32
    %9 = arith.cmpi eq, %arg2, %c0_i32_8 : i32
    %10 = arith.extui %9 : i1 to i32
    %c0_i32_9 = arith.constant 0 : i32
    %11 = arith.cmpi ne, %10, %c0_i32_9 : i32
    scf.if %11 {
      %c0_10 = arith.constant 0 : index
      %c0_11 = arith.constant 0 : index
      %12 = vector.load %arg6[%c0_10, %c0_11] : memref<128x256xf32, #tpu.memory_space<vmem>>, vector<128x256xf32>
      %c0_12 = arith.constant 0 : index
      %c0_13 = arith.constant 0 : index
      %13 = vector.load %arg5[%c0_12, %c0_13] : memref<1x256xf32, #tpu.memory_space<vmem>>, vector<1x256xf32>
      %14 = vector.broadcast %13 : vector<1x256xf32> to vector<128x256xf32>
      %15 = arith.addf %12, %14 : vector<128x256xf32>
      %c0_14 = arith.constant 0 : index
      %c0_15 = arith.constant 0 : index
      %16 = vector.load %arg6[%c0_14, %c0_15] : memref<128x256xf32, #tpu.memory_space<vmem>>, vector<128x256xf32>
      tpu.vector_store %arg6[%c0_14, %c0_15], %15 {strides = array<i32>} : memref<128x256xf32, #tpu.memory_space<vmem>>, vector<128x256xf32>,
    } else {
    }
    return
  }
  func.func @transform_0(%arg0: i32, %arg1: i32, %arg2: i32) -> (i32, i32) {
    %c0_i32 = arith.constant 0 : i32
    return %arg0, %arg2 : i32, i32
  }
  func.func @transform_1(%arg0: i32, %arg1: i32, %arg2: i32) -> (i32, i32) {
    %c0_i32 = arith.constant 0 : i32
    return %arg2, %arg1 : i32, i32
  }
  func.func @transform_2(%arg0: i32, %arg1: i32, %arg2: i32) -> (i32, i32) {
    %c0_i32 = arith.constant 0 : i32
    %c0_i32_0 = arith.constant 0 : i32
    return %c0_i32, %arg1 : i32, i32
  }
  func.func @transform_3(%arg0: i32, %arg1: i32, %arg2: i32) -> (i32, i32) {
    %c0_i32 = arith.constant 0 : i32
    return %arg0, %arg1 : i32, i32
  }
}

module attributes {stable_mosaic.version = 11 : i64} {
  func.func @_gemm_bias_kernel(%arg0: i32, %arg1: i32, %arg2: i32, %arg3: memref<128x384xbf16, #tpu.memory_space<vmem>>, %arg4: memref<384x128xbf16, #tpu.memory_space<vmem>>, %arg5: memref<1x128xf32, #tpu.memory_space<vmem>>, %arg6: memref<128x128xf32, #tpu.memory_space<vmem>>) attributes {dimension_semantics = [#tpu.dimension_semantics<parallel>, #tpu.dimension_semantics<parallel>, #tpu.dimension_semantics<arbitrary>], iteration_bounds = array<i64: 1, 1, 6>, scalar_prefetch = 0 : i64, scratch_operands = 0 : i64, tpu.core_type = #tpu.core_type<tc>, window_params = [{transform_indices = @transform_0, window_bounds = array<i64: 128, 384>}, {transform_indices = @transform_1, window_bounds = array<i64: 384, 128>}, {transform_indices = @transform_2, window_bounds = array<i64: 1, 128>}, {transform_indices = @transform_3, window_bounds = array<i64: 128, 128>}]} {
    %c0_i32 = arith.constant 0 : i32
    %0 = arith.cmpi eq, %arg2, %c0_i32 : i32
    %1 = arith.extui %0 : i1 to i32
    %c0_i32_0 = arith.constant 0 : i32
    %2 = arith.cmpi ne, %1, %c0_i32_0 : i32
    scf.if %2 {
      %cst_9 = arith.constant 0.000000e+00 : f32
      %12 = vector.broadcast %cst_9 : f32 to vector<128x128xf32>
      %c0_10 = arith.constant 0 : index
      %c0_11 = arith.constant 0 : index
      %13 = vector.load %arg6[%c0_10, %c0_11] : memref<128x128xf32, #tpu.memory_space<vmem>>, vector<128x128xf32>
      tpu.vector_store %arg6[%c0_10, %c0_11], %12 {strides = array<i32>} : memref<128x128xf32, #tpu.memory_space<vmem>>, vector<128x128xf32>,
    } else {
    }
    %c0 = arith.constant 0 : index
    %c0_1 = arith.constant 0 : index
    %3 = vector.load %arg6[%c0, %c0_1] : memref<128x128xf32, #tpu.memory_space<vmem>>, vector<128x128xf32>
    %c0_2 = arith.constant 0 : index
    %c0_3 = arith.constant 0 : index
    %4 = vector.load %arg3[%c0_2, %c0_3] : memref<128x384xbf16, #tpu.memory_space<vmem>>, vector<128x384xbf16>
    %c0_4 = arith.constant 0 : index
    %c0_5 = arith.constant 0 : index
    %5 = vector.load %arg4[%c0_4, %c0_5] : memref<384x128xbf16, #tpu.memory_space<vmem>>, vector<384x128xbf16>
    %cst = arith.constant dense<0.000000e+00> : vector<128x128xf32>
    %6 = tpu.matmul %4, %5, %cst {dimension_numbers = #tpu.dot_dimension_numbers<[1], [0], [0], [1], [0, 0, 1, 1], [], []>} : vector<128x384xbf16>, vector<384x128xbf16>, vector<128x128xf32> -> vector<128x128xf32>
    %7 = arith.addf %3, %6 : vector<128x128xf32>
    %c0_6 = arith.constant 0 : index
    %c0_7 = arith.constant 0 : index
    %8 = vector.load %arg6[%c0_6, %c0_7] : memref<128x128xf32, #tpu.memory_space<vmem>>, vector<128x128xf32>
    tpu.vector_store %arg6[%c0_6, %c0_7], %7 {strides = array<i32>} : memref<128x128xf32, #tpu.memory_space<vmem>>, vector<128x128xf32>,
    %c5_i32 = arith.constant 5 : i32
    %9 = arith.cmpi eq, %arg2, %c5_i32 : i32
    %10 = arith.extui %9 : i1 to i32
    %c0_i32_8 = arith.constant 0 : i32
    %11 = arith.cmpi ne, %10, %c0_i32_8 : i32
    scf.if %11 {
      %c0_9 = arith.constant 0 : index
      %c0_10 = arith.constant 0 : index
      %12 = vector.load %arg6[%c0_9, %c0_10] : memref<128x128xf32, #tpu.memory_space<vmem>>, vector<128x128xf32>
      %c0_11 = arith.constant 0 : index
      %c0_12 = arith.constant 0 : index
      %13 = vector.load %arg5[%c0_11, %c0_12] : memref<1x128xf32, #tpu.memory_space<vmem>>, vector<1x128xf32>
      %14 = vector.broadcast %13 : vector<1x128xf32> to vector<128x128xf32>
      %15 = arith.addf %12, %14 : vector<128x128xf32>
      %c0_13 = arith.constant 0 : index
      %c0_14 = arith.constant 0 : index
      %16 = vector.load %arg6[%c0_13, %c0_14] : memref<128x128xf32, #tpu.memory_space<vmem>>, vector<128x128xf32>
      tpu.vector_store %arg6[%c0_13, %c0_14], %15 {strides = array<i32>} : memref<128x128xf32, #tpu.memory_space<vmem>>, vector<128x128xf32>,
    } else {
    }
    return
  }
  func.func @transform_0(%arg0: i32, %arg1: i32, %arg2: i32) -> (i32, i32) {
    %c0_i32 = arith.constant 0 : i32
    return %arg0, %arg2 : i32, i32
  }
  func.func @transform_1(%arg0: i32, %arg1: i32, %arg2: i32) -> (i32, i32) {
    %c0_i32 = arith.constant 0 : i32
    return %arg2, %arg1 : i32, i32
  }
  func.func @transform_2(%arg0: i32, %arg1: i32, %arg2: i32) -> (i32, i32) {
    %c0_i32 = arith.constant 0 : i32
    %c0_i32_0 = arith.constant 0 : i32
    return %c0_i32, %arg1 : i32, i32
  }
  func.func @transform_3(%arg0: i32, %arg1: i32, %arg2: i32) -> (i32, i32) {
    %c0_i32 = arith.constant 0 : i32
    return %arg0, %arg1 : i32, i32
  }
}

module attributes {stable_mosaic.version = 11 : i64} {
  func.func @_gemm_bias_kernel(%arg0: i32, %arg1: i32, %arg2: i32, %arg3: memref<128x128xbf16, #tpu.memory_space<vmem>>, %arg4: memref<128x128xbf16, #tpu.memory_space<vmem>>, %arg5: memref<1x128xf32, #tpu.memory_space<vmem>>, %arg6: memref<128x128xf32, #tpu.memory_space<vmem>>) attributes {dimension_semantics = [#tpu.dimension_semantics<parallel>, #tpu.dimension_semantics<parallel>, #tpu.dimension_semantics<arbitrary>], iteration_bounds = array<i64: 1, 1, 23>, scalar_prefetch = 0 : i64, scratch_operands = 0 : i64, tpu.core_type = #tpu.core_type<tc>, window_params = [{transform_indices = @transform_0, window_bounds = array<i64: 128, 128>}, {transform_indices = @transform_1, window_bounds = array<i64: 128, 128>}, {transform_indices = @transform_2, window_bounds = array<i64: 1, 128>}, {transform_indices = @transform_3, window_bounds = array<i64: 128, 128>}]} {
    %c0_i32 = arith.constant 0 : i32
    %0 = arith.cmpi eq, %arg2, %c0_i32 : i32
    %1 = arith.extui %0 : i1 to i32
    %c0_i32_0 = arith.constant 0 : i32
    %2 = arith.cmpi ne, %1, %c0_i32_0 : i32
    scf.if %2 {
      %cst_9 = arith.constant 0.000000e+00 : f32
      %12 = vector.broadcast %cst_9 : f32 to vector<128x128xf32>
      %c0_10 = arith.constant 0 : index
      %c0_11 = arith.constant 0 : index
      %13 = vector.load %arg6[%c0_10, %c0_11] : memref<128x128xf32, #tpu.memory_space<vmem>>, vector<128x128xf32>
      tpu.vector_store %arg6[%c0_10, %c0_11], %12 {strides = array<i32>} : memref<128x128xf32, #tpu.memory_space<vmem>>, vector<128x128xf32>,
    } else {
    }
    %c0 = arith.constant 0 : index
    %c0_1 = arith.constant 0 : index
    %3 = vector.load %arg6[%c0, %c0_1] : memref<128x128xf32, #tpu.memory_space<vmem>>, vector<128x128xf32>
    %c0_2 = arith.constant 0 : index
    %c0_3 = arith.constant 0 : index
    %4 = vector.load %arg3[%c0_2, %c0_3] : memref<128x128xbf16, #tpu.memory_space<vmem>>, vector<128x128xbf16>
    %c0_4 = arith.constant 0 : index
    %c0_5 = arith.constant 0 : index
    %5 = vector.load %arg4[%c0_4, %c0_5] : memref<128x128xbf16, #tpu.memory_space<vmem>>, vector<128x128xbf16>
    %cst = arith.constant dense<0.000000e+00> : vector<128x128xf32>
    %6 = tpu.matmul %4, %5, %cst {dimension_numbers = #tpu.dot_dimension_numbers<[1], [0], [0], [1], [0, 0, 1, 1], [], []>} : vector<128x128xbf16>, vector<128x128xbf16>, vector<128x128xf32> -> vector<128x128xf32>
    %7 = arith.addf %3, %6 : vector<128x128xf32>
    %c0_6 = arith.constant 0 : index
    %c0_7 = arith.constant 0 : index
    %8 = vector.load %arg6[%c0_6, %c0_7] : memref<128x128xf32, #tpu.memory_space<vmem>>, vector<128x128xf32>
    tpu.vector_store %arg6[%c0_6, %c0_7], %7 {strides = array<i32>} : memref<128x128xf32, #tpu.memory_space<vmem>>, vector<128x128xf32>,
    %c22_i32 = arith.constant 22 : i32
    %9 = arith.cmpi eq, %arg2, %c22_i32 : i32
    %10 = arith.extui %9 : i1 to i32
    %c0_i32_8 = arith.constant 0 : i32
    %11 = arith.cmpi ne, %10, %c0_i32_8 : i32
    scf.if %11 {
      %c0_9 = arith.constant 0 : index
      %c0_10 = arith.constant 0 : index
      %12 = vector.load %arg6[%c0_9, %c0_10] : memref<128x128xf32, #tpu.memory_space<vmem>>, vector<128x128xf32>
      %c0_11 = arith.constant 0 : index
      %c0_12 = arith.constant 0 : index
      %13 = vector.load %arg5[%c0_11, %c0_12] : memref<1x128xf32, #tpu.memory_space<vmem>>, vector<1x128xf32>
      %14 = vector.broadcast %13 : vector<1x128xf32> to vector<128x128xf32>
      %15 = arith.addf %12, %14 : vector<128x128xf32>
      %c0_13 = arith.constant 0 : index
      %c0_14 = arith.constant 0 : index
      %16 = vector.load %arg6[%c0_13, %c0_14] : memref<128x128xf32, #tpu.memory_space<vmem>>, vector<128x128xf32>
      tpu.vector_store %arg6[%c0_13, %c0_14], %15 {strides = array<i32>} : memref<128x128xf32, #tpu.memory_space<vmem>>, vector<128x128xf32>,
    } else {
    }
    return
  }
  func.func @transform_0(%arg0: i32, %arg1: i32, %arg2: i32) -> (i32, i32) {
    %c0_i32 = arith.constant 0 : i32
    return %arg0, %arg2 : i32, i32
  }
  func.func @transform_1(%arg0: i32, %arg1: i32, %arg2: i32) -> (i32, i32) {
    %c0_i32 = arith.constant 0 : i32
    return %arg2, %arg1 : i32, i32
  }
  func.func @transform_2(%arg0: i32, %arg1: i32, %arg2: i32) -> (i32, i32) {
    %c0_i32 = arith.constant 0 : i32
    %c0_i32_0 = arith.constant 0 : i32
    return %c0_i32, %arg1 : i32, i32
  }
  func.func @transform_3(%arg0: i32, %arg1: i32, %arg2: i32) -> (i32, i32) {
    %c0_i32 = arith.constant 0 : i32
    return %arg0, %arg1 : i32, i32
  }
}

module attributes {stable_mosaic.version = 11 : i64} {
  func.func @_gemm_bias_kernel(%arg0: i32, %arg1: i32, %arg2: i32, %arg3: memref<128x384xbf16, #tpu.memory_space<vmem>>, %arg4: memref<384x128xbf16, #tpu.memory_space<vmem>>, %arg5: memref<1x128xf32, #tpu.memory_space<vmem>>, %arg6: memref<128x128xf32, #tpu.memory_space<vmem>>) attributes {dimension_semantics = [#tpu.dimension_semantics<parallel>, #tpu.dimension_semantics<parallel>, #tpu.dimension_semantics<arbitrary>], iteration_bounds = array<i64: 1, 1, 9>, scalar_prefetch = 0 : i64, scratch_operands = 0 : i64, tpu.core_type = #tpu.core_type<tc>, window_params = [{transform_indices = @transform_0, window_bounds = array<i64: 128, 384>}, {transform_indices = @transform_1, window_bounds = array<i64: 384, 128>}, {transform_indices = @transform_2, window_bounds = array<i64: 1, 128>}, {transform_indices = @transform_3, window_bounds = array<i64: 128, 128>}]} {
    %c0_i32 = arith.constant 0 : i32
    %0 = arith.cmpi eq, %arg2, %c0_i32 : i32
    %1 = arith.extui %0 : i1 to i32
    %c0_i32_0 = arith.constant 0 : i32
    %2 = arith.cmpi ne, %1, %c0_i32_0 : i32
    scf.if %2 {
      %cst_9 = arith.constant 0.000000e+00 : f32
      %12 = vector.broadcast %cst_9 : f32 to vector<128x128xf32>
      %c0_10 = arith.constant 0 : index
      %c0_11 = arith.constant 0 : index
      %13 = vector.load %arg6[%c0_10, %c0_11] : memref<128x128xf32, #tpu.memory_space<vmem>>, vector<128x128xf32>
      tpu.vector_store %arg6[%c0_10, %c0_11], %12 {strides = array<i32>} : memref<128x128xf32, #tpu.memory_space<vmem>>, vector<128x128xf32>,
    } else {
    }
    %c0 = arith.constant 0 : index
    %c0_1 = arith.constant 0 : index
    %3 = vector.load %arg6[%c0, %c0_1] : memref<128x128xf32, #tpu.memory_space<vmem>>, vector<128x128xf32>
    %c0_2 = arith.constant 0 : index
    %c0_3 = arith.constant 0 : index
    %4 = vector.load %arg3[%c0_2, %c0_3] : memref<128x384xbf16, #tpu.memory_space<vmem>>, vector<128x384xbf16>
    %c0_4 = arith.constant 0 : index
    %c0_5 = arith.constant 0 : index
    %5 = vector.load %arg4[%c0_4, %c0_5] : memref<384x128xbf16, #tpu.memory_space<vmem>>, vector<384x128xbf16>
    %cst = arith.constant dense<0.000000e+00> : vector<128x128xf32>
    %6 = tpu.matmul %4, %5, %cst {dimension_numbers = #tpu.dot_dimension_numbers<[1], [0], [0], [1], [0, 0, 1, 1], [], []>} : vector<128x384xbf16>, vector<384x128xbf16>, vector<128x128xf32> -> vector<128x128xf32>
    %7 = arith.addf %3, %6 : vector<128x128xf32>
    %c0_6 = arith.constant 0 : index
    %c0_7 = arith.constant 0 : index
    %8 = vector.load %arg6[%c0_6, %c0_7] : memref<128x128xf32, #tpu.memory_space<vmem>>, vector<128x128xf32>
    tpu.vector_store %arg6[%c0_6, %c0_7], %7 {strides = array<i32>} : memref<128x128xf32, #tpu.memory_space<vmem>>, vector<128x128xf32>,
    %c8_i32 = arith.constant 8 : i32
    %9 = arith.cmpi eq, %arg2, %c8_i32 : i32
    %10 = arith.extui %9 : i1 to i32
    %c0_i32_8 = arith.constant 0 : i32
    %11 = arith.cmpi ne, %10, %c0_i32_8 : i32
    scf.if %11 {
      %c0_9 = arith.constant 0 : index
      %c0_10 = arith.constant 0 : index
      %12 = vector.load %arg6[%c0_9, %c0_10] : memref<128x128xf32, #tpu.memory_space<vmem>>, vector<128x128xf32>
      %c0_11 = arith.constant 0 : index
      %c0_12 = arith.constant 0 : index
      %13 = vector.load %arg5[%c0_11, %c0_12] : memref<1x128xf32, #tpu.memory_space<vmem>>, vector<1x128xf32>
      %14 = vector.broadcast %13 : vector<1x128xf32> to vector<128x128xf32>
      %15 = arith.addf %12, %14 : vector<128x128xf32>
      %c0_13 = arith.constant 0 : index
      %c0_14 = arith.constant 0 : index
      %16 = vector.load %arg6[%c0_13, %c0_14] : memref<128x128xf32, #tpu.memory_space<vmem>>, vector<128x128xf32>
      tpu.vector_store %arg6[%c0_13, %c0_14], %15 {strides = array<i32>} : memref<128x128xf32, #tpu.memory_space<vmem>>, vector<128x128xf32>,
    } else {
    }
    return
  }
  func.func @transform_0(%arg0: i32, %arg1: i32, %arg2: i32) -> (i32, i32) {
    %c0_i32 = arith.constant 0 : i32
    return %arg0, %arg2 : i32, i32
  }
  func.func @transform_1(%arg0: i32, %arg1: i32, %arg2: i32) -> (i32, i32) {
    %c0_i32 = arith.constant 0 : i32
    return %arg2, %arg1 : i32, i32
  }
  func.func @transform_2(%arg0: i32, %arg1: i32, %arg2: i32) -> (i32, i32) {
    %c0_i32 = arith.constant 0 : i32
    %c0_i32_0 = arith.constant 0 : i32
    return %c0_i32, %arg1 : i32, i32
  }
  func.func @transform_3(%arg0: i32, %arg1: i32, %arg2: i32) -> (i32, i32) {
    %c0_i32 = arith.constant 0 : i32
    return %arg0, %arg1 : i32, i32
  }
}

module attributes {stable_mosaic.version = 11 : i64} {
  func.func @_gemm_bias_kernel(%arg0: i32, %arg1: i32, %arg2: i32, %arg3: memref<256x384xbf16, #tpu.memory_space<vmem>>, %arg4: memref<384x128xbf16, #tpu.memory_space<vmem>>, %arg5: memref<1x128xf32, #tpu.memory_space<vmem>>, %arg6: memref<256x128xf32, #tpu.memory_space<vmem>>) attributes {dimension_semantics = [#tpu.dimension_semantics<parallel>, #tpu.dimension_semantics<parallel>, #tpu.dimension_semantics<arbitrary>], iteration_bounds = array<i64: 2, 1, 3>, scalar_prefetch = 0 : i64, scratch_operands = 0 : i64, tpu.core_type = #tpu.core_type<tc>, window_params = [{transform_indices = @transform_0, window_bounds = array<i64: 256, 384>}, {transform_indices = @transform_1, window_bounds = array<i64: 384, 128>}, {transform_indices = @transform_2, window_bounds = array<i64: 1, 128>}, {transform_indices = @transform_3, window_bounds = array<i64: 256, 128>}]} {
    %c0_i32 = arith.constant 0 : i32
    %0 = arith.cmpi eq, %arg2, %c0_i32 : i32
    %1 = arith.extui %0 : i1 to i32
    %c0_i32_0 = arith.constant 0 : i32
    %2 = arith.cmpi ne, %1, %c0_i32_0 : i32
    scf.if %2 {
      %cst_9 = arith.constant 0.000000e+00 : f32
      %12 = vector.broadcast %cst_9 : f32 to vector<256x128xf32>
      %c0_10 = arith.constant 0 : index
      %c0_11 = arith.constant 0 : index
      %13 = vector.load %arg6[%c0_10, %c0_11] : memref<256x128xf32, #tpu.memory_space<vmem>>, vector<256x128xf32>
      tpu.vector_store %arg6[%c0_10, %c0_11], %12 {strides = array<i32>} : memref<256x128xf32, #tpu.memory_space<vmem>>, vector<256x128xf32>,
    } else {
    }
    %c0 = arith.constant 0 : index
    %c0_1 = arith.constant 0 : index
    %3 = vector.load %arg6[%c0, %c0_1] : memref<256x128xf32, #tpu.memory_space<vmem>>, vector<256x128xf32>
    %c0_2 = arith.constant 0 : index
    %c0_3 = arith.constant 0 : index
    %4 = vector.load %arg3[%c0_2, %c0_3] : memref<256x384xbf16, #tpu.memory_space<vmem>>, vector<256x384xbf16>
    %c0_4 = arith.constant 0 : index
    %c0_5 = arith.constant 0 : index
    %5 = vector.load %arg4[%c0_4, %c0_5] : memref<384x128xbf16, #tpu.memory_space<vmem>>, vector<384x128xbf16>
    %cst = arith.constant dense<0.000000e+00> : vector<256x128xf32>
    %6 = tpu.matmul %4, %5, %cst {dimension_numbers = #tpu.dot_dimension_numbers<[1], [0], [0], [1], [0, 0, 1, 1], [], []>} : vector<256x384xbf16>, vector<384x128xbf16>, vector<256x128xf32> -> vector<256x128xf32>
    %7 = arith.addf %3, %6 : vector<256x128xf32>
    %c0_6 = arith.constant 0 : index
    %c0_7 = arith.constant 0 : index
    %8 = vector.load %arg6[%c0_6, %c0_7] : memref<256x128xf32, #tpu.memory_space<vmem>>, vector<256x128xf32>
    tpu.vector_store %arg6[%c0_6, %c0_7], %7 {strides = array<i32>} : memref<256x128xf32, #tpu.memory_space<vmem>>, vector<256x128xf32>,
    %c2_i32 = arith.constant 2 : i32
    %9 = arith.cmpi eq, %arg2, %c2_i32 : i32
    %10 = arith.extui %9 : i1 to i32
    %c0_i32_8 = arith.constant 0 : i32
    %11 = arith.cmpi ne, %10, %c0_i32_8 : i32
    scf.if %11 {
      %c0_9 = arith.constant 0 : index
      %c0_10 = arith.constant 0 : index
      %12 = vector.load %arg6[%c0_9, %c0_10] : memref<256x128xf32, #tpu.memory_space<vmem>>, vector<256x128xf32>
      %c0_11 = arith.constant 0 : index
      %c0_12 = arith.constant 0 : index
      %13 = vector.load %arg5[%c0_11, %c0_12] : memref<1x128xf32, #tpu.memory_space<vmem>>, vector<1x128xf32>
      %14 = vector.broadcast %13 : vector<1x128xf32> to vector<256x128xf32>
      %15 = arith.addf %12, %14 : vector<256x128xf32>
      %c0_13 = arith.constant 0 : index
      %c0_14 = arith.constant 0 : index
      %16 = vector.load %arg6[%c0_13, %c0_14] : memref<256x128xf32, #tpu.memory_space<vmem>>, vector<256x128xf32>
      tpu.vector_store %arg6[%c0_13, %c0_14], %15 {strides = array<i32>} : memref<256x128xf32, #tpu.memory_space<vmem>>, vector<256x128xf32>,
    } else {
    }
    return
  }
  func.func @transform_0(%arg0: i32, %arg1: i32, %arg2: i32) -> (i32, i32) {
    %c0_i32 = arith.constant 0 : i32
    return %arg0, %arg2 : i32, i32
  }
  func.func @transform_1(%arg0: i32, %arg1: i32, %arg2: i32) -> (i32, i32) {
    %c0_i32 = arith.constant 0 : i32
    return %arg2, %arg1 : i32, i32
  }
  func.func @transform_2(%arg0: i32, %arg1: i32, %arg2: i32) -> (i32, i32) {
    %c0_i32 = arith.constant 0 : i32
    %c0_i32_0 = arith.constant 0 : i32
    return %c0_i32, %arg1 : i32, i32
  }
  func.func @transform_3(%arg0: i32, %arg1: i32, %arg2: i32) -> (i32, i32) {
    %c0_i32 = arith.constant 0 : i32
    return %arg0, %arg1 : i32, i32
  }
}

module attributes {stable_mosaic.version = 11 : i64} {
  func.func @_gemm_bias_kernel(%arg0: i32, %arg1: i32, %arg2: i32, %arg3: memref<256x512xbf16, #tpu.memory_space<vmem>>, %arg4: memref<512x128xbf16, #tpu.memory_space<vmem>>, %arg5: memref<1x128xf32, #tpu.memory_space<vmem>>, %arg6: memref<256x128xf32, #tpu.memory_space<vmem>>) attributes {dimension_semantics = [#tpu.dimension_semantics<parallel>, #tpu.dimension_semantics<parallel>, #tpu.dimension_semantics<arbitrary>], iteration_bounds = array<i64: 2, 1, 3>, scalar_prefetch = 0 : i64, scratch_operands = 0 : i64, tpu.core_type = #tpu.core_type<tc>, window_params = [{transform_indices = @transform_0, window_bounds = array<i64: 256, 512>}, {transform_indices = @transform_1, window_bounds = array<i64: 512, 128>}, {transform_indices = @transform_2, window_bounds = array<i64: 1, 128>}, {transform_indices = @transform_3, window_bounds = array<i64: 256, 128>}]} {
    %c0_i32 = arith.constant 0 : i32
    %0 = arith.cmpi eq, %arg2, %c0_i32 : i32
    %1 = arith.extui %0 : i1 to i32
    %c0_i32_0 = arith.constant 0 : i32
    %2 = arith.cmpi ne, %1, %c0_i32_0 : i32
    scf.if %2 {
      %cst_9 = arith.constant 0.000000e+00 : f32
      %12 = vector.broadcast %cst_9 : f32 to vector<256x128xf32>
      %c0_10 = arith.constant 0 : index
      %c0_11 = arith.constant 0 : index
      %13 = vector.load %arg6[%c0_10, %c0_11] : memref<256x128xf32, #tpu.memory_space<vmem>>, vector<256x128xf32>
      tpu.vector_store %arg6[%c0_10, %c0_11], %12 {strides = array<i32>} : memref<256x128xf32, #tpu.memory_space<vmem>>, vector<256x128xf32>,
    } else {
    }
    %c0 = arith.constant 0 : index
    %c0_1 = arith.constant 0 : index
    %3 = vector.load %arg6[%c0, %c0_1] : memref<256x128xf32, #tpu.memory_space<vmem>>, vector<256x128xf32>
    %c0_2 = arith.constant 0 : index
    %c0_3 = arith.constant 0 : index
    %4 = vector.load %arg3[%c0_2, %c0_3] : memref<256x512xbf16, #tpu.memory_space<vmem>>, vector<256x512xbf16>
    %c0_4 = arith.constant 0 : index
    %c0_5 = arith.constant 0 : index
    %5 = vector.load %arg4[%c0_4, %c0_5] : memref<512x128xbf16, #tpu.memory_space<vmem>>, vector<512x128xbf16>
    %cst = arith.constant dense<0.000000e+00> : vector<256x128xf32>
    %6 = tpu.matmul %4, %5, %cst {dimension_numbers = #tpu.dot_dimension_numbers<[1], [0], [0], [1], [0, 0, 1, 1], [], []>} : vector<256x512xbf16>, vector<512x128xbf16>, vector<256x128xf32> -> vector<256x128xf32>
    %7 = arith.addf %3, %6 : vector<256x128xf32>
    %c0_6 = arith.constant 0 : index
    %c0_7 = arith.constant 0 : index
    %8 = vector.load %arg6[%c0_6, %c0_7] : memref<256x128xf32, #tpu.memory_space<vmem>>, vector<256x128xf32>
    tpu.vector_store %arg6[%c0_6, %c0_7], %7 {strides = array<i32>} : memref<256x128xf32, #tpu.memory_space<vmem>>, vector<256x128xf32>,
    %c2_i32 = arith.constant 2 : i32
    %9 = arith.cmpi eq, %arg2, %c2_i32 : i32
    %10 = arith.extui %9 : i1 to i32
    %c0_i32_8 = arith.constant 0 : i32
    %11 = arith.cmpi ne, %10, %c0_i32_8 : i32
    scf.if %11 {
      %c0_9 = arith.constant 0 : index
      %c0_10 = arith.constant 0 : index
      %12 = vector.load %arg6[%c0_9, %c0_10] : memref<256x128xf32, #tpu.memory_space<vmem>>, vector<256x128xf32>
      %c0_11 = arith.constant 0 : index
      %c0_12 = arith.constant 0 : index
      %13 = vector.load %arg5[%c0_11, %c0_12] : memref<1x128xf32, #tpu.memory_space<vmem>>, vector<1x128xf32>
      %14 = vector.broadcast %13 : vector<1x128xf32> to vector<256x128xf32>
      %15 = arith.addf %12, %14 : vector<256x128xf32>
      %c0_13 = arith.constant 0 : index
      %c0_14 = arith.constant 0 : index
      %16 = vector.load %arg6[%c0_13, %c0_14] : memref<256x128xf32, #tpu.memory_space<vmem>>, vector<256x128xf32>
      tpu.vector_store %arg6[%c0_13, %c0_14], %15 {strides = array<i32>} : memref<256x128xf32, #tpu.memory_space<vmem>>, vector<256x128xf32>,
    } else {
    }
    return
  }
  func.func @transform_0(%arg0: i32, %arg1: i32, %arg2: i32) -> (i32, i32) {
    %c0_i32 = arith.constant 0 : i32
    return %arg0, %arg2 : i32, i32
  }
  func.func @transform_1(%arg0: i32, %arg1: i32, %arg2: i32) -> (i32, i32) {
    %c0_i32 = arith.constant 0 : i32
    return %arg2, %arg1 : i32, i32
  }
  func.func @transform_2(%arg0: i32, %arg1: i32, %arg2: i32) -> (i32, i32) {
    %c0_i32 = arith.constant 0 : i32
    %c0_i32_0 = arith.constant 0 : i32
    return %c0_i32, %arg1 : i32, i32
  }
  func.func @transform_3(%arg0: i32, %arg1: i32, %arg2: i32) -> (i32, i32) {
    %c0_i32 = arith.constant 0 : i32
    return %arg0, %arg1 : i32, i32
  }
}

module attributes {stable_mosaic.version = 11 : i64} {
  func.func @_gemm_bias_kernel(%arg0: i32, %arg1: i32, %arg2: i32, %arg3: memref<256x256xbf16, #tpu.memory_space<vmem>>, %arg4: memref<256x128xbf16, #tpu.memory_space<vmem>>, %arg5: memref<1x128xf32, #tpu.memory_space<vmem>>, %arg6: memref<256x128xf32, #tpu.memory_space<vmem>>) attributes {dimension_semantics = [#tpu.dimension_semantics<parallel>, #tpu.dimension_semantics<parallel>, #tpu.dimension_semantics<arbitrary>], iteration_bounds = array<i64: 2, 1, 7>, scalar_prefetch = 0 : i64, scratch_operands = 0 : i64, tpu.core_type = #tpu.core_type<tc>, window_params = [{transform_indices = @transform_0, window_bounds = array<i64: 256, 256>}, {transform_indices = @transform_1, window_bounds = array<i64: 256, 128>}, {transform_indices = @transform_2, window_bounds = array<i64: 1, 128>}, {transform_indices = @transform_3, window_bounds = array<i64: 256, 128>}]} {
    %c0_i32 = arith.constant 0 : i32
    %0 = arith.cmpi eq, %arg2, %c0_i32 : i32
    %1 = arith.extui %0 : i1 to i32
    %c0_i32_0 = arith.constant 0 : i32
    %2 = arith.cmpi ne, %1, %c0_i32_0 : i32
    scf.if %2 {
      %cst_9 = arith.constant 0.000000e+00 : f32
      %12 = vector.broadcast %cst_9 : f32 to vector<256x128xf32>
      %c0_10 = arith.constant 0 : index
      %c0_11 = arith.constant 0 : index
      %13 = vector.load %arg6[%c0_10, %c0_11] : memref<256x128xf32, #tpu.memory_space<vmem>>, vector<256x128xf32>
      tpu.vector_store %arg6[%c0_10, %c0_11], %12 {strides = array<i32>} : memref<256x128xf32, #tpu.memory_space<vmem>>, vector<256x128xf32>,
    } else {
    }
    %c0 = arith.constant 0 : index
    %c0_1 = arith.constant 0 : index
    %3 = vector.load %arg6[%c0, %c0_1] : memref<256x128xf32, #tpu.memory_space<vmem>>, vector<256x128xf32>
    %c0_2 = arith.constant 0 : index
    %c0_3 = arith.constant 0 : index
    %4 = vector.load %arg3[%c0_2, %c0_3] : memref<256x256xbf16, #tpu.memory_space<vmem>>, vector<256x256xbf16>
    %c0_4 = arith.constant 0 : index
    %c0_5 = arith.constant 0 : index
    %5 = vector.load %arg4[%c0_4, %c0_5] : memref<256x128xbf16, #tpu.memory_space<vmem>>, vector<256x128xbf16>
    %cst = arith.constant dense<0.000000e+00> : vector<256x128xf32>
    %6 = tpu.matmul %4, %5, %cst {dimension_numbers = #tpu.dot_dimension_numbers<[1], [0], [0], [1], [0, 0, 1, 1], [], []>} : vector<256x256xbf16>, vector<256x128xbf16>, vector<256x128xf32> -> vector<256x128xf32>
    %7 = arith.addf %3, %6 : vector<256x128xf32>
    %c0_6 = arith.constant 0 : index
    %c0_7 = arith.constant 0 : index
    %8 = vector.load %arg6[%c0_6, %c0_7] : memref<256x128xf32, #tpu.memory_space<vmem>>, vector<256x128xf32>
    tpu.vector_store %arg6[%c0_6, %c0_7], %7 {strides = array<i32>} : memref<256x128xf32, #tpu.memory_space<vmem>>, vector<256x128xf32>,
    %c6_i32 = arith.constant 6 : i32
    %9 = arith.cmpi eq, %arg2, %c6_i32 : i32
    %10 = arith.extui %9 : i1 to i32
    %c0_i32_8 = arith.constant 0 : i32
    %11 = arith.cmpi ne, %10, %c0_i32_8 : i32
    scf.if %11 {
      %c0_9 = arith.constant 0 : index
      %c0_10 = arith.constant 0 : index
      %12 = vector.load %arg6[%c0_9, %c0_10] : memref<256x128xf32, #tpu.memory_space<vmem>>, vector<256x128xf32>
      %c0_11 = arith.constant 0 : index
      %c0_12 = arith.constant 0 : index
      %13 = vector.load %arg5[%c0_11, %c0_12] : memref<1x128xf32, #tpu.memory_space<vmem>>, vector<1x128xf32>
      %14 = vector.broadcast %13 : vector<1x128xf32> to vector<256x128xf32>
      %15 = arith.addf %12, %14 : vector<256x128xf32>
      %c0_13 = arith.constant 0 : index
      %c0_14 = arith.constant 0 : index
      %16 = vector.load %arg6[%c0_13, %c0_14] : memref<256x128xf32, #tpu.memory_space<vmem>>, vector<256x128xf32>
      tpu.vector_store %arg6[%c0_13, %c0_14], %15 {strides = array<i32>} : memref<256x128xf32, #tpu.memory_space<vmem>>, vector<256x128xf32>,
    } else {
    }
    return
  }
  func.func @transform_0(%arg0: i32, %arg1: i32, %arg2: i32) -> (i32, i32) {
    %c0_i32 = arith.constant 0 : i32
    return %arg0, %arg2 : i32, i32
  }
  func.func @transform_1(%arg0: i32, %arg1: i32, %arg2: i32) -> (i32, i32) {
    %c0_i32 = arith.constant 0 : i32
    return %arg2, %arg1 : i32, i32
  }
  func.func @transform_2(%arg0: i32, %arg1: i32, %arg2: i32) -> (i32, i32) {
    %c0_i32 = arith.constant 0 : i32
    %c0_i32_0 = arith.constant 0 : i32
    return %c0_i32, %arg1 : i32, i32
  }
  func.func @transform_3(%arg0: i32, %arg1: i32, %arg2: i32) -> (i32, i32) {
    %c0_i32 = arith.constant 0 : i32
    return %arg0, %arg1 : i32, i32
  }
}

module attributes {stable_mosaic.version = 11 : i64} {
  func.func @_gemm_bias_kernel(%arg0: i32, %arg1: i32, %arg2: i32, %arg3: memref<256x512xbf16, #tpu.memory_space<vmem>>, %arg4: memref<512x128xbf16, #tpu.memory_space<vmem>>, %arg5: memref<1x128xf32, #tpu.memory_space<vmem>>, %arg6: memref<256x128xf32, #tpu.memory_space<vmem>>) attributes {dimension_semantics = [#tpu.dimension_semantics<parallel>, #tpu.dimension_semantics<parallel>, #tpu.dimension_semantics<arbitrary>], iteration_bounds = array<i64: 2, 1, 4>, scalar_prefetch = 0 : i64, scratch_operands = 0 : i64, tpu.core_type = #tpu.core_type<tc>, window_params = [{transform_indices = @transform_0, window_bounds = array<i64: 256, 512>}, {transform_indices = @transform_1, window_bounds = array<i64: 512, 128>}, {transform_indices = @transform_2, window_bounds = array<i64: 1, 128>}, {transform_indices = @transform_3, window_bounds = array<i64: 256, 128>}]} {
    %c0_i32 = arith.constant 0 : i32
    %0 = arith.cmpi eq, %arg2, %c0_i32 : i32
    %1 = arith.extui %0 : i1 to i32
    %c0_i32_0 = arith.constant 0 : i32
    %2 = arith.cmpi ne, %1, %c0_i32_0 : i32
    scf.if %2 {
      %cst_9 = arith.constant 0.000000e+00 : f32
      %12 = vector.broadcast %cst_9 : f32 to vector<256x128xf32>
      %c0_10 = arith.constant 0 : index
      %c0_11 = arith.constant 0 : index
      %13 = vector.load %arg6[%c0_10, %c0_11] : memref<256x128xf32, #tpu.memory_space<vmem>>, vector<256x128xf32>
      tpu.vector_store %arg6[%c0_10, %c0_11], %12 {strides = array<i32>} : memref<256x128xf32, #tpu.memory_space<vmem>>, vector<256x128xf32>,
    } else {
    }
    %c0 = arith.constant 0 : index
    %c0_1 = arith.constant 0 : index
    %3 = vector.load %arg6[%c0, %c0_1] : memref<256x128xf32, #tpu.memory_space<vmem>>, vector<256x128xf32>
    %c0_2 = arith.constant 0 : index
    %c0_3 = arith.constant 0 : index
    %4 = vector.load %arg3[%c0_2, %c0_3] : memref<256x512xbf16, #tpu.memory_space<vmem>>, vector<256x512xbf16>
    %c0_4 = arith.constant 0 : index
    %c0_5 = arith.constant 0 : index
    %5 = vector.load %arg4[%c0_4, %c0_5] : memref<512x128xbf16, #tpu.memory_space<vmem>>, vector<512x128xbf16>
    %cst = arith.constant dense<0.000000e+00> : vector<256x128xf32>
    %6 = tpu.matmul %4, %5, %cst {dimension_numbers = #tpu.dot_dimension_numbers<[1], [0], [0], [1], [0, 0, 1, 1], [], []>} : vector<256x512xbf16>, vector<512x128xbf16>, vector<256x128xf32> -> vector<256x128xf32>
    %7 = arith.addf %3, %6 : vector<256x128xf32>
    %c0_6 = arith.constant 0 : index
    %c0_7 = arith.constant 0 : index
    %8 = vector.load %arg6[%c0_6, %c0_7] : memref<256x128xf32, #tpu.memory_space<vmem>>, vector<256x128xf32>
    tpu.vector_store %arg6[%c0_6, %c0_7], %7 {strides = array<i32>} : memref<256x128xf32, #tpu.memory_space<vmem>>, vector<256x128xf32>,
    %c3_i32 = arith.constant 3 : i32
    %9 = arith.cmpi eq, %arg2, %c3_i32 : i32
    %10 = arith.extui %9 : i1 to i32
    %c0_i32_8 = arith.constant 0 : i32
    %11 = arith.cmpi ne, %10, %c0_i32_8 : i32
    scf.if %11 {
      %c0_9 = arith.constant 0 : index
      %c0_10 = arith.constant 0 : index
      %12 = vector.load %arg6[%c0_9, %c0_10] : memref<256x128xf32, #tpu.memory_space<vmem>>, vector<256x128xf32>
      %c0_11 = arith.constant 0 : index
      %c0_12 = arith.constant 0 : index
      %13 = vector.load %arg5[%c0_11, %c0_12] : memref<1x128xf32, #tpu.memory_space<vmem>>, vector<1x128xf32>
      %14 = vector.broadcast %13 : vector<1x128xf32> to vector<256x128xf32>
      %15 = arith.addf %12, %14 : vector<256x128xf32>
      %c0_13 = arith.constant 0 : index
      %c0_14 = arith.constant 0 : index
      %16 = vector.load %arg6[%c0_13, %c0_14] : memref<256x128xf32, #tpu.memory_space<vmem>>, vector<256x128xf32>
      tpu.vector_store %arg6[%c0_13, %c0_14], %15 {strides = array<i32>} : memref<256x128xf32, #tpu.memory_space<vmem>>, vector<256x128xf32>,
    } else {
    }
    return
  }
  func.func @transform_0(%arg0: i32, %arg1: i32, %arg2: i32) -> (i32, i32) {
    %c0_i32 = arith.constant 0 : i32
    return %arg0, %arg2 : i32, i32
  }
  func.func @transform_1(%arg0: i32, %arg1: i32, %arg2: i32) -> (i32, i32) {
    %c0_i32 = arith.constant 0 : i32
    return %arg2, %arg1 : i32, i32
  }
  func.func @transform_2(%arg0: i32, %arg1: i32, %arg2: i32) -> (i32, i32) {
    %c0_i32 = arith.constant 0 : i32
    %c0_i32_0 = arith.constant 0 : i32
    return %c0_i32, %arg1 : i32, i32
  }
  func.func @transform_3(%arg0: i32, %arg1: i32, %arg2: i32) -> (i32, i32) {
    %c0_i32 = arith.constant 0 : i32
    return %arg0, %arg1 : i32, i32
  }
}

</mosaic_0001>

<bundles_post_ra>
// kernel: snunet_forward.30
= control target key start
LH: loop header
LB: loop body
LE: loop exit
PB: predicated region body
PF: predicated region fallthrough
CT: control target
= control target key end

     0   :  { %8 = vsyncpa [#allocation3], 0  ;;  %s1222_s12 = smov 0   ;;  %s1224_s13 = smov 0   ;;  %s1390_s0 = inlined_call_operand.vmem [shape: bf16[512,128], index: 0, kind: input, shape index: {}]   ;;  %s1391_s1 = inlined_call_operand.hbm [shape: bf16[128,128], index: 1, kind: input, shape index: {}]   ;;  %s1392_s2 = inlined_call_operand.vmem [shape: f32[1,128], index: 2, kind: input, shape index: {}]   ;;  %s1393_s3 = inlined_call_operand.vmem [shape: f32[512,128], index: 3, kind: output, shape index: {}]  }
   0x1   :  { %s1226_s14 = smov 0  }
   0x2 LB: > { %s954_s15 = sadd.s32 4294967295, %s1197_s14   ;;  %s33_s16 = sadd.s32 1, %s1193_s13  ;;  %s1197_s14 = sphi %s1226_s14, %s14_s14   ;;  %s1193_s13 = sphi %s1224_s13, %s1403_s13   ;;  %s1189_s12 = sphi %s1222_s12, %s1402_s12  }
   0x3   : > { %p35_p0 = scmp.ge.s32.totalorder %s33_s16, 2  ;;  %p956_p1 = scmp.ge.s32.totalorder %s1197_s14, 1 }
   0x4   : > { %p148_p2 = scmp.lt.s32.totalorder %s1197_s14, 3  ;;  %p1247_p4 = scmp.eq.s32.totalorder %s954_s15, 0 }
   0x5   : > { %s1405_s16 = smov (%p35_p0, %s33_s16), 0  ;;  %s1199_s19 = smov [#allocation2]  }
   0x6   : > { %p1243_p3 = pnand %p956_p1, %p148_p2  ;;  %s164_s20 = sshll.u32 %s1199_s19, 4  ;;  %s165_s20 = int_to_ptr.vmem [resolvable:$true] %s164_s20 }
   0x7   : > { %s1398_s18 = scalar_select %p1247_p4, 1, 0 }
   0x8   : > { %s1397_s17 = scalar_select %p1243_p3, 1, 0 }
   0x9   : > { %p1085_p5 = pneg %p1243_p3  ;;  %s1143_s24 = scalar_lea.hbm %s1391_s1, 1024 }
   0xa   : > { %p1144_p7 = scmp.ne.s32.totalorder %s1391_s1, %s1143_s24  ;;  %p1150_p11 = scmp.lt.u32.totalorder %s1143_s24, %s1391_s1 }
   0xb   : > { %p1255_p6 = pnand %p1247_p4, %p1085_p5 }
   0xd   : > { %p1145_p8 = pneg %p1255_p6 }
   0xf   : > { %p1146_p9 = pnand %p1145_p8, %p1144_p7 }
  0x11   : > { %p1147_p10 = pneg %p1146_p9 }
  0x13   : > { %p1152_p12 = pnand %p1150_p11, %p1147_p10 }
  0x15   : > { %1155 = shalt.err (!%p1152_p12)
}
  0x16   : > { %s1156_s29 = scalar_lea.vmem %s165_s20, 1024  ;;  %p1164_p2 = scmp.lt.s32.totalorder %s165_s20, %s165_s20 }
  0x17   : > { %p1157_p13 = scmp.ne.s32.totalorder %s165_s20, %s1156_s29  ;;  %p1165_p5 = scmp.lt.s32.totalorder %s1156_s29, %s1156_s29 }
  0x19   : > { %p1159_p0 = pnand %p1157_p13, %p1145_p8  ;;  %p1166_p4 = por %p1165_p5, %p1164_p2 }
  0x1b   : > { %p1160_p1 = pneg %p1159_p0 }
  0x1d   : > { %p1167_p3 = pnand %p1166_p4, %p1160_p1 }
  0x1f   : > { %1170 = shalt.err (!%p1167_p3)
}
  0x20   : > { %s1200_s30 = smov 64   ;;  %s1201_s4 = smov 4  }
  0x21   : > { %1088 = dma.hbm_to_vmem [thread:$0]  (!%p1255_p6), %s1391_s1, 1024, %s165_s20, [#allocation3], %s1200_s30, %s1200_s30, %s1201_s4  }
  0x22   : > { %p1400_p7 = scmp.ne.s32.totalorder %s1397_s17, 0 }
  0x23   : > { %p1401_p9 = scmp.ne.s32.totalorder (!%p1400_p7), %s1398_s18, 0 }
  0x24   : > { %198 = sbr.rel (%p1400_p7) target bundleno = 319 (0x13f), region = 32 }
  0x2b   : > { %1184 = dma.done.wait (%p1401_p9), [#allocation3], 1024  }
  0x2c   : > { %1186 = vsyncadd (%p1401_p9), [#allocation3], 4294966272  ;;  %s962_s7 = sshll.u32 %s1189_s12, 5  ;;  %v1119_v0 = vld [vmem:[#allocation2] sm:$0xff]   ;;  %v1120_v1 = vld [vmem:[#allocation2 + $0x8] sm:$0xff]  }
  0x2d   : > { %p232_p3 = scmp.lt.s32.totalorder %s962_s7, 63  ;;  %1017 = vmatprep.subr.bf16.mxu0 %v1119_v0  ;;  %1065 = vmatprep.subr.bf16.mxu1 %v1119_v0  ;;  %v1121_v2 = vld [vmem:[#allocation2 + $0x10] sm:$0xff]   ;;  %v1122_v3 = vld [vmem:[#allocation2 + $0x18] sm:$0xff]   ;;  %v1123_v6 = vld [vmem:[#allocation2 + $0x20] sm:$0xff]  }
  0x2e   : > { %1018 = vmatpush3.bf16.msra.mxu0 %v1119_v0  ;;  %1073 = vmatpush3.bf16.msra.mxu1 %v1119_v0  ;;  %v1124_v7 = vld [vmem:[#allocation2 + $0x28] sm:$0xff]   ;;  %v1125_v8 = vld [vmem:[#allocation2 + $0x30] sm:$0xff]   ;;  %v1126_v9 = vld [vmem:[#allocation2 + $0x38] sm:$0xff]  }
  0x2f   : > { %s1407_s7 = smov (!%p232_p3, %s962_s7), 63  ;;  %1019 = vmatprep.subr.bf16.mxu0 %v1120_v1  ;;  %1066 = vmatprep.subr.bf16.mxu1 %v1120_v1  ;;  %v1310_v25 = vld [vmem:[%s1392_s2] ss:$0 sm:$0xff] }
  0x30   : > { %s963_s8 = sshll.u32 %s1407_s7, 2  ;;  %s965_s12 = sshll.u32 %s1407_s7, 3 }
  0x31   : > { %s1288_s11 = scalar_lea.vmem %s1390_s0, %s963_s8  ;;  %s1315_s20 = scalar_lea.vmem %s1393_s3, %s965_s12 }
  0x32   : > { %1020 = vmatpush3.bf16.msra.mxu0 %v1120_v1  ;;  %1074 = vmatpush3.bf16.msra.mxu1 %v1120_v1  ;;  %v1127_v4 = vld [vmem:[%s1288_s11] sm:$0xff]   ;;  %v1129_v10 = vld [vmem:[%s1288_s11 + $0x8] sm:$0xff]   ;;  %v1131_v12 = vld [vmem:[%s1288_s11 + $0x10] sm:$0xff]  }
  0x33   : > { %1021 = vmatprep.subr.bf16.mxu0 %v1121_v2  ;;  %1067 = vmatprep.subr.bf16.mxu1 %v1121_v2  ;;  %v1128_v5 = vld [vmem:[%s1288_s11 + $0x40] sm:$0xff]   ;;  %v1130_v11 = vld [vmem:[%s1288_s11 + $0x48] sm:$0xff]   ;;  %v1132_v13 = vld [vmem:[%s1288_s11 + $0x50] sm:$0xff]  }
  0x34   : > { %1033 = vmatprep.mubr.bf16.mxu0 %v1127_v4  ;;  %1049 = vmatprep.mubr.bf16.mxu1 %v1128_v5  ;;  %v1133_v14 = vld [vmem:[%s1288_s11 + $0x18] sm:$0xff]   ;;  %v1135_v16 = vld [vmem:[%s1288_s11 + $0x20] sm:$0xff]   ;;  %v1137_v18 = vld [vmem:[%s1288_s11 + $0x28] sm:$0xff]  }
  0x35   : > { %v1134_v15 = vld [vmem:[%s1288_s11 + $0x58] sm:$0xff]   ;;  %v1136_v17 = vld [vmem:[%s1288_s11 + $0x60] sm:$0xff]   ;;  %v1138_v19 = vld [vmem:[%s1288_s11 + $0x68] sm:$0xff]  }
  0x36   : > { %1022 = vmatpush3.bf16.msra.mxu0 %v1121_v2  ;;  %1075 = vmatpush3.bf16.msra.mxu1 %v1121_v2  ;;  %v1139_v20 = vld [vmem:[%s1288_s11 + $0x30] sm:$0xff]   ;;  %v1141_v22 = vld [vmem:[%s1288_s11 + $0x38] sm:$0xff]  }
  0x37   : > { %1023 = vmatprep.subr.bf16.mxu0 %v1122_v3  ;;  %1068 = vmatprep.subr.bf16.mxu1 %v1122_v3  ;;  %v1140_v21 = vld [vmem:[%s1288_s11 + $0x70] sm:$0xff]   ;;  %v1142_v23 = vld [vmem:[%s1288_s11 + $0x78] sm:$0xff]  }
  0x3a   : > { %1024 = vmatpush3.bf16.msra.mxu0 %v1122_v3  ;;  %1076 = vmatpush3.bf16.msra.mxu1 %v1122_v3 }
  0x3b   : > { %1025 = vmatprep.subr.bf16.mxu0 %v1123_v6  ;;  %1069 = vmatprep.subr.bf16.mxu1 %v1123_v6 }
  0x3e   : > { %1026 = vmatpush3.bf16.msra.mxu0 %v1123_v6  ;;  %1077 = vmatpush3.bf16.msra.mxu1 %v1123_v6 }
  0x3f   : > { %1027 = vmatprep.subr.bf16.mxu0 %v1124_v7  ;;  %1070 = vmatprep.subr.bf16.mxu1 %v1124_v7 }
  0x42   : > { %1028 = vmatpush3.bf16.msra.mxu0 %v1124_v7  ;;  %1078 = vmatpush3.bf16.msra.mxu1 %v1124_v7 }
  0x43   : > { %1029 = vmatprep.subr.bf16.mxu0 %v1125_v8  ;;  %1071 = vmatprep.subr.bf16.mxu1 %v1125_v8 }
  0x46   : > { %1030 = vmatpush3.bf16.msra.mxu0 %v1125_v8  ;;  %1079 = vmatpush3.bf16.msra.mxu1 %v1125_v8 }
  0x47   : > { %1031 = vmatprep.subr.bf16.mxu0 %v1126_v9  ;;  %1072 = vmatprep.subr.bf16.mxu1 %v1126_v9 }
  0x4a   : > { %1032 = vmatpush3.bf16.msra.mxu0 %v1126_v9  ;;  %1080 = vmatpush3.bf16.msra.mxu1 %v1126_v9 }
  0x4d   : > { %1034 = vmatmul.mubr.bf16.vlgmr.msra.gmra.mrb[0].mxu0 %v1129_v10  ;;  %1050 = vmatmul.mubr.bf16.vlgmr.msra.gmra.mrb[0].mxu1 %v1130_v11 }
  0x4e   : > { %1037 = vmatprep.mubr.bf16.mxu0 %v1131_v12  ;;  %1053 = vmatprep.mubr.bf16.mxu1 %v1132_v13 }
  0x55   : > { %1038 = vmatmul.mubr.bf16.gmra.mrb[4].mxu0 %v1133_v14  ;;  %1054 = vmatmul.mubr.bf16.gmra.mrb[4].mxu1 %v1134_v15 }
  0x56   : > { %1041 = vmatprep.mubr.bf16.mxu0 %v1135_v16  ;;  %1057 = vmatprep.mubr.bf16.mxu1 %v1136_v17 }
  0x5d   : > { %1042 = vmatmul.mubr.bf16.gmra.mrb[8].mxu0 %v1137_v18  ;;  %1058 = vmatmul.mubr.bf16.gmra.mrb[8].mxu1 %v1138_v19 }
  0x5e   : > { %1045 = vmatprep.mubr.bf16.mxu0 %v1139_v20  ;;  %1061 = vmatprep.mubr.bf16.mxu1 %v1140_v21 }
  0x65   : > { %1046 = vmatmul.mubr.bf16.gmra.mrb[12].mxu0 %v1141_v22  ;;  %1062 = vmatmul.mubr.bf16.gmra.mrb[12].mxu1 %v1142_v23 }
 0x120   : > { %v1035_v24 = vpop.f32.mrb[0].mxu0  ;;  %v1051_v26 = vpop.f32.mrb[0].mxu1 }
 0x121   : > { %v548_v27 = vpop.f32.mrb[1].mxu0  ;;  %v612_v28 = vpop.f32.mrb[1].mxu1  ;;  %v783_v31 = vadd.f32 %v1035_v24, %v1310_v25  ;;  %v799_v32 = vadd.f32 %v1051_v26, %v1310_v25 }
 0x122   : > { %v1036_v29 = vpop.f32.mrb[2].mxu0  ;;  %v1052_v30 = vpop.f32.mrb[2].mxu1  ;;  %v781_v35 = vadd.f32 %v1310_v25, %v548_v27  ;;  %v797_v36 = vadd.f32 %v1310_v25, %v612_v28 }
 0x123   : > { %v551_v33 = vpop.f32.mrb[3].mxu0  ;;  %v615_v34 = vpop.f32.mrb[3].mxu1  ;;  %815 = vst [vmem:[%s1315_s20 + $0x10] sm:$0xff] %v783_v31  ;;  %831 = vst [vmem:[%s1315_s20 + $0x90] sm:$0xff] %v799_v32  ;;  %v784_v37 = vadd.f32 %v1036_v29, %v1310_v25  ;;  %v800_v38 = vadd.f32 %v1052_v30, %v1310_v25 }
 0x124   : > { %813 = vst [vmem:[%s1315_s20] sm:$0xff] %v781_v35  ;;  %829 = vst [vmem:[%s1315_s20 + $0x80] sm:$0xff] %v797_v36  ;;  %v782_v39 = vadd.f32 %v1310_v25, %v551_v33  ;;  %v798_v40 = vadd.f32 %v1310_v25, %v615_v34 }
 0x125   : > { %816 = vst [vmem:[%s1315_s20 + $0x18] sm:$0xff] %v784_v37  ;;  %832 = vst [vmem:[%s1315_s20 + $0x98] sm:$0xff] %v800_v38 }
 0x126   : > { %814 = vst [vmem:[%s1315_s20 + $0x8] sm:$0xff] %v782_v39  ;;  %830 = vst [vmem:[%s1315_s20 + $0x88] sm:$0xff] %v798_v40 }
 0x128   : > { %v1039_v41 = vpop.f32.mrb[4].mxu0  ;;  %v1055_v42 = vpop.f32.mrb[4].mxu1 }
 0x129   : > { %v564_v43 = vpop.f32.mrb[5].mxu0  ;;  %v628_v44 = vpop.f32.mrb[5].mxu1  ;;  %v787_v47 = vadd.f32 %v1039_v41, %v1310_v25  ;;  %v803_v48 = vadd.f32 %v1055_v42, %v1310_v25 }
 0x12a   : > { %v1040_v45 = vpop.f32.mrb[6].mxu0  ;;  %v1056_v46 = vpop.f32.mrb[6].mxu1  ;;  %v785_v51 = vadd.f32 %v1310_v25, %v564_v43  ;;  %v801_v52 = vadd.f32 %v1310_v25, %v628_v44 }
 0x12b   : > { %v567_v49 = vpop.f32.mrb[7].mxu0  ;;  %v631_v50 = vpop.f32.mrb[7].mxu1  ;;  %819 = vst [vmem:[%s1315_s20 + $0x30] sm:$0xff] %v787_v47  ;;  %835 = vst [vmem:[%s1315_s20 + $0xb0] sm:$0xff] %v803_v48  ;;  %v788_v53 = vadd.f32 %v1040_v45, %v1310_v25  ;;  %v804_v54 = vadd.f32 %v1056_v46, %v1310_v25 }
 0x12c   : > { %817 = vst [vmem:[%s1315_s20 + $0x20] sm:$0xff] %v785_v51  ;;  %833 = vst [vmem:[%s1315_s20 + $0xa0] sm:$0xff] %v801_v52  ;;  %v786_v55 = vadd.f32 %v1310_v25, %v567_v49  ;;  %v802_v56 = vadd.f32 %v1310_v25, %v631_v50 }
 0x12d   : > { %820 = vst [vmem:[%s1315_s20 + $0x38] sm:$0xff] %v788_v53  ;;  %836 = vst [vmem:[%s1315_s20 + $0xb8] sm:$0xff] %v804_v54 }
 0x12e   : > { %818 = vst [vmem:[%s1315_s20 + $0x28] sm:$0xff] %v786_v55  ;;  %834 = vst [vmem:[%s1315_s20 + $0xa8] sm:$0xff] %v802_v56 }
 0x130   : > { %v1043_v57 = vpop.f32.mrb[8].mxu0  ;;  %v1059_v58 = vpop.f32.mrb[8].mxu1 }
 0x131   : > { %v580_v59 = vpop.f32.mrb[9].mxu0  ;;  %v644_v60 = vpop.f32.mrb[9].mxu1  ;;  %v791_v63 = vadd.f32 %v1043_v57, %v1310_v25  ;;  %v807_v0 = vadd.f32 %v1059_v58, %v1310_v25 }
 0x132   : > { %v1044_v61 = vpop.f32.mrb[10].mxu0  ;;  %v1060_v62 = vpop.f32.mrb[10].mxu1  ;;  %v789_v3 = vadd.f32 %v1310_v25, %v580_v59  ;;  %v805_v4 = vadd.f32 %v1310_v25, %v644_v60 }
 0x133   : > { %v583_v1 = vpop.f32.mrb[11].mxu0  ;;  %v647_v2 = vpop.f32.mrb[11].mxu1  ;;  %823 = vst [vmem:[%s1315_s20 + $0x50] sm:$0xff] %v791_v63  ;;  %839 = vst [vmem:[%s1315_s20 + $0xd0] sm:$0xff] %v807_v0  ;;  %v792_v5 = vadd.f32 %v1044_v61, %v1310_v25  ;;  %v808_v6 = vadd.f32 %v1060_v62, %v1310_v25 }
 0x134   : > { %821 = vst [vmem:[%s1315_s20 + $0x40] sm:$0xff] %v789_v3  ;;  %837 = vst [vmem:[%s1315_s20 + $0xc0] sm:$0xff] %v805_v4  ;;  %v790_v7 = vadd.f32 %v1310_v25, %v583_v1  ;;  %v806_v8 = vadd.f32 %v1310_v25, %v647_v2 }
 0x135   : > { %824 = vst [vmem:[%s1315_s20 + $0x58] sm:$0xff] %v792_v5  ;;  %840 = vst [vmem:[%s1315_s20 + $0xd8] sm:$0xff] %v808_v6 }
 0x136   : > { %822 = vst [vmem:[%s1315_s20 + $0x48] sm:$0xff] %v790_v7  ;;  %838 = vst [vmem:[%s1315_s20 + $0xc8] sm:$0xff] %v806_v8 }
 0x138   : > { %v1047_v9 = vpop.f32.mrb[12].mxu0  ;;  %v1063_v10 = vpop.f32.mrb[12].mxu1 }
 0x139   : > { %v596_v11 = vpop.f32.mrb[13].mxu0  ;;  %v660_v12 = vpop.f32.mrb[13].mxu1  ;;  %v795_v15 = vadd.f32 %v1047_v9, %v1310_v25  ;;  %v811_v16 = vadd.f32 %v1063_v10, %v1310_v25 }
 0x13a   : > { %v1048_v13 = vpop.f32.mrb[14].mxu0  ;;  %v1064_v14 = vpop.f32.mrb[14].mxu1  ;;  %v793_v19 = vadd.f32 %v1310_v25, %v596_v11  ;;  %v809_v20 = vadd.f32 %v1310_v25, %v660_v12 }
 0x13b   : > { %v599_v17 = vpop.f32.mrb[15].mxu0  ;;  %v663_v18 = vpop.f32.mrb[15].mxu1  ;;  %827 = vst [vmem:[%s1315_s20 + $0x70] sm:$0xff] %v795_v15  ;;  %843 = vst [vmem:[%s1315_s20 + $0xf0] sm:$0xff] %v811_v16  ;;  %v796_v21 = vadd.f32 %v1048_v13, %v1310_v25  ;;  %v812_v22 = vadd.f32 %v1064_v14, %v1310_v25 }
 0x13c   : > { %825 = vst [vmem:[%s1315_s20 + $0x60] sm:$0xff] %v793_v19  ;;  %841 = vst [vmem:[%s1315_s20 + $0xe0] sm:$0xff] %v809_v20  ;;  %v794_v23 = vadd.f32 %v1310_v25, %v599_v17  ;;  %v810_v24 = vadd.f32 %v1310_v25, %v663_v18 }
 0x13d   : > { %828 = vst [vmem:[%s1315_s20 + $0x78] sm:$0xff] %v796_v21  ;;  %844 = vst [vmem:[%s1315_s20 + $0xf8] sm:$0xff] %v812_v22 }
 0x13e   : > { %826 = vst [vmem:[%s1315_s20 + $0x68] sm:$0xff] %v794_v23  ;;  %842 = vst [vmem:[%s1315_s20 + $0xe8] sm:$0xff] %v810_v24 }
 0x13f PF: > { %s14_s14 = sadd.s32 1, %s1197_s14   ;;  %s1402_s12 = smov %s1193_s13 }
 0x140   : > { %p11_p4 = scmp.ge.s32.totalorder %s14_s14, 4   ;;  %s1403_s13 = smov %s1405_s16 }
 0x142   :  { %13 = sbr.rel (!%p11_p4) target bundleno = 2 (0x2), region = 79 }
 0x149   :  { %873 = vsyncpa [#allocation3], 1 }
 0x14a   :  { %875 = vsyncpa [#allocation3 + $0x1], 1 }

// kernel: snunet_forward.26
= control target key start
LH: loop header
LB: loop body
LE: loop exit
PB: predicated region body
PF: predicated region fallthrough
CT: control target
= control target key end

     0   :  { %s1181_s12 = smov 0   ;;  %s1183_s13 = smov 0   ;;  %s1331_s0 = inlined_call_operand.vmem [shape: bf16[512,128], index: 0, kind: input, shape index: {}]   ;;  %s1332_s1 = inlined_call_operand.vmem [shape: bf16[128,128], index: 1, kind: input, shape index: {}]   ;;  %s1333_s2 = inlined_call_operand.vmem [shape: f32[1,128], index: 2, kind: input, shape index: {}]   ;;  %s1334_s3 = inlined_call_operand.vmem [shape: f32[512,128], index: 3, kind: output, shape index: {}]  }
   0x1   :  { %s1185_s14 = smov 0  }
   0x2 LB: > { %s32_s15 = sadd.s32 1, %s1155_s13  ;;  %p968_p0 = scmp.ge.s32.totalorder %s1159_s14, 1  ;;  %s1159_s14 = sphi %s1185_s14, %s13_s14   ;;  %s1155_s13 = sphi %s1183_s13, %s1336_s13   ;;  %s1151_s12 = sphi %s1181_s12, %s1335_s12  }
   0x3   : > { %p34_p1 = scmp.ge.s32.totalorder %s32_s15, 2  ;;  %p188_p2 = scmp.lt.s32.totalorder %s1159_s14, 3 }
   0x5   : > { %s1338_s15 = smov (%p34_p1, %s32_s15), 0  ;;  %p189_p3 = pnand %p968_p0, %p188_p2 }
   0x6   : > { %v1113_v0 = vld [vmem:[%s1332_s1] sm:$0xff] (!%p189_p3)   ;;  %s969_s18 = sshll.u32 (!%p189_p3), %s1151_s12, 5  ;;  %v1114_v1 = vld [vmem:[%s1332_s1 + $0x8] sm:$0xff] (!%p189_p3)   ;;  %v1115_v2 = vld [vmem:[%s1332_s1 + $0x10] sm:$0xff] (!%p189_p3)  }
   0x7   : > { %192 = sbr.rel (%p189_p3) target bundleno = 281 (0x119), region = 32  ;;  %p230_p4 = scmp.lt.s32.totalorder (!%p189_p3), %s969_s18, 63  ;;  %1024 = vmatprep.subr.bf16.mxu0 (!%p189_p3), %v1113_v0  ;;  %1072 = vmatprep.subr.bf16.mxu1 (!%p189_p3), %v1113_v0  ;;  %v1116_v3 = vld [vmem:[%s1332_s1 + $0x18] sm:$0xff] (!%p189_p3)   ;;  %v1117_v6 = vld [vmem:[%s1332_s1 + $0x20] sm:$0xff] (!%p189_p3)   ;;  %v1118_v7 = vld [vmem:[%s1332_s1 + $0x28] sm:$0xff] (!%p189_p3)  }
   0x8   : > { %1025 = vmatpush3.bf16.msra.mxu0 (!%p189_p3), %v1113_v0  ;;  %1080 = vmatpush3.bf16.msra.mxu1 (!%p189_p3), %v1113_v0  ;;  %v1119_v8 = vld [vmem:[%s1332_s1 + $0x30] sm:$0xff] (!%p189_p3)   ;;  %v1120_v9 = vld [vmem:[%s1332_s1 + $0x38] sm:$0xff] (!%p189_p3)   ;;  %v1251_v25 = vld [vmem:[%s1333_s2] ss:$0 sm:$0xff] (!%p189_p3) }
   0x9   : > { %1026 = vmatprep.subr.bf16.mxu0 (!%p189_p3), %v1114_v1  ;;  %1073 = vmatprep.subr.bf16.mxu1 (!%p189_p3), %v1114_v1 }
   0xc   : > { %1027 = vmatpush3.bf16.msra.mxu0 (!%p189_p3), %v1114_v1  ;;  %1081 = vmatpush3.bf16.msra.mxu1 (!%p189_p3), %v1114_v1 }
   0xd   : > { %1028 = vmatprep.subr.bf16.mxu0 (!%p189_p3), %v1115_v2  ;;  %1074 = vmatprep.subr.bf16.mxu1 (!%p189_p3), %v1115_v2 }
   0xe   : > { %s1340_s18 = smov (!%p230_p4, %s969_s18), 63 }
   0xf   : > { %s970_s23 = sshll.u32 %s1340_s18, 2  ;;  %s972_s10 = sshll.u32 %s1340_s18, 3 }
  0x10   : > { %s1214_s26 = scalar_lea.vmem %s1331_s0, %s970_s23  ;;  %1029 = vmatpush3.bf16.msra.mxu0 %v1115_v2  ;;  %1082 = vmatpush3.bf16.msra.mxu1 %v1115_v2  ;;  %s1256_s19 = scalar_lea.vmem %s1334_s3, %s972_s10 }
  0x11   : > { %v1121_v4 = vld [vmem:[%s1214_s26] sm:$0xff]   ;;  %1030 = vmatprep.subr.bf16.mxu0 %v1116_v3  ;;  %1075 = vmatprep.subr.bf16.mxu1 %v1116_v3  ;;  %v1123_v10 = vld [vmem:[%s1214_s26 + $0x8] sm:$0xff]   ;;  %v1125_v12 = vld [vmem:[%s1214_s26 + $0x10] sm:$0xff]  }
  0x12   : > { %v1122_v5 = vld [vmem:[%s1214_s26 + $0x40] sm:$0xff]   ;;  %1040 = vmatprep.mubr.bf16.mxu0 %v1121_v4  ;;  %v1124_v11 = vld [vmem:[%s1214_s26 + $0x48] sm:$0xff]   ;;  %v1126_v13 = vld [vmem:[%s1214_s26 + $0x50] sm:$0xff]  }
  0x13   : > { %1056 = vmatprep.mubr.bf16.mxu1 %v1122_v5  ;;  %v1127_v14 = vld [vmem:[%s1214_s26 + $0x18] sm:$0xff]   ;;  %v1129_v16 = vld [vmem:[%s1214_s26 + $0x20] sm:$0xff]   ;;  %v1131_v18 = vld [vmem:[%s1214_s26 + $0x28] sm:$0xff]  }
  0x14   : > { %1031 = vmatpush3.bf16.msra.mxu0 %v1116_v3  ;;  %1083 = vmatpush3.bf16.msra.mxu1 %v1116_v3  ;;  %v1128_v15 = vld [vmem:[%s1214_s26 + $0x58] sm:$0xff]   ;;  %v1130_v17 = vld [vmem:[%s1214_s26 + $0x60] sm:$0xff]   ;;  %v1132_v19 = vld [vmem:[%s1214_s26 + $0x68] sm:$0xff]  }
  0x15   : > { %1032 = vmatprep.subr.bf16.mxu0 %v1117_v6  ;;  %1076 = vmatprep.subr.bf16.mxu1 %v1117_v6  ;;  %v1133_v20 = vld [vmem:[%s1214_s26 + $0x30] sm:$0xff]   ;;  %v1135_v22 = vld [vmem:[%s1214_s26 + $0x38] sm:$0xff]  }
  0x16   : > { %v1134_v21 = vld [vmem:[%s1214_s26 + $0x70] sm:$0xff]   ;;  %v1136_v23 = vld [vmem:[%s1214_s26 + $0x78] sm:$0xff]  }
  0x18   : > { %1033 = vmatpush3.bf16.msra.mxu0 %v1117_v6  ;;  %1084 = vmatpush3.bf16.msra.mxu1 %v1117_v6 }
  0x19   : > { %1034 = vmatprep.subr.bf16.mxu0 %v1118_v7  ;;  %1077 = vmatprep.subr.bf16.mxu1 %v1118_v7 }
  0x1c   : > { %1035 = vmatpush3.bf16.msra.mxu0 %v1118_v7  ;;  %1085 = vmatpush3.bf16.msra.mxu1 %v1118_v7 }
  0x1d   : > { %1036 = vmatprep.subr.bf16.mxu0 %v1119_v8  ;;  %1078 = vmatprep.subr.bf16.mxu1 %v1119_v8 }
  0x20   : > { %1037 = vmatpush3.bf16.msra.mxu0 %v1119_v8  ;;  %1086 = vmatpush3.bf16.msra.mxu1 %v1119_v8 }
  0x21   : > { %1038 = vmatprep.subr.bf16.mxu0 %v1120_v9  ;;  %1079 = vmatprep.subr.bf16.mxu1 %v1120_v9 }
  0x24   : > { %1039 = vmatpush3.bf16.msra.mxu0 %v1120_v9  ;;  %1087 = vmatpush3.bf16.msra.mxu1 %v1120_v9 }
  0x27   : > { %1041 = vmatmul.mubr.bf16.vlgmr.msra.gmra.mrb[0].mxu0 %v1123_v10  ;;  %1057 = vmatmul.mubr.bf16.vlgmr.msra.gmra.mrb[0].mxu1 %v1124_v11 }
  0x28   : > { %1044 = vmatprep.mubr.bf16.mxu0 %v1125_v12  ;;  %1060 = vmatprep.mubr.bf16.mxu1 %v1126_v13 }
  0x2f   : > { %1045 = vmatmul.mubr.bf16.gmra.mrb[4].mxu0 %v1127_v14  ;;  %1061 = vmatmul.mubr.bf16.gmra.mrb[4].mxu1 %v1128_v15 }
  0x30   : > { %1048 = vmatprep.mubr.bf16.mxu0 %v1129_v16  ;;  %1064 = vmatprep.mubr.bf16.mxu1 %v1130_v17 }
  0x37   : > { %1049 = vmatmul.mubr.bf16.gmra.mrb[8].mxu0 %v1131_v18  ;;  %1065 = vmatmul.mubr.bf16.gmra.mrb[8].mxu1 %v1132_v19 }
  0x38   : > { %1052 = vmatprep.mubr.bf16.mxu0 %v1133_v20  ;;  %1068 = vmatprep.mubr.bf16.mxu1 %v1134_v21 }
  0x3f   : > { %1053 = vmatmul.mubr.bf16.gmra.mrb[12].mxu0 %v1135_v22  ;;  %1069 = vmatmul.mubr.bf16.gmra.mrb[12].mxu1 %v1136_v23 }
  0xfa   : > { %v1042_v24 = vpop.f32.mrb[0].mxu0  ;;  %v1058_v26 = vpop.f32.mrb[0].mxu1 }
  0xfb   : > { %v554_v27 = vpop.f32.mrb[1].mxu0  ;;  %v618_v28 = vpop.f32.mrb[1].mxu1  ;;  %v789_v31 = vadd.f32 %v1042_v24, %v1251_v25  ;;  %v805_v32 = vadd.f32 %v1058_v26, %v1251_v25 }
  0xfc   : > { %v1043_v29 = vpop.f32.mrb[2].mxu0  ;;  %v1059_v30 = vpop.f32.mrb[2].mxu1  ;;  %v787_v35 = vadd.f32 %v1251_v25, %v554_v27  ;;  %v803_v36 = vadd.f32 %v1251_v25, %v618_v28 }
  0xfd   : > { %v557_v33 = vpop.f32.mrb[3].mxu0  ;;  %v621_v34 = vpop.f32.mrb[3].mxu1  ;;  %821 = vst [vmem:[%s1256_s19 + $0x10] sm:$0xff] %v789_v31  ;;  %837 = vst [vmem:[%s1256_s19 + $0x90] sm:$0xff] %v805_v32  ;;  %v790_v37 = vadd.f32 %v1043_v29, %v1251_v25  ;;  %v806_v38 = vadd.f32 %v1059_v30, %v1251_v25 }
  0xfe   : > { %819 = vst [vmem:[%s1256_s19] sm:$0xff] %v787_v35  ;;  %835 = vst [vmem:[%s1256_s19 + $0x80] sm:$0xff] %v803_v36  ;;  %v788_v39 = vadd.f32 %v1251_v25, %v557_v33  ;;  %v804_v40 = vadd.f32 %v1251_v25, %v621_v34 }
  0xff   : > { %822 = vst [vmem:[%s1256_s19 + $0x18] sm:$0xff] %v790_v37  ;;  %838 = vst [vmem:[%s1256_s19 + $0x98] sm:$0xff] %v806_v38 }
 0x100   : > { %820 = vst [vmem:[%s1256_s19 + $0x8] sm:$0xff] %v788_v39  ;;  %836 = vst [vmem:[%s1256_s19 + $0x88] sm:$0xff] %v804_v40 }
 0x102   : > { %v1046_v41 = vpop.f32.mrb[4].mxu0  ;;  %v1062_v42 = vpop.f32.mrb[4].mxu1 }
 0x103   : > { %v570_v43 = vpop.f32.mrb[5].mxu0  ;;  %v634_v44 = vpop.f32.mrb[5].mxu1  ;;  %v793_v47 = vadd.f32 %v1046_v41, %v1251_v25  ;;  %v809_v48 = vadd.f32 %v1062_v42, %v1251_v25 }
 0x104   : > { %v1047_v45 = vpop.f32.mrb[6].mxu0  ;;  %v1063_v46 = vpop.f32.mrb[6].mxu1  ;;  %v791_v51 = vadd.f32 %v1251_v25, %v570_v43  ;;  %v807_v52 = vadd.f32 %v1251_v25, %v634_v44 }
 0x105   : > { %v573_v49 = vpop.f32.mrb[7].mxu0  ;;  %v637_v50 = vpop.f32.mrb[7].mxu1  ;;  %825 = vst [vmem:[%s1256_s19 + $0x30] sm:$0xff] %v793_v47  ;;  %841 = vst [vmem:[%s1256_s19 + $0xb0] sm:$0xff] %v809_v48  ;;  %v794_v53 = vadd.f32 %v1047_v45, %v1251_v25  ;;  %v810_v54 = vadd.f32 %v1063_v46, %v1251_v25 }
 0x106   : > { %823 = vst [vmem:[%s1256_s19 + $0x20] sm:$0xff] %v791_v51  ;;  %839 = vst [vmem:[%s1256_s19 + $0xa0] sm:$0xff] %v807_v52  ;;  %v792_v55 = vadd.f32 %v1251_v25, %v573_v49  ;;  %v808_v56 = vadd.f32 %v1251_v25, %v637_v50 }
 0x107   : > { %826 = vst [vmem:[%s1256_s19 + $0x38] sm:$0xff] %v794_v53  ;;  %842 = vst [vmem:[%s1256_s19 + $0xb8] sm:$0xff] %v810_v54 }
 0x108   : > { %824 = vst [vmem:[%s1256_s19 + $0x28] sm:$0xff] %v792_v55  ;;  %840 = vst [vmem:[%s1256_s19 + $0xa8] sm:$0xff] %v808_v56 }
 0x10a   : > { %v1050_v57 = vpop.f32.mrb[8].mxu0  ;;  %v1066_v58 = vpop.f32.mrb[8].mxu1 }
 0x10b   : > { %v586_v59 = vpop.f32.mrb[9].mxu0  ;;  %v650_v60 = vpop.f32.mrb[9].mxu1  ;;  %v797_v63 = vadd.f32 %v1050_v57, %v1251_v25  ;;  %v813_v0 = vadd.f32 %v1066_v58, %v1251_v25 }
 0x10c   : > { %v1051_v61 = vpop.f32.mrb[10].mxu0  ;;  %v1067_v62 = vpop.f32.mrb[10].mxu1  ;;  %v795_v3 = vadd.f32 %v1251_v25, %v586_v59  ;;  %v811_v4 = vadd.f32 %v1251_v25, %v650_v60 }
 0x10d   : > { %v589_v1 = vpop.f32.mrb[11].mxu0  ;;  %v653_v2 = vpop.f32.mrb[11].mxu1  ;;  %829 = vst [vmem:[%s1256_s19 + $0x50] sm:$0xff] %v797_v63  ;;  %845 = vst [vmem:[%s1256_s19 + $0xd0] sm:$0xff] %v813_v0  ;;  %v798_v5 = vadd.f32 %v1051_v61, %v1251_v25  ;;  %v814_v6 = vadd.f32 %v1067_v62, %v1251_v25 }
 0x10e   : > { %827 = vst [vmem:[%s1256_s19 + $0x40] sm:$0xff] %v795_v3  ;;  %843 = vst [vmem:[%s1256_s19 + $0xc0] sm:$0xff] %v811_v4  ;;  %v796_v7 = vadd.f32 %v1251_v25, %v589_v1  ;;  %v812_v8 = vadd.f32 %v1251_v25, %v653_v2 }
 0x10f   : > { %830 = vst [vmem:[%s1256_s19 + $0x58] sm:$0xff] %v798_v5  ;;  %846 = vst [vmem:[%s1256_s19 + $0xd8] sm:$0xff] %v814_v6 }
 0x110   : > { %828 = vst [vmem:[%s1256_s19 + $0x48] sm:$0xff] %v796_v7  ;;  %844 = vst [vmem:[%s1256_s19 + $0xc8] sm:$0xff] %v812_v8 }
 0x112   : > { %v1054_v9 = vpop.f32.mrb[12].mxu0  ;;  %v1070_v10 = vpop.f32.mrb[12].mxu1 }
 0x113   : > { %v602_v11 = vpop.f32.mrb[13].mxu0  ;;  %v666_v12 = vpop.f32.mrb[13].mxu1  ;;  %v801_v15 = vadd.f32 %v1054_v9, %v1251_v25  ;;  %v817_v16 = vadd.f32 %v1070_v10, %v1251_v25 }
 0x114   : > { %v1055_v13 = vpop.f32.mrb[14].mxu0  ;;  %v1071_v14 = vpop.f32.mrb[14].mxu1  ;;  %v799_v19 = vadd.f32 %v1251_v25, %v602_v11  ;;  %v815_v20 = vadd.f32 %v1251_v25, %v666_v12 }
 0x115   : > { %v605_v17 = vpop.f32.mrb[15].mxu0  ;;  %v669_v18 = vpop.f32.mrb[15].mxu1  ;;  %833 = vst [vmem:[%s1256_s19 + $0x70] sm:$0xff] %v801_v15  ;;  %849 = vst [vmem:[%s1256_s19 + $0xf0] sm:$0xff] %v817_v16  ;;  %v802_v21 = vadd.f32 %v1055_v13, %v1251_v25  ;;  %v818_v22 = vadd.f32 %v1071_v14, %v1251_v25 }
 0x116   : > { %831 = vst [vmem:[%s1256_s19 + $0x60] sm:$0xff] %v799_v19  ;;  %847 = vst [vmem:[%s1256_s19 + $0xe0] sm:$0xff] %v815_v20  ;;  %v800_v23 = vadd.f32 %v1251_v25, %v605_v17  ;;  %v816_v24 = vadd.f32 %v1251_v25, %v669_v18 }
 0x117   : > { %834 = vst [vmem:[%s1256_s19 + $0x78] sm:$0xff] %v802_v21  ;;  %850 = vst [vmem:[%s1256_s19 + $0xf8] sm:$0xff] %v818_v22 }
 0x118   : > { %832 = vst [vmem:[%s1256_s19 + $0x68] sm:$0xff] %v800_v23  ;;  %848 = vst [vmem:[%s1256_s19 + $0xe8] sm:$0xff] %v816_v24 }
 0x119 PF: > { %s13_s14 = sadd.s32 1, %s1159_s14   ;;  %s1335_s12 = smov %s1155_s13 }
 0x11a   : > { %p10_p5 = scmp.ge.s32.totalorder %s13_s14, 4   ;;  %s1336_s13 = smov %s1338_s15 }
 0x11c   :  { %12 = sbr.rel (!%p10_p5) target bundleno = 2 (0x2), region = 76 }

// kernel: snunet_forward.27
= control target key start
LH: loop header
LB: loop body
LE: loop exit
PB: predicated region body
PF: predicated region fallthrough
CT: control target
= control target key end

     0   :  { %s1898_s12 = smov 0   ;;  %s1900_s13 = smov 0   ;;  %s2152_s0 = inlined_call_operand.vmem [shape: bf16[512,384], index: 0, kind: input, shape index: {}]   ;;  %s2153_s1 = inlined_call_operand.vmem [shape: bf16[384,128], index: 1, kind: input, shape index: {}]   ;;  %s2154_s2 = inlined_call_operand.vmem [shape: f32[1,128], index: 2, kind: input, shape index: {}]   ;;  %s2155_s3 = inlined_call_operand.vmem [shape: f32[512,128], index: 3, kind: output, shape index: {}]  }
   0x1   :  { %s1902_s14 = smov 0  }
   0x2 LB: > { %s32_s15 = sadd.s32 1, %s1872_s13  ;;  %p1460_p0 = scmp.ge.s32.totalorder %s1876_s14, 1  ;;  %s1876_s14 = sphi %s1902_s14, %s13_s14   ;;  %s1872_s13 = sphi %s1900_s13, %s2157_s13   ;;  %s1868_s12 = sphi %s1898_s12, %s2156_s12  }
   0x3   : > { %p34_p1 = scmp.ge.s32.totalorder %s32_s15, 2  ;;  %p191_p2 = scmp.lt.s32.totalorder %s1876_s14, 3 }
   0x5   : > { %s2159_s15 = smov (%p34_p1, %s32_s15), 0  ;;  %p192_p3 = pnand %p1460_p0, %p191_p2 }
   0x6   : > { %v1766_v0 = vld [vmem:[%s2153_s1 + $0x40] sm:$0xff] (!%p192_p3)   ;;  %s1461_s18 = sshll.u32 (!%p192_p3), %s1868_s12, 5  ;;  %v1768_v2 = vld [vmem:[%s2153_s1 + $0x48] sm:$0xff] (!%p192_p3)   ;;  %v1770_v4 = vld [vmem:[%s2153_s1 + $0x50] sm:$0xff] (!%p192_p3)  }
   0x7   : > { %195 = sbr.rel (%p192_p3) target bundleno = 349 (0x15d), region = 32  ;;  %v1767_v1 = vld [vmem:[%s2153_s1] sm:$0xff] (!%p192_p3)   ;;  %1540 = vmatprep.subr.bf16.mxu0 (!%p192_p3), %v1766_v0  ;;  %1724 = vmatprep.subr.bf16.mxu1 (!%p192_p3), %v1766_v0  ;;  %p236_p4 = scmp.lt.s32.totalorder (!%p192_p3), %s1461_s18, 63  ;;  %v1769_v3 = vld [vmem:[%s2153_s1 + $0x8] sm:$0xff] (!%p192_p3)   ;;  %v1771_v5 = vld [vmem:[%s2153_s1 + $0x10] sm:$0xff] (!%p192_p3)  }
   0x8   : > { %1541 = vmatpush3.bf16.msra.mxu0 (!%p192_p3), %v1767_v1  ;;  %1732 = vmatpush3.bf16.msra.mxu1 (!%p192_p3), %v1767_v1  ;;  %v1772_v6 = vld [vmem:[%s2153_s1 + $0x58] sm:$0xff] (!%p192_p3)   ;;  %v1774_v8 = vld [vmem:[%s2153_s1 + $0x60] sm:$0xff] (!%p192_p3)   ;;  %v1776_v10 = vld [vmem:[%s2153_s1 + $0x68] sm:$0xff] (!%p192_p3)  }
   0x9   : > { %1542 = vmatprep.subr.bf16.mxu0 (!%p192_p3), %v1768_v2  ;;  %1725 = vmatprep.subr.bf16.mxu1 (!%p192_p3), %v1768_v2  ;;  %v1773_v7 = vld [vmem:[%s2153_s1 + $0x18] sm:$0xff] (!%p192_p3)   ;;  %v1775_v9 = vld [vmem:[%s2153_s1 + $0x20] sm:$0xff] (!%p192_p3)   ;;  %v1777_v13 = vld [vmem:[%s2153_s1 + $0x28] sm:$0xff] (!%p192_p3)  }
   0xa   : > { %v1778_v14 = vld [vmem:[%s2153_s1 + $0x70] sm:$0xff] (!%p192_p3)   ;;  %v1780_v16 = vld [vmem:[%s2153_s1 + $0x78] sm:$0xff] (!%p192_p3)   ;;  %v1788_v18 = vld [vmem:[%s2153_s1 + $0x80] sm:$0xff] (!%p192_p3)  }
   0xb   : > { %v1779_v15 = vld [vmem:[%s2153_s1 + $0x30] sm:$0xff] (!%p192_p3)   ;;  %v1781_v17 = vld [vmem:[%s2153_s1 + $0x38] sm:$0xff] (!%p192_p3)   ;;  %v1789_v22 = vld [vmem:[%s2153_s1 + $0x88] sm:$0xff] (!%p192_p3)  }
   0xc   : > { %1543 = vmatpush3.bf16.msra.mxu0 (!%p192_p3), %v1769_v3  ;;  %1733 = vmatpush3.bf16.msra.mxu1 (!%p192_p3), %v1769_v3  ;;  %v1796_v25 = vld [vmem:[%s2153_s1 + $0x90] sm:$0xff] (!%p192_p3)   ;;  %v1797_v27 = vld [vmem:[%s2153_s1 + $0x98] sm:$0xff] (!%p192_p3)   ;;  %v1804_v30 = vld [vmem:[%s2153_s1 + $0xa0] sm:$0xff] (!%p192_p3)  }
   0xd   : > { %1544 = vmatprep.subr.bf16.mxu0 (!%p192_p3), %v1770_v4  ;;  %1726 = vmatprep.subr.bf16.mxu1 (!%p192_p3), %v1770_v4  ;;  %v1805_v33 = vld [vmem:[%s2153_s1 + $0xa8] sm:$0xff] (!%p192_p3)   ;;  %v1812_v36 = vld [vmem:[%s2153_s1 + $0xb0] sm:$0xff] (!%p192_p3)   ;;  %v1813_v40 = vld [vmem:[%s2153_s1 + $0xb8] sm:$0xff] (!%p192_p3)  }
   0xe   : > { %s2161_s18 = smov (!%p236_p4, %s1461_s18), 63 }
   0xf   : > { %s1740_s4 = smul.u32 12, %s2161_s18 }
  0x10   : > { %1545 = vmatpush3.bf16.msra.mxu0 %v1771_v5  ;;  %1734 = vmatpush3.bf16.msra.mxu1 %v1771_v5 }
  0x11   : > { %1546 = vmatprep.subr.bf16.mxu0 %v1772_v6  ;;  %1727 = vmatprep.subr.bf16.mxu1 %v1772_v6  ;;  %s1949_s11 = scalar_lea.vmem %s2152_s0, %s1740_s4 }
  0x12   : > { %v1784_v11 = vld [vmem:[%s1949_s11 + $0x4] ss:$12 sps:$4 sm:$0xff]   ;;  %v1782_v19 = vld [vmem:[%s1949_s11] ss:$12 sps:$4 sm:$0xff]   ;;  %v1790_v21 = vld [vmem:[%s1949_s11 + $0x1c] ss:$12 sps:$4 sm:$0xff]  }
  0x13   : > { %v1787_v12 = vld [vmem:[%s1949_s11 + $0x124] ss:$12 sps:$4 sm:$0xff]   ;;  %880 = vmatprep.mubr.bf16.mxu0 %v1784_v11  ;;  %v1785_v20 = vld [vmem:[%s1949_s11 + $0x120] ss:$12 sps:$4 sm:$0xff]   ;;  %v1792_v23 = vld [vmem:[%s1949_s11 + $0x13c] ss:$12 sps:$4 sm:$0xff]  }
  0x14   : > { %1547 = vmatpush3.bf16.msra.mxu0 %v1773_v7  ;;  %1735 = vmatpush3.bf16.msra.mxu1 %v1773_v7  ;;  %v1794_v24 = vld [vmem:[%s1949_s11 + $0x18] ss:$12 sps:$4 sm:$0xff]   ;;  %v1798_v28 = vld [vmem:[%s1949_s11 + $0x34] ss:$12 sps:$4 sm:$0xff]   ;;  %v1802_v31 = vld [vmem:[%s1949_s11 + $0x30] ss:$12 sps:$4 sm:$0xff]  }
  0x15   : > { %1548 = vmatprep.subr.bf16.mxu0 %v1774_v8  ;;  %1728 = vmatprep.subr.bf16.mxu1 %v1774_v8  ;;  %v1795_v26 = vld [vmem:[%s1949_s11 + $0x138] ss:$12 sps:$4 sm:$0xff]   ;;  %v1800_v29 = vld [vmem:[%s1949_s11 + $0x154] ss:$12 sps:$4 sm:$0xff]   ;;  %v1803_v32 = vld [vmem:[%s1949_s11 + $0x150] ss:$12 sps:$4 sm:$0xff]  }
  0x16   : > { %976 = vmatprep.mubr.bf16.mxu1 %v1787_v12  ;;  %v1806_v34 = vld [vmem:[%s1949_s11 + $0x4c] ss:$12 sps:$4 sm:$0xff]   ;;  %v1810_v37 = vld [vmem:[%s1949_s11 + $0x48] ss:$12 sps:$4 sm:$0xff]   ;;  %v1814_v39 = vld [vmem:[%s1949_s11 + $0x64] ss:$12 sps:$4 sm:$0xff]  }
  0x17   : > { %v1808_v35 = vld [vmem:[%s1949_s11 + $0x16c] ss:$12 sps:$4 sm:$0xff]   ;;  %v1811_v38 = vld [vmem:[%s1949_s11 + $0x168] ss:$12 sps:$4 sm:$0xff]   ;;  %v1823_v47 = vld [vmem:[%s1949_s11 + $0x50] ss:$12 sps:$4 sm:$0xff]  }
  0x18   : > { %1549 = vmatpush3.bf16.msra.mxu0 %v1775_v9  ;;  %1736 = vmatpush3.bf16.msra.mxu1 %v1775_v9  ;;  %v1816_v41 = vld [vmem:[%s1949_s11 + $0x8] ss:$12 sps:$4 sm:$0xff]   ;;  %v1817_v42 = vld [vmem:[%s1949_s11 + $0x60] ss:$12 sps:$4 sm:$0xff]   ;;  %v1821_v45 = vld [vmem:[%s1949_s11 + $0x38] ss:$12 sps:$4 sm:$0xff]  }
  0x19   : > { %1550 = vmatprep.subr.bf16.mxu0 %v1776_v10  ;;  %1729 = vmatprep.subr.bf16.mxu1 %v1776_v10  ;;  %v1818_v43 = vld [vmem:[%s1949_s11 + $0x20] ss:$12 sps:$4 sm:$0xff]   ;;  %v1819_v44 = vld [vmem:[%s1949_s11 + $0x7c] ss:$12 sps:$4 sm:$0xff]   ;;  %v1822_v46 = vld [vmem:[%s1949_s11 + $0x78] ss:$12 sps:$4 sm:$0xff]  }
  0x1a   : > { %v1824_v48 = vld [vmem:[%s1949_s11 + $0x94] ss:$12 sps:$4 sm:$0xff]   ;;  %v1827_v50 = vld [vmem:[%s1949_s11 + $0x90] ss:$12 sps:$4 sm:$0xff]   ;;  %v1829_v52 = vld [vmem:[%s1949_s11 + $0xac] ss:$12 sps:$4 sm:$0xff]  }
  0x1b   : > { %v1826_v49 = vld [vmem:[%s1949_s11 + $0x68] ss:$12 sps:$4 sm:$0xff]   ;;  %v1828_v51 = vld [vmem:[%s1949_s11 + $0x80] ss:$12 sps:$4 sm:$0xff]   ;;  %v1831_v53 = vld [vmem:[%s1949_s11 + $0x98] ss:$12 sps:$4 sm:$0xff]  }
  0x1c   : > { %1551 = vmatpush3.bf16.msra.mxu0 %v1777_v13  ;;  %1737 = vmatpush3.bf16.msra.mxu1 %v1777_v13  ;;  %v1832_v54 = vld [vmem:[%s1949_s11 + $0xa8] ss:$12 sps:$4 sm:$0xff]   ;;  %v1833_v55 = vld [vmem:[%s1949_s11 + $0xb0] ss:$12 sps:$4 sm:$0xff]   ;;  %v1837_v58 = vld [vmem:[%s1949_s11 + $0xc0] ss:$12 sps:$4 sm:$0xff]  }
  0x1d   : > { %1552 = vmatprep.subr.bf16.mxu0 %v1778_v14  ;;  %1730 = vmatprep.subr.bf16.mxu1 %v1778_v14  ;;  %v1834_v56 = vld [vmem:[%s1949_s11 + $0xc4] ss:$12 sps:$4 sm:$0xff]   ;;  %v1836_v57 = vld [vmem:[%s1949_s11 + $0xc8] ss:$12 sps:$4 sm:$0xff]   ;;  %v1838_v59 = vld [vmem:[%s1949_s11 + $0xe0] ss:$12 sps:$4 sm:$0xff]  }
  0x1e   : > { %v1839_v60 = vld [vmem:[%s1949_s11 + $0xdc] ss:$12 sps:$4 sm:$0xff]   ;;  %v1841_v61 = vld [vmem:[%s1949_s11 + $0xf8] ss:$12 sps:$4 sm:$0xff]   ;;  %v1844_v0 = vld [vmem:[%s1949_s11 + $0xf4] ss:$12 sps:$4 sm:$0xff]  }
  0x1f   : > { %v1842_v62 = vld [vmem:[%s1949_s11 + $0xd8] ss:$12 sps:$4 sm:$0xff]   ;;  %v1843_v63 = vld [vmem:[%s1949_s11 + $0x110] ss:$12 sps:$4 sm:$0xff]   ;;  %v1846_v1 = vld [vmem:[%s1949_s11 + $0x128] ss:$12 sps:$4 sm:$0xff]  }
  0x20   : > { %1553 = vmatpush3.bf16.msra.mxu0 %v1779_v15  ;;  %1738 = vmatpush3.bf16.msra.mxu1 %v1779_v15  ;;  %v1847_v2 = vld [vmem:[%s1949_s11 + $0xf0] ss:$12 sps:$4 sm:$0xff]   ;;  %v1848_v3 = vld [vmem:[%s1949_s11 + $0x140] ss:$12 sps:$4 sm:$0xff]   ;;  %v1851_v5 = vld [vmem:[%s1949_s11 + $0x158] ss:$12 sps:$4 sm:$0xff]  }
  0x21   : > { %1554 = vmatprep.subr.bf16.mxu0 %v1780_v16  ;;  %1731 = vmatprep.subr.bf16.mxu1 %v1780_v16  ;;  %v1849_v4 = vld [vmem:[%s1949_s11 + $0x10c] ss:$12 sps:$4 sm:$0xff]   ;;  %v1852_v6 = vld [vmem:[%s1949_s11 + $0x108] ss:$12 sps:$4 sm:$0xff]   ;;  %v1853_v7 = vld [vmem:[%s1949_s11 + $0x170] ss:$12 sps:$4 sm:$0xff]  }
  0x22   : > { %s1464_s11 = sshll.u32 %s2161_s18, 3 }
  0x23   : > { %s2069_s28 = scalar_lea.vmem %s2155_s3, %s1464_s11 }
  0x24   : > { %1555 = vmatpush3.bf16.msra.mxu0 %v1781_v17  ;;  %1739 = vmatpush3.bf16.msra.mxu1 %v1781_v17 }
  0x25   : > { %1676 = vmatprep.subr.bf16.mxu1 %v1788_v18 }
  0x27   : > { %881 = vmatmul.mubr.bf16.vlgmr.msra.gmra.mrb[0].mxu0 %v1782_v19  ;;  %977 = vmatmul.mubr.bf16.vlgmr.msra.gmra.mrb[0].mxu1 %v1785_v20 }
  0x28   : > { %1677 = vmatpush3.bf16.msra.mxu1 %v1788_v18  ;;  %888 = vmatprep.mubr.bf16.mxu0 %v1790_v21 }
  0x29   : > { %1678 = vmatprep.subr.bf16.mxu1 %v1789_v22  ;;  %984 = vmatprep.mubr.bf16.mxu1 %v1792_v23 }
  0x2c   : > { %1679 = vmatpush3.bf16.msra.mxu1 %v1789_v22 }
  0x2d   : > { %1680 = vmatprep.subr.bf16.mxu1 %v1796_v25 }
  0x2f   : > { %889 = vmatmul.mubr.bf16.gmra.mrb[4].mxu0 %v1794_v24  ;;  %985 = vmatmul.mubr.bf16.gmra.mrb[4].mxu1 %v1795_v26 }
  0x30   : > { %1681 = vmatpush3.bf16.msra.mxu1 %v1796_v25  ;;  %896 = vmatprep.mubr.bf16.mxu0 %v1798_v28 }
  0x31   : > { %1682 = vmatprep.subr.bf16.mxu1 %v1797_v27  ;;  %992 = vmatprep.mubr.bf16.mxu1 %v1800_v29 }
  0x34   : > { %1683 = vmatpush3.bf16.msra.mxu1 %v1797_v27 }
  0x35   : > { %1684 = vmatprep.subr.bf16.mxu1 %v1804_v30 }
  0x37   : > { %897 = vmatmul.mubr.bf16.gmra.mrb[8].mxu0 %v1802_v31  ;;  %993 = vmatmul.mubr.bf16.gmra.mrb[8].mxu1 %v1803_v32 }
  0x38   : > { %1685 = vmatpush3.bf16.msra.mxu1 %v1804_v30  ;;  %904 = vmatprep.mubr.bf16.mxu0 %v1806_v34 }
  0x39   : > { %1686 = vmatprep.subr.bf16.mxu1 %v1805_v33  ;;  %1000 = vmatprep.mubr.bf16.mxu1 %v1808_v35 }
  0x3c   : > { %1687 = vmatpush3.bf16.msra.mxu1 %v1805_v33 }
  0x3d   : > { %1688 = vmatprep.subr.bf16.mxu1 %v1812_v36 }
  0x3f   : > { %905 = vmatmul.mubr.bf16.gmra.mrb[12].mxu0 %v1810_v37  ;;  %1001 = vmatmul.mubr.bf16.gmra.mrb[12].mxu1 %v1811_v38 }
  0x40   : > { %1689 = vmatpush3.bf16.msra.mxu1 %v1812_v36  ;;  %912 = vmatprep.mubr.bf16.mxu0 %v1814_v39 }
  0x41   : > { %1690 = vmatprep.subr.bf16.mxu1 %v1813_v40  ;;  %1692 = vmatprep.mubr.bf16.mxu1 %v1816_v41 }
  0x44   : > { %1691 = vmatpush3.bf16.msra.mxu1 %v1813_v40 }
  0x47   : > { %913 = vmatmul.mubr.bf16.gmra.mrb[16].mxu0 %v1817_v42  ;;  %1693 = vmatmul.mubr.bf16.vlgmr.msra.gmra.mrb[16].mxu1 %v1818_v43 }
  0x48   : > { %920 = vmatprep.mubr.bf16.mxu0 %v1819_v44  ;;  %1696 = vmatprep.mubr.bf16.mxu1 %v1821_v45 }
  0x4f   : > { %921 = vmatmul.mubr.bf16.gmra.mrb[20].mxu0 %v1822_v46  ;;  %1697 = vmatmul.mubr.bf16.gmra.mrb[20].mxu1 %v1823_v47 }
  0x50   : > { %928 = vmatprep.mubr.bf16.mxu0 %v1824_v48  ;;  %1700 = vmatprep.mubr.bf16.mxu1 %v1826_v49 }
  0x57   : > { %929 = vmatmul.mubr.bf16.gmra.mrb[24].mxu0 %v1827_v50  ;;  %1701 = vmatmul.mubr.bf16.gmra.mrb[24].mxu1 %v1828_v51 }
  0x58   : > { %936 = vmatprep.mubr.bf16.mxu0 %v1829_v52  ;;  %1704 = vmatprep.mubr.bf16.mxu1 %v1831_v53 }
  0x5f   : > { %937 = vmatmul.mubr.bf16.gmra.mrb[28].mxu0 %v1832_v54  ;;  %1705 = vmatmul.mubr.bf16.gmra.mrb[28].mxu1 %v1833_v55 }
  0x60   : > { %944 = vmatprep.mubr.bf16.mxu0 %v1834_v56  ;;  %1708 = vmatprep.mubr.bf16.mxu1 %v1836_v57 }
  0x67   : > { %945 = vmatmul.mubr.bf16.gmra.mrb[32].mxu0 %v1837_v58  ;;  %1709 = vmatmul.mubr.bf16.gmra.mrb[32].mxu1 %v1838_v59 }
  0x68   : > { %952 = vmatprep.mubr.bf16.mxu0 %v1839_v60  ;;  %1712 = vmatprep.mubr.bf16.mxu1 %v1841_v61  ;;  %v2064_v61 = vld [vmem:[%s2154_s2] ss:$0 sm:$0xff] }
  0x6f   : > { %953 = vmatmul.mubr.bf16.gmra.mrb[36].mxu0 %v1842_v62  ;;  %1713 = vmatmul.mubr.bf16.gmra.mrb[36].mxu1 %v1843_v63 }
  0x70   : > { %960 = vmatprep.mubr.bf16.mxu0 %v1844_v0  ;;  %1716 = vmatprep.mubr.bf16.mxu1 %v1846_v1 }
  0x77   : > { %961 = vmatmul.mubr.bf16.gmra.mrb[40].mxu0 %v1847_v2  ;;  %1717 = vmatmul.mubr.bf16.gmra.mrb[40].mxu1 %v1848_v3 }
  0x78   : > { %968 = vmatprep.mubr.bf16.mxu0 %v1849_v4  ;;  %1720 = vmatprep.mubr.bf16.mxu1 %v1851_v5 }
  0x7f   : > { %969 = vmatmul.mubr.bf16.gmra.mrb[44].mxu0 %v1852_v6  ;;  %1721 = vmatmul.mubr.bf16.gmra.mrb[44].mxu1 %v1853_v7 }
  0xfa   : > { %v1556_v8 = vpop.f32.mrb[0].mxu0  ;;  %v1628_v9 = vpop.f32.mrb[0].mxu1 }
  0xfb   : > { %v1557_v10 = vpop.f32.mrb[1].mxu0  ;;  %v1629_v11 = vpop.f32.mrb[1].mxu1 }
  0xfc   : > { %v1558_v12 = vadd.f32 %v1557_v10, %v1556_v8  ;;  %v2044_v13 = vadd.f32 %v1629_v11, %v1628_v9  ;;  %v1559_v14 = vpop.f32.mrb[2].mxu0  ;;  %v1631_v15 = vpop.f32.mrb[2].mxu1 }
  0xfd   : > { %v1560_v16 = vpop.f32.mrb[3].mxu0  ;;  %v1632_v17 = vpop.f32.mrb[3].mxu1 }
  0xfe   : > { %v1561_v18 = vadd.f32 %v1560_v16, %v1559_v14  ;;  %v2046_v19 = vadd.f32 %v1632_v17, %v1631_v15 }
 0x102   : > { %v1562_v20 = vpop.f32.mrb[4].mxu0  ;;  %v1634_v21 = vpop.f32.mrb[4].mxu1 }
 0x103   : > { %v1563_v22 = vpop.f32.mrb[5].mxu0  ;;  %v1635_v23 = vpop.f32.mrb[5].mxu1 }
 0x104   : > { %v1564_v24 = vadd.f32 %v1563_v22, %v1562_v20  ;;  %v2048_v25 = vadd.f32 %v1635_v23, %v1634_v21  ;;  %v1565_v26 = vpop.f32.mrb[6].mxu0  ;;  %v1637_v27 = vpop.f32.mrb[6].mxu1 }
 0x105   : > { %v1566_v28 = vpop.f32.mrb[7].mxu0  ;;  %v1638_v29 = vpop.f32.mrb[7].mxu1 }
 0x106   : > { %v1567_v30 = vadd.f32 %v1566_v28, %v1565_v26  ;;  %v2050_v31 = vadd.f32 %v1638_v29, %v1637_v27 }
 0x10a   : > { %v1568_v32 = vpop.f32.mrb[8].mxu0  ;;  %v1640_v33 = vpop.f32.mrb[8].mxu1 }
 0x10b   : > { %v1569_v34 = vpop.f32.mrb[9].mxu0  ;;  %v1641_v35 = vpop.f32.mrb[9].mxu1 }
 0x10c   : > { %v1570_v36 = vadd.f32 %v1569_v34, %v1568_v32  ;;  %v2052_v37 = vadd.f32 %v1641_v35, %v1640_v33  ;;  %v1571_v38 = vpop.f32.mrb[10].mxu0  ;;  %v1643_v39 = vpop.f32.mrb[10].mxu1 }
 0x10d   : > { %v1572_v40 = vpop.f32.mrb[11].mxu0  ;;  %v1644_v41 = vpop.f32.mrb[11].mxu1 }
 0x10e   : > { %v1573_v42 = vadd.f32 %v1572_v40, %v1571_v38  ;;  %v2054_v43 = vadd.f32 %v1644_v41, %v1643_v39 }
 0x112   : > { %v1574_v44 = vpop.f32.mrb[12].mxu0  ;;  %v1646_v45 = vpop.f32.mrb[12].mxu1 }
 0x113   : > { %v1575_v46 = vpop.f32.mrb[13].mxu0  ;;  %v1647_v47 = vpop.f32.mrb[13].mxu1 }
 0x114   : > { %v1576_v48 = vadd.f32 %v1575_v46, %v1574_v44  ;;  %v2056_v49 = vadd.f32 %v1647_v47, %v1646_v45  ;;  %v1577_v50 = vpop.f32.mrb[14].mxu0  ;;  %v1649_v51 = vpop.f32.mrb[14].mxu1 }
 0x115   : > { %v1578_v52 = vpop.f32.mrb[15].mxu0  ;;  %v1650_v53 = vpop.f32.mrb[15].mxu1 }
 0x116   : > { %v1579_v54 = vadd.f32 %v1578_v52, %v1577_v50  ;;  %v2058_v55 = vadd.f32 %v1650_v53, %v1649_v51 }
 0x11a   : > { %v1580_v56 = vpop.f32.mrb[16].mxu0  ;;  %v1694_v57 = vpop.f32.mrb[16].mxu1 }
 0x11b   : > { %v1052_v58 = vadd.f32 %v1694_v57, %v1564_v24  ;;  %v1581_v59 = vpop.f32.mrb[17].mxu0  ;;  %v1043_v60 = vpop.f32.mrb[17].mxu1 }
 0x11c   : > { %v1582_v62 = vadd.f32 %v1581_v59, %v1580_v56  ;;  %v1044_v63 = vadd.f32 %v1558_v12, %v1043_v60  ;;  %v1583_v0 = vpop.f32.mrb[18].mxu0  ;;  %v1695_v1 = vpop.f32.mrb[18].mxu1 }
 0x11d   : > { %v1055_v2 = vadd.f32 %v1695_v1, %v1567_v30  ;;  %v1584_v3 = vpop.f32.mrb[19].mxu0  ;;  %v1046_v4 = vpop.f32.mrb[19].mxu1  ;;  %v1278_v7 = vadd.f32 %v2064_v61, %v1052_v58 }
 0x11e   : > { %v1585_v5 = vadd.f32 %v1584_v3, %v1583_v0  ;;  %v1047_v6 = vadd.f32 %v1561_v18, %v1046_v4  ;;  %v1276_v8 = vadd.f32 %v2064_v61, %v1044_v63 }
 0x11f   : > { %1310 = vst [vmem:[%s2069_s28 + $0x10] sm:$0xff] %v1278_v7  ;;  %v1279_v9 = vadd.f32 %v2064_v61, %v1055_v2 }
 0x120   : > { %1308 = vst [vmem:[%s2069_s28] sm:$0xff] %v1276_v8  ;;  %v1277_v10 = vadd.f32 %v2064_v61, %v1047_v6 }
 0x121   : > { %1311 = vst [vmem:[%s2069_s28 + $0x18] sm:$0xff] %v1279_v9 }
 0x122   : > { %v1586_v11 = vpop.f32.mrb[20].mxu0  ;;  %v1698_v12 = vpop.f32.mrb[20].mxu1  ;;  %1309 = vst [vmem:[%s2069_s28 + $0x8] sm:$0xff] %v1277_v10 }
 0x123   : > { %v1068_v14 = vadd.f32 %v1698_v12, %v1576_v48  ;;  %v1587_v15 = vpop.f32.mrb[21].mxu0  ;;  %v1059_v16 = vpop.f32.mrb[21].mxu1 }
 0x124   : > { %v1588_v17 = vadd.f32 %v1587_v15, %v1586_v11  ;;  %v1060_v18 = vadd.f32 %v1570_v36, %v1059_v16  ;;  %v1589_v20 = vpop.f32.mrb[22].mxu0  ;;  %v1699_v21 = vpop.f32.mrb[22].mxu1 }
 0x125   : > { %v1071_v22 = vadd.f32 %v1699_v21, %v1579_v54  ;;  %v1590_v23 = vpop.f32.mrb[23].mxu0  ;;  %v1062_v24 = vpop.f32.mrb[23].mxu1  ;;  %v1282_v28 = vadd.f32 %v2064_v61, %v1068_v14 }
 0x126   : > { %v1591_v26 = vadd.f32 %v1590_v23, %v1589_v20  ;;  %v1063_v27 = vadd.f32 %v1573_v42, %v1062_v24  ;;  %v1280_v29 = vadd.f32 %v2064_v61, %v1060_v18 }
 0x127   : > { %1314 = vst [vmem:[%s2069_s28 + $0x30] sm:$0xff] %v1282_v28  ;;  %v1283_v30 = vadd.f32 %v2064_v61, %v1071_v22 }
 0x128   : > { %1312 = vst [vmem:[%s2069_s28 + $0x20] sm:$0xff] %v1280_v29  ;;  %v1281_v32 = vadd.f32 %v2064_v61, %v1063_v27 }
 0x129   : > { %1315 = vst [vmem:[%s2069_s28 + $0x38] sm:$0xff] %v1283_v30 }
 0x12a   : > { %v1592_v33 = vpop.f32.mrb[24].mxu0  ;;  %v1702_v34 = vpop.f32.mrb[24].mxu1  ;;  %1313 = vst [vmem:[%s2069_s28 + $0x28] sm:$0xff] %v1281_v32 }
 0x12b   : > { %v1084_v35 = vadd.f32 %v1702_v34, %v1588_v17  ;;  %v1593_v36 = vpop.f32.mrb[25].mxu0  ;;  %v1075_v38 = vpop.f32.mrb[25].mxu1 }
 0x12c   : > { %v1594_v39 = vadd.f32 %v1593_v36, %v1592_v33  ;;  %v1076_v40 = vadd.f32 %v1582_v62, %v1075_v38  ;;  %v1595_v41 = vpop.f32.mrb[26].mxu0  ;;  %v1703_v42 = vpop.f32.mrb[26].mxu1 }
 0x12d   : > { %v1087_v44 = vadd.f32 %v1703_v42, %v1591_v26  ;;  %v1596_v45 = vpop.f32.mrb[27].mxu0  ;;  %v1078_v46 = vpop.f32.mrb[27].mxu1  ;;  %v1286_v50 = vadd.f32 %v2064_v61, %v1084_v35 }
 0x12e   : > { %v1597_v47 = vadd.f32 %v1596_v45, %v1595_v41  ;;  %v1079_v48 = vadd.f32 %v1585_v5, %v1078_v46  ;;  %v1284_v51 = vadd.f32 %v2064_v61, %v1076_v40 }
 0x12f   : > { %1318 = vst [vmem:[%s2069_s28 + $0x50] sm:$0xff] %v1286_v50  ;;  %v1287_v52 = vadd.f32 %v2064_v61, %v1087_v44 }
 0x130   : > { %1316 = vst [vmem:[%s2069_s28 + $0x40] sm:$0xff] %v1284_v51  ;;  %v1285_v53 = vadd.f32 %v2064_v61, %v1079_v48 }
 0x131   : > { %1319 = vst [vmem:[%s2069_s28 + $0x58] sm:$0xff] %v1287_v52 }
 0x132   : > { %v1598_v54 = vpop.f32.mrb[28].mxu0  ;;  %v1706_v56 = vpop.f32.mrb[28].mxu1  ;;  %1317 = vst [vmem:[%s2069_s28 + $0x48] sm:$0xff] %v1285_v53 }
 0x133   : > { %v1599_v57 = vpop.f32.mrb[29].mxu0  ;;  %v1091_v58 = vpop.f32.mrb[29].mxu1 }
 0x134   : > { %v1600_v59 = vadd.f32 %v1599_v57, %v1598_v54  ;;  %v1092_v60 = vadd.f32 %v1594_v39, %v1091_v58  ;;  %v1601_v62 = vpop.f32.mrb[30].mxu0  ;;  %v1707_v63 = vpop.f32.mrb[30].mxu1 }
 0x135   : > { %v1602_v0 = vpop.f32.mrb[31].mxu0  ;;  %v1094_v1 = vpop.f32.mrb[31].mxu1 }
 0x136   : > { %v1100_v2 = vadd.f32 %v1706_v56, %v1600_v59  ;;  %v1603_v3 = vadd.f32 %v1602_v0, %v1601_v62  ;;  %v1095_v4 = vadd.f32 %v1597_v47, %v1094_v1  ;;  %v1288_v5 = vadd.f32 %v2064_v61, %v1092_v60 }
 0x138   : > { %v1103_v6 = vadd.f32 %v1707_v63, %v1603_v3  ;;  %v1290_v7 = vadd.f32 %v2064_v61, %v1100_v2  ;;  %1320 = vst [vmem:[%s2069_s28 + $0x60] sm:$0xff] %v1288_v5  ;;  %v1289_v8 = vadd.f32 %v2064_v61, %v1095_v4 }
 0x13a   : > { %v1604_v9 = vpop.f32.mrb[32].mxu0  ;;  %v1710_v10 = vpop.f32.mrb[32].mxu1  ;;  %1322 = vst [vmem:[%s2069_s28 + $0x70] sm:$0xff] %v1290_v7  ;;  %v1291_v14 = vadd.f32 %v2064_v61, %v1103_v6  ;;  %1321 = vst [vmem:[%s2069_s28 + $0x68] sm:$0xff] %v1289_v8 }
 0x13b   : > { %v1605_v11 = vpop.f32.mrb[33].mxu0  ;;  %v1107_v12 = vpop.f32.mrb[33].mxu1 }
 0x13c   : > { %v1606_v15 = vadd.f32 %v1605_v11, %v1604_v9  ;;  %v1607_v16 = vpop.f32.mrb[34].mxu0  ;;  %v1711_v17 = vpop.f32.mrb[34].mxu1  ;;  %1323 = vst [vmem:[%s2069_s28 + $0x78] sm:$0xff] %v1291_v14 }
 0x13d   : > { %v1608_v18 = vpop.f32.mrb[35].mxu0  ;;  %v1110_v20 = vpop.f32.mrb[35].mxu1 }
 0x13e   : > { %v1108_v21 = vadd.f32 %v1606_v15, %v1107_v12  ;;  %v1609_v22 = vadd.f32 %v1608_v18, %v1607_v16 }
 0x140   : > { %v1111_v23 = vadd.f32 %v1609_v22, %v1110_v20  ;;  %v1292_v24 = vadd.f32 %v2064_v61, %v1108_v21 }
 0x142   : > { %v1610_v26 = vpop.f32.mrb[36].mxu0  ;;  %v1714_v27 = vpop.f32.mrb[36].mxu1  ;;  %1324 = vst [vmem:[%s2069_s28 + $0x80] sm:$0xff] %v1292_v24  ;;  %v1293_v30 = vadd.f32 %v2064_v61, %v1111_v23 }
 0x143   : > { %v1611_v28 = vpop.f32.mrb[37].mxu0  ;;  %v1123_v29 = vpop.f32.mrb[37].mxu1 }
 0x144   : > { %v1612_v32 = vadd.f32 %v1611_v28, %v1610_v26  ;;  %v1613_v33 = vpop.f32.mrb[38].mxu0  ;;  %v1715_v34 = vpop.f32.mrb[38].mxu1  ;;  %1325 = vst [vmem:[%s2069_s28 + $0x88] sm:$0xff] %v1293_v30 }
 0x145   : > { %v1614_v35 = vpop.f32.mrb[39].mxu0  ;;  %v1126_v36 = vpop.f32.mrb[39].mxu1 }
 0x146   : > { %v1116_v38 = vadd.f32 %v1710_v10, %v1612_v32  ;;  %v1615_v39 = vadd.f32 %v1614_v35, %v1613_v33 }
 0x148   : > { %v1119_v40 = vadd.f32 %v1711_v17, %v1615_v39  ;;  %v1294_v41 = vadd.f32 %v2064_v61, %v1116_v38 }
 0x14a   : > { %v1616_v42 = vpop.f32.mrb[40].mxu0  ;;  %v1718_v44 = vpop.f32.mrb[40].mxu1  ;;  %1326 = vst [vmem:[%s2069_s28 + $0x90] sm:$0xff] %v1294_v41  ;;  %v1295_v48 = vadd.f32 %v2064_v61, %v1119_v40 }
 0x14b   : > { %v1148_v45 = vadd.f32 %v1718_v44, %v2048_v25  ;;  %v1617_v46 = vpop.f32.mrb[41].mxu0  ;;  %v1139_v47 = vpop.f32.mrb[41].mxu1 }
 0x14c   : > { %v1618_v50 = vadd.f32 %v1617_v46, %v1616_v42  ;;  %v1140_v51 = vadd.f32 %v2044_v13, %v1139_v47  ;;  %v1619_v52 = vpop.f32.mrb[42].mxu0  ;;  %v1719_v53 = vpop.f32.mrb[42].mxu1  ;;  %1327 = vst [vmem:[%s2069_s28 + $0x98] sm:$0xff] %v1295_v48 }
 0x14d   : > { %v1151_v54 = vadd.f32 %v1719_v53, %v2050_v31  ;;  %v1620_v56 = vpop.f32.mrb[43].mxu0  ;;  %v1142_v57 = vpop.f32.mrb[43].mxu1  ;;  %v1302_v60 = vadd.f32 %v2064_v61, %v1148_v45 }
 0x14e   : > { %v1124_v58 = vadd.f32 %v1618_v50, %v1123_v29  ;;  %v1621_v25 = vadd.f32 %v1620_v56, %v1619_v52  ;;  %v1143_v59 = vadd.f32 %v2046_v19, %v1142_v57  ;;  %v1300_v62 = vadd.f32 %v2064_v61, %v1140_v51 }
 0x14f   : > { %1334 = vst [vmem:[%s2069_s28 + $0xd0] sm:$0xff] %v1302_v60  ;;  %v1303_v63 = vadd.f32 %v2064_v61, %v1151_v54 }
 0x150   : > { %v1127_v13 = vadd.f32 %v1621_v25, %v1126_v36  ;;  %v1296_v31 = vadd.f32 %v2064_v61, %v1124_v58  ;;  %1332 = vst [vmem:[%s2069_s28 + $0xc0] sm:$0xff] %v1300_v62  ;;  %v1301_v0 = vadd.f32 %v2064_v61, %v1143_v59 }
 0x151   : > { %1335 = vst [vmem:[%s2069_s28 + $0xd8] sm:$0xff] %v1303_v63 }
 0x152   : > { %v1622_v1 = vpop.f32.mrb[44].mxu0  ;;  %v1722_v2 = vpop.f32.mrb[44].mxu1  ;;  %1328 = vst [vmem:[%s2069_s28 + $0xa0] sm:$0xff] %v1296_v31  ;;  %v1297_v5 = vadd.f32 %v2064_v61, %v1127_v13  ;;  %1333 = vst [vmem:[%s2069_s28 + $0xc8] sm:$0xff] %v1301_v0 }
 0x153   : > { %v1164_v19 = vadd.f32 %v1722_v2, %v2056_v49  ;;  %v1623_v3 = vpop.f32.mrb[45].mxu0  ;;  %v1155_v4 = vpop.f32.mrb[45].mxu1 }
 0x154   : > { %v1624_v6 = vadd.f32 %v1623_v3, %v1622_v1  ;;  %v1156_v7 = vadd.f32 %v2052_v37, %v1155_v4  ;;  %v1625_v8 = vpop.f32.mrb[46].mxu0  ;;  %v1723_v9 = vpop.f32.mrb[46].mxu1  ;;  %1329 = vst [vmem:[%s2069_s28 + $0xa8] sm:$0xff] %v1297_v5 }
 0x155   : > { %v1167_v10 = vadd.f32 %v1723_v9, %v2058_v55  ;;  %v1626_v11 = vpop.f32.mrb[47].mxu0  ;;  %v1158_v12 = vpop.f32.mrb[47].mxu1  ;;  %v1306_v16 = vadd.f32 %v2064_v61, %v1164_v19 }
 0x156   : > { %v1132_v49 = vadd.f32 %v1714_v27, %v1624_v6  ;;  %v1627_v14 = vadd.f32 %v1626_v11, %v1625_v8  ;;  %v1159_v15 = vadd.f32 %v2054_v43, %v1158_v12  ;;  %v1304_v37 = vadd.f32 %v2064_v61, %v1156_v7 }
 0x157   : > { %1338 = vst [vmem:[%s2069_s28 + $0xf0] sm:$0xff] %v1306_v16  ;;  %v1307_v18 = vadd.f32 %v2064_v61, %v1167_v10 }
 0x158   : > { %v1135_v17 = vadd.f32 %v1715_v34, %v1627_v14  ;;  %v1298_v55 = vadd.f32 %v2064_v61, %v1132_v49  ;;  %1336 = vst [vmem:[%s2069_s28 + $0xe0] sm:$0xff] %v1304_v37  ;;  %v1305_v20 = vadd.f32 %v2064_v61, %v1159_v15 }
 0x159   : > { %1339 = vst [vmem:[%s2069_s28 + $0xf8] sm:$0xff] %v1307_v18 }
 0x15a   : > { %1330 = vst [vmem:[%s2069_s28 + $0xb0] sm:$0xff] %v1298_v55  ;;  %v1299_v21 = vadd.f32 %v2064_v61, %v1135_v17  ;;  %1337 = vst [vmem:[%s2069_s28 + $0xe8] sm:$0xff] %v1305_v20 }
 0x15c   : > { %1331 = vst [vmem:[%s2069_s28 + $0xb8] sm:$0xff] %v1299_v21 }
 0x15d PF: > { %s13_s14 = sadd.s32 1, %s1876_s14   ;;  %s2156_s12 = smov %s1872_s13 }
 0x15e   : > { %p10_p5 = scmp.ge.s32.totalorder %s13_s14, 4   ;;  %s2157_s13 = smov %s2159_s15 }
 0x160   :  { %12 = sbr.rel (!%p10_p5) target bundleno = 2 (0x2), region = 76 }

// kernel: snunet_forward.28
= control target key start
LH: loop header
LB: loop body
LE: loop exit
PB: predicated region body
PF: predicated region fallthrough
CT: control target
= control target key end

     0   :  { %s1142_s1 = inlined_call_operand.vmem [shape: bf16[384,128], index: 1, kind: input, shape index: {}]   ;;  %s1143_s0 = inlined_call_operand.vmem [shape: bf16[128,384], index: 0, kind: input, shape index: {}]   ;;  %s1144_s2 = inlined_call_operand.vmem [shape: f32[1,128], index: 2, kind: input, shape index: {}]   ;;  %s1145_s3 = inlined_call_operand.vmem [shape: f32[128,128], index: 3, kind: output, shape index: {}]  }
   0x1   :  { %v853_v0 = vld [vmem:[%s1142_s1 + $0x40] sm:$0xff]   ;;  %v856_v3 = vld [vmem:[%s1142_s1 + $0x48] sm:$0xff]   ;;  %v859_v6 = vld [vmem:[%s1142_s1 + $0x50] sm:$0xff]  }
   0x2   :  { %v854_v1 = vld [vmem:[%s1142_s1] sm:$0xff]   ;;  %740 = vmatprep.subr.bf16.mxu0 %v853_v0  ;;  %v857_v4 = vld [vmem:[%s1142_s1 + $0x8] sm:$0xff]   ;;  %v860_v7 = vld [vmem:[%s1142_s1 + $0x10] sm:$0xff]  }
   0x3   :  { %v855_v2 = vld [vmem:[%s1142_s1 + $0x80] sm:$0xff]   ;;  %741 = vmatpush3.bf16.msra.mxu0 %v854_v1  ;;  %v858_v5 = vld [vmem:[%s1142_s1 + $0x88] sm:$0xff]   ;;  %v861_v8 = vld [vmem:[%s1142_s1 + $0x90] sm:$0xff]  }
   0x4   :  { %820 = vmatprep.subr.bf16.mxu1 %v855_v2  ;;  %742 = vmatprep.subr.bf16.mxu0 %v856_v3  ;;  %v862_v9 = vld [vmem:[%s1142_s1 + $0x58] sm:$0xff]   ;;  %v865_v12 = vld [vmem:[%s1142_s1 + $0x60] sm:$0xff]   ;;  %v868_v15 = vld [vmem:[%s1142_s1 + $0x68] sm:$0xff]  }
   0x5   :  { %821 = vmatpush3.bf16.msra.mxu1 %v855_v2  ;;  %v863_v10 = vld [vmem:[%s1142_s1 + $0x18] sm:$0xff]   ;;  %v867_v13 = vld [vmem:[%s1142_s1 + $0xa0] sm:$0xff]   ;;  %v870_v16 = vld [vmem:[%s1142_s1 + $0xa8] sm:$0xff]  }
   0x6   :  { %822 = vmatprep.subr.bf16.mxu1 %v858_v5  ;;  %v864_v11 = vld [vmem:[%s1142_s1 + $0x98] sm:$0xff]   ;;  %v866_v14 = vld [vmem:[%s1142_s1 + $0x20] sm:$0xff]   ;;  %v869_v17 = vld [vmem:[%s1142_s1 + $0x28] sm:$0xff]  }
   0x7   :  { %743 = vmatpush3.bf16.msra.mxu0 %v857_v4  ;;  %v871_v18 = vld [vmem:[%s1142_s1 + $0x70] sm:$0xff]   ;;  %v874_v21 = vld [vmem:[%s1142_s1 + $0x78] sm:$0xff]   ;;  %v877_v26 = vld [vmem:[%s1143_s0] ss:$12 sps:$4 sm:$0xff]  }
   0x8   :  { %744 = vmatprep.subr.bf16.mxu0 %v859_v6  ;;  %v872_v19 = vld [vmem:[%s1142_s1 + $0x30] sm:$0xff]   ;;  %v876_v22 = vld [vmem:[%s1142_s1 + $0xb8] sm:$0xff]   ;;  %v881_v28 = vld [vmem:[%s1143_s0 + $0x20] ss:$12 sps:$4 sm:$0xff]  }
   0x9   :  { %823 = vmatpush3.bf16.msra.mxu1 %v858_v5  ;;  %v873_v20 = vld [vmem:[%s1142_s1 + $0xb0] sm:$0xff]   ;;  %v875_v25 = vld [vmem:[%s1142_s1 + $0x38] sm:$0xff]   ;;  %v897_v36 = vld [vmem:[%s1143_s0 + $0x80] ss:$12 sps:$4 sm:$0xff]  }
   0xa   :  { %824 = vmatprep.subr.bf16.mxu1 %v861_v8  ;;  %v879_v23 = vld [vmem:[%s1143_s0 + $0x4] ss:$12 sps:$4 sm:$0xff]   ;;  %v880_v24 = vld [vmem:[%s1143_s0 + $0x8] ss:$12 sps:$4 sm:$0xff]   ;;  %v890_v35 = vld [vmem:[%s1143_s0 + $0x4c] ss:$12 sps:$4 sm:$0xff]  }
   0xb   :  { %745 = vmatpush3.bf16.msra.mxu0 %v860_v7  ;;  %435 = vmatprep.mubr.bf16.mxu0 %v879_v23  ;;  %v882_v27 = vld [vmem:[%s1143_s0 + $0x1c] ss:$12 sps:$4 sm:$0xff]   ;;  %v888_v29 = vld [vmem:[%s1143_s0 + $0x38] ss:$12 sps:$4 sm:$0xff]   ;;  %v885_v31 = vld [vmem:[%s1143_s0 + $0x34] ss:$12 sps:$4 sm:$0xff]  }
   0xc   :  { %746 = vmatprep.subr.bf16.mxu0 %v862_v9  ;;  %836 = vmatprep.mubr.bf16.mxu1 %v880_v24  ;;  %v884_v30 = vld [vmem:[%s1143_s0 + $0x18] ss:$12 sps:$4 sm:$0xff]   ;;  %v889_v32 = vld [vmem:[%s1143_s0 + $0x50] ss:$12 sps:$4 sm:$0xff]   ;;  %v896_v33 = vld [vmem:[%s1143_s0 + $0x68] ss:$12 sps:$4 sm:$0xff]  }
   0xd   :  { %825 = vmatpush3.bf16.msra.mxu1 %v861_v8  ;;  %v887_v34 = vld [vmem:[%s1143_s0 + $0x30] ss:$12 sps:$4 sm:$0xff]   ;;  %v904_v37 = vld [vmem:[%s1143_s0 + $0x98] ss:$12 sps:$4 sm:$0xff]   ;;  %v892_v38 = vld [vmem:[%s1143_s0 + $0x48] ss:$12 sps:$4 sm:$0xff]  }
   0xe   :  { %826 = vmatprep.subr.bf16.mxu1 %v864_v11  ;;  %v893_v39 = vld [vmem:[%s1143_s0 + $0x64] ss:$12 sps:$4 sm:$0xff]   ;;  %v895_v41 = vld [vmem:[%s1143_s0 + $0x60] ss:$12 sps:$4 sm:$0xff]   ;;  %v898_v42 = vld [vmem:[%s1143_s0 + $0x7c] ss:$12 sps:$4 sm:$0xff]  }
   0xf   :  { %747 = vmatpush3.bf16.msra.mxu0 %v863_v10  ;;  %v905_v40 = vld [vmem:[%s1143_s0 + $0xb0] ss:$12 sps:$4 sm:$0xff]   ;;  %v900_v43 = vld [vmem:[%s1143_s0 + $0x78] ss:$12 sps:$4 sm:$0xff]   ;;  %v901_v44 = vld [vmem:[%s1143_s0 + $0x94] ss:$12 sps:$4 sm:$0xff]  }
  0x10   :  { %748 = vmatprep.subr.bf16.mxu0 %v865_v12  ;;  %v903_v45 = vld [vmem:[%s1143_s0 + $0x90] ss:$12 sps:$4 sm:$0xff]   ;;  %v906_v46 = vld [vmem:[%s1143_s0 + $0xac] ss:$12 sps:$4 sm:$0xff]   ;;  %v908_v47 = vld [vmem:[%s1143_s0 + $0xa8] ss:$12 sps:$4 sm:$0xff]  }
  0x11   :  { %827 = vmatpush3.bf16.msra.mxu1 %v864_v11  ;;  %v1076_v58 = vld [vmem:[%s1144_s2] ss:$0 sm:$0xff] }
  0x12   :  { %828 = vmatprep.subr.bf16.mxu1 %v867_v13 }
  0x13   :  { %749 = vmatpush3.bf16.msra.mxu0 %v866_v14 }
  0x14   :  { %750 = vmatprep.subr.bf16.mxu0 %v868_v15 }
  0x15   :  { %829 = vmatpush3.bf16.msra.mxu1 %v867_v13 }
  0x16   :  { %830 = vmatprep.subr.bf16.mxu1 %v870_v16 }
  0x17   :  { %751 = vmatpush3.bf16.msra.mxu0 %v869_v17 }
  0x18   :  { %752 = vmatprep.subr.bf16.mxu0 %v871_v18 }
  0x19   :  { %831 = vmatpush3.bf16.msra.mxu1 %v870_v16 }
  0x1a   :  { %832 = vmatprep.subr.bf16.mxu1 %v873_v20 }
  0x1b   :  { %753 = vmatpush3.bf16.msra.mxu0 %v872_v19 }
  0x1c   :  { %754 = vmatprep.subr.bf16.mxu0 %v874_v21 }
  0x1d   :  { %833 = vmatpush3.bf16.msra.mxu1 %v873_v20 }
  0x1e   :  { %834 = vmatprep.subr.bf16.mxu1 %v876_v22 }
  0x1f   :  { %755 = vmatpush3.bf16.msra.mxu0 %v875_v25 }
  0x21   :  { %835 = vmatpush3.bf16.msra.mxu1 %v876_v22 }
  0x22   :  { %436 = vmatmul.mubr.bf16.vlgmr.msra.gmra.mrb[0].mxu0 %v877_v26 }
  0x23   :  { %443 = vmatprep.mubr.bf16.mxu0 %v882_v27 }
  0x24   :  { %837 = vmatmul.mubr.bf16.vlgmr.msra.gmra.mrb[0].mxu1 %v881_v28 }
  0x25   :  { %840 = vmatprep.mubr.bf16.mxu1 %v888_v29 }
  0x2a   :  { %444 = vmatmul.mubr.bf16.gmra.mrb[4].mxu0 %v884_v30 }
  0x2b   :  { %451 = vmatprep.mubr.bf16.mxu0 %v885_v31 }
  0x2c   :  { %841 = vmatmul.mubr.bf16.gmra.mrb[4].mxu1 %v889_v32 }
  0x2d   :  { %844 = vmatprep.mubr.bf16.mxu1 %v896_v33 }
  0x32   :  { %452 = vmatmul.mubr.bf16.gmra.mrb[8].mxu0 %v887_v34 }
  0x33   :  { %459 = vmatprep.mubr.bf16.mxu0 %v890_v35 }
  0x34   :  { %845 = vmatmul.mubr.bf16.gmra.mrb[8].mxu1 %v897_v36 }
  0x35   :  { %848 = vmatprep.mubr.bf16.mxu1 %v904_v37 }
  0x3a   :  { %460 = vmatmul.mubr.bf16.gmra.mrb[12].mxu0 %v892_v38 }
  0x3b   :  { %467 = vmatprep.mubr.bf16.mxu0 %v893_v39 }
  0x3c   :  { %849 = vmatmul.mubr.bf16.gmra.mrb[12].mxu1 %v905_v40 }
  0x42   :  { %468 = vmatmul.mubr.bf16.gmra.mrb[16].mxu0 %v895_v41 }
  0x43   :  { %475 = vmatprep.mubr.bf16.mxu0 %v898_v42 }
  0x4a   :  { %476 = vmatmul.mubr.bf16.gmra.mrb[20].mxu0 %v900_v43 }
  0x4b   :  { %483 = vmatprep.mubr.bf16.mxu0 %v901_v44 }
  0x52   :  { %484 = vmatmul.mubr.bf16.gmra.mrb[24].mxu0 %v903_v45 }
  0x53   :  { %491 = vmatprep.mubr.bf16.mxu0 %v906_v46 }
  0x5a   :  { %492 = vmatmul.mubr.bf16.gmra.mrb[28].mxu0 %v908_v47 }
  0xf5   :  { %v756_v48 = vpop.f32.mrb[0].mxu0 }
  0xf6   :  { %v757_v49 = vpop.f32.mrb[1].mxu0 }
  0xf7   :  { %v758_v50 = vadd.f32 %v757_v49, %v756_v48  ;;  %v759_v51 = vpop.f32.mrb[2].mxu0  ;;  %v838_v52 = vpop.f32.mrb[0].mxu1 }
  0xf8   :  { %v760_v53 = vpop.f32.mrb[3].mxu0  ;;  %v534_v54 = vpop.f32.mrb[1].mxu1 }
  0xf9   :  { %v761_v55 = vadd.f32 %v760_v53, %v759_v51  ;;  %v535_v56 = vadd.f32 %v758_v50, %v534_v54  ;;  %v839_v57 = vpop.f32.mrb[2].mxu1 }
  0xfa   :  { %v537_v59 = vpop.f32.mrb[3].mxu1 }
  0xfb   :  { %v538_v60 = vadd.f32 %v761_v55, %v537_v59  ;;  %v655_v61 = vadd.f32 %v1076_v58, %v535_v56 }
  0xfd   :  { %v762_v62 = vpop.f32.mrb[4].mxu0  ;;  %671 = vst [vmem:[%s1145_s3] sm:$0xff] %v655_v61  ;;  %v656_v0 = vadd.f32 %v1076_v58, %v538_v60 }
  0xfe   :  { %v763_v63 = vpop.f32.mrb[5].mxu0 }
  0xff   :  { %v764_v1 = vadd.f32 %v763_v63, %v762_v62  ;;  %v765_v2 = vpop.f32.mrb[6].mxu0  ;;  %v842_v3 = vpop.f32.mrb[4].mxu1  ;;  %672 = vst [vmem:[%s1145_s3 + $0x8] sm:$0xff] %v656_v0 }
 0x100   :  { %v766_v4 = vpop.f32.mrb[7].mxu0  ;;  %v550_v5 = vpop.f32.mrb[5].mxu1 }
 0x101   :  { %v543_v6 = vadd.f32 %v838_v52, %v764_v1  ;;  %v767_v7 = vadd.f32 %v766_v4, %v765_v2  ;;  %v843_v8 = vpop.f32.mrb[6].mxu1 }
 0x102   :  { %v553_v9 = vpop.f32.mrb[7].mxu1 }
 0x103   :  { %v546_v10 = vadd.f32 %v839_v57, %v767_v7  ;;  %v657_v11 = vadd.f32 %v1076_v58, %v543_v6 }
 0x105   :  { %v768_v12 = vpop.f32.mrb[8].mxu0  ;;  %673 = vst [vmem:[%s1145_s3 + $0x10] sm:$0xff] %v657_v11  ;;  %v658_v14 = vadd.f32 %v1076_v58, %v546_v10 }
 0x106   :  { %v769_v13 = vpop.f32.mrb[9].mxu0 }
 0x107   :  { %v770_v15 = vadd.f32 %v769_v13, %v768_v12  ;;  %v771_v16 = vpop.f32.mrb[10].mxu0  ;;  %v846_v17 = vpop.f32.mrb[8].mxu1  ;;  %674 = vst [vmem:[%s1145_s3 + $0x18] sm:$0xff] %v658_v14 }
 0x108   :  { %v772_v18 = vpop.f32.mrb[11].mxu0  ;;  %v566_v19 = vpop.f32.mrb[9].mxu1 }
 0x109   :  { %v773_v20 = vadd.f32 %v772_v18, %v771_v16  ;;  %v551_v21 = vadd.f32 %v770_v15, %v550_v5  ;;  %v847_v22 = vpop.f32.mrb[10].mxu1 }
 0x10a   :  { %v569_v23 = vpop.f32.mrb[11].mxu1 }
 0x10b   :  { %v554_v24 = vadd.f32 %v773_v20, %v553_v9  ;;  %v659_v25 = vadd.f32 %v1076_v58, %v551_v21 }
 0x10d   :  { %v774_v26 = vpop.f32.mrb[12].mxu0  ;;  %675 = vst [vmem:[%s1145_s3 + $0x20] sm:$0xff] %v659_v25  ;;  %v660_v28 = vadd.f32 %v1076_v58, %v554_v24 }
 0x10e   :  { %v775_v27 = vpop.f32.mrb[13].mxu0 }
 0x10f   :  { %v776_v29 = vadd.f32 %v775_v27, %v774_v26  ;;  %v777_v30 = vpop.f32.mrb[14].mxu0  ;;  %v850_v31 = vpop.f32.mrb[12].mxu1  ;;  %676 = vst [vmem:[%s1145_s3 + $0x28] sm:$0xff] %v660_v28 }
 0x110   :  { %v778_v32 = vpop.f32.mrb[15].mxu0  ;;  %v582_v33 = vpop.f32.mrb[13].mxu1 }
 0x111   :  { %v559_v34 = vadd.f32 %v842_v3, %v776_v29  ;;  %v779_v35 = vadd.f32 %v778_v32, %v777_v30  ;;  %v851_v36 = vpop.f32.mrb[14].mxu1 }
 0x112   :  { %v585_v37 = vpop.f32.mrb[15].mxu1 }
 0x113   :  { %v562_v38 = vadd.f32 %v843_v8, %v779_v35  ;;  %v661_v39 = vadd.f32 %v1076_v58, %v559_v34 }
 0x115   :  { %v780_v40 = vpop.f32.mrb[16].mxu0  ;;  %677 = vst [vmem:[%s1145_s3 + $0x30] sm:$0xff] %v661_v39  ;;  %v662_v42 = vadd.f32 %v1076_v58, %v562_v38 }
 0x116   :  { %v781_v41 = vpop.f32.mrb[17].mxu0 }
 0x117   :  { %v782_v43 = vadd.f32 %v781_v41, %v780_v40  ;;  %v783_v44 = vpop.f32.mrb[18].mxu0  ;;  %678 = vst [vmem:[%s1145_s3 + $0x38] sm:$0xff] %v662_v42 }
 0x118   :  { %v784_v45 = vpop.f32.mrb[19].mxu0 }
 0x119   :  { %v785_v46 = vadd.f32 %v784_v45, %v783_v44  ;;  %v567_v47 = vadd.f32 %v782_v43, %v566_v19 }
 0x11b   :  { %v570_v48 = vadd.f32 %v785_v46, %v569_v23  ;;  %v663_v49 = vadd.f32 %v1076_v58, %v567_v47 }
 0x11d   :  { %v786_v50 = vpop.f32.mrb[20].mxu0  ;;  %679 = vst [vmem:[%s1145_s3 + $0x40] sm:$0xff] %v663_v49  ;;  %v664_v52 = vadd.f32 %v1076_v58, %v570_v48 }
 0x11e   :  { %v787_v51 = vpop.f32.mrb[21].mxu0 }
 0x11f   :  { %v788_v53 = vadd.f32 %v787_v51, %v786_v50  ;;  %v789_v54 = vpop.f32.mrb[22].mxu0  ;;  %680 = vst [vmem:[%s1145_s3 + $0x48] sm:$0xff] %v664_v52 }
 0x120   :  { %v790_v55 = vpop.f32.mrb[23].mxu0 }
 0x121   :  { %v575_v56 = vadd.f32 %v846_v17, %v788_v53  ;;  %v791_v57 = vadd.f32 %v790_v55, %v789_v54 }
 0x123   :  { %v578_v59 = vadd.f32 %v847_v22, %v791_v57  ;;  %v665_v60 = vadd.f32 %v1076_v58, %v575_v56 }
 0x125   :  { %v792_v61 = vpop.f32.mrb[24].mxu0  ;;  %681 = vst [vmem:[%s1145_s3 + $0x50] sm:$0xff] %v665_v60  ;;  %v666_v63 = vadd.f32 %v1076_v58, %v578_v59 }
 0x126   :  { %v793_v62 = vpop.f32.mrb[25].mxu0 }
 0x127   :  { %v794_v0 = vadd.f32 %v793_v62, %v792_v61  ;;  %v795_v1 = vpop.f32.mrb[26].mxu0  ;;  %682 = vst [vmem:[%s1145_s3 + $0x58] sm:$0xff] %v666_v63 }
 0x128   :  { %v796_v2 = vpop.f32.mrb[27].mxu0 }
 0x129   :  { %v797_v3 = vadd.f32 %v796_v2, %v795_v1  ;;  %v583_v4 = vadd.f32 %v794_v0, %v582_v33 }
 0x12b   :  { %v586_v5 = vadd.f32 %v797_v3, %v585_v37  ;;  %v667_v6 = vadd.f32 %v1076_v58, %v583_v4 }
 0x12d   :  { %v798_v7 = vpop.f32.mrb[28].mxu0  ;;  %683 = vst [vmem:[%s1145_s3 + $0x60] sm:$0xff] %v667_v6  ;;  %v668_v9 = vadd.f32 %v1076_v58, %v586_v5 }
 0x12e   :  { %v799_v8 = vpop.f32.mrb[29].mxu0 }
 0x12f   :  { %v800_v10 = vadd.f32 %v799_v8, %v798_v7  ;;  %v801_v11 = vpop.f32.mrb[30].mxu0  ;;  %684 = vst [vmem:[%s1145_s3 + $0x68] sm:$0xff] %v668_v9 }
 0x130   :  { %v802_v12 = vpop.f32.mrb[31].mxu0 }
 0x131   :  { %v591_v13 = vadd.f32 %v850_v31, %v800_v10  ;;  %v803_v14 = vadd.f32 %v802_v12, %v801_v11 }
 0x133   :  { %v594_v15 = vadd.f32 %v851_v36, %v803_v14  ;;  %v669_v16 = vadd.f32 %v1076_v58, %v591_v13 }
 0x135   :  { %685 = vst [vmem:[%s1145_s3 + $0x70] sm:$0xff] %v669_v16  ;;  %v670_v17 = vadd.f32 %v1076_v58, %v594_v15 }
 0x137   :  { %686 = vst [vmem:[%s1145_s3 + $0x78] sm:$0xff] %v670_v17 }

// kernel: snunet_forward.29
= control target key start
LH: loop header
LB: loop body
LE: loop exit
PB: predicated region body
PF: predicated region fallthrough
CT: control target
= control target key end

     0   :  { %s1031_s12 = smov 0   ;;  %s1033_s13 = smov 0   ;;  %s1379_s0 = inlined_call_operand.vmem [shape: bf16[128,640], index: 0, kind: input, shape index: {}]   ;;  %s1380_s1 = inlined_call_operand.vmem [shape: bf16[640,128], index: 1, kind: input, shape index: {}]   ;;  %s1381_s2 = inlined_call_operand.vmem [shape: f32[1,128], index: 2, kind: input, shape index: {}]   ;;  %s1382_s3 = inlined_call_operand.vmem [shape: f32[128,128], index: 3, kind: output, shape index: {}]  }
   0x1   :  { %s1035_s14 = smov 0   ;;  %s1037_s15 = smov 0  }
   0x2   :  { %s1039_s16 = smov 0  }
   0x3 LB: > { %s25_s17 = sadd.s32 1, %s1004_s15  ;;  %p48_p1 = scmp.ne.s32.totalorder %s996_s13, %s992_s12  ;;  %s1008_s16 = sphi %s1039_s16, %s13_s16   ;;  %s1004_s15 = sphi %s1037_s15, %s1386_s15   ;;  %s1000_s14 = sphi %s1035_s14, %s1385_s14   ;;  %s996_s13 = sphi %s1033_s13, %s1384_s13   ;;  %s992_s12 = sphi %s1031_s12, %s1383_s12  }
   0x4   : > { %p26_p0 = scmp.ge.s32.totalorder %s25_s17, 5  ;;  %p49_p2 = scmp.eq.s32.totalorder %s1008_s16, 0 }
   0x5   : > { %s41_s19 = sadd.s32 1, %s996_s13  ;;  %p819_p5 = scmp.ge.s32.totalorder %s1008_s16, 5 }
   0x6   : > { %s1388_s17 = smov (%p26_p0, %s25_s17), 0  ;;  %p50_p3 = por %p49_p2, %p48_p1 }
   0x7   : > { %s37_s18 = ssub.s32 %s1004_s15, %s1388_s17  ;;  %162 = sbr.rel (%p819_p5) target bundleno = 28 (0x1c), region = 20 }
   0x8   : > { %p39_p4 = scmp.eq.s32.totalorder %s37_s18, 0 }
   0xa   : > { %s1066_s20 = scalar_select %p39_p4, %s996_s13, %s41_s19  }
   0xe   : > { %165 = sbr.rel (!%p50_p3) target bundleno = 28 (0x1c), region = 24  ;;  %s167_s21 = sand.u32 (%p50_p3), 1, %s996_s13  }
   0xf   : > { %s821_s22 = sshll.u32 (%p50_p3), %s1004_s15, 2  ;;  %s820_s23 = sshll.u32 (%p50_p3), %s167_s21, 6 }
  0x10   : > { %s1074_s26 = scalar_lea.vmem (%p50_p3), %s1379_s0, %s821_s22  ;;  %s169_s27 = scalar_lea.vmem (%p50_p3), [#allocation2], %s820_s23 }
  0x11   : > { %v190_v0 = vld [vmem:[%s1074_s26] sm:$0xf] (%p50_p3)  ;;  %v192_v1 = vld [vmem:[%s1074_s26 + $0x14] sm:$0xf] (%p50_p3)  ;;  %v194_v2 = vld [vmem:[%s1074_s26 + $0x28] sm:$0xf] (%p50_p3) }
  0x12   : > { %191 = vst [vmem:[%s169_s27] sm:$0xf] (%p50_p3), %v190_v0  ;;  %193 = vst [vmem:[%s169_s27 + $0x4] sm:$0xf] (%p50_p3), %v192_v1  ;;  %v196_v3 = vld [vmem:[%s1074_s26 + $0x3c] sm:$0xf] (%p50_p3) }
  0x13   : > { %v198_v4 = vld [vmem:[%s1074_s26 + $0x50] sm:$0xf] (%p50_p3)  ;;  %195 = vst [vmem:[%s169_s27 + $0x8] sm:$0xf] (%p50_p3), %v194_v2  ;;  %197 = vst [vmem:[%s169_s27 + $0xc] sm:$0xf] (%p50_p3), %v196_v3 }
  0x14   : > { %199 = vst [vmem:[%s169_s27 + $0x10] sm:$0xf] (%p50_p3), %v198_v4  ;;  %v200_v5 = vld [vmem:[%s1074_s26 + $0x64] sm:$0xf] (%p50_p3)  ;;  %v202_v6 = vld [vmem:[%s1074_s26 + $0x78] sm:$0xf] (%p50_p3) }
  0x15   : > { %v204_v7 = vld [vmem:[%s1074_s26 + $0x8c] sm:$0xf]  ;;  %201 = vst [vmem:[%s169_s27 + $0x14] sm:$0xf] %v200_v5  ;;  %203 = vst [vmem:[%s169_s27 + $0x18] sm:$0xf] %v202_v6 }
  0x16   : > { %205 = vst [vmem:[%s169_s27 + $0x1c] sm:$0xf] %v204_v7  ;;  %v206_v8 = vld [vmem:[%s1074_s26 + $0xa0] sm:$0xf]  ;;  %v208_v9 = vld [vmem:[%s1074_s26 + $0xb4] sm:$0xf] }
  0x17   : > { %v210_v10 = vld [vmem:[%s1074_s26 + $0xc8] sm:$0xf]  ;;  %207 = vst [vmem:[%s169_s27 + $0x20] sm:$0xf] %v206_v8  ;;  %209 = vst [vmem:[%s169_s27 + $0x24] sm:$0xf] %v208_v9 }
  0x18   : > { %211 = vst [vmem:[%s169_s27 + $0x28] sm:$0xf] %v210_v10  ;;  %v212_v11 = vld [vmem:[%s1074_s26 + $0xdc] sm:$0xf]  ;;  %v214_v12 = vld [vmem:[%s1074_s26 + $0xf0] sm:$0xf] }
  0x19   : > { %v216_v13 = vld [vmem:[%s1074_s26 + $0x104] sm:$0xf]  ;;  %213 = vst [vmem:[%s169_s27 + $0x2c] sm:$0xf] %v212_v11  ;;  %215 = vst [vmem:[%s169_s27 + $0x30] sm:$0xf] %v214_v12 }
  0x1a   : > { %217 = vst [vmem:[%s169_s27 + $0x34] sm:$0xf] %v216_v13  ;;  %v218_v14 = vld [vmem:[%s1074_s26 + $0x118] sm:$0xf]  ;;  %v220_v15 = vld [vmem:[%s1074_s26 + $0x12c] sm:$0xf] }
  0x1b   : > { %219 = vst [vmem:[%s169_s27 + $0x38] sm:$0xf] %v218_v14  ;;  %221 = vst [vmem:[%s169_s27 + $0x3c] sm:$0xf] %v220_v15 }
  0x1c PF: > { %p822_p6 = scmp.ge.s32.totalorder %s1008_s16, 1  ;;  %p287_p7 = scmp.lt.s32.totalorder %s1008_s16, 6 }
  0x1e   : > { %p288_p8 = pnand %p822_p6, %p287_p7 }
  0x1f   : > { %s294_s28 = sand.u32 (!%p288_p8), 1, %s992_s12   ;;  %s824_s29 = sshll.u32 (!%p288_p8), %s1000_s14, 4 }
  0x20   : > { %291 = sbr.rel (%p288_p8) target bundleno = 319 (0x13f), region = 69  ;;  %s823_s30 = sshll.u32 (!%p288_p8), %s294_s28, 6 }
  0x21   : > { %p333_p9 = scmp.lt.s32.totalorder (!%p288_p8), %s824_s29, 79  ;;  %s1101_s8 = scalar_lea.vmem (!%p288_p8), [#allocation2], %s823_s30 }
  0x22   : > { %p826_p10 = scmp.ne.s32.totalorder (!%p288_p8), %s1000_s14, 0 }
  0x27   : > { %s1390_s29 = smov (!%p333_p9, %s824_s29), 79  ;;  %357 = sbr.rel (%p826_p10) target bundleno = 49 (0x31), region = 77 }
  0x28   : > { %s825_s4 = sshll.u32 %s1390_s29, 2  ;;  %v1010_v16 = vmov (!%p826_p10), 0.0  }
  0x29   : > { %s1099_s7 = scalar_lea.vmem %s1380_s1, %s825_s4  ;;  %358 = vst [vmem:[%s1382_s3] sm:$0xff] (!%p826_p10), %v1010_v16  ;;  %359 = vst [vmem:[%s1382_s3 + $0x8] sm:$0xff] (!%p826_p10), %v1010_v16 }
  0x2a   : > { %360 = vst [vmem:[%s1382_s3 + $0x10] sm:$0xff] (!%p826_p10), %v1010_v16  ;;  %361 = vst [vmem:[%s1382_s3 + $0x18] sm:$0xff] (!%p826_p10), %v1010_v16 }
  0x2b   : > { %362 = vst [vmem:[%s1382_s3 + $0x20] sm:$0xff] (!%p826_p10), %v1010_v16  ;;  %363 = vst [vmem:[%s1382_s3 + $0x28] sm:$0xff] (!%p826_p10), %v1010_v16 }
  0x2c   : > { %364 = vst [vmem:[%s1382_s3 + $0x30] sm:$0xff] (!%p826_p10), %v1010_v16  ;;  %365 = vst [vmem:[%s1382_s3 + $0x38] sm:$0xff] (!%p826_p10), %v1010_v16 }
  0x2d   : > { %366 = vst [vmem:[%s1382_s3 + $0x40] sm:$0xff] (!%p826_p10), %v1010_v16  ;;  %367 = vst [vmem:[%s1382_s3 + $0x48] sm:$0xff] (!%p826_p10), %v1010_v16 }
  0x2e   : > { %368 = vst [vmem:[%s1382_s3 + $0x50] sm:$0xff] %v1010_v16  ;;  %369 = vst [vmem:[%s1382_s3 + $0x58] sm:$0xff] %v1010_v16 }
  0x2f   : > { %370 = vst [vmem:[%s1382_s3 + $0x60] sm:$0xff] %v1010_v16  ;;  %371 = vst [vmem:[%s1382_s3 + $0x68] sm:$0xff] %v1010_v16 }
  0x30   : > { %372 = vst [vmem:[%s1382_s3 + $0x70] sm:$0xff] %v1010_v16  ;;  %373 = vst [vmem:[%s1382_s3 + $0x78] sm:$0xff] %v1010_v16 }
  0x31 PF: > { %v954_v17 = vld [vmem:[%s1099_s7] sm:$0xff]   ;;  %v955_v18 = vld [vmem:[%s1099_s7 + $0x8] sm:$0xff]   ;;  %v956_v19 = vld [vmem:[%s1099_s7 + $0x10] sm:$0xff]   ;;  %p843_p11 = scmp.ne.s32.totalorder %s1000_s14, 4 }
  0x32   : > { %865 = vmatprep.subr.bf16.mxu0 %v954_v17  ;;  %897 = vmatprep.subr.bf16.mxu1 %v954_v17  ;;  %v957_v20 = vld [vmem:[%s1099_s7 + $0x18] sm:$0xff]   ;;  %v962_v21 = vld [vmem:[%s1101_s8] sm:$0xff]   ;;  %v959_v24 = vld [vmem:[%s1099_s7 + $0x28] sm:$0xff]  }
  0x33   : > { %866 = vmatpush3.bf16.msra.mxu0 %v954_v17  ;;  %905 = vmatpush3.bf16.msra.mxu1 %v954_v17  ;;  %v963_v22 = vld [vmem:[%s1101_s8 + $0x20] sm:$0xff]   ;;  %v960_v25 = vld [vmem:[%s1099_s7 + $0x30] sm:$0xff]   ;;  %v961_v26 = vld [vmem:[%s1099_s7 + $0x38] sm:$0xff]  }
  0x34   : > { %867 = vmatprep.subr.bf16.mxu0 %v955_v18  ;;  %898 = vmatprep.subr.bf16.mxu1 %v955_v18  ;;  %v958_v23 = vld [vmem:[%s1099_s7 + $0x20] sm:$0xff]   ;;  %v964_v27 = vld [vmem:[%s1101_s8 + $0x8] sm:$0xff]   ;;  %v966_v29 = vld [vmem:[%s1101_s8 + $0x10] sm:$0xff]  }
  0x35   : > { %881 = vmatprep.mubr.bf16.mxu0 %v962_v21  ;;  %889 = vmatprep.mubr.bf16.mxu1 %v963_v22  ;;  %v965_v28 = vld [vmem:[%s1101_s8 + $0x28] sm:$0xff]   ;;  %v967_v30 = vld [vmem:[%s1101_s8 + $0x30] sm:$0xff]   ;;  %v968_v31 = vld [vmem:[%s1101_s8 + $0x18] sm:$0xff]  }
  0x36   : > { %v969_v32 = vld [vmem:[%s1101_s8 + $0x38] sm:$0xff]   ;;  %v376_v33 = vld [vmem:[%s1382_s3 + $0x10] sm:$0xff]  ;;  %v374_v35 = vld [vmem:[%s1382_s3] sm:$0xff] }
  0x37   : > { %868 = vmatpush3.bf16.msra.mxu0 %v955_v18  ;;  %906 = vmatpush3.bf16.msra.mxu1 %v955_v18  ;;  %v384_v34 = vld [vmem:[%s1382_s3 + $0x50] sm:$0xff]  ;;  %v382_v36 = vld [vmem:[%s1382_s3 + $0x40] sm:$0xff]  ;;  %v377_v39 = vld [vmem:[%s1382_s3 + $0x18] sm:$0xff] }
  0x38   : > { %869 = vmatprep.subr.bf16.mxu0 %v956_v19  ;;  %899 = vmatprep.subr.bf16.mxu1 %v956_v19  ;;  %v385_v40 = vld [vmem:[%s1382_s3 + $0x58] sm:$0xff]  ;;  %v375_v45 = vld [vmem:[%s1382_s3 + $0x8] sm:$0xff]  ;;  %v380_v57 = vld [vmem:[%s1382_s3 + $0x30] sm:$0xff] }
  0x39   : > { %v383_v46 = vld [vmem:[%s1382_s3 + $0x48] sm:$0xff]  ;;  %v388_v58 = vld [vmem:[%s1382_s3 + $0x70] sm:$0xff]  ;;  %v378_v59 = vld [vmem:[%s1382_s3 + $0x20] sm:$0xff] }
  0x3a   : > { %v386_v60 = vld [vmem:[%s1382_s3 + $0x60] sm:$0xff]  ;;  %v381_v63 = vld [vmem:[%s1382_s3 + $0x38] sm:$0xff]  ;;  %v379_v5 = vld [vmem:[%s1382_s3 + $0x28] sm:$0xff] }
  0x3b   : > { %870 = vmatpush3.bf16.msra.mxu0 %v956_v19  ;;  %907 = vmatpush3.bf16.msra.mxu1 %v956_v19  ;;  %v389_v0 = vld [vmem:[%s1382_s3 + $0x78] sm:$0xff]  ;;  %v387_v6 = vld [vmem:[%s1382_s3 + $0x68] sm:$0xff]  ;;  %v844_v18 = vld [vmem:[%s1381_s2] ss:$0 sm:$0xff] (!%p843_p11) }
  0x3c   : > { %871 = vmatprep.subr.bf16.mxu0 %v957_v20  ;;  %900 = vmatprep.subr.bf16.mxu1 %v957_v20 }
  0x3f   : > { %872 = vmatpush3.bf16.msra.mxu0 %v957_v20  ;;  %908 = vmatpush3.bf16.msra.mxu1 %v957_v20 }
  0x40   : > { %873 = vmatprep.subr.bf16.mxu0 %v958_v23  ;;  %901 = vmatprep.subr.bf16.mxu1 %v958_v23 }
  0x43   : > { %874 = vmatpush3.bf16.msra.mxu0 %v958_v23  ;;  %909 = vmatpush3.bf16.msra.mxu1 %v958_v23 }
  0x44   : > { %875 = vmatprep.subr.bf16.mxu0 %v959_v24  ;;  %902 = vmatprep.subr.bf16.mxu1 %v959_v24 }
  0x47   : > { %876 = vmatpush3.bf16.msra.mxu0 %v959_v24  ;;  %910 = vmatpush3.bf16.msra.mxu1 %v959_v24 }
  0x48   : > { %877 = vmatprep.subr.bf16.mxu0 %v960_v25  ;;  %903 = vmatprep.subr.bf16.mxu1 %v960_v25 }
  0x4b   : > { %878 = vmatpush3.bf16.msra.mxu0 %v960_v25  ;;  %911 = vmatpush3.bf16.msra.mxu1 %v960_v25 }
  0x4c   : > { %879 = vmatprep.subr.bf16.mxu0 %v961_v26  ;;  %904 = vmatprep.subr.bf16.mxu1 %v961_v26 }
  0x4f   : > { %880 = vmatpush3.bf16.msra.mxu0 %v961_v26  ;;  %912 = vmatpush3.bf16.msra.mxu1 %v961_v26 }
  0x52   : > { %882 = vmatmul.mubr.bf16.vlgmr.msra.gmra.mrb[0].mxu0 %v964_v27  ;;  %890 = vmatmul.mubr.bf16.vlgmr.msra.gmra.mrb[0].mxu1 %v965_v28 }
  0x53   : > { %885 = vmatprep.mubr.bf16.mxu0 %v966_v29  ;;  %893 = vmatprep.mubr.bf16.mxu1 %v967_v30 }
  0x5a   : > { %886 = vmatmul.mubr.bf16.gmra.mrb[4].mxu0 %v968_v31  ;;  %894 = vmatmul.mubr.bf16.gmra.mrb[4].mxu1 %v969_v32 }
 0x125   : > { %v883_v37 = vpop.f32.mrb[0].mxu0  ;;  %v891_v38 = vpop.f32.mrb[0].mxu1 }
 0x126   : > { %v617_v41 = vadd.f32 %v883_v37, %v376_v33  ;;  %v625_v42 = vadd.f32 %v891_v38, %v384_v34  ;;  %v552_v43 = vpop.f32.mrb[1].mxu0  ;;  %v584_v44 = vpop.f32.mrb[1].mxu1 }
 0x127   : > { %v615_v47 = vadd.f32 %v552_v43, %v374_v35  ;;  %v623_v48 = vadd.f32 %v584_v44, %v382_v36  ;;  %v884_v49 = vpop.f32.mrb[2].mxu0  ;;  %v892_v50 = vpop.f32.mrb[2].mxu1 }
 0x128   : > { %633 = vst [vmem:[%s1382_s3 + $0x10] sm:$0xff] %v617_v41  ;;  %641 = vst [vmem:[%s1382_s3 + $0x50] sm:$0xff] %v625_v42  ;;  %v618_v51 = vadd.f32 %v884_v49, %v377_v39  ;;  %v626_v52 = vadd.f32 %v892_v50, %v385_v40  ;;  %v555_v53 = vpop.f32.mrb[3].mxu0  ;;  %v587_v54 = vpop.f32.mrb[3].mxu1 }
 0x129   : > { %631 = vst [vmem:[%s1382_s3] sm:$0xff] %v615_v47  ;;  %639 = vst [vmem:[%s1382_s3 + $0x40] sm:$0xff] %v623_v48  ;;  %v616_v55 = vadd.f32 %v555_v53, %v375_v45  ;;  %v624_v56 = vadd.f32 %v587_v54, %v383_v46 }
 0x12a   : > { %634 = vst [vmem:[%s1382_s3 + $0x18] sm:$0xff] %v618_v51  ;;  %642 = vst [vmem:[%s1382_s3 + $0x58] sm:$0xff] %v626_v52 }
 0x12b   : > { %632 = vst [vmem:[%s1382_s3 + $0x8] sm:$0xff] %v616_v55  ;;  %640 = vst [vmem:[%s1382_s3 + $0x48] sm:$0xff] %v624_v56 }
 0x12d   : > { %v887_v61 = vpop.f32.mrb[4].mxu0  ;;  %v895_v62 = vpop.f32.mrb[4].mxu1  ;;  %650 = sbr.rel (%p843_p11) target bundleno = 319 (0x13f), region = 81 }
 0x12e   : > { %v621_v1 = vadd.f32 %v887_v61, %v380_v57  ;;  %v629_v2 = vadd.f32 %v895_v62, %v388_v58  ;;  %v568_v3 = vpop.f32.mrb[5].mxu0  ;;  %v600_v4 = vpop.f32.mrb[5].mxu1 }
 0x12f   : > { %v619_v7 = vadd.f32 %v568_v3, %v378_v59  ;;  %v627_v8 = vadd.f32 %v600_v4, %v386_v60  ;;  %v888_v9 = vpop.f32.mrb[6].mxu0  ;;  %v896_v10 = vpop.f32.mrb[6].mxu1  ;;  %v653_v22 = vld [vmem:[%s1382_s3 + $0x10] sm:$0xff] (!%p843_p11) }
 0x130   : > { %637 = vst [vmem:[%s1382_s3 + $0x30] sm:$0xff] %v621_v1  ;;  %645 = vst [vmem:[%s1382_s3 + $0x70] sm:$0xff] %v629_v2  ;;  %v622_v11 = vadd.f32 %v888_v9, %v381_v63  ;;  %v630_v12 = vadd.f32 %v896_v10, %v389_v0  ;;  %v571_v13 = vpop.f32.mrb[7].mxu0  ;;  %v603_v14 = vpop.f32.mrb[7].mxu1  ;;  %v651_v17 = vld [vmem:[%s1382_s3] sm:$0xff] (!%p843_p11)  ;;  %v676_v25 = vadd.f32 (!%p843_p11), %v844_v18, %v653_v22  ;;  %v661_v36 = vld [vmem:[%s1382_s3 + $0x50] sm:$0xff] (!%p843_p11) }
 0x131   : > { %635 = vst [vmem:[%s1382_s3 + $0x20] sm:$0xff] %v619_v7  ;;  %643 = vst [vmem:[%s1382_s3 + $0x60] sm:$0xff] %v627_v8  ;;  %v620_v15 = vadd.f32 %v571_v13, %v379_v5  ;;  %v628_v16 = vadd.f32 %v603_v14, %v387_v6  ;;  %v674_v20 = vadd.f32 (!%p843_p11), %v844_v18, %v651_v17  ;;  %v654_v23 = vld [vmem:[%s1382_s3 + $0x18] sm:$0xff] (!%p843_p11)  ;;  %v659_v34 = vld [vmem:[%s1382_s3 + $0x40] sm:$0xff] (!%p843_p11) }
 0x132   : > { %638 = vst [vmem:[%s1382_s3 + $0x38] sm:$0xff] %v622_v11  ;;  %646 = vst [vmem:[%s1382_s3 + $0x78] sm:$0xff] %v630_v12  ;;  %v652_v19 = vld [vmem:[%s1382_s3 + $0x8] sm:$0xff] (!%p843_p11)  ;;  %v677_v26 = vadd.f32 (!%p843_p11), %v844_v18, %v654_v23  ;;  %v682_v37 = vadd.f32 (!%p843_p11), %v844_v18, %v659_v34  ;;  %v684_v39 = vadd.f32 (!%p843_p11), %v844_v18, %v661_v36  ;;  %v662_v40 = vld [vmem:[%s1382_s3 + $0x58] sm:$0xff] (!%p843_p11) }
 0x133   : > { %636 = vst [vmem:[%s1382_s3 + $0x28] sm:$0xff] %v620_v15  ;;  %644 = vst [vmem:[%s1382_s3 + $0x68] sm:$0xff] %v628_v16  ;;  %v675_v21 = vadd.f32 (!%p843_p11), %v844_v18, %v652_v19  ;;  %v660_v35 = vld [vmem:[%s1382_s3 + $0x48] sm:$0xff] (!%p843_p11)  ;;  %v685_v43 = vadd.f32 (!%p843_p11), %v844_v18, %v662_v40 }
 0x134   : > { %690 = vst [vmem:[%s1382_s3] sm:$0xff] %v674_v20  ;;  %692 = vst [vmem:[%s1382_s3 + $0x10] sm:$0xff] %v676_v25  ;;  %v683_v38 = vadd.f32 %v844_v18, %v660_v35 }
 0x135   : > { %691 = vst [vmem:[%s1382_s3 + $0x8] sm:$0xff] %v675_v21  ;;  %693 = vst [vmem:[%s1382_s3 + $0x18] sm:$0xff] %v677_v26 }
 0x136   : > { %698 = vst [vmem:[%s1382_s3 + $0x40] sm:$0xff] %v682_v37  ;;  %699 = vst [vmem:[%s1382_s3 + $0x48] sm:$0xff] %v683_v38 }
 0x137   : > { %v657_v29 = vld [vmem:[%s1382_s3 + $0x30] sm:$0xff]  ;;  %700 = vst [vmem:[%s1382_s3 + $0x50] sm:$0xff] %v684_v39  ;;  %701 = vst [vmem:[%s1382_s3 + $0x58] sm:$0xff] %v685_v43 }
 0x138   : > { %v655_v24 = vld [vmem:[%s1382_s3 + $0x20] sm:$0xff]  ;;  %v680_v32 = vadd.f32 %v844_v18, %v657_v29  ;;  %v665_v46 = vld [vmem:[%s1382_s3 + $0x70] sm:$0xff] }
 0x139   : > { %v678_v27 = vadd.f32 %v844_v18, %v655_v24  ;;  %v658_v30 = vld [vmem:[%s1382_s3 + $0x38] sm:$0xff]  ;;  %v663_v41 = vld [vmem:[%s1382_s3 + $0x60] sm:$0xff]  ;;  %v688_v48 = vadd.f32 %v844_v18, %v665_v46 }
 0x13a   : > { %v656_v28 = vld [vmem:[%s1382_s3 + $0x28] sm:$0xff]  ;;  %v681_v33 = vadd.f32 %v844_v18, %v658_v30  ;;  %696 = vst [vmem:[%s1382_s3 + $0x30] sm:$0xff] %v680_v32  ;;  %v686_v44 = vadd.f32 %v844_v18, %v663_v41  ;;  %v666_v47 = vld [vmem:[%s1382_s3 + $0x78] sm:$0xff] }
 0x13b   : > { %v679_v31 = vadd.f32 %v844_v18, %v656_v28  ;;  %694 = vst [vmem:[%s1382_s3 + $0x20] sm:$0xff] %v678_v27  ;;  %v664_v42 = vld [vmem:[%s1382_s3 + $0x68] sm:$0xff]  ;;  %v689_v49 = vadd.f32 %v844_v18, %v666_v47  ;;  %704 = vst [vmem:[%s1382_s3 + $0x70] sm:$0xff] %v688_v48 }
 0x13c   : > { %697 = vst [vmem:[%s1382_s3 + $0x38] sm:$0xff] %v681_v33  ;;  %v687_v45 = vadd.f32 %v844_v18, %v664_v42  ;;  %702 = vst [vmem:[%s1382_s3 + $0x60] sm:$0xff] %v686_v44 }
 0x13d   : > { %695 = vst [vmem:[%s1382_s3 + $0x28] sm:$0xff] %v679_v31  ;;  %705 = vst [vmem:[%s1382_s3 + $0x78] sm:$0xff] %v689_v49 }
 0x13e   : > { %703 = vst [vmem:[%s1382_s3 + $0x68] sm:$0xff] %v687_v45 }
 0x13f PF: > { %s13_s16 = sadd.s32 1, %s1008_s16   ;;  %s1383_s12 = smov %s996_s13 }
 0x140   : > { %p10_p12 = scmp.ge.s32.totalorder %s13_s16, 7   ;;  %s1384_s13 = smov %s1066_s20 }
 0x141   : > { %s1385_s14 = smov %s1004_s15  ;;  %s1386_s15 = smov %s1388_s17 }
 0x142   :  { %12 = sbr.rel (!%p10_p12) target bundleno = 3 (0x3), region = 122 }

// kernel: snunet_forward.34
= control target key start
LH: loop header
LB: loop body
LE: loop exit
PB: predicated region body
PF: predicated region fallthrough
CT: control target
= control target key end

     0   :  { %v609_v1 = vmov 0   ;;  %v457_v25 = vlaneseq  ;;  %s845_s1 = inlined_call_operand.vmem [shape: bf16[128,256], index: 1, kind: input, shape index: {}]   ;;  %s846_s0 = inlined_call_operand.vmem [shape: bf16[128,128], index: 0, kind: input, shape index: {}]   ;;  %s847_s2 = inlined_call_operand.vmem [shape: f32[1,256], index: 2, kind: input, shape index: {}]   ;;  %s848_s3 = inlined_call_operand.vmem [shape: f32[128,256], index: 3, kind: output, shape index: {}]  }
   0x1   :  { %v577_v0 = vld [vmem:[%s845_s1 + $0x4] ss:$8 sps:$4 sm:$0xff]   ;;  %275 = vmatprep.mubr.bf16.mxu0 %v609_v1  ;;  %315 = vmatprep.mubr.bf16.mxu1 %v609_v1  ;;  %v579_v2 = vld [vmem:[%s845_s1] ss:$8 sps:$4 sm:$0xff]   ;;  %v580_v3 = vld [vmem:[%s845_s1 + $0x14] ss:$8 sps:$4 sm:$0xff]  }
   0x2   :  { %243 = vmatprep.subr.bf16.mxu0 %v577_v0  ;;  %559 = vmatprep.subr.bf16.mxu1 %v577_v0  ;;  %v582_v4 = vld [vmem:[%s845_s1 + $0x10] ss:$8 sps:$4 sm:$0xff]   ;;  %v583_v5 = vld [vmem:[%s845_s1 + $0x24] ss:$8 sps:$4 sm:$0xff]   ;;  %v585_v6 = vld [vmem:[%s845_s1 + $0x20] ss:$8 sps:$4 sm:$0xff]  }
   0x3   :  { %244 = vmatpush1.bf16.msra.mxu0 %v579_v2  ;;  %567 = vmatpush1.bf16.msra.mxu1 %v579_v2  ;;  %v586_v7 = vld [vmem:[%s845_s1 + $0x34] ss:$8 sps:$4 sm:$0xff]   ;;  %v588_v8 = vld [vmem:[%s845_s1 + $0x30] ss:$8 sps:$4 sm:$0xff]   ;;  %v589_v9 = vld [vmem:[%s845_s1 + $0x44] ss:$8 sps:$4 sm:$0xff]  }
   0x4   :  { %245 = vmatprep.subr.bf16.mxu0 %v580_v3  ;;  %560 = vmatprep.subr.bf16.mxu1 %v580_v3  ;;  %v591_v10 = vld [vmem:[%s845_s1 + $0x40] ss:$8 sps:$4 sm:$0xff]   ;;  %v592_v11 = vld [vmem:[%s845_s1 + $0x54] ss:$8 sps:$4 sm:$0xff]   ;;  %v594_v12 = vld [vmem:[%s845_s1 + $0x50] ss:$8 sps:$4 sm:$0xff]  }
   0x5   :  { %v595_v13 = vld [vmem:[%s845_s1 + $0x64] ss:$8 sps:$4 sm:$0xff]   ;;  %v597_v14 = vld [vmem:[%s845_s1 + $0x60] ss:$8 sps:$4 sm:$0xff]   ;;  %v598_v15 = vld [vmem:[%s845_s1 + $0x74] ss:$8 sps:$4 sm:$0xff]  }
   0x6   :  { %v600_v16 = vld [vmem:[%s845_s1 + $0x70] ss:$8 sps:$4 sm:$0xff]   ;;  %v601_v17 = vld [vmem:[%s846_s0] sm:$0xff]   ;;  %v603_v19 = vld [vmem:[%s846_s0 + $0x8] sm:$0xff]   ;;  %v458_v26 = vshrl.u32 %v457_v25, 7 }
   0x7   :  { %246 = vmatpush1.bf16.msra.mxu0 %v582_v4  ;;  %568 = vmatpush1.bf16.msra.mxu1 %v582_v4  ;;  %v602_v18 = vld [vmem:[%s846_s0 + $0x20] sm:$0xff]   ;;  %v604_v20 = vld [vmem:[%s846_s0 + $0x28] sm:$0xff]   ;;  %v605_v21 = vld [vmem:[%s846_s0 + $0x10] sm:$0xff]  }
   0x8   :  { %247 = vmatprep.subr.bf16.mxu0 %v583_v5  ;;  %561 = vmatprep.subr.bf16.mxu1 %v583_v5  ;;  %v606_v22 = vld [vmem:[%s846_s0 + $0x30] sm:$0xff]   ;;  %v607_v23 = vld [vmem:[%s846_s0 + $0x18] sm:$0xff]   ;;  %v459_v27 = vsub.s32 0, %v458_v26  ;;  %v455_v28 = vld [vmem:[%s847_s2] sm:$0x3]  ;;  %v463_v29 = vsub.s32 1, %v458_v26 }
   0x9   :  { %v608_v24 = vld [vmem:[%s846_s0 + $0x38] sm:$0xff]  }
   0xa   :  { %v713_v30 = vrot.slane %v455_v28, %v459_v27  ;;  %v715_v33 = vrot.slane %v455_v28, %v463_v29 }
   0xb   :  { %248 = vmatpush1.bf16.msra.mxu0 %v585_v6  ;;  %569 = vmatpush1.bf16.msra.mxu1 %v585_v6 }
   0xc   :  { %249 = vmatprep.subr.bf16.mxu0 %v586_v7  ;;  %562 = vmatprep.subr.bf16.mxu1 %v586_v7 }
   0xf   :  { %250 = vmatpush1.bf16.msra.mxu0 %v588_v8  ;;  %570 = vmatpush1.bf16.msra.mxu1 %v588_v8 }
  0x10   :  { %251 = vmatprep.subr.bf16.mxu0 %v589_v9  ;;  %563 = vmatprep.subr.bf16.mxu1 %v589_v9 }
  0x13   :  { %252 = vmatpush1.bf16.msra.mxu0 %v591_v10  ;;  %571 = vmatpush1.bf16.msra.mxu1 %v591_v10 }
  0x14   :  { %253 = vmatprep.subr.bf16.mxu0 %v592_v11  ;;  %564 = vmatprep.subr.bf16.mxu1 %v592_v11 }
  0x17   :  { %254 = vmatpush1.bf16.msra.mxu0 %v594_v12  ;;  %572 = vmatpush1.bf16.msra.mxu1 %v594_v12 }
  0x18   :  { %255 = vmatprep.subr.bf16.mxu0 %v595_v13  ;;  %565 = vmatprep.subr.bf16.mxu1 %v595_v13 }
  0x1b   :  { %256 = vmatpush1.bf16.msra.mxu0 %v597_v14  ;;  %573 = vmatpush1.bf16.msra.mxu1 %v597_v14 }
  0x1c   :  { %257 = vmatprep.subr.bf16.mxu0 %v598_v15  ;;  %566 = vmatprep.subr.bf16.mxu1 %v598_v15 }
  0x1f   :  { %258 = vmatpush1.bf16.msra.mxu0 %v600_v16  ;;  %574 = vmatpush1.bf16.msra.mxu1 %v600_v16 }
  0x22   :  { %276 = vmatmul.mubr.bf16.vlgmr.msra.gmra.mrb[0].mxu0 %v601_v17  ;;  %316 = vmatmul.mubr.bf16.vlgmr.msra.gmra.mrb[0].mxu1 %v602_v18 }
  0x23   :  { %285 = vmatprep.mubr.bf16.mxu0 %v609_v1  ;;  %325 = vmatprep.mubr.bf16.mxu1 %v609_v1 }
  0x2a   :  { %286 = vmatmul.mubr.bf16.gmra.mrb[4].mxu0 %v603_v19  ;;  %326 = vmatmul.mubr.bf16.gmra.mrb[4].mxu1 %v604_v20 }
  0x2b   :  { %295 = vmatprep.mubr.bf16.mxu0 %v609_v1  ;;  %335 = vmatprep.mubr.bf16.mxu1 %v609_v1 }
  0x32   :  { %296 = vmatmul.mubr.bf16.gmra.mrb[8].mxu0 %v605_v21  ;;  %336 = vmatmul.mubr.bf16.gmra.mrb[8].mxu1 %v606_v22 }
  0x33   :  { %305 = vmatprep.mubr.bf16.mxu0 %v609_v1  ;;  %345 = vmatprep.mubr.bf16.mxu1 %v609_v1 }
  0x3a   :  { %306 = vmatmul.mubr.bf16.gmra.mrb[12].mxu0 %v607_v23  ;;  %346 = vmatmul.mubr.bf16.gmra.mrb[12].mxu1 %v608_v24 }
  0xf5   :  { %v277_v31 = vpop.f32.mrb[0].mxu0  ;;  %v317_v32 = vpop.f32.mrb[0].mxu1 }
  0xf6   :  { %v279_v34 = vpop.f32.mrb[1].mxu0  ;;  %v319_v35 = vpop.f32.mrb[1].mxu1  ;;  %v467_v38 = vadd.f32 %v713_v30, %v277_v31  ;;  %v483_v39 = vadd.f32 %v713_v30, %v317_v32 }
  0xf7   :  { %v281_v36 = vpop.f32.mrb[2].mxu0  ;;  %v321_v37 = vpop.f32.mrb[2].mxu1  ;;  %v468_v42 = vadd.f32 %v715_v33, %v279_v34  ;;  %v484_v43 = vadd.f32 %v715_v33, %v319_v35 }
  0xf8   :  { %v283_v40 = vpop.f32.mrb[3].mxu0  ;;  %v323_v41 = vpop.f32.mrb[3].mxu1  ;;  %499 = vst [vmem:[%s848_s3] sm:$0xff] %v467_v38  ;;  %515 = vst [vmem:[%s848_s3 + $0x80] sm:$0xff] %v483_v39  ;;  %v469_v44 = vadd.f32 %v713_v30, %v281_v36  ;;  %v485_v45 = vadd.f32 %v713_v30, %v321_v37 }
  0xf9   :  { %500 = vst [vmem:[%s848_s3 + $0x8] sm:$0xff] %v468_v42  ;;  %516 = vst [vmem:[%s848_s3 + $0x88] sm:$0xff] %v484_v43  ;;  %v470_v46 = vadd.f32 %v715_v33, %v283_v40  ;;  %v486_v47 = vadd.f32 %v715_v33, %v323_v41 }
  0xfa   :  { %501 = vst [vmem:[%s848_s3 + $0x10] sm:$0xff] %v469_v44  ;;  %517 = vst [vmem:[%s848_s3 + $0x90] sm:$0xff] %v485_v45 }
  0xfb   :  { %502 = vst [vmem:[%s848_s3 + $0x18] sm:$0xff] %v470_v46  ;;  %518 = vst [vmem:[%s848_s3 + $0x98] sm:$0xff] %v486_v47 }
  0xfd   :  { %v287_v48 = vpop.f32.mrb[4].mxu0  ;;  %v327_v49 = vpop.f32.mrb[4].mxu1 }
  0xfe   :  { %v289_v50 = vpop.f32.mrb[5].mxu0  ;;  %v329_v51 = vpop.f32.mrb[5].mxu1  ;;  %v471_v54 = vadd.f32 %v713_v30, %v287_v48  ;;  %v487_v55 = vadd.f32 %v713_v30, %v327_v49 }
  0xff   :  { %v291_v52 = vpop.f32.mrb[6].mxu0  ;;  %v331_v53 = vpop.f32.mrb[6].mxu1  ;;  %v472_v58 = vadd.f32 %v715_v33, %v289_v50  ;;  %v488_v59 = vadd.f32 %v715_v33, %v329_v51 }
 0x100   :  { %v293_v56 = vpop.f32.mrb[7].mxu0  ;;  %v333_v57 = vpop.f32.mrb[7].mxu1  ;;  %503 = vst [vmem:[%s848_s3 + $0x20] sm:$0xff] %v471_v54  ;;  %519 = vst [vmem:[%s848_s3 + $0xa0] sm:$0xff] %v487_v55  ;;  %v473_v60 = vadd.f32 %v713_v30, %v291_v52  ;;  %v489_v61 = vadd.f32 %v713_v30, %v331_v53 }
 0x101   :  { %504 = vst [vmem:[%s848_s3 + $0x28] sm:$0xff] %v472_v58  ;;  %520 = vst [vmem:[%s848_s3 + $0xa8] sm:$0xff] %v488_v59  ;;  %v474_v62 = vadd.f32 %v715_v33, %v293_v56  ;;  %v490_v63 = vadd.f32 %v715_v33, %v333_v57 }
 0x102   :  { %505 = vst [vmem:[%s848_s3 + $0x30] sm:$0xff] %v473_v60  ;;  %521 = vst [vmem:[%s848_s3 + $0xb0] sm:$0xff] %v489_v61 }
 0x103   :  { %506 = vst [vmem:[%s848_s3 + $0x38] sm:$0xff] %v474_v62  ;;  %522 = vst [vmem:[%s848_s3 + $0xb8] sm:$0xff] %v490_v63 }
 0x105   :  { %v297_v0 = vpop.f32.mrb[8].mxu0  ;;  %v337_v1 = vpop.f32.mrb[8].mxu1 }
 0x106   :  { %v299_v2 = vpop.f32.mrb[9].mxu0  ;;  %v339_v3 = vpop.f32.mrb[9].mxu1  ;;  %v475_v6 = vadd.f32 %v713_v30, %v297_v0  ;;  %v491_v7 = vadd.f32 %v713_v30, %v337_v1 }
 0x107   :  { %v301_v4 = vpop.f32.mrb[10].mxu0  ;;  %v341_v5 = vpop.f32.mrb[10].mxu1  ;;  %v476_v10 = vadd.f32 %v715_v33, %v299_v2  ;;  %v492_v11 = vadd.f32 %v715_v33, %v339_v3 }
 0x108   :  { %v303_v8 = vpop.f32.mrb[11].mxu0  ;;  %v343_v9 = vpop.f32.mrb[11].mxu1  ;;  %507 = vst [vmem:[%s848_s3 + $0x40] sm:$0xff] %v475_v6  ;;  %523 = vst [vmem:[%s848_s3 + $0xc0] sm:$0xff] %v491_v7  ;;  %v477_v12 = vadd.f32 %v713_v30, %v301_v4  ;;  %v493_v13 = vadd.f32 %v713_v30, %v341_v5 }
 0x109   :  { %508 = vst [vmem:[%s848_s3 + $0x48] sm:$0xff] %v476_v10  ;;  %524 = vst [vmem:[%s848_s3 + $0xc8] sm:$0xff] %v492_v11  ;;  %v478_v14 = vadd.f32 %v715_v33, %v303_v8  ;;  %v494_v15 = vadd.f32 %v715_v33, %v343_v9 }
 0x10a   :  { %509 = vst [vmem:[%s848_s3 + $0x50] sm:$0xff] %v477_v12  ;;  %525 = vst [vmem:[%s848_s3 + $0xd0] sm:$0xff] %v493_v13 }
 0x10b   :  { %510 = vst [vmem:[%s848_s3 + $0x58] sm:$0xff] %v478_v14  ;;  %526 = vst [vmem:[%s848_s3 + $0xd8] sm:$0xff] %v494_v15 }
 0x10d   :  { %v307_v16 = vpop.f32.mrb[12].mxu0  ;;  %v347_v17 = vpop.f32.mrb[12].mxu1 }
 0x10e   :  { %v309_v18 = vpop.f32.mrb[13].mxu0  ;;  %v349_v19 = vpop.f32.mrb[13].mxu1  ;;  %v479_v22 = vadd.f32 %v713_v30, %v307_v16  ;;  %v495_v23 = vadd.f32 %v713_v30, %v347_v17 }
 0x10f   :  { %v311_v20 = vpop.f32.mrb[14].mxu0  ;;  %v351_v21 = vpop.f32.mrb[14].mxu1  ;;  %v480_v26 = vadd.f32 %v715_v33, %v309_v18  ;;  %v496_v27 = vadd.f32 %v715_v33, %v349_v19 }
 0x110   :  { %v313_v24 = vpop.f32.mrb[15].mxu0  ;;  %v353_v25 = vpop.f32.mrb[15].mxu1  ;;  %511 = vst [vmem:[%s848_s3 + $0x60] sm:$0xff] %v479_v22  ;;  %527 = vst [vmem:[%s848_s3 + $0xe0] sm:$0xff] %v495_v23  ;;  %v481_v28 = vadd.f32 %v713_v30, %v311_v20  ;;  %v497_v29 = vadd.f32 %v713_v30, %v351_v21 }
 0x111   :  { %512 = vst [vmem:[%s848_s3 + $0x68] sm:$0xff] %v480_v26  ;;  %528 = vst [vmem:[%s848_s3 + $0xe8] sm:$0xff] %v496_v27  ;;  %v482_v31 = vadd.f32 %v715_v33, %v313_v24  ;;  %v498_v32 = vadd.f32 %v715_v33, %v353_v25 }
 0x112   :  { %513 = vst [vmem:[%s848_s3 + $0x70] sm:$0xff] %v481_v28  ;;  %529 = vst [vmem:[%s848_s3 + $0xf0] sm:$0xff] %v497_v29 }
 0x113   :  { %514 = vst [vmem:[%s848_s3 + $0x78] sm:$0xff] %v482_v31  ;;  %530 = vst [vmem:[%s848_s3 + $0xf8] sm:$0xff] %v498_v32 }

// kernel: snunet_forward.37
= control target key start
LH: loop header
LB: loop body
LE: loop exit
PB: predicated region body
PF: predicated region fallthrough
CT: control target
= control target key end

     0   :  { %s1500_s12 = smov 0   ;;  %s1502_s13 = smov 0   ;;  %s1930_s0 = inlined_call_operand.vmem [shape: bf16[128,2304], index: 0, kind: input, shape index: {}]   ;;  %s1931_s1 = inlined_call_operand.vmem [shape: bf16[2304,128], index: 1, kind: input, shape index: {}]   ;;  %s1932_s2 = inlined_call_operand.vmem [shape: f32[1,128], index: 2, kind: input, shape index: {}]   ;;  %s1933_s3 = inlined_call_operand.vmem [shape: f32[128,128], index: 3, kind: output, shape index: {}]  }
   0x1   :  { %s1504_s14 = smov 0   ;;  %s1506_s15 = smov 0  }
   0x2   :  { %s1508_s16 = smov 0  }
   0x3 LB: > { %s25_s17 = sadd.s32 1, %s1473_s15  ;;  %p48_p1 = scmp.ne.s32.totalorder %s1465_s13, %s1461_s12  ;;  %s1477_s16 = sphi %s1508_s16, %s13_s16   ;;  %s1473_s15 = sphi %s1506_s15, %s1937_s15   ;;  %s1469_s14 = sphi %s1504_s14, %s1936_s14   ;;  %s1465_s13 = sphi %s1502_s13, %s1935_s13   ;;  %s1461_s12 = sphi %s1500_s12, %s1934_s12  }
   0x4   : > { %p26_p0 = scmp.ge.s32.totalorder %s25_s17, 6  ;;  %p49_p2 = scmp.eq.s32.totalorder %s1477_s16, 0 }
   0x5   : > { %s41_s19 = sadd.s32 1, %s1465_s13  ;;  %p1136_p5 = scmp.ge.s32.totalorder %s1477_s16, 6 }
   0x6   : > { %s1939_s17 = smov (%p26_p0, %s25_s17), 0  ;;  %p50_p3 = por %p49_p2, %p48_p1 }
   0x7   : > { %s37_s18 = ssub.s32 %s1473_s15, %s1939_s17  ;;  %162 = sbr.rel (%p1136_p5) target bundleno = 37 (0x25), region = 20 }
   0x8   : > { %p39_p4 = scmp.eq.s32.totalorder %s37_s18, 0 }
   0xa   : > { %s1535_s20 = scalar_select %p39_p4, %s1465_s13, %s41_s19  }
   0xe   : > { %165 = sbr.rel (!%p50_p3) target bundleno = 37 (0x25), region = 24  ;;  %s167_s21 = sand.u32 (%p50_p3), 1, %s1465_s13  }
   0xf   : > { %s1227_s22 = smul.u32 (%p50_p3), 12, %s1473_s15 }
  0x10   : > { %s1340_s23 = smul.u32 (%p50_p3), 192, %s167_s21 }
  0x11   : > { %s1543_s26 = scalar_lea.vmem (%p50_p3), %s1930_s0, %s1227_s22 }
  0x12   : > { %v190_v0 = vld [vmem:[%s1543_s26] sm:$0xff] (%p50_p3)  ;;  %v192_v1 = vld [vmem:[%s1543_s26 + $0x48] sm:$0xff] (%p50_p3)  ;;  %v194_v2 = vld [vmem:[%s1543_s26 + $0x90] sm:$0xff] (%p50_p3)  ;;  %s1548_s27 = scalar_lea.vmem (%p50_p3), [#allocation2], %s1340_s23 }
  0x13   : > { %191 = vst [vmem:[%s1548_s27] sm:$0xff] (%p50_p3), %v190_v0  ;;  %193 = vst [vmem:[%s1548_s27 + $0xc] sm:$0xff] (%p50_p3), %v192_v1  ;;  %v196_v3 = vld [vmem:[%s1543_s26 + $0xd8] sm:$0xff] (%p50_p3)  ;;  %v198_v4 = vld [vmem:[%s1543_s26 + $0x120] sm:$0xff] (%p50_p3) }
  0x14   : > { %195 = vst [vmem:[%s1548_s27 + $0x18] sm:$0xff] (%p50_p3), %v194_v2  ;;  %v200_v5 = vld [vmem:[%s1543_s26 + $0x168] sm:$0xff] (%p50_p3)  ;;  %197 = vst [vmem:[%s1548_s27 + $0x24] sm:$0xff] (%p50_p3), %v196_v3  ;;  %v202_v6 = vld [vmem:[%s1543_s26 + $0x1b0] sm:$0xff] (%p50_p3) }
  0x15   : > { %199 = vst [vmem:[%s1548_s27 + $0x30] sm:$0xff] %v198_v4  ;;  %201 = vst [vmem:[%s1548_s27 + $0x3c] sm:$0xff] %v200_v5  ;;  %v204_v7 = vld [vmem:[%s1543_s26 + $0x1f8] sm:$0xff]  ;;  %v206_v8 = vld [vmem:[%s1543_s26 + $0x240] sm:$0xff] }
  0x16   : > { %203 = vst [vmem:[%s1548_s27 + $0x48] sm:$0xff] %v202_v6  ;;  %205 = vst [vmem:[%s1548_s27 + $0x54] sm:$0xff] %v204_v7  ;;  %v208_v9 = vld [vmem:[%s1543_s26 + $0x288] sm:$0xff]  ;;  %v210_v10 = vld [vmem:[%s1543_s26 + $0x2d0] sm:$0xff] }
  0x17   : > { %207 = vst [vmem:[%s1548_s27 + $0x60] sm:$0xff] %v206_v8  ;;  %v212_v11 = vld [vmem:[%s1543_s26 + $0x318] sm:$0xff]  ;;  %209 = vst [vmem:[%s1548_s27 + $0x6c] sm:$0xff] %v208_v9  ;;  %v214_v12 = vld [vmem:[%s1543_s26 + $0x360] sm:$0xff] }
  0x18   : > { %211 = vst [vmem:[%s1548_s27 + $0x78] sm:$0xff] %v210_v10  ;;  %213 = vst [vmem:[%s1548_s27 + $0x84] sm:$0xff] %v212_v11  ;;  %v216_v13 = vld [vmem:[%s1543_s26 + $0x3a8] sm:$0xff]  ;;  %v218_v14 = vld [vmem:[%s1543_s26 + $0x3f0] sm:$0xff] }
  0x19   : > { %215 = vst [vmem:[%s1548_s27 + $0x90] sm:$0xff] %v214_v12  ;;  %217 = vst [vmem:[%s1548_s27 + $0x9c] sm:$0xff] %v216_v13  ;;  %v220_v15 = vld [vmem:[%s1543_s26 + $0x438] sm:$0xff]  ;;  %v1138_v16 = vld [vmem:[%s1543_s26 + $0x8] sm:$0xf] }
  0x1a   : > { %219 = vst [vmem:[%s1548_s27 + $0xa8] sm:$0xff] %v218_v14  ;;  %v1140_v17 = vld [vmem:[%s1543_s26 + $0x50] sm:$0xf]  ;;  %221 = vst [vmem:[%s1548_s27 + $0xb4] sm:$0xff] %v220_v15  ;;  %v1142_v18 = vld [vmem:[%s1543_s26 + $0x98] sm:$0xf] }
  0x1b   : > { %1139 = vst [vmem:[%s1548_s27 + $0x8] sm:$0xf] %v1138_v16  ;;  %1141 = vst [vmem:[%s1548_s27 + $0x14] sm:$0xf] %v1140_v17  ;;  %v1144_v19 = vld [vmem:[%s1543_s26 + $0xe0] sm:$0xf] }
  0x1c   : > { %v1146_v20 = vld [vmem:[%s1543_s26 + $0x128] sm:$0xf]  ;;  %1143 = vst [vmem:[%s1548_s27 + $0x20] sm:$0xf] %v1142_v18  ;;  %1145 = vst [vmem:[%s1548_s27 + $0x2c] sm:$0xf] %v1144_v19 }
  0x1d   : > { %1147 = vst [vmem:[%s1548_s27 + $0x38] sm:$0xf] %v1146_v20  ;;  %v1148_v21 = vld [vmem:[%s1543_s26 + $0x170] sm:$0xf]  ;;  %v1150_v22 = vld [vmem:[%s1543_s26 + $0x1b8] sm:$0xf] }
  0x1e   : > { %v1152_v23 = vld [vmem:[%s1543_s26 + $0x200] sm:$0xf]  ;;  %1149 = vst [vmem:[%s1548_s27 + $0x44] sm:$0xf] %v1148_v21  ;;  %1151 = vst [vmem:[%s1548_s27 + $0x50] sm:$0xf] %v1150_v22 }
  0x1f   : > { %1153 = vst [vmem:[%s1548_s27 + $0x5c] sm:$0xf] %v1152_v23  ;;  %v1154_v24 = vld [vmem:[%s1543_s26 + $0x248] sm:$0xf]  ;;  %v1156_v25 = vld [vmem:[%s1543_s26 + $0x290] sm:$0xf] }
  0x20   : > { %v1158_v26 = vld [vmem:[%s1543_s26 + $0x2d8] sm:$0xf]  ;;  %1155 = vst [vmem:[%s1548_s27 + $0x68] sm:$0xf] %v1154_v24  ;;  %1157 = vst [vmem:[%s1548_s27 + $0x74] sm:$0xf] %v1156_v25 }
  0x21   : > { %1159 = vst [vmem:[%s1548_s27 + $0x80] sm:$0xf] %v1158_v26  ;;  %v1160_v27 = vld [vmem:[%s1543_s26 + $0x320] sm:$0xf]  ;;  %v1162_v28 = vld [vmem:[%s1543_s26 + $0x368] sm:$0xf] }
  0x22   : > { %v1164_v29 = vld [vmem:[%s1543_s26 + $0x3b0] sm:$0xf]  ;;  %1161 = vst [vmem:[%s1548_s27 + $0x8c] sm:$0xf] %v1160_v27  ;;  %1163 = vst [vmem:[%s1548_s27 + $0x98] sm:$0xf] %v1162_v28 }
  0x23   : > { %1165 = vst [vmem:[%s1548_s27 + $0xa4] sm:$0xf] %v1164_v29  ;;  %v1166_v30 = vld [vmem:[%s1543_s26 + $0x3f8] sm:$0xf]  ;;  %v1168_v31 = vld [vmem:[%s1543_s26 + $0x440] sm:$0xf] }
  0x24   : > { %1167 = vst [vmem:[%s1548_s27 + $0xb0] sm:$0xf] %v1166_v30  ;;  %1169 = vst [vmem:[%s1548_s27 + $0xbc] sm:$0xf] %v1168_v31 }
  0x25 PF: > { %p1170_p6 = scmp.ge.s32.totalorder %s1477_s16, 1  ;;  %p277_p7 = scmp.lt.s32.totalorder %s1477_s16, 7 }
  0x27   : > { %p278_p8 = pnand %p1170_p6, %p277_p7 }
  0x28   : > { %s284_s28 = sand.u32 (!%p278_p8), 1, %s1461_s12   ;;  %s323_s29 = smul.u32 (!%p278_p8), 48, %s1469_s14 }
  0x29   : > { %281 = sbr.rel (%p278_p8) target bundleno = 379 (0x17b), region = 54  ;;  %p1172_p10 = scmp.ne.s32.totalorder (!%p278_p8), %s1469_s14, 0 }
  0x2a   : > { %s1341_s30 = smul.u32 (!%p278_p8), 192, %s284_s28  ;;  %p324_p9 = scmp.lt.s32.totalorder (!%p278_p8), %s323_s29, 287 }
  0x2c   : > { %s1620_s8 = scalar_lea.vmem (!%p278_p8), [#allocation2], %s1341_s30 }
  0x30   : > { %s1941_s29 = smov (!%p324_p9, %s323_s29), 287  ;;  %348 = sbr.rel (%p1172_p10) target bundleno = 58 (0x3a), region = 62 }
  0x31   : > { %s1171_s4 = sshll.u32 %s1941_s29, 2  ;;  %v1479_v32 = vmov (!%p1172_p10), 0.0  }
  0x32   : > { %s1618_s7 = scalar_lea.vmem %s1931_s1, %s1171_s4  ;;  %349 = vst [vmem:[%s1933_s3] sm:$0xff] (!%p1172_p10), %v1479_v32  ;;  %350 = vst [vmem:[%s1933_s3 + $0x8] sm:$0xff] (!%p1172_p10), %v1479_v32 }
  0x33   : > { %351 = vst [vmem:[%s1933_s3 + $0x10] sm:$0xff] (!%p1172_p10), %v1479_v32  ;;  %352 = vst [vmem:[%s1933_s3 + $0x18] sm:$0xff] (!%p1172_p10), %v1479_v32 }
  0x34   : > { %353 = vst [vmem:[%s1933_s3 + $0x20] sm:$0xff] (!%p1172_p10), %v1479_v32  ;;  %354 = vst [vmem:[%s1933_s3 + $0x28] sm:$0xff] (!%p1172_p10), %v1479_v32 }
  0x35   : > { %355 = vst [vmem:[%s1933_s3 + $0x30] sm:$0xff] (!%p1172_p10), %v1479_v32  ;;  %356 = vst [vmem:[%s1933_s3 + $0x38] sm:$0xff] (!%p1172_p10), %v1479_v32 }
  0x36   : > { %357 = vst [vmem:[%s1933_s3 + $0x40] sm:$0xff] (!%p1172_p10), %v1479_v32  ;;  %358 = vst [vmem:[%s1933_s3 + $0x48] sm:$0xff] (!%p1172_p10), %v1479_v32 }
  0x37   : > { %359 = vst [vmem:[%s1933_s3 + $0x50] sm:$0xff] %v1479_v32  ;;  %360 = vst [vmem:[%s1933_s3 + $0x58] sm:$0xff] %v1479_v32 }
  0x38   : > { %361 = vst [vmem:[%s1933_s3 + $0x60] sm:$0xff] %v1479_v32  ;;  %362 = vst [vmem:[%s1933_s3 + $0x68] sm:$0xff] %v1479_v32 }
  0x39   : > { %363 = vst [vmem:[%s1933_s3 + $0x70] sm:$0xff] %v1479_v32  ;;  %364 = vst [vmem:[%s1933_s3 + $0x78] sm:$0xff] %v1479_v32 }
  0x3a PF: > { %v1383_v33 = vld [vmem:[%s1618_s7 + $0x40] sm:$0xff]   ;;  %v1386_v36 = vld [vmem:[%s1618_s7 + $0x48] sm:$0xff]   ;;  %v1389_v39 = vld [vmem:[%s1618_s7 + $0x50] sm:$0xff]   ;;  %p1221_p11 = scmp.ne.s32.totalorder %s1469_s14, 5 }
  0x3b   : > { %v1384_v34 = vld [vmem:[%s1618_s7] sm:$0xff]   ;;  %1228 = vmatprep.subr.bf16.mxu0 %v1383_v33  ;;  %v1387_v37 = vld [vmem:[%s1618_s7 + $0x8] sm:$0xff]   ;;  %v1390_v40 = vld [vmem:[%s1618_s7 + $0x10] sm:$0xff]  }
  0x3c   : > { %v1385_v35 = vld [vmem:[%s1618_s7 + $0x80] sm:$0xff]   ;;  %1229 = vmatpush3.bf16.msra.mxu0 %v1384_v34  ;;  %v1388_v38 = vld [vmem:[%s1618_s7 + $0x88] sm:$0xff]   ;;  %v1391_v41 = vld [vmem:[%s1618_s7 + $0x90] sm:$0xff]  }
  0x3d   : > { %1308 = vmatprep.subr.bf16.mxu1 %v1385_v35  ;;  %1230 = vmatprep.subr.bf16.mxu0 %v1386_v36  ;;  %v1392_v42 = vld [vmem:[%s1618_s7 + $0x58] sm:$0xff]   ;;  %v1395_v45 = vld [vmem:[%s1618_s7 + $0x60] sm:$0xff]   ;;  %v1398_v48 = vld [vmem:[%s1618_s7 + $0x68] sm:$0xff]  }
  0x3e   : > { %1309 = vmatpush3.bf16.msra.mxu1 %v1385_v35  ;;  %v1393_v43 = vld [vmem:[%s1618_s7 + $0x18] sm:$0xff]   ;;  %v1397_v46 = vld [vmem:[%s1618_s7 + $0xa0] sm:$0xff]   ;;  %v1400_v49 = vld [vmem:[%s1618_s7 + $0xa8] sm:$0xff]  }
  0x3f   : > { %1310 = vmatprep.subr.bf16.mxu1 %v1388_v38  ;;  %v1394_v44 = vld [vmem:[%s1618_s7 + $0x98] sm:$0xff]   ;;  %v1396_v47 = vld [vmem:[%s1618_s7 + $0x20] sm:$0xff]   ;;  %v1399_v50 = vld [vmem:[%s1618_s7 + $0x28] sm:$0xff]  }
  0x40   : > { %1231 = vmatpush3.bf16.msra.mxu0 %v1387_v37  ;;  %v1401_v51 = vld [vmem:[%s1618_s7 + $0x70] sm:$0xff]   ;;  %v1404_v54 = vld [vmem:[%s1618_s7 + $0x78] sm:$0xff]   ;;  %v1407_v59 = vld [vmem:[%s1620_s8] ss:$12 sps:$4 sm:$0xff]  }
  0x41   : > { %1232 = vmatprep.subr.bf16.mxu0 %v1389_v39  ;;  %v1402_v52 = vld [vmem:[%s1618_s7 + $0x30] sm:$0xff]   ;;  %v1406_v55 = vld [vmem:[%s1618_s7 + $0xb8] sm:$0xff]   ;;  %v1411_v61 = vld [vmem:[%s1620_s8 + $0x20] ss:$12 sps:$4 sm:$0xff]  }
  0x42   : > { %1311 = vmatpush3.bf16.msra.mxu1 %v1388_v38  ;;  %v1403_v53 = vld [vmem:[%s1618_s7 + $0xb0] sm:$0xff]   ;;  %v1405_v58 = vld [vmem:[%s1618_s7 + $0x38] sm:$0xff]   ;;  %v1427_v5 = vld [vmem:[%s1620_s8 + $0x80] ss:$12 sps:$4 sm:$0xff]  }
  0x43   : > { %1312 = vmatprep.subr.bf16.mxu1 %v1391_v41  ;;  %v1409_v56 = vld [vmem:[%s1620_s8 + $0x4] ss:$12 sps:$4 sm:$0xff]   ;;  %v1410_v57 = vld [vmem:[%s1620_s8 + $0x8] ss:$12 sps:$4 sm:$0xff]   ;;  %v1420_v4 = vld [vmem:[%s1620_s8 + $0x4c] ss:$12 sps:$4 sm:$0xff]  }
  0x44   : > { %1233 = vmatpush3.bf16.msra.mxu0 %v1390_v40  ;;  %765 = vmatprep.mubr.bf16.mxu0 %v1409_v56  ;;  %v1412_v60 = vld [vmem:[%s1620_s8 + $0x1c] ss:$12 sps:$4 sm:$0xff]   ;;  %v1418_v62 = vld [vmem:[%s1620_s8 + $0x38] ss:$12 sps:$4 sm:$0xff]   ;;  %v1415_v0 = vld [vmem:[%s1620_s8 + $0x34] ss:$12 sps:$4 sm:$0xff]  }
  0x45   : > { %1234 = vmatprep.subr.bf16.mxu0 %v1392_v42  ;;  %1324 = vmatprep.mubr.bf16.mxu1 %v1410_v57  ;;  %v1414_v63 = vld [vmem:[%s1620_s8 + $0x18] ss:$12 sps:$4 sm:$0xff]   ;;  %v1419_v1 = vld [vmem:[%s1620_s8 + $0x50] ss:$12 sps:$4 sm:$0xff]   ;;  %v1426_v2 = vld [vmem:[%s1620_s8 + $0x68] ss:$12 sps:$4 sm:$0xff]  }
  0x46   : > { %1313 = vmatpush3.bf16.msra.mxu1 %v1391_v41  ;;  %v1417_v3 = vld [vmem:[%s1620_s8 + $0x30] ss:$12 sps:$4 sm:$0xff]   ;;  %v1434_v6 = vld [vmem:[%s1620_s8 + $0x98] ss:$12 sps:$4 sm:$0xff]   ;;  %v1422_v7 = vld [vmem:[%s1620_s8 + $0x48] ss:$12 sps:$4 sm:$0xff]  }
  0x47   : > { %1314 = vmatprep.subr.bf16.mxu1 %v1394_v44  ;;  %v1423_v8 = vld [vmem:[%s1620_s8 + $0x64] ss:$12 sps:$4 sm:$0xff]   ;;  %v1425_v10 = vld [vmem:[%s1620_s8 + $0x60] ss:$12 sps:$4 sm:$0xff]   ;;  %v1428_v11 = vld [vmem:[%s1620_s8 + $0x7c] ss:$12 sps:$4 sm:$0xff]  }
  0x48   : > { %1235 = vmatpush3.bf16.msra.mxu0 %v1393_v43  ;;  %v1435_v9 = vld [vmem:[%s1620_s8 + $0xb0] ss:$12 sps:$4 sm:$0xff]   ;;  %v1430_v12 = vld [vmem:[%s1620_s8 + $0x78] ss:$12 sps:$4 sm:$0xff]   ;;  %v1431_v13 = vld [vmem:[%s1620_s8 + $0x94] ss:$12 sps:$4 sm:$0xff]  }
  0x49   : > { %1236 = vmatprep.subr.bf16.mxu0 %v1395_v45  ;;  %v1433_v14 = vld [vmem:[%s1620_s8 + $0x90] ss:$12 sps:$4 sm:$0xff]   ;;  %v1436_v15 = vld [vmem:[%s1620_s8 + $0xac] ss:$12 sps:$4 sm:$0xff]   ;;  %v1438_v16 = vld [vmem:[%s1620_s8 + $0xa8] ss:$12 sps:$4 sm:$0xff]  }
  0x4a   : > { %1315 = vmatpush3.bf16.msra.mxu1 %v1394_v44  ;;  %v365_v23 = vld [vmem:[%s1933_s3] sm:$0xff]  ;;  %v366_v28 = vld [vmem:[%s1933_s3 + $0x8] sm:$0xff]  ;;  %v367_v38 = vld [vmem:[%s1933_s3 + $0x10] sm:$0xff] }
  0x4b   : > { %1316 = vmatprep.subr.bf16.mxu1 %v1397_v46  ;;  %v368_v44 = vld [vmem:[%s1933_s3 + $0x18] sm:$0xff] }
  0x4c   : > { %1237 = vmatpush3.bf16.msra.mxu0 %v1396_v47 }
  0x4d   : > { %1238 = vmatprep.subr.bf16.mxu0 %v1398_v48 }
  0x4e   : > { %1317 = vmatpush3.bf16.msra.mxu1 %v1397_v46 }
  0x4f   : > { %1318 = vmatprep.subr.bf16.mxu1 %v1400_v49 }
  0x50   : > { %1239 = vmatpush3.bf16.msra.mxu0 %v1399_v50 }
  0x51   : > { %1240 = vmatprep.subr.bf16.mxu0 %v1401_v51 }
  0x52   : > { %1319 = vmatpush3.bf16.msra.mxu1 %v1400_v49 }
  0x53   : > { %1320 = vmatprep.subr.bf16.mxu1 %v1403_v53 }
  0x54   : > { %1241 = vmatpush3.bf16.msra.mxu0 %v1402_v52 }
  0x55   : > { %1242 = vmatprep.subr.bf16.mxu0 %v1404_v54 }
  0x56   : > { %1321 = vmatpush3.bf16.msra.mxu1 %v1403_v53 }
  0x57   : > { %1322 = vmatprep.subr.bf16.mxu1 %v1406_v55 }
  0x58   : > { %1243 = vmatpush3.bf16.msra.mxu0 %v1405_v58 }
  0x5a   : > { %1323 = vmatpush3.bf16.msra.mxu1 %v1406_v55  ;;  %v369_v55 = vld [vmem:[%s1933_s3 + $0x20] sm:$0xff] }
  0x5b   : > { %766 = vmatmul.mubr.bf16.vlgmr.msra.gmra.mrb[0].mxu0 %v1407_v59 }
  0x5c   : > { %773 = vmatprep.mubr.bf16.mxu0 %v1412_v60  ;;  %v370_v60 = vld [vmem:[%s1933_s3 + $0x28] sm:$0xff] }
  0x5d   : > { %1325 = vmatmul.mubr.bf16.vlgmr.msra.gmra.mrb[0].mxu1 %v1411_v61 }
  0x5e   : > { %1328 = vmatprep.mubr.bf16.mxu1 %v1418_v62 }
  0x63   : > { %774 = vmatmul.mubr.bf16.gmra.mrb[4].mxu0 %v1414_v63 }
  0x64   : > { %781 = vmatprep.mubr.bf16.mxu0 %v1415_v0 }
  0x65   : > { %1329 = vmatmul.mubr.bf16.gmra.mrb[4].mxu1 %v1419_v1 }
  0x66   : > { %1332 = vmatprep.mubr.bf16.mxu1 %v1426_v2 }
  0x6b   : > { %782 = vmatmul.mubr.bf16.gmra.mrb[8].mxu0 %v1417_v3 }
  0x6c   : > { %789 = vmatprep.mubr.bf16.mxu0 %v1420_v4 }
  0x6d   : > { %1333 = vmatmul.mubr.bf16.gmra.mrb[8].mxu1 %v1427_v5 }
  0x6e   : > { %1336 = vmatprep.mubr.bf16.mxu1 %v1434_v6  ;;  %v371_v6 = vld [vmem:[%s1933_s3 + $0x30] sm:$0xff] }
  0x73   : > { %790 = vmatmul.mubr.bf16.gmra.mrb[12].mxu0 %v1422_v7 }
  0x74   : > { %797 = vmatprep.mubr.bf16.mxu0 %v1423_v8 }
  0x75   : > { %1337 = vmatmul.mubr.bf16.gmra.mrb[12].mxu1 %v1435_v9 }
  0x7b   : > { %798 = vmatmul.mubr.bf16.gmra.mrb[16].mxu0 %v1425_v10 }
  0x7c   : > { %805 = vmatprep.mubr.bf16.mxu0 %v1428_v11 }
  0x83   : > { %806 = vmatmul.mubr.bf16.gmra.mrb[20].mxu0 %v1430_v12  ;;  %v372_v12 = vld [vmem:[%s1933_s3 + $0x38] sm:$0xff] }
  0x84   : > { %813 = vmatprep.mubr.bf16.mxu0 %v1431_v13 }
  0x8b   : > { %814 = vmatmul.mubr.bf16.gmra.mrb[24].mxu0 %v1433_v14 }
  0x8c   : > { %821 = vmatprep.mubr.bf16.mxu0 %v1436_v15 }
  0x93   : > { %822 = vmatmul.mubr.bf16.gmra.mrb[28].mxu0 %v1438_v16 }
 0x12e   : > { %v1244_v17 = vpop.f32.mrb[0].mxu0 }
 0x12f   : > { %v1245_v18 = vpop.f32.mrb[1].mxu0 }
 0x130   : > { %v1246_v19 = vadd.f32 %v1245_v18, %v1244_v17  ;;  %v1247_v20 = vpop.f32.mrb[2].mxu0  ;;  %v1326_v21 = vpop.f32.mrb[0].mxu1 }
 0x131   : > { %v1248_v22 = vpop.f32.mrb[3].mxu0  ;;  %v864_v24 = vpop.f32.mrb[1].mxu1 }
 0x132   : > { %v1249_v25 = vadd.f32 %v1248_v22, %v1247_v20  ;;  %v865_v26 = vadd.f32 %v1246_v19, %v864_v24  ;;  %v1327_v27 = vpop.f32.mrb[2].mxu1  ;;  %v373_v22 = vld [vmem:[%s1933_s3 + $0x40] sm:$0xff] }
 0x133   : > { %v867_v29 = vpop.f32.mrb[3].mxu1 }
 0x134   : > { %v927_v30 = vadd.f32 %v865_v26, %v365_v23  ;;  %v868_v31 = vadd.f32 %v1249_v25, %v867_v29  ;;  %v374_v25 = vld [vmem:[%s1933_s3 + $0x48] sm:$0xff] }
 0x136   : > { %943 = vst [vmem:[%s1933_s3] sm:$0xff] %v927_v30  ;;  %v928_v32 = vadd.f32 %v868_v31, %v366_v28  ;;  %v1250_v33 = vpop.f32.mrb[4].mxu0 }
 0x137   : > { %v1251_v34 = vpop.f32.mrb[5].mxu0 }
 0x138   : > { %944 = vst [vmem:[%s1933_s3 + $0x8] sm:$0xff] %v928_v32  ;;  %v1252_v35 = vadd.f32 %v1251_v34, %v1250_v33  ;;  %v1253_v36 = vpop.f32.mrb[6].mxu0  ;;  %v1330_v37 = vpop.f32.mrb[4].mxu1  ;;  %v375_v33 = vld [vmem:[%s1933_s3 + $0x50] sm:$0xff] }
 0x139   : > { %v1254_v39 = vpop.f32.mrb[7].mxu0  ;;  %v880_v40 = vpop.f32.mrb[5].mxu1 }
 0x13a   : > { %v873_v41 = vadd.f32 %v1326_v21, %v1252_v35  ;;  %v1255_v42 = vadd.f32 %v1254_v39, %v1253_v36  ;;  %v1331_v43 = vpop.f32.mrb[6].mxu1 }
 0x13b   : > { %v883_v45 = vpop.f32.mrb[7].mxu1 }
 0x13c   : > { %v929_v46 = vadd.f32 %v873_v41, %v367_v38  ;;  %v876_v47 = vadd.f32 %v1327_v27, %v1255_v42 }
 0x13e   : > { %945 = vst [vmem:[%s1933_s3 + $0x10] sm:$0xff] %v929_v46  ;;  %v930_v48 = vadd.f32 %v876_v47, %v368_v44  ;;  %v1256_v49 = vpop.f32.mrb[8].mxu0  ;;  %v377_v46 = vld [vmem:[%s1933_s3 + $0x60] sm:$0xff] }
 0x13f   : > { %v1257_v50 = vpop.f32.mrb[9].mxu0 }
 0x140   : > { %946 = vst [vmem:[%s1933_s3 + $0x18] sm:$0xff] %v930_v48  ;;  %v1258_v51 = vadd.f32 %v1257_v50, %v1256_v49  ;;  %v1259_v52 = vpop.f32.mrb[10].mxu0  ;;  %v1334_v53 = vpop.f32.mrb[8].mxu1  ;;  %v378_v49 = vld [vmem:[%s1933_s3 + $0x68] sm:$0xff] }
 0x141   : > { %v1260_v54 = vpop.f32.mrb[11].mxu0  ;;  %v896_v56 = vpop.f32.mrb[9].mxu1 }
 0x142   : > { %v1261_v57 = vadd.f32 %v1260_v54, %v1259_v52  ;;  %v881_v58 = vadd.f32 %v1258_v51, %v880_v40  ;;  %v1335_v59 = vpop.f32.mrb[10].mxu1 }
 0x143   : > { %v899_v61 = vpop.f32.mrb[11].mxu1 }
 0x144   : > { %v931_v62 = vadd.f32 %v881_v58, %v369_v55  ;;  %v884_v63 = vadd.f32 %v1261_v57, %v883_v45  ;;  %v379_v57 = vld [vmem:[%s1933_s3 + $0x70] sm:$0xff] }
 0x146   : > { %947 = vst [vmem:[%s1933_s3 + $0x20] sm:$0xff] %v931_v62  ;;  %v932_v0 = vadd.f32 %v884_v63, %v370_v60  ;;  %v1262_v1 = vpop.f32.mrb[12].mxu0 }
 0x147   : > { %v1263_v2 = vpop.f32.mrb[13].mxu0 }
 0x148   : > { %948 = vst [vmem:[%s1933_s3 + $0x28] sm:$0xff] %v932_v0  ;;  %v1264_v3 = vadd.f32 %v1263_v2, %v1262_v1  ;;  %v1265_v4 = vpop.f32.mrb[14].mxu0  ;;  %v1338_v5 = vpop.f32.mrb[12].mxu1  ;;  %v963_v1 = vld [vmem:[%s1933_s3] sm:$0xff] (!%p1221_p11) }
 0x149   : > { %v1266_v7 = vpop.f32.mrb[15].mxu0  ;;  %v912_v8 = vpop.f32.mrb[13].mxu1  ;;  %v1222_v2 = vld [vmem:[%s1932_s2] ss:$0 sm:$0xff] (!%p1221_p11) }
 0x14a   : > { %v889_v9 = vadd.f32 %v1330_v37, %v1264_v3  ;;  %v1267_v10 = vadd.f32 %v1266_v7, %v1265_v4  ;;  %v1339_v11 = vpop.f32.mrb[14].mxu1  ;;  %v376_v37 = vld [vmem:[%s1933_s3 + $0x58] sm:$0xff]  ;;  %v964_v3 = vld [vmem:[%s1933_s3 + $0x8] sm:$0xff] (!%p1221_p11)  ;;  %v986_v4 = vadd.f32 (!%p1221_p11), %v1222_v2, %v963_v1 }
 0x14b   : > { %v915_v13 = vpop.f32.mrb[15].mxu1  ;;  %v966_v7 = vld [vmem:[%s1933_s3 + $0x18] sm:$0xff] (!%p1221_p11) }
 0x14c   : > { %v933_v14 = vadd.f32 %v889_v9, %v371_v6  ;;  %v892_v15 = vadd.f32 %v1331_v43, %v1267_v10  ;;  %v965_v6 = vld [vmem:[%s1933_s3 + $0x10] sm:$0xff] (!%p1221_p11)  ;;  %v989_v10 = vadd.f32 (!%p1221_p11), %v1222_v2, %v966_v7  ;;  %1002 = vst [vmem:[%s1933_s3] sm:$0xff] (!%p1221_p11), %v986_v4 }
 0x14d   : > { %v988_v9 = vadd.f32 (!%p1221_p11), %v1222_v2, %v965_v6 }
 0x14e   : > { %949 = vst [vmem:[%s1933_s3 + $0x30] sm:$0xff] %v933_v14  ;;  %v934_v16 = vadd.f32 %v892_v15, %v372_v12  ;;  %v1268_v17 = vpop.f32.mrb[16].mxu0  ;;  %1005 = vst [vmem:[%s1933_s3 + $0x18] sm:$0xff] (!%p1221_p11), %v989_v10 }
 0x14f   : > { %v1269_v18 = vpop.f32.mrb[17].mxu0  ;;  %v968_v12 = vld [vmem:[%s1933_s3 + $0x28] sm:$0xff] (!%p1221_p11)  ;;  %1004 = vst [vmem:[%s1933_s3 + $0x10] sm:$0xff] (!%p1221_p11), %v988_v9 }
 0x150   : > { %950 = vst [vmem:[%s1933_s3 + $0x38] sm:$0xff] %v934_v16  ;;  %v1270_v19 = vadd.f32 %v1269_v18, %v1268_v17  ;;  %v1271_v20 = vpop.f32.mrb[18].mxu0  ;;  %v991_v15 = vadd.f32 (!%p1221_p11), %v1222_v2, %v968_v12 }
 0x151   : > { %v1272_v21 = vpop.f32.mrb[19].mxu0 }
 0x152   : > { %v1273_v23 = vadd.f32 %v1272_v21, %v1271_v20  ;;  %v897_v24 = vadd.f32 %v1270_v19, %v896_v56  ;;  %1007 = vst [vmem:[%s1933_s3 + $0x28] sm:$0xff] (!%p1221_p11), %v991_v15 }
 0x154   : > { %v935_v26 = vadd.f32 %v897_v24, %v373_v22  ;;  %v900_v27 = vadd.f32 %v1273_v23, %v899_v61  ;;  %v380_v61 = vld [vmem:[%s1933_s3 + $0x78] sm:$0xff] }
 0x156   : > { %951 = vst [vmem:[%s1933_s3 + $0x40] sm:$0xff] %v935_v26  ;;  %v936_v28 = vadd.f32 %v900_v27, %v374_v25  ;;  %v1274_v29 = vpop.f32.mrb[20].mxu0 }
 0x157   : > { %v1275_v30 = vpop.f32.mrb[21].mxu0  ;;  %v970_v14 = vld [vmem:[%s1933_s3 + $0x38] sm:$0xff] (!%p1221_p11) }
 0x158   : > { %952 = vst [vmem:[%s1933_s3 + $0x48] sm:$0xff] %v936_v28  ;;  %v1276_v31 = vadd.f32 %v1275_v30, %v1274_v29  ;;  %v1277_v32 = vpop.f32.mrb[22].mxu0  ;;  %v993_v17 = vadd.f32 (!%p1221_p11), %v1222_v2, %v970_v14 }
 0x159   : > { %v1278_v34 = vpop.f32.mrb[23].mxu0 }
 0x15a   : > { %v905_v35 = vadd.f32 %v1334_v53, %v1276_v31  ;;  %v1279_v36 = vadd.f32 %v1278_v34, %v1277_v32  ;;  %1009 = vst [vmem:[%s1933_s3 + $0x38] sm:$0xff] (!%p1221_p11), %v993_v17 }
 0x15c   : > { %v937_v38 = vadd.f32 %v905_v35, %v375_v33  ;;  %v908_v39 = vadd.f32 %v1335_v59, %v1279_v36 }
 0x15d   : > { %v971_v18 = vld [vmem:[%s1933_s3 + $0x40] sm:$0xff] (!%p1221_p11) }
 0x15e   : > { %953 = vst [vmem:[%s1933_s3 + $0x50] sm:$0xff] %v937_v38  ;;  %v938_v40 = vadd.f32 %v908_v39, %v376_v37  ;;  %v1280_v41 = vpop.f32.mrb[24].mxu0  ;;  %v994_v21 = vadd.f32 (!%p1221_p11), %v1222_v2, %v971_v18 }
 0x15f   : > { %v1281_v42 = vpop.f32.mrb[25].mxu0  ;;  %v972_v19 = vld [vmem:[%s1933_s3 + $0x48] sm:$0xff] (!%p1221_p11) }
 0x160   : > { %954 = vst [vmem:[%s1933_s3 + $0x58] sm:$0xff] %v938_v40  ;;  %v1282_v43 = vadd.f32 %v1281_v42, %v1280_v41  ;;  %v1283_v44 = vpop.f32.mrb[26].mxu0  ;;  %v995_v22 = vadd.f32 (!%p1221_p11), %v1222_v2, %v972_v19  ;;  %1010 = vst [vmem:[%s1933_s3 + $0x40] sm:$0xff] (!%p1221_p11), %v994_v21 }
 0x161   : > { %v1284_v45 = vpop.f32.mrb[27].mxu0 }
 0x162   : > { %v1285_v47 = vadd.f32 %v1284_v45, %v1283_v44  ;;  %v913_v48 = vadd.f32 %v1282_v43, %v912_v8  ;;  %v967_v8 = vld [vmem:[%s1933_s3 + $0x20] sm:$0xff] (!%p1221_p11)  ;;  %1011 = vst [vmem:[%s1933_s3 + $0x48] sm:$0xff] (!%p1221_p11), %v995_v22 }
 0x164   : > { %v939_v50 = vadd.f32 %v913_v48, %v377_v46  ;;  %v916_v51 = vadd.f32 %v1285_v47, %v915_v13  ;;  %v969_v13 = vld [vmem:[%s1933_s3 + $0x30] sm:$0xff] (!%p1221_p11) }
 0x165   : > { %v992_v16 = vadd.f32 (!%p1221_p11), %v1222_v2, %v969_v13  ;;  %v973_v20 = vld [vmem:[%s1933_s3 + $0x50] sm:$0xff] (!%p1221_p11) }
 0x166   : > { %955 = vst [vmem:[%s1933_s3 + $0x60] sm:$0xff] %v939_v50  ;;  %v940_v52 = vadd.f32 %v916_v51, %v378_v49  ;;  %v1286_v53 = vpop.f32.mrb[28].mxu0  ;;  %v996_v23 = vadd.f32 (!%p1221_p11), %v1222_v2, %v973_v20 }
 0x167   : > { %v1287_v54 = vpop.f32.mrb[29].mxu0  ;;  %v974_v24 = vld [vmem:[%s1933_s3 + $0x58] sm:$0xff] (!%p1221_p11)  ;;  %1008 = vst [vmem:[%s1933_s3 + $0x30] sm:$0xff] (!%p1221_p11), %v992_v16 }
 0x168   : > { %956 = vst [vmem:[%s1933_s3 + $0x68] sm:$0xff] %v940_v52  ;;  %v1288_v55 = vadd.f32 %v1287_v54, %v1286_v53  ;;  %v1289_v56 = vpop.f32.mrb[30].mxu0  ;;  %v997_v27 = vadd.f32 (!%p1221_p11), %v1222_v2, %v974_v24  ;;  %1012 = vst [vmem:[%s1933_s3 + $0x50] sm:$0xff] (!%p1221_p11), %v996_v23 }
 0x169   : > { %v1290_v58 = vpop.f32.mrb[31].mxu0 }
 0x16a   : > { %v921_v59 = vadd.f32 %v1338_v5, %v1288_v55  ;;  %v1291_v60 = vadd.f32 %v1290_v58, %v1289_v56  ;;  %962 = sbr.rel (%p1221_p11) target bundleno = 379 (0x17b), region = 66  ;;  %v987_v5 = vadd.f32 (!%p1221_p11), %v1222_v2, %v964_v3  ;;  %1013 = vst [vmem:[%s1933_s3 + $0x58] sm:$0xff] (!%p1221_p11), %v997_v27 }
 0x16c   : > { %v941_v62 = vadd.f32 %v921_v59, %v379_v57  ;;  %v924_v63 = vadd.f32 %v1339_v11, %v1291_v60  ;;  %v990_v11 = vadd.f32 (!%p1221_p11), %v1222_v2, %v967_v8  ;;  %1003 = vst [vmem:[%s1933_s3 + $0x8] sm:$0xff] (!%p1221_p11), %v987_v5 }
 0x16d   : > { %v975_v25 = vld [vmem:[%s1933_s3 + $0x60] sm:$0xff] (!%p1221_p11) }
 0x16e   : > { %957 = vst [vmem:[%s1933_s3 + $0x70] sm:$0xff] %v941_v62  ;;  %v942_v0 = vadd.f32 %v924_v63, %v380_v61  ;;  %1006 = vst [vmem:[%s1933_s3 + $0x20] sm:$0xff] (!%p1221_p11), %v990_v11  ;;  %v998_v28 = vadd.f32 (!%p1221_p11), %v1222_v2, %v975_v25 }
 0x16f   : > { %v976_v26 = vld [vmem:[%s1933_s3 + $0x68] sm:$0xff] (!%p1221_p11) }
 0x170   : > { %958 = vst [vmem:[%s1933_s3 + $0x78] sm:$0xff] %v942_v0  ;;  %v999_v29 = vadd.f32 (!%p1221_p11), %v1222_v2, %v976_v26  ;;  %1014 = vst [vmem:[%s1933_s3 + $0x60] sm:$0xff] (!%p1221_p11), %v998_v28 }
 0x172   : > { %1015 = vst [vmem:[%s1933_s3 + $0x68] sm:$0xff] %v999_v29 }
 0x175   : > { %v977_v30 = vld [vmem:[%s1933_s3 + $0x70] sm:$0xff] }
 0x176   : > { %v1000_v32 = vadd.f32 %v1222_v2, %v977_v30 }
 0x177   : > { %v978_v31 = vld [vmem:[%s1933_s3 + $0x78] sm:$0xff] }
 0x178   : > { %v1001_v33 = vadd.f32 %v1222_v2, %v978_v31  ;;  %1016 = vst [vmem:[%s1933_s3 + $0x70] sm:$0xff] %v1000_v32 }
 0x17a   : > { %1017 = vst [vmem:[%s1933_s3 + $0x78] sm:$0xff] %v1001_v33 }
 0x17b PF: > { %s13_s16 = sadd.s32 1, %s1477_s16   ;;  %s1934_s12 = smov %s1465_s13 }
 0x17c   : > { %p10_p12 = scmp.ge.s32.totalorder %s13_s16, 8   ;;  %s1935_s13 = smov %s1535_s20 }
 0x17d   : > { %s1936_s14 = smov %s1473_s15  ;;  %s1937_s15 = smov %s1939_s17 }
 0x17e   :  { %12 = sbr.rel (!%p10_p12) target bundleno = 3 (0x3), region = 113 }

// kernel: snunet_forward.42
= control target key start
LH: loop header
LB: loop body
LE: loop exit
PB: predicated region body
PF: predicated region fallthrough
CT: control target
= control target key end

     0   :  { %s1031_s12 = smov 0   ;;  %s1033_s13 = smov 0   ;;  %s1379_s0 = inlined_call_operand.vmem [shape: bf16[128,2944], index: 0, kind: input, shape index: {}]   ;;  %s1380_s1 = inlined_call_operand.vmem [shape: bf16[2944,128], index: 1, kind: input, shape index: {}]   ;;  %s1381_s2 = inlined_call_operand.vmem [shape: f32[1,128], index: 2, kind: input, shape index: {}]   ;;  %s1382_s3 = inlined_call_operand.vmem [shape: f32[128,128], index: 3, kind: output, shape index: {}]  }
   0x1   :  { %s1035_s14 = smov 0   ;;  %s1037_s15 = smov 0  }
   0x2   :  { %s1039_s16 = smov 0  }
   0x3 LB: > { %s25_s17 = sadd.s32 1, %s1004_s15  ;;  %p48_p1 = scmp.ne.s32.totalorder %s996_s13, %s992_s12  ;;  %s1008_s16 = sphi %s1039_s16, %s13_s16   ;;  %s1004_s15 = sphi %s1037_s15, %s1386_s15   ;;  %s1000_s14 = sphi %s1035_s14, %s1385_s14   ;;  %s996_s13 = sphi %s1033_s13, %s1384_s13   ;;  %s992_s12 = sphi %s1031_s12, %s1383_s12  }
   0x4   : > { %p26_p0 = scmp.ge.s32.totalorder %s25_s17, 23  ;;  %p49_p2 = scmp.eq.s32.totalorder %s1008_s16, 0 }
   0x5   : > { %s41_s19 = sadd.s32 1, %s996_s13  ;;  %p819_p5 = scmp.ge.s32.totalorder %s1008_s16, 23 }
   0x6   : > { %s1388_s17 = smov (%p26_p0, %s25_s17), 0  ;;  %p50_p3 = por %p49_p2, %p48_p1 }
   0x7   : > { %s37_s18 = ssub.s32 %s1004_s15, %s1388_s17  ;;  %162 = sbr.rel (%p819_p5) target bundleno = 28 (0x1c), region = 20 }
   0x8   : > { %p39_p4 = scmp.eq.s32.totalorder %s37_s18, 0 }
   0xa   : > { %s1066_s20 = scalar_select %p39_p4, %s996_s13, %s41_s19  }
   0xe   : > { %165 = sbr.rel (!%p50_p3) target bundleno = 28 (0x1c), region = 24  ;;  %s167_s21 = sand.u32 (%p50_p3), 1, %s996_s13  }
   0xf   : > { %s821_s22 = sshll.u32 (%p50_p3), %s1004_s15, 2  ;;  %s820_s23 = sshll.u32 (%p50_p3), %s167_s21, 6 }
  0x10   : > { %s1074_s26 = scalar_lea.vmem (%p50_p3), %s1379_s0, %s821_s22  ;;  %s169_s27 = scalar_lea.vmem (%p50_p3), [#allocation2], %s820_s23 }
  0x11   : > { %v190_v0 = vld [vmem:[%s1074_s26] sm:$0xf] (%p50_p3)  ;;  %v192_v1 = vld [vmem:[%s1074_s26 + $0x5c] sm:$0xf] (%p50_p3)  ;;  %v194_v2 = vld [vmem:[%s1074_s26 + $0xb8] sm:$0xf] (%p50_p3) }
  0x12   : > { %191 = vst [vmem:[%s169_s27] sm:$0xf] (%p50_p3), %v190_v0  ;;  %193 = vst [vmem:[%s169_s27 + $0x4] sm:$0xf] (%p50_p3), %v192_v1  ;;  %v196_v3 = vld [vmem:[%s1074_s26 + $0x114] sm:$0xf] (%p50_p3) }
  0x13   : > { %v198_v4 = vld [vmem:[%s1074_s26 + $0x170] sm:$0xf] (%p50_p3)  ;;  %195 = vst [vmem:[%s169_s27 + $0x8] sm:$0xf] (%p50_p3), %v194_v2  ;;  %197 = vst [vmem:[%s169_s27 + $0xc] sm:$0xf] (%p50_p3), %v196_v3 }
  0x14   : > { %199 = vst [vmem:[%s169_s27 + $0x10] sm:$0xf] (%p50_p3), %v198_v4  ;;  %v200_v5 = vld [vmem:[%s1074_s26 + $0x1cc] sm:$0xf] (%p50_p3)  ;;  %v202_v6 = vld [vmem:[%s1074_s26 + $0x228] sm:$0xf] (%p50_p3) }
  0x15   : > { %v204_v7 = vld [vmem:[%s1074_s26 + $0x284] sm:$0xf]  ;;  %201 = vst [vmem:[%s169_s27 + $0x14] sm:$0xf] %v200_v5  ;;  %203 = vst [vmem:[%s169_s27 + $0x18] sm:$0xf] %v202_v6 }
  0x16   : > { %205 = vst [vmem:[%s169_s27 + $0x1c] sm:$0xf] %v204_v7  ;;  %v206_v8 = vld [vmem:[%s1074_s26 + $0x2e0] sm:$0xf]  ;;  %v208_v9 = vld [vmem:[%s1074_s26 + $0x33c] sm:$0xf] }
  0x17   : > { %v210_v10 = vld [vmem:[%s1074_s26 + $0x398] sm:$0xf]  ;;  %207 = vst [vmem:[%s169_s27 + $0x20] sm:$0xf] %v206_v8  ;;  %209 = vst [vmem:[%s169_s27 + $0x24] sm:$0xf] %v208_v9 }
  0x18   : > { %211 = vst [vmem:[%s169_s27 + $0x28] sm:$0xf] %v210_v10  ;;  %v212_v11 = vld [vmem:[%s1074_s26 + $0x3f4] sm:$0xf]  ;;  %v214_v12 = vld [vmem:[%s1074_s26 + $0x450] sm:$0xf] }
  0x19   : > { %v216_v13 = vld [vmem:[%s1074_s26 + $0x4ac] sm:$0xf]  ;;  %213 = vst [vmem:[%s169_s27 + $0x2c] sm:$0xf] %v212_v11  ;;  %215 = vst [vmem:[%s169_s27 + $0x30] sm:$0xf] %v214_v12 }
  0x1a   : > { %217 = vst [vmem:[%s169_s27 + $0x34] sm:$0xf] %v216_v13  ;;  %v218_v14 = vld [vmem:[%s1074_s26 + $0x508] sm:$0xf]  ;;  %v220_v15 = vld [vmem:[%s1074_s26 + $0x564] sm:$0xf] }
  0x1b   : > { %219 = vst [vmem:[%s169_s27 + $0x38] sm:$0xf] %v218_v14  ;;  %221 = vst [vmem:[%s169_s27 + $0x3c] sm:$0xf] %v220_v15 }
  0x1c PF: > { %p822_p6 = scmp.ge.s32.totalorder %s1008_s16, 1  ;;  %p287_p7 = scmp.lt.s32.totalorder %s1008_s16, 24 }
  0x1e   : > { %p288_p8 = pnand %p822_p6, %p287_p7 }
  0x1f   : > { %s294_s28 = sand.u32 (!%p288_p8), 1, %s992_s12   ;;  %s824_s29 = sshll.u32 (!%p288_p8), %s1000_s14, 4 }
  0x20   : > { %291 = sbr.rel (%p288_p8) target bundleno = 319 (0x13f), region = 69  ;;  %s823_s30 = sshll.u32 (!%p288_p8), %s294_s28, 6 }
  0x21   : > { %p333_p9 = scmp.lt.s32.totalorder (!%p288_p8), %s824_s29, 367  ;;  %s1101_s8 = scalar_lea.vmem (!%p288_p8), [#allocation2], %s823_s30 }
  0x22   : > { %p826_p10 = scmp.ne.s32.totalorder (!%p288_p8), %s1000_s14, 0 }
  0x27   : > { %s1390_s29 = smov (!%p333_p9, %s824_s29), 367  ;;  %357 = sbr.rel (%p826_p10) target bundleno = 49 (0x31), region = 77 }
  0x28   : > { %s825_s4 = sshll.u32 %s1390_s29, 2  ;;  %v1010_v16 = vmov (!%p826_p10), 0.0  }
  0x29   : > { %s1099_s7 = scalar_lea.vmem %s1380_s1, %s825_s4  ;;  %358 = vst [vmem:[%s1382_s3] sm:$0xff] (!%p826_p10), %v1010_v16  ;;  %359 = vst [vmem:[%s1382_s3 + $0x8] sm:$0xff] (!%p826_p10), %v1010_v16 }
  0x2a   : > { %360 = vst [vmem:[%s1382_s3 + $0x10] sm:$0xff] (!%p826_p10), %v1010_v16  ;;  %361 = vst [vmem:[%s1382_s3 + $0x18] sm:$0xff] (!%p826_p10), %v1010_v16 }
  0x2b   : > { %362 = vst [vmem:[%s1382_s3 + $0x20] sm:$0xff] (!%p826_p10), %v1010_v16  ;;  %363 = vst [vmem:[%s1382_s3 + $0x28] sm:$0xff] (!%p826_p10), %v1010_v16 }
  0x2c   : > { %364 = vst [vmem:[%s1382_s3 + $0x30] sm:$0xff] (!%p826_p10), %v1010_v16  ;;  %365 = vst [vmem:[%s1382_s3 + $0x38] sm:$0xff] (!%p826_p10), %v1010_v16 }
  0x2d   : > { %366 = vst [vmem:[%s1382_s3 + $0x40] sm:$0xff] (!%p826_p10), %v1010_v16  ;;  %367 = vst [vmem:[%s1382_s3 + $0x48] sm:$0xff] (!%p826_p10), %v1010_v16 }
  0x2e   : > { %368 = vst [vmem:[%s1382_s3 + $0x50] sm:$0xff] %v1010_v16  ;;  %369 = vst [vmem:[%s1382_s3 + $0x58] sm:$0xff] %v1010_v16 }
  0x2f   : > { %370 = vst [vmem:[%s1382_s3 + $0x60] sm:$0xff] %v1010_v16  ;;  %371 = vst [vmem:[%s1382_s3 + $0x68] sm:$0xff] %v1010_v16 }
  0x30   : > { %372 = vst [vmem:[%s1382_s3 + $0x70] sm:$0xff] %v1010_v16  ;;  %373 = vst [vmem:[%s1382_s3 + $0x78] sm:$0xff] %v1010_v16 }
  0x31 PF: > { %v954_v17 = vld [vmem:[%s1099_s7] sm:$0xff]   ;;  %v955_v18 = vld [vmem:[%s1099_s7 + $0x8] sm:$0xff]   ;;  %v956_v19 = vld [vmem:[%s1099_s7 + $0x10] sm:$0xff]   ;;  %p843_p11 = scmp.ne.s32.totalorder %s1000_s14, 22 }
  0x32   : > { %865 = vmatprep.subr.bf16.mxu0 %v954_v17  ;;  %897 = vmatprep.subr.bf16.mxu1 %v954_v17  ;;  %v957_v20 = vld [vmem:[%s1099_s7 + $0x18] sm:$0xff]   ;;  %v962_v21 = vld [vmem:[%s1101_s8] sm:$0xff]   ;;  %v959_v24 = vld [vmem:[%s1099_s7 + $0x28] sm:$0xff]  }
  0x33   : > { %866 = vmatpush3.bf16.msra.mxu0 %v954_v17  ;;  %905 = vmatpush3.bf16.msra.mxu1 %v954_v17  ;;  %v963_v22 = vld [vmem:[%s1101_s8 + $0x20] sm:$0xff]   ;;  %v960_v25 = vld [vmem:[%s1099_s7 + $0x30] sm:$0xff]   ;;  %v961_v26 = vld [vmem:[%s1099_s7 + $0x38] sm:$0xff]  }
  0x34   : > { %867 = vmatprep.subr.bf16.mxu0 %v955_v18  ;;  %898 = vmatprep.subr.bf16.mxu1 %v955_v18  ;;  %v958_v23 = vld [vmem:[%s1099_s7 + $0x20] sm:$0xff]   ;;  %v964_v27 = vld [vmem:[%s1101_s8 + $0x8] sm:$0xff]   ;;  %v966_v29 = vld [vmem:[%s1101_s8 + $0x10] sm:$0xff]  }
  0x35   : > { %881 = vmatprep.mubr.bf16.mxu0 %v962_v21  ;;  %889 = vmatprep.mubr.bf16.mxu1 %v963_v22  ;;  %v965_v28 = vld [vmem:[%s1101_s8 + $0x28] sm:$0xff]   ;;  %v967_v30 = vld [vmem:[%s1101_s8 + $0x30] sm:$0xff]   ;;  %v968_v31 = vld [vmem:[%s1101_s8 + $0x18] sm:$0xff]  }
  0x36   : > { %v969_v32 = vld [vmem:[%s1101_s8 + $0x38] sm:$0xff]   ;;  %v376_v33 = vld [vmem:[%s1382_s3 + $0x10] sm:$0xff]  ;;  %v374_v35 = vld [vmem:[%s1382_s3] sm:$0xff] }
  0x37   : > { %868 = vmatpush3.bf16.msra.mxu0 %v955_v18  ;;  %906 = vmatpush3.bf16.msra.mxu1 %v955_v18  ;;  %v384_v34 = vld [vmem:[%s1382_s3 + $0x50] sm:$0xff]  ;;  %v382_v36 = vld [vmem:[%s1382_s3 + $0x40] sm:$0xff]  ;;  %v377_v39 = vld [vmem:[%s1382_s3 + $0x18] sm:$0xff] }
  0x38   : > { %869 = vmatprep.subr.bf16.mxu0 %v956_v19  ;;  %899 = vmatprep.subr.bf16.mxu1 %v956_v19  ;;  %v385_v40 = vld [vmem:[%s1382_s3 + $0x58] sm:$0xff]  ;;  %v375_v45 = vld [vmem:[%s1382_s3 + $0x8] sm:$0xff]  ;;  %v380_v57 = vld [vmem:[%s1382_s3 + $0x30] sm:$0xff] }
  0x39   : > { %v383_v46 = vld [vmem:[%s1382_s3 + $0x48] sm:$0xff]  ;;  %v388_v58 = vld [vmem:[%s1382_s3 + $0x70] sm:$0xff]  ;;  %v378_v59 = vld [vmem:[%s1382_s3 + $0x20] sm:$0xff] }
  0x3a   : > { %v386_v60 = vld [vmem:[%s1382_s3 + $0x60] sm:$0xff]  ;;  %v381_v63 = vld [vmem:[%s1382_s3 + $0x38] sm:$0xff]  ;;  %v379_v5 = vld [vmem:[%s1382_s3 + $0x28] sm:$0xff] }
  0x3b   : > { %870 = vmatpush3.bf16.msra.mxu0 %v956_v19  ;;  %907 = vmatpush3.bf16.msra.mxu1 %v956_v19  ;;  %v389_v0 = vld [vmem:[%s1382_s3 + $0x78] sm:$0xff]  ;;  %v387_v6 = vld [vmem:[%s1382_s3 + $0x68] sm:$0xff]  ;;  %v844_v18 = vld [vmem:[%s1381_s2] ss:$0 sm:$0xff] (!%p843_p11) }
  0x3c   : > { %871 = vmatprep.subr.bf16.mxu0 %v957_v20  ;;  %900 = vmatprep.subr.bf16.mxu1 %v957_v20 }
  0x3f   : > { %872 = vmatpush3.bf16.msra.mxu0 %v957_v20  ;;  %908 = vmatpush3.bf16.msra.mxu1 %v957_v20 }
  0x40   : > { %873 = vmatprep.subr.bf16.mxu0 %v958_v23  ;;  %901 = vmatprep.subr.bf16.mxu1 %v958_v23 }
  0x43   : > { %874 = vmatpush3.bf16.msra.mxu0 %v958_v23  ;;  %909 = vmatpush3.bf16.msra.mxu1 %v958_v23 }
  0x44   : > { %875 = vmatprep.subr.bf16.mxu0 %v959_v24  ;;  %902 = vmatprep.subr.bf16.mxu1 %v959_v24 }
  0x47   : > { %876 = vmatpush3.bf16.msra.mxu0 %v959_v24  ;;  %910 = vmatpush3.bf16.msra.mxu1 %v959_v24 }
  0x48   : > { %877 = vmatprep.subr.bf16.mxu0 %v960_v25  ;;  %903 = vmatprep.subr.bf16.mxu1 %v960_v25 }
  0x4b   : > { %878 = vmatpush3.bf16.msra.mxu0 %v960_v25  ;;  %911 = vmatpush3.bf16.msra.mxu1 %v960_v25 }
  0x4c   : > { %879 = vmatprep.subr.bf16.mxu0 %v961_v26  ;;  %904 = vmatprep.subr.bf16.mxu1 %v961_v26 }
  0x4f   : > { %880 = vmatpush3.bf16.msra.mxu0 %v961_v26  ;;  %912 = vmatpush3.bf16.msra.mxu1 %v961_v26 }
  0x52   : > { %882 = vmatmul.mubr.bf16.vlgmr.msra.gmra.mrb[0].mxu0 %v964_v27  ;;  %890 = vmatmul.mubr.bf16.vlgmr.msra.gmra.mrb[0].mxu1 %v965_v28 }
  0x53   : > { %885 = vmatprep.mubr.bf16.mxu0 %v966_v29  ;;  %893 = vmatprep.mubr.bf16.mxu1 %v967_v30 }
  0x5a   : > { %886 = vmatmul.mubr.bf16.gmra.mrb[4].mxu0 %v968_v31  ;;  %894 = vmatmul.mubr.bf16.gmra.mrb[4].mxu1 %v969_v32 }
 0x125   : > { %v883_v37 = vpop.f32.mrb[0].mxu0  ;;  %v891_v38 = vpop.f32.mrb[0].mxu1 }
 0x126   : > { %v617_v41 = vadd.f32 %v883_v37, %v376_v33  ;;  %v625_v42 = vadd.f32 %v891_v38, %v384_v34  ;;  %v552_v43 = vpop.f32.mrb[1].mxu0  ;;  %v584_v44 = vpop.f32.mrb[1].mxu1 }
 0x127   : > { %v615_v47 = vadd.f32 %v552_v43, %v374_v35  ;;  %v623_v48 = vadd.f32 %v584_v44, %v382_v36  ;;  %v884_v49 = vpop.f32.mrb[2].mxu0  ;;  %v892_v50 = vpop.f32.mrb[2].mxu1 }
 0x128   : > { %633 = vst [vmem:[%s1382_s3 + $0x10] sm:$0xff] %v617_v41  ;;  %641 = vst [vmem:[%s1382_s3 + $0x50] sm:$0xff] %v625_v42  ;;  %v618_v51 = vadd.f32 %v884_v49, %v377_v39  ;;  %v626_v52 = vadd.f32 %v892_v50, %v385_v40  ;;  %v555_v53 = vpop.f32.mrb[3].mxu0  ;;  %v587_v54 = vpop.f32.mrb[3].mxu1 }
 0x129   : > { %631 = vst [vmem:[%s1382_s3] sm:$0xff] %v615_v47  ;;  %639 = vst [vmem:[%s1382_s3 + $0x40] sm:$0xff] %v623_v48  ;;  %v616_v55 = vadd.f32 %v555_v53, %v375_v45  ;;  %v624_v56 = vadd.f32 %v587_v54, %v383_v46 }
 0x12a   : > { %634 = vst [vmem:[%s1382_s3 + $0x18] sm:$0xff] %v618_v51  ;;  %642 = vst [vmem:[%s1382_s3 + $0x58] sm:$0xff] %v626_v52 }
 0x12b   : > { %632 = vst [vmem:[%s1382_s3 + $0x8] sm:$0xff] %v616_v55  ;;  %640 = vst [vmem:[%s1382_s3 + $0x48] sm:$0xff] %v624_v56 }
 0x12d   : > { %v887_v61 = vpop.f32.mrb[4].mxu0  ;;  %v895_v62 = vpop.f32.mrb[4].mxu1  ;;  %650 = sbr.rel (%p843_p11) target bundleno = 319 (0x13f), region = 81 }
 0x12e   : > { %v621_v1 = vadd.f32 %v887_v61, %v380_v57  ;;  %v629_v2 = vadd.f32 %v895_v62, %v388_v58  ;;  %v568_v3 = vpop.f32.mrb[5].mxu0  ;;  %v600_v4 = vpop.f32.mrb[5].mxu1 }
 0x12f   : > { %v619_v7 = vadd.f32 %v568_v3, %v378_v59  ;;  %v627_v8 = vadd.f32 %v600_v4, %v386_v60  ;;  %v888_v9 = vpop.f32.mrb[6].mxu0  ;;  %v896_v10 = vpop.f32.mrb[6].mxu1  ;;  %v653_v22 = vld [vmem:[%s1382_s3 + $0x10] sm:$0xff] (!%p843_p11) }
 0x130   : > { %637 = vst [vmem:[%s1382_s3 + $0x30] sm:$0xff] %v621_v1  ;;  %645 = vst [vmem:[%s1382_s3 + $0x70] sm:$0xff] %v629_v2  ;;  %v622_v11 = vadd.f32 %v888_v9, %v381_v63  ;;  %v630_v12 = vadd.f32 %v896_v10, %v389_v0  ;;  %v571_v13 = vpop.f32.mrb[7].mxu0  ;;  %v603_v14 = vpop.f32.mrb[7].mxu1  ;;  %v651_v17 = vld [vmem:[%s1382_s3] sm:$0xff] (!%p843_p11)  ;;  %v676_v25 = vadd.f32 (!%p843_p11), %v844_v18, %v653_v22  ;;  %v661_v36 = vld [vmem:[%s1382_s3 + $0x50] sm:$0xff] (!%p843_p11) }
 0x131   : > { %635 = vst [vmem:[%s1382_s3 + $0x20] sm:$0xff] %v619_v7  ;;  %643 = vst [vmem:[%s1382_s3 + $0x60] sm:$0xff] %v627_v8  ;;  %v620_v15 = vadd.f32 %v571_v13, %v379_v5  ;;  %v628_v16 = vadd.f32 %v603_v14, %v387_v6  ;;  %v674_v20 = vadd.f32 (!%p843_p11), %v844_v18, %v651_v17  ;;  %v654_v23 = vld [vmem:[%s1382_s3 + $0x18] sm:$0xff] (!%p843_p11)  ;;  %v659_v34 = vld [vmem:[%s1382_s3 + $0x40] sm:$0xff] (!%p843_p11) }
 0x132   : > { %638 = vst [vmem:[%s1382_s3 + $0x38] sm:$0xff] %v622_v11  ;;  %646 = vst [vmem:[%s1382_s3 + $0x78] sm:$0xff] %v630_v12  ;;  %v652_v19 = vld [vmem:[%s1382_s3 + $0x8] sm:$0xff] (!%p843_p11)  ;;  %v677_v26 = vadd.f32 (!%p843_p11), %v844_v18, %v654_v23  ;;  %v682_v37 = vadd.f32 (!%p843_p11), %v844_v18, %v659_v34  ;;  %v684_v39 = vadd.f32 (!%p843_p11), %v844_v18, %v661_v36  ;;  %v662_v40 = vld [vmem:[%s1382_s3 + $0x58] sm:$0xff] (!%p843_p11) }
 0x133   : > { %636 = vst [vmem:[%s1382_s3 + $0x28] sm:$0xff] %v620_v15  ;;  %644 = vst [vmem:[%s1382_s3 + $0x68] sm:$0xff] %v628_v16  ;;  %v675_v21 = vadd.f32 (!%p843_p11), %v844_v18, %v652_v19  ;;  %v660_v35 = vld [vmem:[%s1382_s3 + $0x48] sm:$0xff] (!%p843_p11)  ;;  %v685_v43 = vadd.f32 (!%p843_p11), %v844_v18, %v662_v40 }
 0x134   : > { %690 = vst [vmem:[%s1382_s3] sm:$0xff] %v674_v20  ;;  %692 = vst [vmem:[%s1382_s3 + $0x10] sm:$0xff] %v676_v25  ;;  %v683_v38 = vadd.f32 %v844_v18, %v660_v35 }
 0x135   : > { %691 = vst [vmem:[%s1382_s3 + $0x8] sm:$0xff] %v675_v21  ;;  %693 = vst [vmem:[%s1382_s3 + $0x18] sm:$0xff] %v677_v26 }
 0x136   : > { %698 = vst [vmem:[%s1382_s3 + $0x40] sm:$0xff] %v682_v37  ;;  %699 = vst [vmem:[%s1382_s3 + $0x48] sm:$0xff] %v683_v38 }
 0x137   : > { %v657_v29 = vld [vmem:[%s1382_s3 + $0x30] sm:$0xff]  ;;  %700 = vst [vmem:[%s1382_s3 + $0x50] sm:$0xff] %v684_v39  ;;  %701 = vst [vmem:[%s1382_s3 + $0x58] sm:$0xff] %v685_v43 }
 0x138   : > { %v655_v24 = vld [vmem:[%s1382_s3 + $0x20] sm:$0xff]  ;;  %v680_v32 = vadd.f32 %v844_v18, %v657_v29  ;;  %v665_v46 = vld [vmem:[%s1382_s3 + $0x70] sm:$0xff] }
 0x139   : > { %v678_v27 = vadd.f32 %v844_v18, %v655_v24  ;;  %v658_v30 = vld [vmem:[%s1382_s3 + $0x38] sm:$0xff]  ;;  %v663_v41 = vld [vmem:[%s1382_s3 + $0x60] sm:$0xff]  ;;  %v688_v48 = vadd.f32 %v844_v18, %v665_v46 }
 0x13a   : > { %v656_v28 = vld [vmem:[%s1382_s3 + $0x28] sm:$0xff]  ;;  %v681_v33 = vadd.f32 %v844_v18, %v658_v30  ;;  %696 = vst [vmem:[%s1382_s3 + $0x30] sm:$0xff] %v680_v32  ;;  %v686_v44 = vadd.f32 %v844_v18, %v663_v41  ;;  %v666_v47 = vld [vmem:[%s1382_s3 + $0x78] sm:$0xff] }
 0x13b   : > { %v679_v31 = vadd.f32 %v844_v18, %v656_v28  ;;  %694 = vst [vmem:[%s1382_s3 + $0x20] sm:$0xff] %v678_v27  ;;  %v664_v42 = vld [vmem:[%s1382_s3 + $0x68] sm:$0xff]  ;;  %v689_v49 = vadd.f32 %v844_v18, %v666_v47  ;;  %704 = vst [vmem:[%s1382_s3 + $0x70] sm:$0xff] %v688_v48 }
 0x13c   : > { %697 = vst [vmem:[%s1382_s3 + $0x38] sm:$0xff] %v681_v33  ;;  %v687_v45 = vadd.f32 %v844_v18, %v664_v42  ;;  %702 = vst [vmem:[%s1382_s3 + $0x60] sm:$0xff] %v686_v44 }
 0x13d   : > { %695 = vst [vmem:[%s1382_s3 + $0x28] sm:$0xff] %v679_v31  ;;  %705 = vst [vmem:[%s1382_s3 + $0x78] sm:$0xff] %v689_v49 }
 0x13e   : > { %703 = vst [vmem:[%s1382_s3 + $0x68] sm:$0xff] %v687_v45 }
 0x13f PF: > { %s13_s16 = sadd.s32 1, %s1008_s16   ;;  %s1383_s12 = smov %s996_s13 }
 0x140   : > { %p10_p12 = scmp.ge.s32.totalorder %s13_s16, 25   ;;  %s1384_s13 = smov %s1066_s20 }
 0x141   : > { %s1385_s14 = smov %s1004_s15  ;;  %s1386_s15 = smov %s1388_s17 }
 0x142   :  { %12 = sbr.rel (!%p10_p12) target bundleno = 3 (0x3), region = 122 }

// kernel: snunet_forward.47
= control target key start
LH: loop header
LB: loop body
LE: loop exit
PB: predicated region body
PF: predicated region fallthrough
CT: control target
= control target key end

     0   :  { %s1500_s12 = smov 0   ;;  %s1502_s13 = smov 0   ;;  %s1930_s0 = inlined_call_operand.vmem [shape: bf16[128,3456], index: 0, kind: input, shape index: {}]   ;;  %s1931_s1 = inlined_call_operand.vmem [shape: bf16[3456,128], index: 1, kind: input, shape index: {}]   ;;  %s1932_s2 = inlined_call_operand.vmem [shape: f32[1,128], index: 2, kind: input, shape index: {}]   ;;  %s1933_s3 = inlined_call_operand.vmem [shape: f32[128,128], index: 3, kind: output, shape index: {}]  }
   0x1   :  { %s1504_s14 = smov 0   ;;  %s1506_s15 = smov 0  }
   0x2   :  { %s1508_s16 = smov 0  }
   0x3 LB: > { %s25_s17 = sadd.s32 1, %s1473_s15  ;;  %p48_p1 = scmp.ne.s32.totalorder %s1465_s13, %s1461_s12  ;;  %s1477_s16 = sphi %s1508_s16, %s13_s16   ;;  %s1473_s15 = sphi %s1506_s15, %s1937_s15   ;;  %s1469_s14 = sphi %s1504_s14, %s1936_s14   ;;  %s1465_s13 = sphi %s1502_s13, %s1935_s13   ;;  %s1461_s12 = sphi %s1500_s12, %s1934_s12  }
   0x4   : > { %p26_p0 = scmp.ge.s32.totalorder %s25_s17, 9  ;;  %p49_p2 = scmp.eq.s32.totalorder %s1477_s16, 0 }
   0x5   : > { %s41_s19 = sadd.s32 1, %s1465_s13  ;;  %p1136_p5 = scmp.ge.s32.totalorder %s1477_s16, 9 }
   0x6   : > { %s1939_s17 = smov (%p26_p0, %s25_s17), 0  ;;  %p50_p3 = por %p49_p2, %p48_p1 }
   0x7   : > { %s37_s18 = ssub.s32 %s1473_s15, %s1939_s17  ;;  %162 = sbr.rel (%p1136_p5) target bundleno = 37 (0x25), region = 20 }
   0x8   : > { %p39_p4 = scmp.eq.s32.totalorder %s37_s18, 0 }
   0xa   : > { %s1535_s20 = scalar_select %p39_p4, %s1465_s13, %s41_s19  }
   0xe   : > { %165 = sbr.rel (!%p50_p3) target bundleno = 37 (0x25), region = 24  ;;  %s167_s21 = sand.u32 (%p50_p3), 1, %s1465_s13  }
   0xf   : > { %s1227_s22 = smul.u32 (%p50_p3), 12, %s1473_s15 }
  0x10   : > { %s1340_s23 = smul.u32 (%p50_p3), 192, %s167_s21 }
  0x11   : > { %s1543_s26 = scalar_lea.vmem (%p50_p3), %s1930_s0, %s1227_s22 }
  0x12   : > { %v190_v0 = vld [vmem:[%s1543_s26] sm:$0xff] (%p50_p3)  ;;  %v192_v1 = vld [vmem:[%s1543_s26 + $0x6c] sm:$0xff] (%p50_p3)  ;;  %v194_v2 = vld [vmem:[%s1543_s26 + $0xd8] sm:$0xff] (%p50_p3)  ;;  %s1548_s27 = scalar_lea.vmem (%p50_p3), [#allocation2], %s1340_s23 }
  0x13   : > { %191 = vst [vmem:[%s1548_s27] sm:$0xff] (%p50_p3), %v190_v0  ;;  %193 = vst [vmem:[%s1548_s27 + $0xc] sm:$0xff] (%p50_p3), %v192_v1  ;;  %v196_v3 = vld [vmem:[%s1543_s26 + $0x144] sm:$0xff] (%p50_p3)  ;;  %v198_v4 = vld [vmem:[%s1543_s26 + $0x1b0] sm:$0xff] (%p50_p3) }
  0x14   : > { %195 = vst [vmem:[%s1548_s27 + $0x18] sm:$0xff] (%p50_p3), %v194_v2  ;;  %v200_v5 = vld [vmem:[%s1543_s26 + $0x21c] sm:$0xff] (%p50_p3)  ;;  %197 = vst [vmem:[%s1548_s27 + $0x24] sm:$0xff] (%p50_p3), %v196_v3  ;;  %v202_v6 = vld [vmem:[%s1543_s26 + $0x288] sm:$0xff] (%p50_p3) }
  0x15   : > { %199 = vst [vmem:[%s1548_s27 + $0x30] sm:$0xff] %v198_v4  ;;  %201 = vst [vmem:[%s1548_s27 + $0x3c] sm:$0xff] %v200_v5  ;;  %v204_v7 = vld [vmem:[%s1543_s26 + $0x2f4] sm:$0xff]  ;;  %v206_v8 = vld [vmem:[%s1543_s26 + $0x360] sm:$0xff] }
  0x16   : > { %203 = vst [vmem:[%s1548_s27 + $0x48] sm:$0xff] %v202_v6  ;;  %205 = vst [vmem:[%s1548_s27 + $0x54] sm:$0xff] %v204_v7  ;;  %v208_v9 = vld [vmem:[%s1543_s26 + $0x3cc] sm:$0xff]  ;;  %v210_v10 = vld [vmem:[%s1543_s26 + $0x438] sm:$0xff] }
  0x17   : > { %207 = vst [vmem:[%s1548_s27 + $0x60] sm:$0xff] %v206_v8  ;;  %v212_v11 = vld [vmem:[%s1543_s26 + $0x4a4] sm:$0xff]  ;;  %209 = vst [vmem:[%s1548_s27 + $0x6c] sm:$0xff] %v208_v9  ;;  %v214_v12 = vld [vmem:[%s1543_s26 + $0x510] sm:$0xff] }
  0x18   : > { %211 = vst [vmem:[%s1548_s27 + $0x78] sm:$0xff] %v210_v10  ;;  %213 = vst [vmem:[%s1548_s27 + $0x84] sm:$0xff] %v212_v11  ;;  %v216_v13 = vld [vmem:[%s1543_s26 + $0x57c] sm:$0xff]  ;;  %v218_v14 = vld [vmem:[%s1543_s26 + $0x5e8] sm:$0xff] }
  0x19   : > { %215 = vst [vmem:[%s1548_s27 + $0x90] sm:$0xff] %v214_v12  ;;  %217 = vst [vmem:[%s1548_s27 + $0x9c] sm:$0xff] %v216_v13  ;;  %v220_v15 = vld [vmem:[%s1543_s26 + $0x654] sm:$0xff]  ;;  %v1138_v16 = vld [vmem:[%s1543_s26 + $0x8] sm:$0xf] }
  0x1a   : > { %219 = vst [vmem:[%s1548_s27 + $0xa8] sm:$0xff] %v218_v14  ;;  %v1140_v17 = vld [vmem:[%s1543_s26 + $0x74] sm:$0xf]  ;;  %221 = vst [vmem:[%s1548_s27 + $0xb4] sm:$0xff] %v220_v15  ;;  %v1142_v18 = vld [vmem:[%s1543_s26 + $0xe0] sm:$0xf] }
  0x1b   : > { %1139 = vst [vmem:[%s1548_s27 + $0x8] sm:$0xf] %v1138_v16  ;;  %1141 = vst [vmem:[%s1548_s27 + $0x14] sm:$0xf] %v1140_v17  ;;  %v1144_v19 = vld [vmem:[%s1543_s26 + $0x14c] sm:$0xf] }
  0x1c   : > { %v1146_v20 = vld [vmem:[%s1543_s26 + $0x1b8] sm:$0xf]  ;;  %1143 = vst [vmem:[%s1548_s27 + $0x20] sm:$0xf] %v1142_v18  ;;  %1145 = vst [vmem:[%s1548_s27 + $0x2c] sm:$0xf] %v1144_v19 }
  0x1d   : > { %1147 = vst [vmem:[%s1548_s27 + $0x38] sm:$0xf] %v1146_v20  ;;  %v1148_v21 = vld [vmem:[%s1543_s26 + $0x224] sm:$0xf]  ;;  %v1150_v22 = vld [vmem:[%s1543_s26 + $0x290] sm:$0xf] }
  0x1e   : > { %v1152_v23 = vld [vmem:[%s1543_s26 + $0x2fc] sm:$0xf]  ;;  %1149 = vst [vmem:[%s1548_s27 + $0x44] sm:$0xf] %v1148_v21  ;;  %1151 = vst [vmem:[%s1548_s27 + $0x50] sm:$0xf] %v1150_v22 }
  0x1f   : > { %1153 = vst [vmem:[%s1548_s27 + $0x5c] sm:$0xf] %v1152_v23  ;;  %v1154_v24 = vld [vmem:[%s1543_s26 + $0x368] sm:$0xf]  ;;  %v1156_v25 = vld [vmem:[%s1543_s26 + $0x3d4] sm:$0xf] }
  0x20   : > { %v1158_v26 = vld [vmem:[%s1543_s26 + $0x440] sm:$0xf]  ;;  %1155 = vst [vmem:[%s1548_s27 + $0x68] sm:$0xf] %v1154_v24  ;;  %1157 = vst [vmem:[%s1548_s27 + $0x74] sm:$0xf] %v1156_v25 }
  0x21   : > { %1159 = vst [vmem:[%s1548_s27 + $0x80] sm:$0xf] %v1158_v26  ;;  %v1160_v27 = vld [vmem:[%s1543_s26 + $0x4ac] sm:$0xf]  ;;  %v1162_v28 = vld [vmem:[%s1543_s26 + $0x518] sm:$0xf] }
  0x22   : > { %v1164_v29 = vld [vmem:[%s1543_s26 + $0x584] sm:$0xf]  ;;  %1161 = vst [vmem:[%s1548_s27 + $0x8c] sm:$0xf] %v1160_v27  ;;  %1163 = vst [vmem:[%s1548_s27 + $0x98] sm:$0xf] %v1162_v28 }
  0x23   : > { %1165 = vst [vmem:[%s1548_s27 + $0xa4] sm:$0xf] %v1164_v29  ;;  %v1166_v30 = vld [vmem:[%s1543_s26 + $0x5f0] sm:$0xf]  ;;  %v1168_v31 = vld [vmem:[%s1543_s26 + $0x65c] sm:$0xf] }
  0x24   : > { %1167 = vst [vmem:[%s1548_s27 + $0xb0] sm:$0xf] %v1166_v30  ;;  %1169 = vst [vmem:[%s1548_s27 + $0xbc] sm:$0xf] %v1168_v31 }
  0x25 PF: > { %p1170_p6 = scmp.ge.s32.totalorder %s1477_s16, 1  ;;  %p277_p7 = scmp.lt.s32.totalorder %s1477_s16, 10 }
  0x27   : > { %p278_p8 = pnand %p1170_p6, %p277_p7 }
  0x28   : > { %s284_s28 = sand.u32 (!%p278_p8), 1, %s1461_s12   ;;  %s323_s29 = smul.u32 (!%p278_p8), 48, %s1469_s14 }
  0x29   : > { %281 = sbr.rel (%p278_p8) target bundleno = 379 (0x17b), region = 54  ;;  %p1172_p10 = scmp.ne.s32.totalorder (!%p278_p8), %s1469_s14, 0 }
  0x2a   : > { %s1341_s30 = smul.u32 (!%p278_p8), 192, %s284_s28  ;;  %p324_p9 = scmp.lt.s32.totalorder (!%p278_p8), %s323_s29, 431 }
  0x2c   : > { %s1620_s8 = scalar_lea.vmem (!%p278_p8), [#allocation2], %s1341_s30 }
  0x30   : > { %s1941_s29 = smov (!%p324_p9, %s323_s29), 431  ;;  %348 = sbr.rel (%p1172_p10) target bundleno = 58 (0x3a), region = 62 }
  0x31   : > { %s1171_s4 = sshll.u32 %s1941_s29, 2  ;;  %v1479_v32 = vmov (!%p1172_p10), 0.0  }
  0x32   : > { %s1618_s7 = scalar_lea.vmem %s1931_s1, %s1171_s4  ;;  %349 = vst [vmem:[%s1933_s3] sm:$0xff] (!%p1172_p10), %v1479_v32  ;;  %350 = vst [vmem:[%s1933_s3 + $0x8] sm:$0xff] (!%p1172_p10), %v1479_v32 }
  0x33   : > { %351 = vst [vmem:[%s1933_s3 + $0x10] sm:$0xff] (!%p1172_p10), %v1479_v32  ;;  %352 = vst [vmem:[%s1933_s3 + $0x18] sm:$0xff] (!%p1172_p10), %v1479_v32 }
  0x34   : > { %353 = vst [vmem:[%s1933_s3 + $0x20] sm:$0xff] (!%p1172_p10), %v1479_v32  ;;  %354 = vst [vmem:[%s1933_s3 + $0x28] sm:$0xff] (!%p1172_p10), %v1479_v32 }
  0x35   : > { %355 = vst [vmem:[%s1933_s3 + $0x30] sm:$0xff] (!%p1172_p10), %v1479_v32  ;;  %356 = vst [vmem:[%s1933_s3 + $0x38] sm:$0xff] (!%p1172_p10), %v1479_v32 }
  0x36   : > { %357 = vst [vmem:[%s1933_s3 + $0x40] sm:$0xff] (!%p1172_p10), %v1479_v32  ;;  %358 = vst [vmem:[%s1933_s3 + $0x48] sm:$0xff] (!%p1172_p10), %v1479_v32 }
  0x37   : > { %359 = vst [vmem:[%s1933_s3 + $0x50] sm:$0xff] %v1479_v32  ;;  %360 = vst [vmem:[%s1933_s3 + $0x58] sm:$0xff] %v1479_v32 }
  0x38   : > { %361 = vst [vmem:[%s1933_s3 + $0x60] sm:$0xff] %v1479_v32  ;;  %362 = vst [vmem:[%s1933_s3 + $0x68] sm:$0xff] %v1479_v32 }
  0x39   : > { %363 = vst [vmem:[%s1933_s3 + $0x70] sm:$0xff] %v1479_v32  ;;  %364 = vst [vmem:[%s1933_s3 + $0x78] sm:$0xff] %v1479_v32 }
  0x3a PF: > { %v1383_v33 = vld [vmem:[%s1618_s7 + $0x40] sm:$0xff]   ;;  %v1386_v36 = vld [vmem:[%s1618_s7 + $0x48] sm:$0xff]   ;;  %v1389_v39 = vld [vmem:[%s1618_s7 + $0x50] sm:$0xff]   ;;  %p1221_p11 = scmp.ne.s32.totalorder %s1469_s14, 8 }
  0x3b   : > { %v1384_v34 = vld [vmem:[%s1618_s7] sm:$0xff]   ;;  %1228 = vmatprep.subr.bf16.mxu0 %v1383_v33  ;;  %v1387_v37 = vld [vmem:[%s1618_s7 + $0x8] sm:$0xff]   ;;  %v1390_v40 = vld [vmem:[%s1618_s7 + $0x10] sm:$0xff]  }
  0x3c   : > { %v1385_v35 = vld [vmem:[%s1618_s7 + $0x80] sm:$0xff]   ;;  %1229 = vmatpush3.bf16.msra.mxu0 %v1384_v34  ;;  %v1388_v38 = vld [vmem:[%s1618_s7 + $0x88] sm:$0xff]   ;;  %v1391_v41 = vld [vmem:[%s1618_s7 + $0x90] sm:$0xff]  }
  0x3d   : > { %1308 = vmatprep.subr.bf16.mxu1 %v1385_v35  ;;  %1230 = vmatprep.subr.bf16.mxu0 %v1386_v36  ;;  %v1392_v42 = vld [vmem:[%s1618_s7 + $0x58] sm:$0xff]   ;;  %v1395_v45 = vld [vmem:[%s1618_s7 + $0x60] sm:$0xff]   ;;  %v1398_v48 = vld [vmem:[%s1618_s7 + $0x68] sm:$0xff]  }
  0x3e   : > { %1309 = vmatpush3.bf16.msra.mxu1 %v1385_v35  ;;  %v1393_v43 = vld [vmem:[%s1618_s7 + $0x18] sm:$0xff]   ;;  %v1397_v46 = vld [vmem:[%s1618_s7 + $0xa0] sm:$0xff]   ;;  %v1400_v49 = vld [vmem:[%s1618_s7 + $0xa8] sm:$0xff]  }
  0x3f   : > { %1310 = vmatprep.subr.bf16.mxu1 %v1388_v38  ;;  %v1394_v44 = vld [vmem:[%s1618_s7 + $0x98] sm:$0xff]   ;;  %v1396_v47 = vld [vmem:[%s1618_s7 + $0x20] sm:$0xff]   ;;  %v1399_v50 = vld [vmem:[%s1618_s7 + $0x28] sm:$0xff]  }
  0x40   : > { %1231 = vmatpush3.bf16.msra.mxu0 %v1387_v37  ;;  %v1401_v51 = vld [vmem:[%s1618_s7 + $0x70] sm:$0xff]   ;;  %v1404_v54 = vld [vmem:[%s1618_s7 + $0x78] sm:$0xff]   ;;  %v1407_v59 = vld [vmem:[%s1620_s8] ss:$12 sps:$4 sm:$0xff]  }
  0x41   : > { %1232 = vmatprep.subr.bf16.mxu0 %v1389_v39  ;;  %v1402_v52 = vld [vmem:[%s1618_s7 + $0x30] sm:$0xff]   ;;  %v1406_v55 = vld [vmem:[%s1618_s7 + $0xb8] sm:$0xff]   ;;  %v1411_v61 = vld [vmem:[%s1620_s8 + $0x20] ss:$12 sps:$4 sm:$0xff]  }
  0x42   : > { %1311 = vmatpush3.bf16.msra.mxu1 %v1388_v38  ;;  %v1403_v53 = vld [vmem:[%s1618_s7 + $0xb0] sm:$0xff]   ;;  %v1405_v58 = vld [vmem:[%s1618_s7 + $0x38] sm:$0xff]   ;;  %v1427_v5 = vld [vmem:[%s1620_s8 + $0x80] ss:$12 sps:$4 sm:$0xff]  }
  0x43   : > { %1312 = vmatprep.subr.bf16.mxu1 %v1391_v41  ;;  %v1409_v56 = vld [vmem:[%s1620_s8 + $0x4] ss:$12 sps:$4 sm:$0xff]   ;;  %v1410_v57 = vld [vmem:[%s1620_s8 + $0x8] ss:$12 sps:$4 sm:$0xff]   ;;  %v1420_v4 = vld [vmem:[%s1620_s8 + $0x4c] ss:$12 sps:$4 sm:$0xff]  }
  0x44   : > { %1233 = vmatpush3.bf16.msra.mxu0 %v1390_v40  ;;  %765 = vmatprep.mubr.bf16.mxu0 %v1409_v56  ;;  %v1412_v60 = vld [vmem:[%s1620_s8 + $0x1c] ss:$12 sps:$4 sm:$0xff]   ;;  %v1418_v62 = vld [vmem:[%s1620_s8 + $0x38] ss:$12 sps:$4 sm:$0xff]   ;;  %v1415_v0 = vld [vmem:[%s1620_s8 + $0x34] ss:$12 sps:$4 sm:$0xff]  }
  0x45   : > { %1234 = vmatprep.subr.bf16.mxu0 %v1392_v42  ;;  %1324 = vmatprep.mubr.bf16.mxu1 %v1410_v57  ;;  %v1414_v63 = vld [vmem:[%s1620_s8 + $0x18] ss:$12 sps:$4 sm:$0xff]   ;;  %v1419_v1 = vld [vmem:[%s1620_s8 + $0x50] ss:$12 sps:$4 sm:$0xff]   ;;  %v1426_v2 = vld [vmem:[%s1620_s8 + $0x68] ss:$12 sps:$4 sm:$0xff]  }
  0x46   : > { %1313 = vmatpush3.bf16.msra.mxu1 %v1391_v41  ;;  %v1417_v3 = vld [vmem:[%s1620_s8 + $0x30] ss:$12 sps:$4 sm:$0xff]   ;;  %v1434_v6 = vld [vmem:[%s1620_s8 + $0x98] ss:$12 sps:$4 sm:$0xff]   ;;  %v1422_v7 = vld [vmem:[%s1620_s8 + $0x48] ss:$12 sps:$4 sm:$0xff]  }
  0x47   : > { %1314 = vmatprep.subr.bf16.mxu1 %v1394_v44  ;;  %v1423_v8 = vld [vmem:[%s1620_s8 + $0x64] ss:$12 sps:$4 sm:$0xff]   ;;  %v1425_v10 = vld [vmem:[%s1620_s8 + $0x60] ss:$12 sps:$4 sm:$0xff]   ;;  %v1428_v11 = vld [vmem:[%s1620_s8 + $0x7c] ss:$12 sps:$4 sm:$0xff]  }
  0x48   : > { %1235 = vmatpush3.bf16.msra.mxu0 %v1393_v43  ;;  %v1435_v9 = vld [vmem:[%s1620_s8 + $0xb0] ss:$12 sps:$4 sm:$0xff]   ;;  %v1430_v12 = vld [vmem:[%s1620_s8 + $0x78] ss:$12 sps:$4 sm:$0xff]   ;;  %v1431_v13 = vld [vmem:[%s1620_s8 + $0x94] ss:$12 sps:$4 sm:$0xff]  }
  0x49   : > { %1236 = vmatprep.subr.bf16.mxu0 %v1395_v45  ;;  %v1433_v14 = vld [vmem:[%s1620_s8 + $0x90] ss:$12 sps:$4 sm:$0xff]   ;;  %v1436_v15 = vld [vmem:[%s1620_s8 + $0xac] ss:$12 sps:$4 sm:$0xff]   ;;  %v1438_v16 = vld [vmem:[%s1620_s8 + $0xa8] ss:$12 sps:$4 sm:$0xff]  }
  0x4a   : > { %1315 = vmatpush3.bf16.msra.mxu1 %v1394_v44  ;;  %v365_v23 = vld [vmem:[%s1933_s3] sm:$0xff]  ;;  %v366_v28 = vld [vmem:[%s1933_s3 + $0x8] sm:$0xff]  ;;  %v367_v38 = vld [vmem:[%s1933_s3 + $0x10] sm:$0xff] }
  0x4b   : > { %1316 = vmatprep.subr.bf16.mxu1 %v1397_v46  ;;  %v368_v44 = vld [vmem:[%s1933_s3 + $0x18] sm:$0xff] }
  0x4c   : > { %1237 = vmatpush3.bf16.msra.mxu0 %v1396_v47 }
  0x4d   : > { %1238 = vmatprep.subr.bf16.mxu0 %v1398_v48 }
  0x4e   : > { %1317 = vmatpush3.bf16.msra.mxu1 %v1397_v46 }
  0x4f   : > { %1318 = vmatprep.subr.bf16.mxu1 %v1400_v49 }
  0x50   : > { %1239 = vmatpush3.bf16.msra.mxu0 %v1399_v50 }
  0x51   : > { %1240 = vmatprep.subr.bf16.mxu0 %v1401_v51 }
  0x52   : > { %1319 = vmatpush3.bf16.msra.mxu1 %v1400_v49 }
  0x53   : > { %1320 = vmatprep.subr.bf16.mxu1 %v1403_v53 }
  0x54   : > { %1241 = vmatpush3.bf16.msra.mxu0 %v1402_v52 }
  0x55   : > { %1242 = vmatprep.subr.bf16.mxu0 %v1404_v54 }
  0x56   : > { %1321 = vmatpush3.bf16.msra.mxu1 %v1403_v53 }
  0x57   : > { %1322 = vmatprep.subr.bf16.mxu1 %v1406_v55 }
  0x58   : > { %1243 = vmatpush3.bf16.msra.mxu0 %v1405_v58 }
  0x5a   : > { %1323 = vmatpush3.bf16.msra.mxu1 %v1406_v55  ;;  %v369_v55 = vld [vmem:[%s1933_s3 + $0x20] sm:$0xff] }
  0x5b   : > { %766 = vmatmul.mubr.bf16.vlgmr.msra.gmra.mrb[0].mxu0 %v1407_v59 }
  0x5c   : > { %773 = vmatprep.mubr.bf16.mxu0 %v1412_v60  ;;  %v370_v60 = vld [vmem:[%s1933_s3 + $0x28] sm:$0xff] }
  0x5d   : > { %1325 = vmatmul.mubr.bf16.vlgmr.msra.gmra.mrb[0].mxu1 %v1411_v61 }
  0x5e   : > { %1328 = vmatprep.mubr.bf16.mxu1 %v1418_v62 }
  0x63   : > { %774 = vmatmul.mubr.bf16.gmra.mrb[4].mxu0 %v1414_v63 }
  0x64   : > { %781 = vmatprep.mubr.bf16.mxu0 %v1415_v0 }
  0x65   : > { %1329 = vmatmul.mubr.bf16.gmra.mrb[4].mxu1 %v1419_v1 }
  0x66   : > { %1332 = vmatprep.mubr.bf16.mxu1 %v1426_v2 }
  0x6b   : > { %782 = vmatmul.mubr.bf16.gmra.mrb[8].mxu0 %v1417_v3 }
  0x6c   : > { %789 = vmatprep.mubr.bf16.mxu0 %v1420_v4 }
  0x6d   : > { %1333 = vmatmul.mubr.bf16.gmra.mrb[8].mxu1 %v1427_v5 }
  0x6e   : > { %1336 = vmatprep.mubr.bf16.mxu1 %v1434_v6  ;;  %v371_v6 = vld [vmem:[%s1933_s3 + $0x30] sm:$0xff] }
  0x73   : > { %790 = vmatmul.mubr.bf16.gmra.mrb[12].mxu0 %v1422_v7 }
  0x74   : > { %797 = vmatprep.mubr.bf16.mxu0 %v1423_v8 }
  0x75   : > { %1337 = vmatmul.mubr.bf16.gmra.mrb[12].mxu1 %v1435_v9 }
  0x7b   : > { %798 = vmatmul.mubr.bf16.gmra.mrb[16].mxu0 %v1425_v10 }
  0x7c   : > { %805 = vmatprep.mubr.bf16.mxu0 %v1428_v11 }
  0x83   : > { %806 = vmatmul.mubr.bf16.gmra.mrb[20].mxu0 %v1430_v12  ;;  %v372_v12 = vld [vmem:[%s1933_s3 + $0x38] sm:$0xff] }
  0x84   : > { %813 = vmatprep.mubr.bf16.mxu0 %v1431_v13 }
  0x8b   : > { %814 = vmatmul.mubr.bf16.gmra.mrb[24].mxu0 %v1433_v14 }
  0x8c   : > { %821 = vmatprep.mubr.bf16.mxu0 %v1436_v15 }
  0x93   : > { %822 = vmatmul.mubr.bf16.gmra.mrb[28].mxu0 %v1438_v16 }
 0x12e   : > { %v1244_v17 = vpop.f32.mrb[0].mxu0 }
 0x12f   : > { %v1245_v18 = vpop.f32.mrb[1].mxu0 }
 0x130   : > { %v1246_v19 = vadd.f32 %v1245_v18, %v1244_v17  ;;  %v1247_v20 = vpop.f32.mrb[2].mxu0  ;;  %v1326_v21 = vpop.f32.mrb[0].mxu1 }
 0x131   : > { %v1248_v22 = vpop.f32.mrb[3].mxu0  ;;  %v864_v24 = vpop.f32.mrb[1].mxu1 }
 0x132   : > { %v1249_v25 = vadd.f32 %v1248_v22, %v1247_v20  ;;  %v865_v26 = vadd.f32 %v1246_v19, %v864_v24  ;;  %v1327_v27 = vpop.f32.mrb[2].mxu1  ;;  %v373_v22 = vld [vmem:[%s1933_s3 + $0x40] sm:$0xff] }
 0x133   : > { %v867_v29 = vpop.f32.mrb[3].mxu1 }
 0x134   : > { %v927_v30 = vadd.f32 %v865_v26, %v365_v23  ;;  %v868_v31 = vadd.f32 %v1249_v25, %v867_v29  ;;  %v374_v25 = vld [vmem:[%s1933_s3 + $0x48] sm:$0xff] }
 0x136   : > { %943 = vst [vmem:[%s1933_s3] sm:$0xff] %v927_v30  ;;  %v928_v32 = vadd.f32 %v868_v31, %v366_v28  ;;  %v1250_v33 = vpop.f32.mrb[4].mxu0 }
 0x137   : > { %v1251_v34 = vpop.f32.mrb[5].mxu0 }
 0x138   : > { %944 = vst [vmem:[%s1933_s3 + $0x8] sm:$0xff] %v928_v32  ;;  %v1252_v35 = vadd.f32 %v1251_v34, %v1250_v33  ;;  %v1253_v36 = vpop.f32.mrb[6].mxu0  ;;  %v1330_v37 = vpop.f32.mrb[4].mxu1  ;;  %v375_v33 = vld [vmem:[%s1933_s3 + $0x50] sm:$0xff] }
 0x139   : > { %v1254_v39 = vpop.f32.mrb[7].mxu0  ;;  %v880_v40 = vpop.f32.mrb[5].mxu1 }
 0x13a   : > { %v873_v41 = vadd.f32 %v1326_v21, %v1252_v35  ;;  %v1255_v42 = vadd.f32 %v1254_v39, %v1253_v36  ;;  %v1331_v43 = vpop.f32.mrb[6].mxu1 }
 0x13b   : > { %v883_v45 = vpop.f32.mrb[7].mxu1 }
 0x13c   : > { %v929_v46 = vadd.f32 %v873_v41, %v367_v38  ;;  %v876_v47 = vadd.f32 %v1327_v27, %v1255_v42 }
 0x13e   : > { %945 = vst [vmem:[%s1933_s3 + $0x10] sm:$0xff] %v929_v46  ;;  %v930_v48 = vadd.f32 %v876_v47, %v368_v44  ;;  %v1256_v49 = vpop.f32.mrb[8].mxu0  ;;  %v377_v46 = vld [vmem:[%s1933_s3 + $0x60] sm:$0xff] }
 0x13f   : > { %v1257_v50 = vpop.f32.mrb[9].mxu0 }
 0x140   : > { %946 = vst [vmem:[%s1933_s3 + $0x18] sm:$0xff] %v930_v48  ;;  %v1258_v51 = vadd.f32 %v1257_v50, %v1256_v49  ;;  %v1259_v52 = vpop.f32.mrb[10].mxu0  ;;  %v1334_v53 = vpop.f32.mrb[8].mxu1  ;;  %v378_v49 = vld [vmem:[%s1933_s3 + $0x68] sm:$0xff] }
 0x141   : > { %v1260_v54 = vpop.f32.mrb[11].mxu0  ;;  %v896_v56 = vpop.f32.mrb[9].mxu1 }
 0x142   : > { %v1261_v57 = vadd.f32 %v1260_v54, %v1259_v52  ;;  %v881_v58 = vadd.f32 %v1258_v51, %v880_v40  ;;  %v1335_v59 = vpop.f32.mrb[10].mxu1 }
 0x143   : > { %v899_v61 = vpop.f32.mrb[11].mxu1 }
 0x144   : > { %v931_v62 = vadd.f32 %v881_v58, %v369_v55  ;;  %v884_v63 = vadd.f32 %v1261_v57, %v883_v45  ;;  %v379_v57 = vld [vmem:[%s1933_s3 + $0x70] sm:$0xff] }
 0x146   : > { %947 = vst [vmem:[%s1933_s3 + $0x20] sm:$0xff] %v931_v62  ;;  %v932_v0 = vadd.f32 %v884_v63, %v370_v60  ;;  %v1262_v1 = vpop.f32.mrb[12].mxu0 }
 0x147   : > { %v1263_v2 = vpop.f32.mrb[13].mxu0 }
 0x148   : > { %948 = vst [vmem:[%s1933_s3 + $0x28] sm:$0xff] %v932_v0  ;;  %v1264_v3 = vadd.f32 %v1263_v2, %v1262_v1  ;;  %v1265_v4 = vpop.f32.mrb[14].mxu0  ;;  %v1338_v5 = vpop.f32.mrb[12].mxu1  ;;  %v963_v1 = vld [vmem:[%s1933_s3] sm:$0xff] (!%p1221_p11) }
 0x149   : > { %v1266_v7 = vpop.f32.mrb[15].mxu0  ;;  %v912_v8 = vpop.f32.mrb[13].mxu1  ;;  %v1222_v2 = vld [vmem:[%s1932_s2] ss:$0 sm:$0xff] (!%p1221_p11) }
 0x14a   : > { %v889_v9 = vadd.f32 %v1330_v37, %v1264_v3  ;;  %v1267_v10 = vadd.f32 %v1266_v7, %v1265_v4  ;;  %v1339_v11 = vpop.f32.mrb[14].mxu1  ;;  %v376_v37 = vld [vmem:[%s1933_s3 + $0x58] sm:$0xff]  ;;  %v964_v3 = vld [vmem:[%s1933_s3 + $0x8] sm:$0xff] (!%p1221_p11)  ;;  %v986_v4 = vadd.f32 (!%p1221_p11), %v1222_v2, %v963_v1 }
 0x14b   : > { %v915_v13 = vpop.f32.mrb[15].mxu1  ;;  %v966_v7 = vld [vmem:[%s1933_s3 + $0x18] sm:$0xff] (!%p1221_p11) }
 0x14c   : > { %v933_v14 = vadd.f32 %v889_v9, %v371_v6  ;;  %v892_v15 = vadd.f32 %v1331_v43, %v1267_v10  ;;  %v965_v6 = vld [vmem:[%s1933_s3 + $0x10] sm:$0xff] (!%p1221_p11)  ;;  %v989_v10 = vadd.f32 (!%p1221_p11), %v1222_v2, %v966_v7  ;;  %1002 = vst [vmem:[%s1933_s3] sm:$0xff] (!%p1221_p11), %v986_v4 }
 0x14d   : > { %v988_v9 = vadd.f32 (!%p1221_p11), %v1222_v2, %v965_v6 }
 0x14e   : > { %949 = vst [vmem:[%s1933_s3 + $0x30] sm:$0xff] %v933_v14  ;;  %v934_v16 = vadd.f32 %v892_v15, %v372_v12  ;;  %v1268_v17 = vpop.f32.mrb[16].mxu0  ;;  %1005 = vst [vmem:[%s1933_s3 + $0x18] sm:$0xff] (!%p1221_p11), %v989_v10 }
 0x14f   : > { %v1269_v18 = vpop.f32.mrb[17].mxu0  ;;  %v968_v12 = vld [vmem:[%s1933_s3 + $0x28] sm:$0xff] (!%p1221_p11)  ;;  %1004 = vst [vmem:[%s1933_s3 + $0x10] sm:$0xff] (!%p1221_p11), %v988_v9 }
 0x150   : > { %950 = vst [vmem:[%s1933_s3 + $0x38] sm:$0xff] %v934_v16  ;;  %v1270_v19 = vadd.f32 %v1269_v18, %v1268_v17  ;;  %v1271_v20 = vpop.f32.mrb[18].mxu0  ;;  %v991_v15 = vadd.f32 (!%p1221_p11), %v1222_v2, %v968_v12 }
 0x151   : > { %v1272_v21 = vpop.f32.mrb[19].mxu0 }
 0x152   : > { %v1273_v23 = vadd.f32 %v1272_v21, %v1271_v20  ;;  %v897_v24 = vadd.f32 %v1270_v19, %v896_v56  ;;  %1007 = vst [vmem:[%s1933_s3 + $0x28] sm:$0xff] (!%p1221_p11), %v991_v15 }
 0x154   : > { %v935_v26 = vadd.f32 %v897_v24, %v373_v22  ;;  %v900_v27 = vadd.f32 %v1273_v23, %v899_v61  ;;  %v380_v61 = vld [vmem:[%s1933_s3 + $0x78] sm:$0xff] }
 0x156   : > { %951 = vst [vmem:[%s1933_s3 + $0x40] sm:$0xff] %v935_v26  ;;  %v936_v28 = vadd.f32 %v900_v27, %v374_v25  ;;  %v1274_v29 = vpop.f32.mrb[20].mxu0 }
 0x157   : > { %v1275_v30 = vpop.f32.mrb[21].mxu0  ;;  %v970_v14 = vld [vmem:[%s1933_s3 + $0x38] sm:$0xff] (!%p1221_p11) }
 0x158   : > { %952 = vst [vmem:[%s1933_s3 + $0x48] sm:$0xff] %v936_v28  ;;  %v1276_v31 = vadd.f32 %v1275_v30, %v1274_v29  ;;  %v1277_v32 = vpop.f32.mrb[22].mxu0  ;;  %v993_v17 = vadd.f32 (!%p1221_p11), %v1222_v2, %v970_v14 }
 0x159   : > { %v1278_v34 = vpop.f32.mrb[23].mxu0 }
 0x15a   : > { %v905_v35 = vadd.f32 %v1334_v53, %v1276_v31  ;;  %v1279_v36 = vadd.f32 %v1278_v34, %v1277_v32  ;;  %1009 = vst [vmem:[%s1933_s3 + $0x38] sm:$0xff] (!%p1221_p11), %v993_v17 }
 0x15c   : > { %v937_v38 = vadd.f32 %v905_v35, %v375_v33  ;;  %v908_v39 = vadd.f32 %v1335_v59, %v1279_v36 }
 0x15d   : > { %v971_v18 = vld [vmem:[%s1933_s3 + $0x40] sm:$0xff] (!%p1221_p11) }
 0x15e   : > { %953 = vst [vmem:[%s1933_s3 + $0x50] sm:$0xff] %v937_v38  ;;  %v938_v40 = vadd.f32 %v908_v39, %v376_v37  ;;  %v1280_v41 = vpop.f32.mrb[24].mxu0  ;;  %v994_v21 = vadd.f32 (!%p1221_p11), %v1222_v2, %v971_v18 }
 0x15f   : > { %v1281_v42 = vpop.f32.mrb[25].mxu0  ;;  %v972_v19 = vld [vmem:[%s1933_s3 + $0x48] sm:$0xff] (!%p1221_p11) }
 0x160   : > { %954 = vst [vmem:[%s1933_s3 + $0x58] sm:$0xff] %v938_v40  ;;  %v1282_v43 = vadd.f32 %v1281_v42, %v1280_v41  ;;  %v1283_v44 = vpop.f32.mrb[26].mxu0  ;;  %v995_v22 = vadd.f32 (!%p1221_p11), %v1222_v2, %v972_v19  ;;  %1010 = vst [vmem:[%s1933_s3 + $0x40] sm:$0xff] (!%p1221_p11), %v994_v21 }
 0x161   : > { %v1284_v45 = vpop.f32.mrb[27].mxu0 }
 0x162   : > { %v1285_v47 = vadd.f32 %v1284_v45, %v1283_v44  ;;  %v913_v48 = vadd.f32 %v1282_v43, %v912_v8  ;;  %v967_v8 = vld [vmem:[%s1933_s3 + $0x20] sm:$0xff] (!%p1221_p11)  ;;  %1011 = vst [vmem:[%s1933_s3 + $0x48] sm:$0xff] (!%p1221_p11), %v995_v22 }
 0x164   : > { %v939_v50 = vadd.f32 %v913_v48, %v377_v46  ;;  %v916_v51 = vadd.f32 %v1285_v47, %v915_v13  ;;  %v969_v13 = vld [vmem:[%s1933_s3 + $0x30] sm:$0xff] (!%p1221_p11) }
 0x165   : > { %v992_v16 = vadd.f32 (!%p1221_p11), %v1222_v2, %v969_v13  ;;  %v973_v20 = vld [vmem:[%s1933_s3 + $0x50] sm:$0xff] (!%p1221_p11) }
 0x166   : > { %955 = vst [vmem:[%s1933_s3 + $0x60] sm:$0xff] %v939_v50  ;;  %v940_v52 = vadd.f32 %v916_v51, %v378_v49  ;;  %v1286_v53 = vpop.f32.mrb[28].mxu0  ;;  %v996_v23 = vadd.f32 (!%p1221_p11), %v1222_v2, %v973_v20 }
 0x167   : > { %v1287_v54 = vpop.f32.mrb[29].mxu0  ;;  %v974_v24 = vld [vmem:[%s1933_s3 + $0x58] sm:$0xff] (!%p1221_p11)  ;;  %1008 = vst [vmem:[%s1933_s3 + $0x30] sm:$0xff] (!%p1221_p11), %v992_v16 }
 0x168   : > { %956 = vst [vmem:[%s1933_s3 + $0x68] sm:$0xff] %v940_v52  ;;  %v1288_v55 = vadd.f32 %v1287_v54, %v1286_v53  ;;  %v1289_v56 = vpop.f32.mrb[30].mxu0  ;;  %v997_v27 = vadd.f32 (!%p1221_p11), %v1222_v2, %v974_v24  ;;  %1012 = vst [vmem:[%s1933_s3 + $0x50] sm:$0xff] (!%p1221_p11), %v996_v23 }
 0x169   : > { %v1290_v58 = vpop.f32.mrb[31].mxu0 }
 0x16a   : > { %v921_v59 = vadd.f32 %v1338_v5, %v1288_v55  ;;  %v1291_v60 = vadd.f32 %v1290_v58, %v1289_v56  ;;  %962 = sbr.rel (%p1221_p11) target bundleno = 379 (0x17b), region = 66  ;;  %v987_v5 = vadd.f32 (!%p1221_p11), %v1222_v2, %v964_v3  ;;  %1013 = vst [vmem:[%s1933_s3 + $0x58] sm:$0xff] (!%p1221_p11), %v997_v27 }
 0x16c   : > { %v941_v62 = vadd.f32 %v921_v59, %v379_v57  ;;  %v924_v63 = vadd.f32 %v1339_v11, %v1291_v60  ;;  %v990_v11 = vadd.f32 (!%p1221_p11), %v1222_v2, %v967_v8  ;;  %1003 = vst [vmem:[%s1933_s3 + $0x8] sm:$0xff] (!%p1221_p11), %v987_v5 }
 0x16d   : > { %v975_v25 = vld [vmem:[%s1933_s3 + $0x60] sm:$0xff] (!%p1221_p11) }
 0x16e   : > { %957 = vst [vmem:[%s1933_s3 + $0x70] sm:$0xff] %v941_v62  ;;  %v942_v0 = vadd.f32 %v924_v63, %v380_v61  ;;  %1006 = vst [vmem:[%s1933_s3 + $0x20] sm:$0xff] (!%p1221_p11), %v990_v11  ;;  %v998_v28 = vadd.f32 (!%p1221_p11), %v1222_v2, %v975_v25 }
 0x16f   : > { %v976_v26 = vld [vmem:[%s1933_s3 + $0x68] sm:$0xff] (!%p1221_p11) }
 0x170   : > { %958 = vst [vmem:[%s1933_s3 + $0x78] sm:$0xff] %v942_v0  ;;  %v999_v29 = vadd.f32 (!%p1221_p11), %v1222_v2, %v976_v26  ;;  %1014 = vst [vmem:[%s1933_s3 + $0x60] sm:$0xff] (!%p1221_p11), %v998_v28 }
 0x172   : > { %1015 = vst [vmem:[%s1933_s3 + $0x68] sm:$0xff] %v999_v29 }
 0x175   : > { %v977_v30 = vld [vmem:[%s1933_s3 + $0x70] sm:$0xff] }
 0x176   : > { %v1000_v32 = vadd.f32 %v1222_v2, %v977_v30 }
 0x177   : > { %v978_v31 = vld [vmem:[%s1933_s3 + $0x78] sm:$0xff] }
 0x178   : > { %v1001_v33 = vadd.f32 %v1222_v2, %v978_v31  ;;  %1016 = vst [vmem:[%s1933_s3 + $0x70] sm:$0xff] %v1000_v32 }
 0x17a   : > { %1017 = vst [vmem:[%s1933_s3 + $0x78] sm:$0xff] %v1001_v33 }
 0x17b PF: > { %s13_s16 = sadd.s32 1, %s1477_s16   ;;  %s1934_s12 = smov %s1465_s13 }
 0x17c   : > { %p10_p12 = scmp.ge.s32.totalorder %s13_s16, 11   ;;  %s1935_s13 = smov %s1535_s20 }
 0x17d   : > { %s1936_s14 = smov %s1473_s15  ;;  %s1937_s15 = smov %s1939_s17 }
 0x17e   :  { %12 = sbr.rel (!%p10_p12) target bundleno = 3 (0x3), region = 113 }

// kernel: snunet_forward.35
= control target key start
LH: loop header
LB: loop body
LE: loop exit
PB: predicated region body
PF: predicated region fallthrough
CT: control target
= control target key end

     0   :  { %s2181_s12 = smov 0   ;;  %s2183_s13 = smov 0   ;;  %s2712_s0 = inlined_call_operand.vmem [shape: bf16[512,1152], index: 0, kind: input, shape index: {}]   ;;  %s2713_s1 = inlined_call_operand.vmem [shape: bf16[1152,128], index: 1, kind: input, shape index: {}]   ;;  %s2714_s2 = inlined_call_operand.vmem [shape: f32[1,128], index: 2, kind: input, shape index: {}]   ;;  %s2715_s3 = inlined_call_operand.vmem [shape: f32[512,128], index: 3, kind: output, shape index: {}]  }
   0x1   :  { %s2185_s14 = smov 0   ;;  %s2187_s15 = smov 0  }
   0x2   :  { %s2189_s16 = smov 0   ;;  %s2191_s17 = smov 0  }
   0x3   :  { %s2193_s18 = smov 0  }
   0x4 LB: > { %s25_s19 = sadd.s32 1, %s2150_s16  ;;  %s32_s20 = sadd.s32 1, %s2154_s17  ;;  %s2158_s18 = sphi %s2193_s18, %s13_s18   ;;  %s2154_s17 = sphi %s2191_s17, %s2721_s17   ;;  %s2150_s16 = sphi %s2189_s16, %s2720_s16   ;;  %s2146_s15 = sphi %s2187_s15, %s2719_s15   ;;  %s2142_s14 = sphi %s2185_s14, %s2718_s14   ;;  %s2138_s13 = sphi %s2183_s13, %s2717_s13   ;;  %s2134_s12 = sphi %s2181_s12, %s2716_s12  }
   0x5   : > { %p26_p0 = scmp.ge.s32.totalorder %s25_s19, 3  ;;  %p48_p1 = scmp.ne.s32.totalorder %s2138_s13, %s2134_s12 }
   0x6   : > { %p49_p2 = scmp.eq.s32.totalorder %s2158_s18, 0  ;;  %s41_s24 = sadd.s32 1, %s2138_s13 }
   0x7   : > { %s2723_s19 = smov (%p26_p0, %s25_s19), 0  ;;  %s2725_s20 = smov (!%p26_p0, %s32_s20), %s2154_s17 }
   0x8   : > { %p50_p3 = por %p49_p2, %p48_p1  ;;  %p34_p4 = scmp.ge.s32.totalorder %s2725_s20, 2 }
   0x9   : > { %s37_s21 = ssub.s32 %s2150_s16, %s2723_s19  ;;  %p1607_p6 = scmp.ge.s32.totalorder %s2158_s18, 6 }
   0xa   : > { %s2727_s20 = smov (%p34_p4, %s2725_s20), 0 }
   0xb   : > { %s36_s22 = ssub.s32 %s2154_s17, %s2727_s20  ;;  %162 = sbr.rel (%p1607_p6) target bundleno = 64 (0x40), region = 20 }
   0xc   : > { %s38_s23 = sor.u32 %s37_s21, %s36_s22 }
   0xd   : > { %p39_p5 = scmp.eq.s32.totalorder %s38_s23, 0 }
   0xf   : > { %s2232_s25 = scalar_select %p39_p5, %s2138_s13, %s41_s24  }
  0x12   : > { %165 = sbr.rel (!%p50_p3) target bundleno = 64 (0x40), region = 24  ;;  %s167_s26 = sand.u32 (%p50_p3), 1, %s2138_s13  }
  0x13   : > { %s171_s27 = smul.u32 (%p50_p3), 3, %s2150_s16 }
  0x14   : > { %s1956_s28 = smul.u32 (%p50_p3), 384, %s167_s26 }
  0x15   : > { %s1957_s29 = smul.u32 (%p50_p3), 288, %s2154_s17 }
  0x16   : > { %s2246_s8 = scalar_lea.vmem (%p50_p3), [#allocation2], %s1956_s28 }
  0x17   : > { %s173_s30 = sadd.s32 (%p50_p3), %s1957_s29, %s171_s27 }
  0x18   : > { %s1610_s4 = sshll.u32 (%p50_p3), %s173_s30, 2 }
  0x19   : > { %s2241_s7 = scalar_lea.vmem %s2712_s0, %s1610_s4 }
  0x1a   : > { %v190_v0 = vld [vmem:[%s2241_s7] sm:$0xff]  ;;  %v194_v2 = vld [vmem:[%s2241_s7 + $0x48] sm:$0xff]  ;;  %v198_v4 = vld [vmem:[%s2241_s7 + $0x90] sm:$0xff] }
  0x1b   : > { %v192_v1 = vld [vmem:[%s2241_s7 + $0x24] sm:$0xff]  ;;  %191 = vst [vmem:[%s2246_s8] sm:$0xff] %v190_v0  ;;  %195 = vst [vmem:[%s2246_s8 + $0x18] sm:$0xff] %v194_v2  ;;  %v196_v3 = vld [vmem:[%s2241_s7 + $0x6c] sm:$0xff] }
  0x1c   : > { %193 = vst [vmem:[%s2246_s8 + $0xc] sm:$0xff] %v192_v1  ;;  %v200_v5 = vld [vmem:[%s2241_s7 + $0xb4] sm:$0xff]  ;;  %197 = vst [vmem:[%s2246_s8 + $0x24] sm:$0xff] %v196_v3  ;;  %v204_v7 = vld [vmem:[%s2241_s7 + $0xfc] sm:$0xff] }
  0x1d   : > { %199 = vst [vmem:[%s2246_s8 + $0x30] sm:$0xff] %v198_v4  ;;  %201 = vst [vmem:[%s2246_s8 + $0x3c] sm:$0xff] %v200_v5  ;;  %v202_v6 = vld [vmem:[%s2241_s7 + $0xd8] sm:$0xff]  ;;  %v206_v8 = vld [vmem:[%s2241_s7 + $0x120] sm:$0xff] }
  0x1e   : > { %203 = vst [vmem:[%s2246_s8 + $0x48] sm:$0xff] %v202_v6  ;;  %205 = vst [vmem:[%s2246_s8 + $0x54] sm:$0xff] %v204_v7  ;;  %v208_v9 = vld [vmem:[%s2241_s7 + $0x144] sm:$0xff]  ;;  %v212_v11 = vld [vmem:[%s2241_s7 + $0x18c] sm:$0xff] }
  0x1f   : > { %207 = vst [vmem:[%s2246_s8 + $0x60] sm:$0xff] %v206_v8  ;;  %v210_v10 = vld [vmem:[%s2241_s7 + $0x168] sm:$0xff]  ;;  %209 = vst [vmem:[%s2246_s8 + $0x6c] sm:$0xff] %v208_v9  ;;  %v214_v12 = vld [vmem:[%s2241_s7 + $0x1b0] sm:$0xff] }
  0x20   : > { %211 = vst [vmem:[%s2246_s8 + $0x78] sm:$0xff] %v210_v10  ;;  %213 = vst [vmem:[%s2246_s8 + $0x84] sm:$0xff] %v212_v11  ;;  %v216_v13 = vld [vmem:[%s2241_s7 + $0x1d4] sm:$0xff]  ;;  %v220_v15 = vld [vmem:[%s2241_s7 + $0x21c] sm:$0xff] }
  0x21   : > { %v218_v14 = vld [vmem:[%s2241_s7 + $0x1f8] sm:$0xff]  ;;  %215 = vst [vmem:[%s2246_s8 + $0x90] sm:$0xff] %v214_v12  ;;  %217 = vst [vmem:[%s2246_s8 + $0x9c] sm:$0xff] %v216_v13  ;;  %v222_v16 = vld [vmem:[%s2241_s7 + $0x240] sm:$0xff] }
  0x22   : > { %219 = vst [vmem:[%s2246_s8 + $0xa8] sm:$0xff] %v218_v14  ;;  %v224_v17 = vld [vmem:[%s2241_s7 + $0x264] sm:$0xff]  ;;  %221 = vst [vmem:[%s2246_s8 + $0xb4] sm:$0xff] %v220_v15  ;;  %v228_v19 = vld [vmem:[%s2241_s7 + $0x2ac] sm:$0xff] }
  0x23   : > { %223 = vst [vmem:[%s2246_s8 + $0xc0] sm:$0xff] %v222_v16  ;;  %225 = vst [vmem:[%s2246_s8 + $0xcc] sm:$0xff] %v224_v17  ;;  %v226_v18 = vld [vmem:[%s2241_s7 + $0x288] sm:$0xff]  ;;  %v230_v20 = vld [vmem:[%s2241_s7 + $0x2d0] sm:$0xff] }
  0x24   : > { %227 = vst [vmem:[%s2246_s8 + $0xd8] sm:$0xff] %v226_v18  ;;  %229 = vst [vmem:[%s2246_s8 + $0xe4] sm:$0xff] %v228_v19  ;;  %v232_v21 = vld [vmem:[%s2241_s7 + $0x2f4] sm:$0xff]  ;;  %v236_v23 = vld [vmem:[%s2241_s7 + $0x33c] sm:$0xff] }
  0x25   : > { %231 = vst [vmem:[%s2246_s8 + $0xf0] sm:$0xff] %v230_v20  ;;  %v234_v22 = vld [vmem:[%s2241_s7 + $0x318] sm:$0xff]  ;;  %233 = vst [vmem:[%s2246_s8 + $0xfc] sm:$0xff] %v232_v21  ;;  %v238_v24 = vld [vmem:[%s2241_s7 + $0x360] sm:$0xff] }
  0x26   : > { %235 = vst [vmem:[%s2246_s8 + $0x108] sm:$0xff] %v234_v22  ;;  %237 = vst [vmem:[%s2246_s8 + $0x114] sm:$0xff] %v236_v23  ;;  %v240_v25 = vld [vmem:[%s2241_s7 + $0x384] sm:$0xff]  ;;  %v244_v27 = vld [vmem:[%s2241_s7 + $0x3cc] sm:$0xff] }
  0x27   : > { %v242_v26 = vld [vmem:[%s2241_s7 + $0x3a8] sm:$0xff]  ;;  %239 = vst [vmem:[%s2246_s8 + $0x120] sm:$0xff] %v238_v24  ;;  %241 = vst [vmem:[%s2246_s8 + $0x12c] sm:$0xff] %v240_v25  ;;  %v246_v28 = vld [vmem:[%s2241_s7 + $0x3f0] sm:$0xff] }
  0x28   : > { %243 = vst [vmem:[%s2246_s8 + $0x138] sm:$0xff] %v242_v26  ;;  %v248_v29 = vld [vmem:[%s2241_s7 + $0x414] sm:$0xff]  ;;  %245 = vst [vmem:[%s2246_s8 + $0x144] sm:$0xff] %v244_v27  ;;  %v252_v31 = vld [vmem:[%s2241_s7 + $0x45c] sm:$0xff] }
  0x29   : > { %247 = vst [vmem:[%s2246_s8 + $0x150] sm:$0xff] %v246_v28  ;;  %249 = vst [vmem:[%s2246_s8 + $0x15c] sm:$0xff] %v248_v29  ;;  %v250_v30 = vld [vmem:[%s2241_s7 + $0x438] sm:$0xff]  ;;  %v1611_v32 = vld [vmem:[%s2241_s7 + $0x8] sm:$0xf] }
  0x2a   : > { %251 = vst [vmem:[%s2246_s8 + $0x168] sm:$0xff] %v250_v30  ;;  %253 = vst [vmem:[%s2246_s8 + $0x174] sm:$0xff] %v252_v31  ;;  %v1613_v33 = vld [vmem:[%s2241_s7 + $0x2c] sm:$0xf]  ;;  %v1615_v34 = vld [vmem:[%s2241_s7 + $0x50] sm:$0xf] }
  0x2b   : > { %1612 = vst [vmem:[%s2246_s8 + $0x8] sm:$0xf] %v1611_v32  ;;  %v1617_v35 = vld [vmem:[%s2241_s7 + $0x74] sm:$0xf]  ;;  %1614 = vst [vmem:[%s2246_s8 + $0x14] sm:$0xf] %v1613_v33 }
  0x2c   : > { %1616 = vst [vmem:[%s2246_s8 + $0x20] sm:$0xf] %v1615_v34  ;;  %1618 = vst [vmem:[%s2246_s8 + $0x2c] sm:$0xf] %v1617_v35  ;;  %v1619_v36 = vld [vmem:[%s2241_s7 + $0x98] sm:$0xf] }
  0x2d   : > { %v1621_v37 = vld [vmem:[%s2241_s7 + $0xbc] sm:$0xf]  ;;  %v1623_v38 = vld [vmem:[%s2241_s7 + $0xe0] sm:$0xf]  ;;  %1620 = vst [vmem:[%s2246_s8 + $0x38] sm:$0xf] %v1619_v36 }
  0x2e   : > { %1622 = vst [vmem:[%s2246_s8 + $0x44] sm:$0xf] %v1621_v37  ;;  %1624 = vst [vmem:[%s2246_s8 + $0x50] sm:$0xf] %v1623_v38  ;;  %v1625_v39 = vld [vmem:[%s2241_s7 + $0x104] sm:$0xf] }
  0x2f   : > { %v1627_v40 = vld [vmem:[%s2241_s7 + $0x128] sm:$0xf]  ;;  %v1629_v41 = vld [vmem:[%s2241_s7 + $0x14c] sm:$0xf]  ;;  %1626 = vst [vmem:[%s2246_s8 + $0x5c] sm:$0xf] %v1625_v39 }
  0x30   : > { %1628 = vst [vmem:[%s2246_s8 + $0x68] sm:$0xf] %v1627_v40  ;;  %1630 = vst [vmem:[%s2246_s8 + $0x74] sm:$0xf] %v1629_v41  ;;  %v1631_v42 = vld [vmem:[%s2241_s7 + $0x170] sm:$0xf] }
  0x31   : > { %v1633_v43 = vld [vmem:[%s2241_s7 + $0x194] sm:$0xf]  ;;  %v1635_v44 = vld [vmem:[%s2241_s7 + $0x1b8] sm:$0xf]  ;;  %1632 = vst [vmem:[%s2246_s8 + $0x80] sm:$0xf] %v1631_v42 }
  0x32   : > { %1634 = vst [vmem:[%s2246_s8 + $0x8c] sm:$0xf] %v1633_v43  ;;  %1636 = vst [vmem:[%s2246_s8 + $0x98] sm:$0xf] %v1635_v44  ;;  %v1637_v45 = vld [vmem:[%s2241_s7 + $0x1dc] sm:$0xf] }
  0x33   : > { %v1639_v46 = vld [vmem:[%s2241_s7 + $0x200] sm:$0xf]  ;;  %v1641_v47 = vld [vmem:[%s2241_s7 + $0x224] sm:$0xf]  ;;  %1638 = vst [vmem:[%s2246_s8 + $0xa4] sm:$0xf] %v1637_v45 }
  0x34   : > { %1640 = vst [vmem:[%s2246_s8 + $0xb0] sm:$0xf] %v1639_v46  ;;  %1642 = vst [vmem:[%s2246_s8 + $0xbc] sm:$0xf] %v1641_v47  ;;  %v1643_v48 = vld [vmem:[%s2241_s7 + $0x248] sm:$0xf] }
  0x35   : > { %v1645_v49 = vld [vmem:[%s2241_s7 + $0x26c] sm:$0xf]  ;;  %v1647_v50 = vld [vmem:[%s2241_s7 + $0x290] sm:$0xf]  ;;  %1644 = vst [vmem:[%s2246_s8 + $0xc8] sm:$0xf] %v1643_v48 }
  0x36   : > { %1646 = vst [vmem:[%s2246_s8 + $0xd4] sm:$0xf] %v1645_v49  ;;  %1648 = vst [vmem:[%s2246_s8 + $0xe0] sm:$0xf] %v1647_v50  ;;  %v1649_v51 = vld [vmem:[%s2241_s7 + $0x2b4] sm:$0xf] }
  0x37   : > { %v1651_v52 = vld [vmem:[%s2241_s7 + $0x2d8] sm:$0xf]  ;;  %v1653_v53 = vld [vmem:[%s2241_s7 + $0x2fc] sm:$0xf]  ;;  %1650 = vst [vmem:[%s2246_s8 + $0xec] sm:$0xf] %v1649_v51 }
  0x38   : > { %1652 = vst [vmem:[%s2246_s8 + $0xf8] sm:$0xf] %v1651_v52  ;;  %1654 = vst [vmem:[%s2246_s8 + $0x104] sm:$0xf] %v1653_v53  ;;  %v1655_v54 = vld [vmem:[%s2241_s7 + $0x320] sm:$0xf] }
  0x39   : > { %v1657_v55 = vld [vmem:[%s2241_s7 + $0x344] sm:$0xf]  ;;  %v1659_v56 = vld [vmem:[%s2241_s7 + $0x368] sm:$0xf]  ;;  %1656 = vst [vmem:[%s2246_s8 + $0x110] sm:$0xf] %v1655_v54 }
  0x3a   : > { %1658 = vst [vmem:[%s2246_s8 + $0x11c] sm:$0xf] %v1657_v55  ;;  %1660 = vst [vmem:[%s2246_s8 + $0x128] sm:$0xf] %v1659_v56  ;;  %v1661_v57 = vld [vmem:[%s2241_s7 + $0x38c] sm:$0xf] }
  0x3b   : > { %v1663_v58 = vld [vmem:[%s2241_s7 + $0x3b0] sm:$0xf]  ;;  %v1665_v59 = vld [vmem:[%s2241_s7 + $0x3d4] sm:$0xf]  ;;  %1662 = vst [vmem:[%s2246_s8 + $0x134] sm:$0xf] %v1661_v57 }
  0x3c   : > { %1664 = vst [vmem:[%s2246_s8 + $0x140] sm:$0xf] %v1663_v58  ;;  %1666 = vst [vmem:[%s2246_s8 + $0x14c] sm:$0xf] %v1665_v59  ;;  %v1667_v60 = vld [vmem:[%s2241_s7 + $0x3f8] sm:$0xf] }
  0x3d   : > { %v1669_v61 = vld [vmem:[%s2241_s7 + $0x41c] sm:$0xf]  ;;  %v1671_v62 = vld [vmem:[%s2241_s7 + $0x440] sm:$0xf]  ;;  %1668 = vst [vmem:[%s2246_s8 + $0x158] sm:$0xf] %v1667_v60 }
  0x3e   : > { %1670 = vst [vmem:[%s2246_s8 + $0x164] sm:$0xf] %v1669_v61  ;;  %1672 = vst [vmem:[%s2246_s8 + $0x170] sm:$0xf] %v1671_v62  ;;  %v1673_v63 = vld [vmem:[%s2241_s7 + $0x464] sm:$0xf] }
  0x3f   : > { %1674 = vst [vmem:[%s2246_s8 + $0x17c] sm:$0xf] %v1673_v63 }
  0x40 PF: > { %p1675_p7 = scmp.ge.s32.totalorder %s2158_s18, 1  ;;  %p341_p8 = scmp.lt.s32.totalorder %s2158_s18, 7 }
  0x42   : > { %p342_p9 = pnand %p1675_p7, %p341_p8 }
  0x43   : > { %s348_s9 = sand.u32 (!%p342_p9), 1, %s2134_s12   ;;  %s387_s10 = smul.u32 (!%p342_p9), 48, %s2142_s14 }
  0x44   : > { %345 = sbr.rel (%p342_p9) target bundleno = 452 (0x1c4), region = 54  ;;  %s1677_s21 = sshll.u32 (!%p342_p9), %s2146_s15, 5 }
  0x45   : > { %s1958_s11 = smul.u32 (!%p342_p9), 384, %s348_s9  ;;  %p388_p10 = scmp.lt.s32.totalorder (!%p342_p9), %s387_s10, 143 }
  0x46   : > { %p400_p11 = scmp.lt.s32.totalorder (!%p342_p9), %s1677_s21, 63  ;;  %p1679_p12 = scmp.ne.s32.totalorder (!%p342_p9), %s2142_s14, 0 }
  0x47   : > { %s2388_s12 = scalar_lea.vmem (!%p342_p9), [#allocation2], %s1958_s11 }
  0x4b   : > { %s2729_s10 = smov (!%p388_p10, %s387_s10), 143  ;;  %s2731_s21 = smov (!%p400_p11, %s1677_s21), 63 }
  0x4c   : > { %s1676_s22 = sshll.u32 %s2729_s10, 2  ;;  %s1678_s27 = sshll.u32 %s2731_s21, 3  ;;  %v2160_v0 = vmov (!%p1679_p12), 0.0  }
  0x4d   : > { %s2381_s26 = scalar_lea.vmem %s2713_s1, %s1676_s22  ;;  %s2386_s30 = scalar_lea.vmem %s2715_s3, %s1678_s27 }
  0x4e   : > { %412 = sbr.rel (%p1679_p12) target bundleno = 94 (0x5e), region = 62  ;;  %413 = vst [vmem:[%s2386_s30] sm:$0xff] (!%p1679_p12), %v2160_v0  ;;  %414 = vst [vmem:[%s2386_s30 + $0x8] sm:$0xff] (!%p1679_p12), %v2160_v0 }
  0x4f   : > { %415 = vst [vmem:[%s2386_s30 + $0x10] sm:$0xff] (!%p1679_p12), %v2160_v0  ;;  %416 = vst [vmem:[%s2386_s30 + $0x18] sm:$0xff] (!%p1679_p12), %v2160_v0 }
  0x50   : > { %417 = vst [vmem:[%s2386_s30 + $0x20] sm:$0xff] (!%p1679_p12), %v2160_v0  ;;  %418 = vst [vmem:[%s2386_s30 + $0x28] sm:$0xff] (!%p1679_p12), %v2160_v0 }
  0x51   : > { %419 = vst [vmem:[%s2386_s30 + $0x30] sm:$0xff] (!%p1679_p12), %v2160_v0  ;;  %420 = vst [vmem:[%s2386_s30 + $0x38] sm:$0xff] (!%p1679_p12), %v2160_v0 }
  0x52   : > { %421 = vst [vmem:[%s2386_s30 + $0x40] sm:$0xff] (!%p1679_p12), %v2160_v0  ;;  %422 = vst [vmem:[%s2386_s30 + $0x48] sm:$0xff] (!%p1679_p12), %v2160_v0 }
  0x53   : > { %423 = vst [vmem:[%s2386_s30 + $0x50] sm:$0xff] (!%p1679_p12), %v2160_v0  ;;  %424 = vst [vmem:[%s2386_s30 + $0x58] sm:$0xff] (!%p1679_p12), %v2160_v0 }
  0x54   : > { %425 = vst [vmem:[%s2386_s30 + $0x60] sm:$0xff] (!%p1679_p12), %v2160_v0  ;;  %426 = vst [vmem:[%s2386_s30 + $0x68] sm:$0xff] (!%p1679_p12), %v2160_v0 }
  0x55   : > { %427 = vst [vmem:[%s2386_s30 + $0x70] sm:$0xff] %v2160_v0  ;;  %428 = vst [vmem:[%s2386_s30 + $0x78] sm:$0xff] %v2160_v0 }
  0x56   : > { %429 = vst [vmem:[%s2386_s30 + $0x80] sm:$0xff] %v2160_v0  ;;  %430 = vst [vmem:[%s2386_s30 + $0x88] sm:$0xff] %v2160_v0 }
  0x57   : > { %431 = vst [vmem:[%s2386_s30 + $0x90] sm:$0xff] %v2160_v0  ;;  %432 = vst [vmem:[%s2386_s30 + $0x98] sm:$0xff] %v2160_v0 }
  0x58   : > { %433 = vst [vmem:[%s2386_s30 + $0xa0] sm:$0xff] %v2160_v0  ;;  %434 = vst [vmem:[%s2386_s30 + $0xa8] sm:$0xff] %v2160_v0 }
  0x59   : > { %435 = vst [vmem:[%s2386_s30 + $0xb0] sm:$0xff] %v2160_v0  ;;  %436 = vst [vmem:[%s2386_s30 + $0xb8] sm:$0xff] %v2160_v0 }
  0x5a   : > { %437 = vst [vmem:[%s2386_s30 + $0xc0] sm:$0xff] %v2160_v0  ;;  %438 = vst [vmem:[%s2386_s30 + $0xc8] sm:$0xff] %v2160_v0 }
  0x5b   : > { %439 = vst [vmem:[%s2386_s30 + $0xd0] sm:$0xff] %v2160_v0  ;;  %440 = vst [vmem:[%s2386_s30 + $0xd8] sm:$0xff] %v2160_v0 }
  0x5c   : > { %441 = vst [vmem:[%s2386_s30 + $0xe0] sm:$0xff] %v2160_v0  ;;  %442 = vst [vmem:[%s2386_s30 + $0xe8] sm:$0xff] %v2160_v0 }
  0x5d   : > { %443 = vst [vmem:[%s2386_s30 + $0xf0] sm:$0xff] %v2160_v0  ;;  %444 = vst [vmem:[%s2386_s30 + $0xf8] sm:$0xff] %v2160_v0 }
  0x5e PF: > { %v2016_v1 = vld [vmem:[%s2381_s26 + $0x40] sm:$0xff]   ;;  %v2018_v3 = vld [vmem:[%s2381_s26 + $0x48] sm:$0xff]   ;;  %v2020_v5 = vld [vmem:[%s2381_s26 + $0x50] sm:$0xff]   ;;  %p1752_p13 = scmp.ne.s32.totalorder %s2142_s14, 2 }
  0x5f   : > { %v2017_v2 = vld [vmem:[%s2381_s26] sm:$0xff]   ;;  %1756 = vmatprep.subr.bf16.mxu0 %v2016_v1  ;;  %1940 = vmatprep.subr.bf16.mxu1 %v2016_v1  ;;  %v2019_v4 = vld [vmem:[%s2381_s26 + $0x8] sm:$0xff]   ;;  %v2021_v6 = vld [vmem:[%s2381_s26 + $0x10] sm:$0xff]  }
  0x60   : > { %1757 = vmatpush3.bf16.msra.mxu0 %v2017_v2  ;;  %1948 = vmatpush3.bf16.msra.mxu1 %v2017_v2  ;;  %v2022_v7 = vld [vmem:[%s2381_s26 + $0x58] sm:$0xff]   ;;  %v2024_v9 = vld [vmem:[%s2381_s26 + $0x60] sm:$0xff]   ;;  %v2026_v11 = vld [vmem:[%s2381_s26 + $0x68] sm:$0xff]  }
  0x61   : > { %1758 = vmatprep.subr.bf16.mxu0 %v2018_v3  ;;  %1941 = vmatprep.subr.bf16.mxu1 %v2018_v3  ;;  %v2023_v8 = vld [vmem:[%s2381_s26 + $0x18] sm:$0xff]   ;;  %v2025_v10 = vld [vmem:[%s2381_s26 + $0x20] sm:$0xff]   ;;  %v2027_v14 = vld [vmem:[%s2381_s26 + $0x28] sm:$0xff]  }
  0x62   : > { %v2034_v12 = vld [vmem:[%s2388_s12 + $0x4] ss:$12 sps:$4 sm:$0xff]   ;;  %v2030_v17 = vld [vmem:[%s2381_s26 + $0x78] sm:$0xff]   ;;  %v2032_v20 = vld [vmem:[%s2388_s12] ss:$12 sps:$4 sm:$0xff]  }
  0x63   : > { %v2037_v13 = vld [vmem:[%s2388_s12 + $0x124] ss:$12 sps:$4 sm:$0xff]   ;;  %1021 = vmatprep.mubr.bf16.mxu0 %v2034_v12  ;;  %v2031_v18 = vld [vmem:[%s2381_s26 + $0x38] sm:$0xff]   ;;  %v2035_v21 = vld [vmem:[%s2388_s12 + $0x120] ss:$12 sps:$4 sm:$0xff]  }
  0x64   : > { %1759 = vmatpush3.bf16.msra.mxu0 %v2019_v4  ;;  %1949 = vmatpush3.bf16.msra.mxu1 %v2019_v4  ;;  %v2028_v15 = vld [vmem:[%s2381_s26 + $0x70] sm:$0xff]   ;;  %v2038_v19 = vld [vmem:[%s2381_s26 + $0x80] sm:$0xff]   ;;  %v2040_v22 = vld [vmem:[%s2388_s12 + $0x1c] ss:$12 sps:$4 sm:$0xff]  }
  0x65   : > { %1760 = vmatprep.subr.bf16.mxu0 %v2020_v5  ;;  %1942 = vmatprep.subr.bf16.mxu1 %v2020_v5  ;;  %v2029_v16 = vld [vmem:[%s2381_s26 + $0x30] sm:$0xff]   ;;  %v2039_v23 = vld [vmem:[%s2381_s26 + $0x88] sm:$0xff]   ;;  %v2044_v25 = vld [vmem:[%s2388_s12 + $0x18] ss:$12 sps:$4 sm:$0xff]  }
  0x66   : > { %1117 = vmatprep.mubr.bf16.mxu1 %v2037_v13  ;;  %v2042_v24 = vld [vmem:[%s2388_s12 + $0x13c] ss:$12 sps:$4 sm:$0xff]   ;;  %v2046_v26 = vld [vmem:[%s2381_s26 + $0x90] sm:$0xff]   ;;  %v2045_v27 = vld [vmem:[%s2388_s12 + $0x138] ss:$12 sps:$4 sm:$0xff]  }
  0x67   : > { %v2047_v28 = vld [vmem:[%s2381_s26 + $0x98] sm:$0xff]   ;;  %v2048_v29 = vld [vmem:[%s2388_s12 + $0x34] ss:$12 sps:$4 sm:$0xff]   ;;  %v2055_v34 = vld [vmem:[%s2381_s26 + $0xa8] sm:$0xff]  }
  0x68   : > { %1761 = vmatpush3.bf16.msra.mxu0 %v2021_v6  ;;  %1950 = vmatpush3.bf16.msra.mxu1 %v2021_v6  ;;  %v2050_v30 = vld [vmem:[%s2388_s12 + $0x154] ss:$12 sps:$4 sm:$0xff]   ;;  %v2052_v32 = vld [vmem:[%s2388_s12 + $0x30] ss:$12 sps:$4 sm:$0xff]   ;;  %v2056_v35 = vld [vmem:[%s2388_s12 + $0x4c] ss:$12 sps:$4 sm:$0xff]  }
  0x69   : > { %1762 = vmatprep.subr.bf16.mxu0 %v2022_v7  ;;  %1943 = vmatprep.subr.bf16.mxu1 %v2022_v7  ;;  %v2054_v31 = vld [vmem:[%s2381_s26 + $0xa0] sm:$0xff]   ;;  %v2053_v33 = vld [vmem:[%s2388_s12 + $0x150] ss:$12 sps:$4 sm:$0xff]   ;;  %v2058_v36 = vld [vmem:[%s2388_s12 + $0x16c] ss:$12 sps:$4 sm:$0xff]  }
  0x6a   : > { %v2062_v37 = vld [vmem:[%s2381_s26 + $0xb0] sm:$0xff]   ;;  %v2063_v41 = vld [vmem:[%s2381_s26 + $0xb8] sm:$0xff]   ;;  %v2067_v43 = vld [vmem:[%s2388_s12 + $0x60] ss:$12 sps:$4 sm:$0xff]  }
  0x6b   : > { %v2060_v38 = vld [vmem:[%s2388_s12 + $0x48] ss:$12 sps:$4 sm:$0xff]   ;;  %v2064_v40 = vld [vmem:[%s2388_s12 + $0x64] ss:$12 sps:$4 sm:$0xff]   ;;  %v2068_v44 = vld [vmem:[%s2388_s12 + $0x20] ss:$12 sps:$4 sm:$0xff]  }
  0x6c   : > { %1763 = vmatpush3.bf16.msra.mxu0 %v2023_v8  ;;  %1951 = vmatpush3.bf16.msra.mxu1 %v2023_v8  ;;  %v2061_v39 = vld [vmem:[%s2388_s12 + $0x168] ss:$12 sps:$4 sm:$0xff]   ;;  %v2071_v46 = vld [vmem:[%s2388_s12 + $0x38] ss:$12 sps:$4 sm:$0xff]   ;;  %v2073_v48 = vld [vmem:[%s2388_s12 + $0x50] ss:$12 sps:$4 sm:$0xff]  }
  0x6d   : > { %1764 = vmatprep.subr.bf16.mxu0 %v2024_v9  ;;  %1944 = vmatprep.subr.bf16.mxu1 %v2024_v9  ;;  %v2066_v42 = vld [vmem:[%s2388_s12 + $0x8] ss:$12 sps:$4 sm:$0xff]   ;;  %v2072_v47 = vld [vmem:[%s2388_s12 + $0x78] ss:$12 sps:$4 sm:$0xff]   ;;  %v2077_v51 = vld [vmem:[%s2388_s12 + $0x90] ss:$12 sps:$4 sm:$0xff]  }
  0x6e   : > { %v2069_v45 = vld [vmem:[%s2388_s12 + $0x7c] ss:$12 sps:$4 sm:$0xff]   ;;  %v2074_v49 = vld [vmem:[%s2388_s12 + $0x94] ss:$12 sps:$4 sm:$0xff]   ;;  %v2079_v53 = vld [vmem:[%s2388_s12 + $0xac] ss:$12 sps:$4 sm:$0xff]  }
  0x6f   : > { %v2076_v50 = vld [vmem:[%s2388_s12 + $0x68] ss:$12 sps:$4 sm:$0xff]   ;;  %v2078_v52 = vld [vmem:[%s2388_s12 + $0x80] ss:$12 sps:$4 sm:$0xff]   ;;  %v2081_v54 = vld [vmem:[%s2388_s12 + $0x98] ss:$12 sps:$4 sm:$0xff]  }
  0x70   : > { %1765 = vmatpush3.bf16.msra.mxu0 %v2025_v10  ;;  %1952 = vmatpush3.bf16.msra.mxu1 %v2025_v10  ;;  %v2082_v55 = vld [vmem:[%s2388_s12 + $0xa8] ss:$12 sps:$4 sm:$0xff]   ;;  %v2083_v56 = vld [vmem:[%s2388_s12 + $0xb0] ss:$12 sps:$4 sm:$0xff]   ;;  %v2087_v59 = vld [vmem:[%s2388_s12 + $0xc0] ss:$12 sps:$4 sm:$0xff]  }
  0x71   : > { %1766 = vmatprep.subr.bf16.mxu0 %v2026_v11  ;;  %1945 = vmatprep.subr.bf16.mxu1 %v2026_v11  ;;  %v2084_v57 = vld [vmem:[%s2388_s12 + $0xc4] ss:$12 sps:$4 sm:$0xff]   ;;  %v2086_v58 = vld [vmem:[%s2388_s12 + $0xc8] ss:$12 sps:$4 sm:$0xff]   ;;  %v2088_v60 = vld [vmem:[%s2388_s12 + $0xe0] ss:$12 sps:$4 sm:$0xff]  }
  0x72   : > { %v2089_v61 = vld [vmem:[%s2388_s12 + $0xdc] ss:$12 sps:$4 sm:$0xff]   ;;  %v2091_v62 = vld [vmem:[%s2388_s12 + $0xf8] ss:$12 sps:$4 sm:$0xff]   ;;  %v2094_v1 = vld [vmem:[%s2388_s12 + $0xf4] ss:$12 sps:$4 sm:$0xff]  }
  0x73   : > { %v2092_v63 = vld [vmem:[%s2388_s12 + $0xd8] ss:$12 sps:$4 sm:$0xff]   ;;  %v2093_v0 = vld [vmem:[%s2388_s12 + $0x110] ss:$12 sps:$4 sm:$0xff]   ;;  %v2096_v2 = vld [vmem:[%s2388_s12 + $0x128] ss:$12 sps:$4 sm:$0xff]  }
  0x74   : > { %1767 = vmatpush3.bf16.msra.mxu0 %v2027_v14  ;;  %1953 = vmatpush3.bf16.msra.mxu1 %v2027_v14  ;;  %v2097_v3 = vld [vmem:[%s2388_s12 + $0xf0] ss:$12 sps:$4 sm:$0xff]   ;;  %v2098_v4 = vld [vmem:[%s2388_s12 + $0x140] ss:$12 sps:$4 sm:$0xff]   ;;  %v2101_v6 = vld [vmem:[%s2388_s12 + $0x158] ss:$12 sps:$4 sm:$0xff]  }
  0x75   : > { %1768 = vmatprep.subr.bf16.mxu0 %v2028_v15  ;;  %1946 = vmatprep.subr.bf16.mxu1 %v2028_v15  ;;  %v2099_v5 = vld [vmem:[%s2388_s12 + $0x10c] ss:$12 sps:$4 sm:$0xff]   ;;  %v2102_v7 = vld [vmem:[%s2388_s12 + $0x108] ss:$12 sps:$4 sm:$0xff]   ;;  %v2103_v8 = vld [vmem:[%s2388_s12 + $0x170] ss:$12 sps:$4 sm:$0xff]  }
  0x78   : > { %1769 = vmatpush3.bf16.msra.mxu0 %v2029_v16  ;;  %1954 = vmatpush3.bf16.msra.mxu1 %v2029_v16 }
  0x79   : > { %1770 = vmatprep.subr.bf16.mxu0 %v2030_v17  ;;  %1947 = vmatprep.subr.bf16.mxu1 %v2030_v17 }
  0x7c   : > { %1771 = vmatpush3.bf16.msra.mxu0 %v2031_v18  ;;  %1955 = vmatpush3.bf16.msra.mxu1 %v2031_v18 }
  0x7d   : > { %1892 = vmatprep.subr.bf16.mxu1 %v2038_v19 }
  0x7f   : > { %1022 = vmatmul.mubr.bf16.vlgmr.msra.gmra.mrb[0].mxu0 %v2032_v20  ;;  %1118 = vmatmul.mubr.bf16.vlgmr.msra.gmra.mrb[0].mxu1 %v2035_v21 }
  0x80   : > { %1893 = vmatpush3.bf16.msra.mxu1 %v2038_v19  ;;  %1029 = vmatprep.mubr.bf16.mxu0 %v2040_v22 }
  0x81   : > { %1894 = vmatprep.subr.bf16.mxu1 %v2039_v23  ;;  %1125 = vmatprep.mubr.bf16.mxu1 %v2042_v24 }
  0x84   : > { %1895 = vmatpush3.bf16.msra.mxu1 %v2039_v23 }
  0x85   : > { %1896 = vmatprep.subr.bf16.mxu1 %v2046_v26 }
  0x87   : > { %1030 = vmatmul.mubr.bf16.gmra.mrb[4].mxu0 %v2044_v25  ;;  %1126 = vmatmul.mubr.bf16.gmra.mrb[4].mxu1 %v2045_v27 }
  0x88   : > { %1897 = vmatpush3.bf16.msra.mxu1 %v2046_v26  ;;  %1037 = vmatprep.mubr.bf16.mxu0 %v2048_v29 }
  0x89   : > { %1898 = vmatprep.subr.bf16.mxu1 %v2047_v28  ;;  %1133 = vmatprep.mubr.bf16.mxu1 %v2050_v30 }
  0x8c   : > { %1899 = vmatpush3.bf16.msra.mxu1 %v2047_v28 }
  0x8d   : > { %1900 = vmatprep.subr.bf16.mxu1 %v2054_v31 }
  0x8f   : > { %1038 = vmatmul.mubr.bf16.gmra.mrb[8].mxu0 %v2052_v32  ;;  %1134 = vmatmul.mubr.bf16.gmra.mrb[8].mxu1 %v2053_v33 }
  0x90   : > { %1901 = vmatpush3.bf16.msra.mxu1 %v2054_v31  ;;  %1045 = vmatprep.mubr.bf16.mxu0 %v2056_v35 }
  0x91   : > { %1902 = vmatprep.subr.bf16.mxu1 %v2055_v34  ;;  %1141 = vmatprep.mubr.bf16.mxu1 %v2058_v36 }
  0x94   : > { %1903 = vmatpush3.bf16.msra.mxu1 %v2055_v34 }
  0x95   : > { %1904 = vmatprep.subr.bf16.mxu1 %v2062_v37 }
  0x97   : > { %1046 = vmatmul.mubr.bf16.gmra.mrb[12].mxu0 %v2060_v38  ;;  %1142 = vmatmul.mubr.bf16.gmra.mrb[12].mxu1 %v2061_v39 }
  0x98   : > { %1905 = vmatpush3.bf16.msra.mxu1 %v2062_v37  ;;  %1053 = vmatprep.mubr.bf16.mxu0 %v2064_v40 }
  0x99   : > { %1906 = vmatprep.subr.bf16.mxu1 %v2063_v41  ;;  %1908 = vmatprep.mubr.bf16.mxu1 %v2066_v42 }
  0x9c   : > { %1907 = vmatpush3.bf16.msra.mxu1 %v2063_v41 }
  0x9f   : > { %1054 = vmatmul.mubr.bf16.gmra.mrb[16].mxu0 %v2067_v43  ;;  %1909 = vmatmul.mubr.bf16.vlgmr.msra.gmra.mrb[16].mxu1 %v2068_v44 }
  0xa0   : > { %1061 = vmatprep.mubr.bf16.mxu0 %v2069_v45  ;;  %1912 = vmatprep.mubr.bf16.mxu1 %v2071_v46 }
  0xa7   : > { %1062 = vmatmul.mubr.bf16.gmra.mrb[20].mxu0 %v2072_v47  ;;  %1913 = vmatmul.mubr.bf16.gmra.mrb[20].mxu1 %v2073_v48 }
  0xa8   : > { %1069 = vmatprep.mubr.bf16.mxu0 %v2074_v49  ;;  %1916 = vmatprep.mubr.bf16.mxu1 %v2076_v50 }
  0xaf   : > { %1070 = vmatmul.mubr.bf16.gmra.mrb[24].mxu0 %v2077_v51  ;;  %1917 = vmatmul.mubr.bf16.gmra.mrb[24].mxu1 %v2078_v52 }
  0xb0   : > { %1077 = vmatprep.mubr.bf16.mxu0 %v2079_v53  ;;  %1920 = vmatprep.mubr.bf16.mxu1 %v2081_v54 }
  0xb7   : > { %1078 = vmatmul.mubr.bf16.gmra.mrb[28].mxu0 %v2082_v55  ;;  %1921 = vmatmul.mubr.bf16.gmra.mrb[28].mxu1 %v2083_v56 }
  0xb8   : > { %1085 = vmatprep.mubr.bf16.mxu0 %v2084_v57  ;;  %1924 = vmatprep.mubr.bf16.mxu1 %v2086_v58  ;;  %v447_v58 = vld [vmem:[%s2386_s30 + $0x10] sm:$0xff] }
  0xbf   : > { %1086 = vmatmul.mubr.bf16.gmra.mrb[32].mxu0 %v2087_v59  ;;  %1925 = vmatmul.mubr.bf16.gmra.mrb[32].mxu1 %v2088_v60 }
  0xc0   : > { %1093 = vmatprep.mubr.bf16.mxu0 %v2089_v61  ;;  %1928 = vmatprep.mubr.bf16.mxu1 %v2091_v62  ;;  %v445_v62 = vld [vmem:[%s2386_s30] sm:$0xff] }
  0xc7   : > { %1094 = vmatmul.mubr.bf16.gmra.mrb[36].mxu0 %v2092_v63  ;;  %1929 = vmatmul.mubr.bf16.gmra.mrb[36].mxu1 %v2093_v0 }
  0xc8   : > { %1101 = vmatprep.mubr.bf16.mxu0 %v2094_v1  ;;  %1932 = vmatprep.mubr.bf16.mxu1 %v2096_v2 }
  0xcf   : > { %1102 = vmatmul.mubr.bf16.gmra.mrb[40].mxu0 %v2097_v3  ;;  %1933 = vmatmul.mubr.bf16.gmra.mrb[40].mxu1 %v2098_v4  ;;  %v448_v3 = vld [vmem:[%s2386_s30 + $0x18] sm:$0xff] }
  0xd0   : > { %1109 = vmatprep.mubr.bf16.mxu0 %v2099_v5  ;;  %1936 = vmatprep.mubr.bf16.mxu1 %v2101_v6 }
  0xd7   : > { %1110 = vmatmul.mubr.bf16.gmra.mrb[44].mxu0 %v2102_v7  ;;  %1937 = vmatmul.mubr.bf16.gmra.mrb[44].mxu1 %v2103_v8  ;;  %v446_v8 = vld [vmem:[%s2386_s30 + $0x8] sm:$0xff] }
 0x152   : > { %v1772_v9 = vpop.f32.mrb[0].mxu0  ;;  %v1844_v10 = vpop.f32.mrb[0].mxu1 }
 0x153   : > { %v1773_v11 = vpop.f32.mrb[1].mxu0  ;;  %v1845_v12 = vpop.f32.mrb[1].mxu1 }
 0x154   : > { %v1774_v13 = vadd.f32 %v1773_v11, %v1772_v9  ;;  %v2495_v14 = vadd.f32 %v1845_v12, %v1844_v10  ;;  %v1775_v15 = vpop.f32.mrb[2].mxu0  ;;  %v1847_v16 = vpop.f32.mrb[2].mxu1 }
 0x155   : > { %v1776_v17 = vpop.f32.mrb[3].mxu0  ;;  %v1848_v18 = vpop.f32.mrb[3].mxu1 }
 0x156   : > { %v1777_v19 = vadd.f32 %v1776_v17, %v1775_v15  ;;  %v2497_v20 = vadd.f32 %v1848_v18, %v1847_v16  ;;  %v451_v17 = vld [vmem:[%s2386_s30 + $0x30] sm:$0xff] }
 0x15a   : > { %v1778_v21 = vpop.f32.mrb[4].mxu0  ;;  %v1850_v22 = vpop.f32.mrb[4].mxu1 }
 0x15b   : > { %v1779_v23 = vpop.f32.mrb[5].mxu0  ;;  %v1851_v24 = vpop.f32.mrb[5].mxu1 }
 0x15c   : > { %v1780_v25 = vadd.f32 %v1779_v23, %v1778_v21  ;;  %v2499_v26 = vadd.f32 %v1851_v24, %v1850_v22  ;;  %v1781_v27 = vpop.f32.mrb[6].mxu0  ;;  %v1853_v28 = vpop.f32.mrb[6].mxu1  ;;  %v449_v23 = vld [vmem:[%s2386_s30 + $0x20] sm:$0xff] }
 0x15d   : > { %v1782_v29 = vpop.f32.mrb[7].mxu0  ;;  %v1854_v30 = vpop.f32.mrb[7].mxu1 }
 0x15e   : > { %v1783_v31 = vadd.f32 %v1782_v29, %v1781_v27  ;;  %v2501_v32 = vadd.f32 %v1854_v30, %v1853_v28  ;;  %v452_v28 = vld [vmem:[%s2386_s30 + $0x38] sm:$0xff] }
 0x162   : > { %v1784_v33 = vpop.f32.mrb[8].mxu0  ;;  %v1856_v34 = vpop.f32.mrb[8].mxu1 }
 0x163   : > { %v1785_v35 = vpop.f32.mrb[9].mxu0  ;;  %v1857_v36 = vpop.f32.mrb[9].mxu1 }
 0x164   : > { %v1786_v37 = vadd.f32 %v1785_v35, %v1784_v33  ;;  %v2503_v38 = vadd.f32 %v1857_v36, %v1856_v34  ;;  %v1787_v39 = vpop.f32.mrb[10].mxu0  ;;  %v1859_v40 = vpop.f32.mrb[10].mxu1  ;;  %v450_v34 = vld [vmem:[%s2386_s30 + $0x28] sm:$0xff] }
 0x165   : > { %v1788_v41 = vpop.f32.mrb[11].mxu0  ;;  %v1860_v42 = vpop.f32.mrb[11].mxu1 }
 0x166   : > { %v1789_v43 = vadd.f32 %v1788_v41, %v1787_v39  ;;  %v2505_v44 = vadd.f32 %v1860_v42, %v1859_v40 }
 0x16a   : > { %v1790_v45 = vpop.f32.mrb[12].mxu0  ;;  %v1862_v46 = vpop.f32.mrb[12].mxu1 }
 0x16b   : > { %v1791_v47 = vpop.f32.mrb[13].mxu0  ;;  %v1863_v48 = vpop.f32.mrb[13].mxu1 }
 0x16c   : > { %v1792_v49 = vadd.f32 %v1791_v47, %v1790_v45  ;;  %v2507_v50 = vadd.f32 %v1863_v48, %v1862_v46  ;;  %v1793_v51 = vpop.f32.mrb[14].mxu0  ;;  %v1865_v52 = vpop.f32.mrb[14].mxu1  ;;  %v455_v45 = vld [vmem:[%s2386_s30 + $0x50] sm:$0xff] }
 0x16d   : > { %v1794_v53 = vpop.f32.mrb[15].mxu0  ;;  %v1866_v54 = vpop.f32.mrb[15].mxu1 }
 0x16e   : > { %v1795_v55 = vadd.f32 %v1794_v53, %v1793_v51  ;;  %v2509_v56 = vadd.f32 %v1866_v54, %v1865_v52  ;;  %v456_v54 = vld [vmem:[%s2386_s30 + $0x58] sm:$0xff] }
 0x172   : > { %v1796_v57 = vpop.f32.mrb[16].mxu0  ;;  %v1910_v59 = vpop.f32.mrb[16].mxu1 }
 0x173   : > { %v1193_v60 = vadd.f32 %v1910_v59, %v1780_v25  ;;  %v1797_v61 = vpop.f32.mrb[17].mxu0  ;;  %v1184_v63 = vpop.f32.mrb[17].mxu1 }
 0x174   : > { %v1798_v0 = vadd.f32 %v1797_v61, %v1796_v57  ;;  %v1185_v1 = vadd.f32 %v1774_v13, %v1184_v63  ;;  %v1799_v2 = vpop.f32.mrb[18].mxu0  ;;  %v1911_v4 = vpop.f32.mrb[18].mxu1 }
 0x175   : > { %v1313_v5 = vadd.f32 %v1193_v60, %v447_v58  ;;  %v1196_v6 = vadd.f32 %v1911_v4, %v1783_v31  ;;  %v1800_v7 = vpop.f32.mrb[19].mxu0  ;;  %v1187_v9 = vpop.f32.mrb[19].mxu1  ;;  %v454_v60 = vld [vmem:[%s2386_s30 + $0x48] sm:$0xff] }
 0x176   : > { %v1311_v10 = vadd.f32 %v1185_v1, %v445_v62  ;;  %v1801_v11 = vadd.f32 %v1800_v7, %v1799_v2  ;;  %v1188_v12 = vadd.f32 %v1777_v19, %v1187_v9 }
 0x177   : > { %1345 = vst [vmem:[%s2386_s30 + $0x10] sm:$0xff] %v1313_v5  ;;  %v1314_v15 = vadd.f32 %v1196_v6, %v448_v3  ;;  %v457_v6 = vld [vmem:[%s2386_s30 + $0x60] sm:$0xff] }
 0x178   : > { %1343 = vst [vmem:[%s2386_s30] sm:$0xff] %v1311_v10  ;;  %v1312_v13 = vadd.f32 %v1188_v12, %v446_v8  ;;  %v459_v12 = vld [vmem:[%s2386_s30 + $0x70] sm:$0xff] }
 0x179   : > { %1346 = vst [vmem:[%s2386_s30 + $0x18] sm:$0xff] %v1314_v15 }
 0x17a   : > { %1344 = vst [vmem:[%s2386_s30 + $0x8] sm:$0xff] %v1312_v13  ;;  %v1802_v16 = vpop.f32.mrb[20].mxu0  ;;  %v1914_v18 = vpop.f32.mrb[20].mxu1  ;;  %v458_v13 = vld [vmem:[%s2386_s30 + $0x68] sm:$0xff] }
 0x17b   : > { %v1209_v21 = vadd.f32 %v1914_v18, %v1792_v49  ;;  %v1803_v22 = vpop.f32.mrb[21].mxu0  ;;  %v1200_v24 = vpop.f32.mrb[21].mxu1  ;;  %v453_v49 = vld [vmem:[%s2386_s30 + $0x40] sm:$0xff] }
 0x17c   : > { %v1804_v25 = vadd.f32 %v1803_v22, %v1802_v16  ;;  %v1201_v27 = vadd.f32 %v1786_v37, %v1200_v24  ;;  %v1805_v19 = vpop.f32.mrb[22].mxu0  ;;  %v1915_v29 = vpop.f32.mrb[22].mxu1 }
 0x17d   : > { %v1317_v30 = vadd.f32 %v1209_v21, %v451_v17  ;;  %v1212_v31 = vadd.f32 %v1915_v29, %v1795_v55  ;;  %v1806_v33 = vpop.f32.mrb[23].mxu0  ;;  %v1203_v35 = vpop.f32.mrb[23].mxu1 }
 0x17e   : > { %v1315_v36 = vadd.f32 %v1201_v27, %v449_v23  ;;  %v1807_v39 = vadd.f32 %v1806_v33, %v1805_v19  ;;  %v1204_v40 = vadd.f32 %v1789_v43, %v1203_v35  ;;  %v460_v23 = vld [vmem:[%s2386_s30 + $0x78] sm:$0xff] }
 0x17f   : > { %1349 = vst [vmem:[%s2386_s30 + $0x30] sm:$0xff] %v1317_v30  ;;  %v1318_v41 = vadd.f32 %v1212_v31, %v452_v28 }
 0x180   : > { %1347 = vst [vmem:[%s2386_s30 + $0x20] sm:$0xff] %v1315_v36  ;;  %v1316_v37 = vadd.f32 %v1204_v40, %v450_v34  ;;  %v461_v36 = vld [vmem:[%s2386_s30 + $0x80] sm:$0xff] }
 0x181   : > { %1350 = vst [vmem:[%s2386_s30 + $0x38] sm:$0xff] %v1318_v41 }
 0x182   : > { %1348 = vst [vmem:[%s2386_s30 + $0x28] sm:$0xff] %v1316_v37  ;;  %v1808_v42 = vpop.f32.mrb[24].mxu0  ;;  %v1918_v46 = vpop.f32.mrb[24].mxu1 }
 0x183   : > { %v1225_v47 = vadd.f32 %v1918_v46, %v1804_v25  ;;  %v1809_v48 = vpop.f32.mrb[25].mxu0  ;;  %v1216_v51 = vpop.f32.mrb[25].mxu1 }
 0x184   : > { %v1810_v52 = vadd.f32 %v1809_v48, %v1808_v42  ;;  %v1217_v53 = vadd.f32 %v1798_v0, %v1216_v51  ;;  %v1811_v43 = vpop.f32.mrb[26].mxu0  ;;  %v1919_v55 = vpop.f32.mrb[26].mxu1  ;;  %v462_v42 = vld [vmem:[%s2386_s30 + $0x88] sm:$0xff] }
 0x185   : > { %v1321_v57 = vadd.f32 %v1225_v47, %v455_v45  ;;  %v1228_v58 = vadd.f32 %v1919_v55, %v1807_v39  ;;  %v1812_v59 = vpop.f32.mrb[27].mxu0  ;;  %v1219_v61 = vpop.f32.mrb[27].mxu1  ;;  %v463_v55 = vld [vmem:[%s2386_s30 + $0x90] sm:$0xff] }
 0x186   : > { %v1319_v62 = vadd.f32 %v1217_v53, %v453_v49  ;;  %v1813_v63 = vadd.f32 %v1812_v59, %v1811_v43  ;;  %v1220_v1 = vadd.f32 %v1801_v11, %v1219_v61  ;;  %v464_v61 = vld [vmem:[%s2386_s30 + $0x98] sm:$0xff] }
 0x187   : > { %1353 = vst [vmem:[%s2386_s30 + $0x50] sm:$0xff] %v1321_v57  ;;  %v1322_v2 = vadd.f32 %v1228_v58, %v456_v54 }
 0x188   : > { %1351 = vst [vmem:[%s2386_s30 + $0x40] sm:$0xff] %v1319_v62  ;;  %v1320_v0 = vadd.f32 %v1220_v1, %v454_v60 }
 0x189   : > { %1354 = vst [vmem:[%s2386_s30 + $0x58] sm:$0xff] %v1322_v2 }
 0x18a   : > { %1352 = vst [vmem:[%s2386_s30 + $0x48] sm:$0xff] %v1320_v0  ;;  %v1814_v3 = vpop.f32.mrb[28].mxu0  ;;  %v1922_v4 = vpop.f32.mrb[28].mxu1  ;;  %v471_v0 = vld [vmem:[%s2386_s30 + $0xd0] sm:$0xff] }
 0x18b   : > { %v1815_v5 = vpop.f32.mrb[29].mxu0  ;;  %v1232_v7 = vpop.f32.mrb[29].mxu1 }
 0x18c   : > { %v1816_v8 = vadd.f32 %v1815_v5, %v1814_v3  ;;  %v1233_v9 = vadd.f32 %v1810_v52, %v1232_v7  ;;  %v1817_v10 = vpop.f32.mrb[30].mxu0  ;;  %v1923_v11 = vpop.f32.mrb[30].mxu1 }
 0x18d   : > { %v1818_v15 = vpop.f32.mrb[31].mxu0  ;;  %v1235_v16 = vpop.f32.mrb[31].mxu1 }
 0x18e   : > { %v1241_v17 = vadd.f32 %v1922_v4, %v1816_v8  ;;  %v1323_v18 = vadd.f32 %v1233_v9, %v457_v6  ;;  %v1819_v21 = vadd.f32 %v1818_v15, %v1817_v10  ;;  %v1236_v22 = vadd.f32 %v1813_v63, %v1235_v16  ;;  %v469_v6 = vld [vmem:[%s2386_s30 + $0xc0] sm:$0xff] }
 0x190   : > { %v1325_v24 = vadd.f32 %v1241_v17, %v459_v12  ;;  %1355 = vst [vmem:[%s2386_s30 + $0x60] sm:$0xff] %v1323_v18  ;;  %v1244_v25 = vadd.f32 %v1923_v11, %v1819_v21  ;;  %v1324_v27 = vadd.f32 %v1236_v22, %v458_v13  ;;  %v472_v11 = vld [vmem:[%s2386_s30 + $0xd8] sm:$0xff]  ;;  %v465_v13 = vld [vmem:[%s2386_s30 + $0xa0] sm:$0xff]  ;;  %v470_v17 = vld [vmem:[%s2386_s30 + $0xc8] sm:$0xff] }
 0x192   : > { %1357 = vst [vmem:[%s2386_s30 + $0x70] sm:$0xff] %v1325_v24  ;;  %v1326_v19 = vadd.f32 %v1244_v25, %v460_v23  ;;  %1356 = vst [vmem:[%s2386_s30 + $0x68] sm:$0xff] %v1324_v27  ;;  %v1820_v28 = vpop.f32.mrb[32].mxu0  ;;  %v1926_v29 = vpop.f32.mrb[32].mxu1  ;;  %v466_v25 = vld [vmem:[%s2386_s30 + $0xa8] sm:$0xff] }
 0x193   : > { %v1821_v30 = vpop.f32.mrb[33].mxu0  ;;  %v1248_v31 = vpop.f32.mrb[33].mxu1 }
 0x194   : > { %1358 = vst [vmem:[%s2386_s30 + $0x78] sm:$0xff] %v1326_v19  ;;  %v1822_v33 = vadd.f32 %v1821_v30, %v1820_v28  ;;  %v1823_v34 = vpop.f32.mrb[34].mxu0  ;;  %v1927_v35 = vpop.f32.mrb[34].mxu1  ;;  %v475_v30 = vld [vmem:[%s2386_s30 + $0xf0] sm:$0xff] }
 0x195   : > { %v1824_v39 = vpop.f32.mrb[35].mxu0  ;;  %v1251_v40 = vpop.f32.mrb[35].mxu1 }
 0x196   : > { %v1249_v41 = vadd.f32 %v1822_v33, %v1248_v31  ;;  %v1825_v37 = vadd.f32 %v1824_v39, %v1823_v34  ;;  %v473_v34 = vld [vmem:[%s2386_s30 + $0xe0] sm:$0xff] }
 0x198   : > { %v1327_v45 = vadd.f32 %v1249_v41, %v461_v36  ;;  %v1252_v46 = vadd.f32 %v1825_v37, %v1251_v40  ;;  %v476_v41 = vld [vmem:[%s2386_s30 + $0xf8] sm:$0xff] }
 0x19a   : > { %1359 = vst [vmem:[%s2386_s30 + $0x80] sm:$0xff] %v1327_v45  ;;  %v1328_v47 = vadd.f32 %v1252_v46, %v462_v42  ;;  %v1826_v48 = vpop.f32.mrb[36].mxu0  ;;  %v2546_v49 = vpop.f32.mrb[36].mxu1  ;;  %v467_v45 = vld [vmem:[%s2386_s30 + $0xb0] sm:$0xff] }
 0x19b   : > { %v1827_v51 = vpop.f32.mrb[37].mxu0  ;;  %v1264_v52 = vpop.f32.mrb[37].mxu1 }
 0x19c   : > { %1360 = vst [vmem:[%s2386_s30 + $0x88] sm:$0xff] %v1328_v47  ;;  %v1828_v53 = vadd.f32 %v1827_v51, %v1826_v48  ;;  %v1829_v43 = vpop.f32.mrb[38].mxu0  ;;  %v2549_v54 = vpop.f32.mrb[38].mxu1  ;;  %v474_v47 = vld [vmem:[%s2386_s30 + $0xe8] sm:$0xff] }
 0x19d   : > { %v1830_v57 = vpop.f32.mrb[39].mxu0  ;;  %v1267_v58 = vpop.f32.mrb[39].mxu1 }
 0x19e   : > { %v1257_v59 = vadd.f32 %v1926_v29, %v1828_v53  ;;  %v1831_v60 = vadd.f32 %v1830_v57, %v1829_v43 }
 0x1a0   : > { %v1329_v62 = vadd.f32 %v1257_v59, %v463_v55  ;;  %v1260_v63 = vadd.f32 %v1927_v35, %v1831_v60  ;;  %v468_v55 = vld [vmem:[%s2386_s30 + $0xb8] sm:$0xff] }
 0x1a2   : > { %1361 = vst [vmem:[%s2386_s30 + $0x90] sm:$0xff] %v1329_v62  ;;  %v1330_v1 = vadd.f32 %v1260_v63, %v464_v61  ;;  %v1832_v2 = vpop.f32.mrb[40].mxu0  ;;  %v1934_v3 = vpop.f32.mrb[40].mxu1  ;;  %v1381_v62 = vld [vmem:[%s2386_s30 + $0x10] sm:$0xff] (!%p1752_p13)  ;;  %v1382_v63 = vld [vmem:[%s2386_s30 + $0x18] sm:$0xff] (!%p1752_p13) }
 0x1a3   : > { %v1289_v4 = vadd.f32 %v1934_v3, %v2499_v26  ;;  %v1833_v5 = vpop.f32.mrb[41].mxu0  ;;  %v1280_v7 = vpop.f32.mrb[41].mxu1 }
 0x1a4   : > { %1362 = vst [vmem:[%s2386_s30 + $0x98] sm:$0xff] %v1330_v1  ;;  %v1834_v8 = vadd.f32 %v1833_v5, %v1832_v2  ;;  %v1281_v9 = vadd.f32 %v2495_v14, %v1280_v7  ;;  %v1835_v10 = vpop.f32.mrb[42].mxu0  ;;  %v1935_v12 = vpop.f32.mrb[42].mxu1  ;;  %v1383_v1 = vld [vmem:[%s2386_s30 + $0x20] sm:$0xff] (!%p1752_p13)  ;;  %v1385_v5 = vld [vmem:[%s2386_s30 + $0x30] sm:$0xff] (!%p1752_p13) }
 0x1a5   : > { %v1337_v15 = vadd.f32 %v1289_v4, %v471_v0  ;;  %v1292_v16 = vadd.f32 %v1935_v12, %v2501_v32  ;;  %v1836_v26 = vpop.f32.mrb[43].mxu0  ;;  %v1283_v18 = vpop.f32.mrb[43].mxu1  ;;  %v1384_v4 = vld [vmem:[%s2386_s30 + $0x28] sm:$0xff] (!%p1752_p13)  ;;  %v1389_v12 = vld [vmem:[%s2386_s30 + $0x50] sm:$0xff] (!%p1752_p13) }
 0x1a6   : > { %v1265_v21 = vadd.f32 %v1834_v8, %v1264_v52  ;;  %v1335_v22 = vadd.f32 %v1281_v9, %v469_v6  ;;  %v1837_v23 = vadd.f32 %v1836_v26, %v1835_v10  ;;  %v1284_v14 = vadd.f32 %v2497_v20, %v1283_v18  ;;  %v1386_v6 = vld [vmem:[%s2386_s30 + $0x38] sm:$0xff] (!%p1752_p13)  ;;  %v1387_v10 = vld [vmem:[%s2386_s30 + $0x40] sm:$0xff] (!%p1752_p13)  ;;  %v1392_v18 = vld [vmem:[%s2386_s30 + $0x68] sm:$0xff] (!%p1752_p13) }
 0x1a7   : > { %1369 = vst [vmem:[%s2386_s30 + $0xd0] sm:$0xff] %v1337_v15  ;;  %v1338_v24 = vadd.f32 %v1292_v16, %v472_v11  ;;  %v1388_v11 = vld [vmem:[%s2386_s30 + $0x48] sm:$0xff] (!%p1752_p13)  ;;  %v1390_v26 = vld [vmem:[%s2386_s30 + $0x58] sm:$0xff] (!%p1752_p13) }
 0x1a8   : > { %v1331_v27 = vadd.f32 %v1265_v21, %v465_v13  ;;  %1367 = vst [vmem:[%s2386_s30 + $0xc0] sm:$0xff] %v1335_v22  ;;  %v1268_v19 = vadd.f32 %v1837_v23, %v1267_v58  ;;  %v1336_v32 = vadd.f32 %v1284_v14, %v470_v17  ;;  %v1391_v17 = vld [vmem:[%s2386_s30 + $0x60] sm:$0xff] (!%p1752_p13)  ;;  %v1393_v14 = vld [vmem:[%s2386_s30 + $0x70] sm:$0xff] (!%p1752_p13) }
 0x1a9   : > { %1370 = vst [vmem:[%s2386_s30 + $0xd8] sm:$0xff] %v1338_v24  ;;  %v1394_v24 = vld [vmem:[%s2386_s30 + $0x78] sm:$0xff] (!%p1752_p13) }
 0x1aa   : > { %1363 = vst [vmem:[%s2386_s30 + $0xa0] sm:$0xff] %v1331_v27  ;;  %v1332_v28 = vadd.f32 %v1268_v19, %v466_v25  ;;  %1368 = vst [vmem:[%s2386_s30 + $0xc8] sm:$0xff] %v1336_v32  ;;  %v1838_v29 = vpop.f32.mrb[44].mxu0  ;;  %v1938_v31 = vpop.f32.mrb[44].mxu1  ;;  %v1395_v25 = vld [vmem:[%s2386_s30 + $0x80] sm:$0xff] (!%p1752_p13) }
 0x1ab   : > { %v1305_v20 = vadd.f32 %v1938_v31, %v2507_v50  ;;  %v1839_v33 = vpop.f32.mrb[45].mxu0  ;;  %v1296_v35 = vpop.f32.mrb[45].mxu1 }
 0x1ac   : > { %1364 = vst [vmem:[%s2386_s30 + $0xa8] sm:$0xff] %v1332_v28  ;;  %v1840_v36 = vadd.f32 %v1839_v33, %v1838_v29  ;;  %v1297_v39 = vadd.f32 %v2503_v38, %v1296_v35  ;;  %v1841_v40 = vpop.f32.mrb[46].mxu0  ;;  %v1939_v37 = vpop.f32.mrb[46].mxu1  ;;  %v1396_v28 = vld [vmem:[%s2386_s30 + $0x88] sm:$0xff] (!%p1752_p13)  ;;  %v1397_v29 = vld [vmem:[%s2386_s30 + $0x90] sm:$0xff] (!%p1752_p13) }
 0x1ad   : > { %v1341_v42 = vadd.f32 %v1305_v20, %v475_v30  ;;  %v1308_v46 = vadd.f32 %v1939_v37, %v2509_v56  ;;  %v1842_v50 = vpop.f32.mrb[47].mxu0  ;;  %v1299_v48 = vpop.f32.mrb[47].mxu1  ;;  %v1398_v30 = vld [vmem:[%s2386_s30 + $0x98] sm:$0xff] (!%p1752_p13) }
 0x1ae   : > { %v1273_v51 = vadd.f32 %v2546_v49, %v1840_v36  ;;  %v1339_v52 = vadd.f32 %v1297_v39, %v473_v34  ;;  %v1843_v38 = vadd.f32 %v1842_v50, %v1841_v40  ;;  %v1300_v53 = vadd.f32 %v2505_v44, %v1299_v48  ;;  %1378 = sbr.rel (%p1752_p13) target bundleno = 452 (0x1c4), region = 66  ;;  %v1379_v44 = vld [vmem:[%s2386_s30] sm:$0xff] (!%p1752_p13)  ;;  %v1405_v48 = vld [vmem:[%s2386_s30 + $0xd0] sm:$0xff] (!%p1752_p13) }
 0x1af   : > { %1373 = vst [vmem:[%s2386_s30 + $0xf0] sm:$0xff] %v1341_v42  ;;  %v1342_v43 = vadd.f32 %v1308_v46, %v476_v41  ;;  %v2594_v49 = vld [vmem:[%s2714_s2] ss:$0 sm:$0xff] (!%p1752_p13) }
 0x1b0   : > { %v1333_v57 = vadd.f32 %v1273_v51, %v467_v45  ;;  %1371 = vst [vmem:[%s2386_s30 + $0xe0] sm:$0xff] %v1339_v52  ;;  %v1276_v58 = vadd.f32 %v2549_v54, %v1843_v38  ;;  %v1340_v56 = vadd.f32 %v1300_v53, %v474_v47  ;;  %v1380_v54 = vld [vmem:[%s2386_s30 + $0x8] sm:$0xff] (!%p1752_p13)  ;;  %v1418_v60 = vadd.f32 (!%p1752_p13), %v2594_v49, %v1379_v44  ;;  %v1403_v42 = vld [vmem:[%s2386_s30 + $0xc0] sm:$0xff] (!%p1752_p13)  ;;  %v1406_v51 = vld [vmem:[%s2386_s30 + $0xd8] sm:$0xff] (!%p1752_p13) }
 0x1b1   : > { %1374 = vst [vmem:[%s2386_s30 + $0xf8] sm:$0xff] %v1342_v43  ;;  %v1419_v61 = vadd.f32 (!%p1752_p13), %v2594_v49, %v1380_v54  ;;  %v1420_v2 = vadd.f32 (!%p1752_p13), %v2594_v49, %v1381_v62  ;;  %v1421_v0 = vadd.f32 (!%p1752_p13), %v2594_v49, %v1382_v63  ;;  %v1422_v3 = vadd.f32 (!%p1752_p13), %v2594_v49, %v1383_v1  ;;  %v1399_v34 = vld [vmem:[%s2386_s30 + $0xa0] sm:$0xff] (!%p1752_p13)  ;;  %v1404_v45 = vld [vmem:[%s2386_s30 + $0xc8] sm:$0xff] (!%p1752_p13) }
 0x1b2   : > { %1365 = vst [vmem:[%s2386_s30 + $0xb0] sm:$0xff] %v1333_v57  ;;  %v1334_v59 = vadd.f32 %v1276_v58, %v468_v55  ;;  %1372 = vst [vmem:[%s2386_s30 + $0xe8] sm:$0xff] %v1340_v56  ;;  %v1423_v7 = vadd.f32 (!%p1752_p13), %v2594_v49, %v1384_v4  ;;  %v1424_v8 = vadd.f32 (!%p1752_p13), %v2594_v49, %v1385_v5 }
 0x1b3   : > { %1450 = vst [vmem:[%s2386_s30] sm:$0xff] (!%p1752_p13), %v1418_v60  ;;  %1451 = vst [vmem:[%s2386_s30 + $0x8] sm:$0xff] (!%p1752_p13), %v1419_v61  ;;  %v1425_v9 = vadd.f32 (!%p1752_p13), %v2594_v49, %v1386_v6  ;;  %v1426_v15 = vadd.f32 (!%p1752_p13), %v2594_v49, %v1387_v10  ;;  %v1427_v13 = vadd.f32 (!%p1752_p13), %v2594_v49, %v1388_v11  ;;  %v1400_v35 = vld [vmem:[%s2386_s30 + $0xa8] sm:$0xff] (!%p1752_p13) }
 0x1b4   : > { %1366 = vst [vmem:[%s2386_s30 + $0xb8] sm:$0xff] %v1334_v59  ;;  %1452 = vst [vmem:[%s2386_s30 + $0x10] sm:$0xff] (!%p1752_p13), %v1420_v2  ;;  %v1428_v16 = vadd.f32 (!%p1752_p13), %v2594_v49, %v1389_v12  ;;  %v1429_v21 = vadd.f32 (!%p1752_p13), %v2594_v49, %v1390_v26  ;;  %v1430_v22 = vadd.f32 (!%p1752_p13), %v2594_v49, %v1391_v17 }
 0x1b5   : > { %1453 = vst [vmem:[%s2386_s30 + $0x18] sm:$0xff] %v1421_v0  ;;  %1454 = vst [vmem:[%s2386_s30 + $0x20] sm:$0xff] %v1422_v3  ;;  %v1431_v23 = vadd.f32 %v2594_v49, %v1392_v18  ;;  %v1432_v27 = vadd.f32 %v2594_v49, %v1393_v14  ;;  %v1433_v19 = vadd.f32 %v2594_v49, %v1394_v24 }
 0x1b6   : > { %1455 = vst [vmem:[%s2386_s30 + $0x28] sm:$0xff] %v1423_v7  ;;  %1456 = vst [vmem:[%s2386_s30 + $0x30] sm:$0xff] %v1424_v8  ;;  %v1434_v32 = vadd.f32 %v2594_v49, %v1395_v25  ;;  %v1435_v31 = vadd.f32 %v2594_v49, %v1396_v28  ;;  %v1436_v20 = vadd.f32 %v2594_v49, %v1397_v29  ;;  %v1409_v57 = vld [vmem:[%s2386_s30 + $0xf0] sm:$0xff] }
 0x1b7   : > { %1457 = vst [vmem:[%s2386_s30 + $0x38] sm:$0xff] %v1425_v9  ;;  %1458 = vst [vmem:[%s2386_s30 + $0x40] sm:$0xff] %v1426_v15  ;;  %v1437_v33 = vadd.f32 %v2594_v49, %v1398_v30  ;;  %v1438_v39 = vadd.f32 %v2594_v49, %v1399_v34  ;;  %v1439_v40 = vadd.f32 %v2594_v49, %v1400_v35  ;;  %v1407_v52 = vld [vmem:[%s2386_s30 + $0xe0] sm:$0xff] }
 0x1b8   : > { %1459 = vst [vmem:[%s2386_s30 + $0x48] sm:$0xff] %v1427_v13  ;;  %1460 = vst [vmem:[%s2386_s30 + $0x50] sm:$0xff] %v1428_v16  ;;  %v1442_v50 = vadd.f32 %v2594_v49, %v1403_v42  ;;  %v1443_v47 = vadd.f32 %v2594_v49, %v1404_v45  ;;  %v1444_v38 = vadd.f32 %v2594_v49, %v1405_v48  ;;  %v1410_v58 = vld [vmem:[%s2386_s30 + $0xf8] sm:$0xff] }
 0x1b9   : > { %1461 = vst [vmem:[%s2386_s30 + $0x58] sm:$0xff] %v1429_v21  ;;  %1462 = vst [vmem:[%s2386_s30 + $0x60] sm:$0xff] %v1430_v22  ;;  %v1401_v36 = vld [vmem:[%s2386_s30 + $0xb0] sm:$0xff]  ;;  %v1445_v53 = vadd.f32 %v2594_v49, %v1406_v51  ;;  %v1446_v43 = vadd.f32 %v2594_v49, %v1407_v52  ;;  %v1408_v55 = vld [vmem:[%s2386_s30 + $0xe8] sm:$0xff]  ;;  %v1448_v59 = vadd.f32 %v2594_v49, %v1409_v57 }
 0x1ba   : > { %1463 = vst [vmem:[%s2386_s30 + $0x68] sm:$0xff] %v1431_v23  ;;  %1464 = vst [vmem:[%s2386_s30 + $0x70] sm:$0xff] %v1432_v27  ;;  %v1440_v41 = vadd.f32 %v2594_v49, %v1401_v36  ;;  %v1447_v56 = vadd.f32 %v2594_v49, %v1408_v55  ;;  %v1449_v44 = vadd.f32 %v2594_v49, %v1410_v58 }
 0x1bb   : > { %1465 = vst [vmem:[%s2386_s30 + $0x78] sm:$0xff] %v1433_v19  ;;  %1466 = vst [vmem:[%s2386_s30 + $0x80] sm:$0xff] %v1434_v32  ;;  %v1402_v37 = vld [vmem:[%s2386_s30 + $0xb8] sm:$0xff] }
 0x1bc   : > { %1467 = vst [vmem:[%s2386_s30 + $0x88] sm:$0xff] %v1435_v31  ;;  %1468 = vst [vmem:[%s2386_s30 + $0x90] sm:$0xff] %v1436_v20  ;;  %v1441_v46 = vadd.f32 %v2594_v49, %v1402_v37 }
 0x1bd   : > { %1469 = vst [vmem:[%s2386_s30 + $0x98] sm:$0xff] %v1437_v33  ;;  %1470 = vst [vmem:[%s2386_s30 + $0xa0] sm:$0xff] %v1438_v39 }
 0x1be   : > { %1471 = vst [vmem:[%s2386_s30 + $0xa8] sm:$0xff] %v1439_v40  ;;  %1472 = vst [vmem:[%s2386_s30 + $0xb0] sm:$0xff] %v1440_v41 }
 0x1bf   : > { %1473 = vst [vmem:[%s2386_s30 + $0xb8] sm:$0xff] %v1441_v46  ;;  %1474 = vst [vmem:[%s2386_s30 + $0xc0] sm:$0xff] %v1442_v50 }
 0x1c0   : > { %1475 = vst [vmem:[%s2386_s30 + $0xc8] sm:$0xff] %v1443_v47  ;;  %1476 = vst [vmem:[%s2386_s30 + $0xd0] sm:$0xff] %v1444_v38 }
 0x1c1   : > { %1477 = vst [vmem:[%s2386_s30 + $0xd8] sm:$0xff] %v1445_v53  ;;  %1478 = vst [vmem:[%s2386_s30 + $0xe0] sm:$0xff] %v1446_v43 }
 0x1c2   : > { %1479 = vst [vmem:[%s2386_s30 + $0xe8] sm:$0xff] %v1447_v56  ;;  %1480 = vst [vmem:[%s2386_s30 + $0xf0] sm:$0xff] %v1448_v59 }
 0x1c3   : > { %1481 = vst [vmem:[%s2386_s30 + $0xf8] sm:$0xff] %v1449_v44 }
 0x1c4 PF: > { %s13_s18 = sadd.s32 1, %s2158_s18   ;;  %s2716_s12 = smov %s2138_s13 }
 0x1c5   : > { %p10_p0 = scmp.ge.s32.totalorder %s13_s18, 8   ;;  %s2717_s13 = smov %s2232_s25 }
 0x1c6   : > { %s2718_s14 = smov %s2150_s16  ;;  %s2719_s15 = smov %s2154_s17 }
 0x1c7   : > { %s2720_s16 = smov %s2723_s19  ;;  %s2721_s17 = smov %s2727_s20 }
 0x1c8   :  { %12 = sbr.rel (!%p10_p0) target bundleno = 4 (0x4), region = 113 }

// kernel: snunet_forward.40
= control target key start
LH: loop header
LB: loop body
LE: loop exit
PB: predicated region body
PF: predicated region fallthrough
CT: control target
= control target key end

     0   :  { %s2322_s12 = smov 0   ;;  %s2324_s13 = smov 0   ;;  %s2847_s0 = inlined_call_operand.vmem [shape: bf16[512,1536], index: 0, kind: input, shape index: {}]   ;;  %s2848_s1 = inlined_call_operand.vmem [shape: bf16[1536,128], index: 1, kind: input, shape index: {}]   ;;  %s2849_s2 = inlined_call_operand.vmem [shape: f32[1,128], index: 2, kind: input, shape index: {}]   ;;  %s2850_s3 = inlined_call_operand.vmem [shape: f32[512,128], index: 3, kind: output, shape index: {}]  }
   0x1   :  { %s2326_s14 = smov 0   ;;  %s2328_s15 = smov 0  }
   0x2   :  { %s2330_s16 = smov 0   ;;  %s2332_s17 = smov 0  }
   0x3   :  { %s2334_s18 = smov 0  }
   0x4 LB: > { %s25_s19 = sadd.s32 1, %s2291_s16  ;;  %s32_s20 = sadd.s32 1, %s2295_s17  ;;  %s2299_s18 = sphi %s2334_s18, %s13_s18   ;;  %s2295_s17 = sphi %s2332_s17, %s2856_s17   ;;  %s2291_s16 = sphi %s2330_s16, %s2855_s16   ;;  %s2287_s15 = sphi %s2328_s15, %s2854_s15   ;;  %s2283_s14 = sphi %s2326_s14, %s2853_s14   ;;  %s2279_s13 = sphi %s2324_s13, %s2852_s13   ;;  %s2275_s12 = sphi %s2322_s12, %s2851_s12  }
   0x5   : > { %p26_p0 = scmp.ge.s32.totalorder %s25_s19, 3  ;;  %p48_p1 = scmp.ne.s32.totalorder %s2279_s13, %s2275_s12 }
   0x6   : > { %p49_p2 = scmp.eq.s32.totalorder %s2299_s18, 0  ;;  %s41_s24 = sadd.s32 1, %s2279_s13 }
   0x7   : > { %s2858_s19 = smov (%p26_p0, %s25_s19), 0  ;;  %s2860_s20 = smov (!%p26_p0, %s32_s20), %s2295_s17 }
   0x8   : > { %p50_p3 = por %p49_p2, %p48_p1  ;;  %p34_p4 = scmp.ge.s32.totalorder %s2860_s20, 2 }
   0x9   : > { %s37_s21 = ssub.s32 %s2291_s16, %s2858_s19  ;;  %p1722_p6 = scmp.ge.s32.totalorder %s2299_s18, 6 }
   0xa   : > { %s2862_s20 = smov (%p34_p4, %s2860_s20), 0 }
   0xb   : > { %s36_s22 = ssub.s32 %s2295_s17, %s2862_s20  ;;  %162 = sbr.rel (%p1722_p6) target bundleno = 58 (0x3a), region = 20 }
   0xc   : > { %s38_s23 = sor.u32 %s37_s21, %s36_s22 }
   0xd   : > { %p39_p5 = scmp.eq.s32.totalorder %s38_s23, 0 }
   0xf   : > { %s2373_s25 = scalar_select %p39_p5, %s2279_s13, %s41_s24  }
  0x12   : > { %165 = sbr.rel (!%p50_p3) target bundleno = 58 (0x3a), region = 24  ;;  %s167_s26 = sand.u32 (%p50_p3), 1, %s2279_s13  }
  0x13   : > { %s1725_s27 = sshll.u32 (%p50_p3), %s2291_s16, 2  ;;  %s1723_s28 = sshll.u32 (%p50_p3), %s167_s26, 9 }
  0x14   : > { %s2059_s29 = smul.u32 (%p50_p3), 384, %s2295_s17  ;;  %s2387_s8 = scalar_lea.vmem (%p50_p3), [#allocation2], %s1723_s28 }
  0x16   : > { %s173_s30 = sadd.s32 (%p50_p3), %s2059_s29, %s1725_s27 }
  0x17   : > { %s1727_s4 = sshll.u32 (%p50_p3), %s173_s30, 2 }
  0x18   : > { %s2382_s7 = scalar_lea.vmem (%p50_p3), %s2847_s0, %s1727_s4 }
  0x19   : > { %v188_v0 = vld [vmem:[%s2382_s7] sm:$0xff]  ;;  %v190_v1 = vld [vmem:[%s2382_s7 + $0x8] sm:$0xff]  ;;  %v192_v2 = vld [vmem:[%s2382_s7 + $0x30] sm:$0xff] }
  0x1a   : > { %189 = vst [vmem:[%s2387_s8] sm:$0xff] %v188_v0  ;;  %191 = vst [vmem:[%s2387_s8 + $0x8] sm:$0xff] %v190_v1  ;;  %v194_v3 = vld [vmem:[%s2382_s7 + $0x38] sm:$0xff]  ;;  %v196_v4 = vld [vmem:[%s2382_s7 + $0x60] sm:$0xff] }
  0x1b   : > { %193 = vst [vmem:[%s2387_s8 + $0x10] sm:$0xff] %v192_v2  ;;  %v198_v5 = vld [vmem:[%s2382_s7 + $0x68] sm:$0xff]  ;;  %195 = vst [vmem:[%s2387_s8 + $0x18] sm:$0xff] %v194_v3  ;;  %v200_v6 = vld [vmem:[%s2382_s7 + $0x90] sm:$0xff] }
  0x1c   : > { %197 = vst [vmem:[%s2387_s8 + $0x20] sm:$0xff] %v196_v4  ;;  %199 = vst [vmem:[%s2387_s8 + $0x28] sm:$0xff] %v198_v5  ;;  %v202_v7 = vld [vmem:[%s2382_s7 + $0x98] sm:$0xff]  ;;  %v204_v8 = vld [vmem:[%s2382_s7 + $0xc0] sm:$0xff] }
  0x1d   : > { %201 = vst [vmem:[%s2387_s8 + $0x30] sm:$0xff] %v200_v6  ;;  %203 = vst [vmem:[%s2387_s8 + $0x38] sm:$0xff] %v202_v7  ;;  %v206_v9 = vld [vmem:[%s2382_s7 + $0xc8] sm:$0xff]  ;;  %v208_v10 = vld [vmem:[%s2382_s7 + $0xf0] sm:$0xff] }
  0x1e   : > { %205 = vst [vmem:[%s2387_s8 + $0x40] sm:$0xff] %v204_v8  ;;  %v210_v11 = vld [vmem:[%s2382_s7 + $0xf8] sm:$0xff]  ;;  %207 = vst [vmem:[%s2387_s8 + $0x48] sm:$0xff] %v206_v9  ;;  %v212_v12 = vld [vmem:[%s2382_s7 + $0x120] sm:$0xff] }
  0x1f   : > { %209 = vst [vmem:[%s2387_s8 + $0x50] sm:$0xff] %v208_v10  ;;  %211 = vst [vmem:[%s2387_s8 + $0x58] sm:$0xff] %v210_v11  ;;  %v214_v13 = vld [vmem:[%s2382_s7 + $0x128] sm:$0xff]  ;;  %v216_v14 = vld [vmem:[%s2382_s7 + $0x150] sm:$0xff] }
  0x20   : > { %213 = vst [vmem:[%s2387_s8 + $0x60] sm:$0xff] %v212_v12  ;;  %215 = vst [vmem:[%s2387_s8 + $0x68] sm:$0xff] %v214_v13  ;;  %v218_v15 = vld [vmem:[%s2382_s7 + $0x158] sm:$0xff]  ;;  %v220_v16 = vld [vmem:[%s2382_s7 + $0x180] sm:$0xff] }
  0x21   : > { %217 = vst [vmem:[%s2387_s8 + $0x70] sm:$0xff] %v216_v14  ;;  %v222_v17 = vld [vmem:[%s2382_s7 + $0x188] sm:$0xff]  ;;  %219 = vst [vmem:[%s2387_s8 + $0x78] sm:$0xff] %v218_v15  ;;  %v224_v18 = vld [vmem:[%s2382_s7 + $0x1b0] sm:$0xff] }
  0x22   : > { %221 = vst [vmem:[%s2387_s8 + $0x80] sm:$0xff] %v220_v16  ;;  %223 = vst [vmem:[%s2387_s8 + $0x88] sm:$0xff] %v222_v17  ;;  %v226_v19 = vld [vmem:[%s2382_s7 + $0x1b8] sm:$0xff]  ;;  %v228_v20 = vld [vmem:[%s2382_s7 + $0x1e0] sm:$0xff] }
  0x23   : > { %225 = vst [vmem:[%s2387_s8 + $0x90] sm:$0xff] %v224_v18  ;;  %227 = vst [vmem:[%s2387_s8 + $0x98] sm:$0xff] %v226_v19  ;;  %v230_v21 = vld [vmem:[%s2382_s7 + $0x1e8] sm:$0xff]  ;;  %v232_v22 = vld [vmem:[%s2382_s7 + $0x210] sm:$0xff] }
  0x24   : > { %229 = vst [vmem:[%s2387_s8 + $0xa0] sm:$0xff] %v228_v20  ;;  %v234_v23 = vld [vmem:[%s2382_s7 + $0x218] sm:$0xff]  ;;  %231 = vst [vmem:[%s2387_s8 + $0xa8] sm:$0xff] %v230_v21  ;;  %v236_v24 = vld [vmem:[%s2382_s7 + $0x240] sm:$0xff] }
  0x25   : > { %233 = vst [vmem:[%s2387_s8 + $0xb0] sm:$0xff] %v232_v22  ;;  %235 = vst [vmem:[%s2387_s8 + $0xb8] sm:$0xff] %v234_v23  ;;  %v238_v25 = vld [vmem:[%s2382_s7 + $0x248] sm:$0xff]  ;;  %v240_v26 = vld [vmem:[%s2382_s7 + $0x270] sm:$0xff] }
  0x26   : > { %237 = vst [vmem:[%s2387_s8 + $0xc0] sm:$0xff] %v236_v24  ;;  %239 = vst [vmem:[%s2387_s8 + $0xc8] sm:$0xff] %v238_v25  ;;  %v242_v27 = vld [vmem:[%s2382_s7 + $0x278] sm:$0xff]  ;;  %v244_v28 = vld [vmem:[%s2382_s7 + $0x2a0] sm:$0xff] }
  0x27   : > { %241 = vst [vmem:[%s2387_s8 + $0xd0] sm:$0xff] %v240_v26  ;;  %v246_v29 = vld [vmem:[%s2382_s7 + $0x2a8] sm:$0xff]  ;;  %243 = vst [vmem:[%s2387_s8 + $0xd8] sm:$0xff] %v242_v27  ;;  %v248_v30 = vld [vmem:[%s2382_s7 + $0x2d0] sm:$0xff] }
  0x28   : > { %245 = vst [vmem:[%s2387_s8 + $0xe0] sm:$0xff] %v244_v28  ;;  %247 = vst [vmem:[%s2387_s8 + $0xe8] sm:$0xff] %v246_v29  ;;  %v250_v31 = vld [vmem:[%s2382_s7 + $0x2d8] sm:$0xff]  ;;  %v252_v32 = vld [vmem:[%s2382_s7 + $0x300] sm:$0xff] }
  0x29   : > { %249 = vst [vmem:[%s2387_s8 + $0xf0] sm:$0xff] %v248_v30  ;;  %251 = vst [vmem:[%s2387_s8 + $0xf8] sm:$0xff] %v250_v31  ;;  %v254_v33 = vld [vmem:[%s2382_s7 + $0x308] sm:$0xff]  ;;  %v256_v34 = vld [vmem:[%s2382_s7 + $0x330] sm:$0xff] }
  0x2a   : > { %253 = vst [vmem:[%s2387_s8 + $0x100] sm:$0xff] %v252_v32  ;;  %v258_v35 = vld [vmem:[%s2382_s7 + $0x338] sm:$0xff]  ;;  %255 = vst [vmem:[%s2387_s8 + $0x108] sm:$0xff] %v254_v33  ;;  %v260_v36 = vld [vmem:[%s2382_s7 + $0x360] sm:$0xff] }
  0x2b   : > { %257 = vst [vmem:[%s2387_s8 + $0x110] sm:$0xff] %v256_v34  ;;  %259 = vst [vmem:[%s2387_s8 + $0x118] sm:$0xff] %v258_v35  ;;  %v262_v37 = vld [vmem:[%s2382_s7 + $0x368] sm:$0xff]  ;;  %v264_v38 = vld [vmem:[%s2382_s7 + $0x390] sm:$0xff] }
  0x2c   : > { %261 = vst [vmem:[%s2387_s8 + $0x120] sm:$0xff] %v260_v36  ;;  %263 = vst [vmem:[%s2387_s8 + $0x128] sm:$0xff] %v262_v37  ;;  %v266_v39 = vld [vmem:[%s2382_s7 + $0x398] sm:$0xff]  ;;  %v268_v40 = vld [vmem:[%s2382_s7 + $0x3c0] sm:$0xff] }
  0x2d   : > { %265 = vst [vmem:[%s2387_s8 + $0x130] sm:$0xff] %v264_v38  ;;  %v270_v41 = vld [vmem:[%s2382_s7 + $0x3c8] sm:$0xff]  ;;  %267 = vst [vmem:[%s2387_s8 + $0x138] sm:$0xff] %v266_v39  ;;  %v272_v42 = vld [vmem:[%s2382_s7 + $0x3f0] sm:$0xff] }
  0x2e   : > { %269 = vst [vmem:[%s2387_s8 + $0x140] sm:$0xff] %v268_v40  ;;  %271 = vst [vmem:[%s2387_s8 + $0x148] sm:$0xff] %v270_v41  ;;  %v274_v43 = vld [vmem:[%s2382_s7 + $0x3f8] sm:$0xff]  ;;  %v276_v44 = vld [vmem:[%s2382_s7 + $0x420] sm:$0xff] }
  0x2f   : > { %273 = vst [vmem:[%s2387_s8 + $0x150] sm:$0xff] %v272_v42  ;;  %275 = vst [vmem:[%s2387_s8 + $0x158] sm:$0xff] %v274_v43  ;;  %v278_v45 = vld [vmem:[%s2382_s7 + $0x428] sm:$0xff]  ;;  %v280_v46 = vld [vmem:[%s2382_s7 + $0x450] sm:$0xff] }
  0x30   : > { %277 = vst [vmem:[%s2387_s8 + $0x160] sm:$0xff] %v276_v44  ;;  %v282_v47 = vld [vmem:[%s2382_s7 + $0x458] sm:$0xff]  ;;  %279 = vst [vmem:[%s2387_s8 + $0x168] sm:$0xff] %v278_v45  ;;  %v284_v48 = vld [vmem:[%s2382_s7 + $0x480] sm:$0xff] }
  0x31   : > { %281 = vst [vmem:[%s2387_s8 + $0x170] sm:$0xff] %v280_v46  ;;  %283 = vst [vmem:[%s2387_s8 + $0x178] sm:$0xff] %v282_v47  ;;  %v286_v49 = vld [vmem:[%s2382_s7 + $0x488] sm:$0xff]  ;;  %v288_v50 = vld [vmem:[%s2382_s7 + $0x4b0] sm:$0xff] }
  0x32   : > { %285 = vst [vmem:[%s2387_s8 + $0x180] sm:$0xff] %v284_v48  ;;  %287 = vst [vmem:[%s2387_s8 + $0x188] sm:$0xff] %v286_v49  ;;  %v290_v51 = vld [vmem:[%s2382_s7 + $0x4b8] sm:$0xff]  ;;  %v292_v52 = vld [vmem:[%s2382_s7 + $0x4e0] sm:$0xff] }
  0x33   : > { %289 = vst [vmem:[%s2387_s8 + $0x190] sm:$0xff] %v288_v50  ;;  %v294_v53 = vld [vmem:[%s2382_s7 + $0x4e8] sm:$0xff]  ;;  %291 = vst [vmem:[%s2387_s8 + $0x198] sm:$0xff] %v290_v51  ;;  %v296_v54 = vld [vmem:[%s2382_s7 + $0x510] sm:$0xff] }
  0x34   : > { %293 = vst [vmem:[%s2387_s8 + $0x1a0] sm:$0xff] %v292_v52  ;;  %295 = vst [vmem:[%s2387_s8 + $0x1a8] sm:$0xff] %v294_v53  ;;  %v298_v55 = vld [vmem:[%s2382_s7 + $0x518] sm:$0xff]  ;;  %v300_v56 = vld [vmem:[%s2382_s7 + $0x540] sm:$0xff] }
  0x35   : > { %297 = vst [vmem:[%s2387_s8 + $0x1b0] sm:$0xff] %v296_v54  ;;  %299 = vst [vmem:[%s2387_s8 + $0x1b8] sm:$0xff] %v298_v55  ;;  %v302_v57 = vld [vmem:[%s2382_s7 + $0x548] sm:$0xff]  ;;  %v304_v58 = vld [vmem:[%s2382_s7 + $0x570] sm:$0xff] }
  0x36   : > { %301 = vst [vmem:[%s2387_s8 + $0x1c0] sm:$0xff] %v300_v56  ;;  %v306_v59 = vld [vmem:[%s2382_s7 + $0x578] sm:$0xff]  ;;  %303 = vst [vmem:[%s2387_s8 + $0x1c8] sm:$0xff] %v302_v57  ;;  %v308_v60 = vld [vmem:[%s2382_s7 + $0x5a0] sm:$0xff] }
  0x37   : > { %305 = vst [vmem:[%s2387_s8 + $0x1d0] sm:$0xff] %v304_v58  ;;  %307 = vst [vmem:[%s2387_s8 + $0x1d8] sm:$0xff] %v306_v59  ;;  %v310_v61 = vld [vmem:[%s2382_s7 + $0x5a8] sm:$0xff]  ;;  %v312_v62 = vld [vmem:[%s2382_s7 + $0x5d0] sm:$0xff] }
  0x38   : > { %309 = vst [vmem:[%s2387_s8 + $0x1e0] sm:$0xff] %v308_v60  ;;  %311 = vst [vmem:[%s2387_s8 + $0x1e8] sm:$0xff] %v310_v61  ;;  %v314_v63 = vld [vmem:[%s2382_s7 + $0x5d8] sm:$0xff] }
  0x39   : > { %313 = vst [vmem:[%s2387_s8 + $0x1f0] sm:$0xff] %v312_v62  ;;  %315 = vst [vmem:[%s2387_s8 + $0x1f8] sm:$0xff] %v314_v63 }
  0x3a PF: > { %p1728_p7 = scmp.ge.s32.totalorder %s2299_s18, 1  ;;  %p332_p8 = scmp.lt.s32.totalorder %s2299_s18, 7 }
  0x3c   : > { %p333_p9 = pnand %p1728_p7, %p332_p8 }
  0x3d   : > { %s339_s9 = sand.u32 (!%p333_p9), 1, %s2275_s12   ;;  %s1730_s10 = sshll.u32 (!%p333_p9), %s2283_s14, 6 }
  0x3e   : > { %336 = sbr.rel (%p333_p9) target bundleno = 475 (0x1db), region = 51  ;;  %s1729_s11 = sshll.u32 (!%p333_p9), %s339_s9, 9 }
  0x3f   : > { %p379_p10 = scmp.lt.s32.totalorder (!%p333_p9), %s1730_s10, 191  ;;  %s1732_s21 = sshll.u32 (!%p333_p9), %s2287_s15, 5 }
  0x40   : > { %p391_p11 = scmp.lt.s32.totalorder (!%p333_p9), %s1732_s21, 63  ;;  %s2529_s12 = scalar_lea.vmem (!%p333_p9), [#allocation2], %s1729_s11 }
  0x41   : > { %p1734_p12 = scmp.ne.s32.totalorder (!%p333_p9), %s2283_s14, 0 }
  0x45   : > { %s2864_s10 = smov (!%p379_p10, %s1730_s10), 191  ;;  %s2866_s21 = smov (!%p391_p11, %s1732_s21), 63 }
  0x46   : > { %s1731_s22 = sshll.u32 %s2864_s10, 2  ;;  %s1733_s27 = sshll.u32 %s2866_s21, 3  ;;  %v2301_v0 = vmov (!%p1734_p12), 0.0  }
  0x47   : > { %s2522_s26 = scalar_lea.vmem %s2848_s1, %s1731_s22  ;;  %s2527_s30 = scalar_lea.vmem %s2850_s3, %s1733_s27 }
  0x48   : > { %403 = sbr.rel (%p1734_p12) target bundleno = 88 (0x58), region = 59  ;;  %404 = vst [vmem:[%s2527_s30] sm:$0xff] (!%p1734_p12), %v2301_v0  ;;  %405 = vst [vmem:[%s2527_s30 + $0x8] sm:$0xff] (!%p1734_p12), %v2301_v0 }
  0x49   : > { %406 = vst [vmem:[%s2527_s30 + $0x10] sm:$0xff] (!%p1734_p12), %v2301_v0  ;;  %407 = vst [vmem:[%s2527_s30 + $0x18] sm:$0xff] (!%p1734_p12), %v2301_v0 }
  0x4a   : > { %408 = vst [vmem:[%s2527_s30 + $0x20] sm:$0xff] (!%p1734_p12), %v2301_v0  ;;  %409 = vst [vmem:[%s2527_s30 + $0x28] sm:$0xff] (!%p1734_p12), %v2301_v0 }
  0x4b   : > { %410 = vst [vmem:[%s2527_s30 + $0x30] sm:$0xff] (!%p1734_p12), %v2301_v0  ;;  %411 = vst [vmem:[%s2527_s30 + $0x38] sm:$0xff] (!%p1734_p12), %v2301_v0 }
  0x4c   : > { %412 = vst [vmem:[%s2527_s30 + $0x40] sm:$0xff] (!%p1734_p12), %v2301_v0  ;;  %413 = vst [vmem:[%s2527_s30 + $0x48] sm:$0xff] (!%p1734_p12), %v2301_v0 }
  0x4d   : > { %414 = vst [vmem:[%s2527_s30 + $0x50] sm:$0xff] (!%p1734_p12), %v2301_v0  ;;  %415 = vst [vmem:[%s2527_s30 + $0x58] sm:$0xff] (!%p1734_p12), %v2301_v0 }
  0x4e   : > { %416 = vst [vmem:[%s2527_s30 + $0x60] sm:$0xff] (!%p1734_p12), %v2301_v0  ;;  %417 = vst [vmem:[%s2527_s30 + $0x68] sm:$0xff] (!%p1734_p12), %v2301_v0 }
  0x4f   : > { %418 = vst [vmem:[%s2527_s30 + $0x70] sm:$0xff] %v2301_v0  ;;  %419 = vst [vmem:[%s2527_s30 + $0x78] sm:$0xff] %v2301_v0 }
  0x50   : > { %420 = vst [vmem:[%s2527_s30 + $0x80] sm:$0xff] %v2301_v0  ;;  %421 = vst [vmem:[%s2527_s30 + $0x88] sm:$0xff] %v2301_v0 }
  0x51   : > { %422 = vst [vmem:[%s2527_s30 + $0x90] sm:$0xff] %v2301_v0  ;;  %423 = vst [vmem:[%s2527_s30 + $0x98] sm:$0xff] %v2301_v0 }
  0x52   : > { %424 = vst [vmem:[%s2527_s30 + $0xa0] sm:$0xff] %v2301_v0  ;;  %425 = vst [vmem:[%s2527_s30 + $0xa8] sm:$0xff] %v2301_v0 }
  0x53   : > { %426 = vst [vmem:[%s2527_s30 + $0xb0] sm:$0xff] %v2301_v0  ;;  %427 = vst [vmem:[%s2527_s30 + $0xb8] sm:$0xff] %v2301_v0 }
  0x54   : > { %428 = vst [vmem:[%s2527_s30 + $0xc0] sm:$0xff] %v2301_v0  ;;  %429 = vst [vmem:[%s2527_s30 + $0xc8] sm:$0xff] %v2301_v0 }
  0x55   : > { %430 = vst [vmem:[%s2527_s30 + $0xd0] sm:$0xff] %v2301_v0  ;;  %431 = vst [vmem:[%s2527_s30 + $0xd8] sm:$0xff] %v2301_v0 }
  0x56   : > { %432 = vst [vmem:[%s2527_s30 + $0xe0] sm:$0xff] %v2301_v0  ;;  %433 = vst [vmem:[%s2527_s30 + $0xe8] sm:$0xff] %v2301_v0 }
  0x57   : > { %434 = vst [vmem:[%s2527_s30 + $0xf0] sm:$0xff] %v2301_v0  ;;  %435 = vst [vmem:[%s2527_s30 + $0xf8] sm:$0xff] %v2301_v0 }
  0x58 PF: > { %v2117_v1 = vld [vmem:[%s2522_s26 + $0x40] sm:$0xff]   ;;  %v2121_v5 = vld [vmem:[%s2522_s26 + $0x48] sm:$0xff]   ;;  %v2125_v9 = vld [vmem:[%s2522_s26 + $0x50] sm:$0xff]   ;;  %p1831_p13 = scmp.ne.s32.totalorder %s2283_s14, 2 }
  0x59   : > { %v2118_v2 = vld [vmem:[%s2522_s26 + $0xc0] sm:$0xff]   ;;  %1835 = vmatprep.subr.bf16.mxu0 %v2117_v1  ;;  %v2122_v6 = vld [vmem:[%s2522_s26 + $0xc8] sm:$0xff]   ;;  %v2126_v10 = vld [vmem:[%s2522_s26 + $0xd0] sm:$0xff]  }
  0x5a   : > { %v2119_v3 = vld [vmem:[%s2522_s26] sm:$0xff]   ;;  %1947 = vmatprep.subr.bf16.mxu1 %v2118_v2  ;;  %v2123_v7 = vld [vmem:[%s2522_s26 + $0x8] sm:$0xff]   ;;  %v2127_v11 = vld [vmem:[%s2522_s26 + $0x10] sm:$0xff]  }
  0x5b   : > { %v2120_v4 = vld [vmem:[%s2522_s26 + $0x80] sm:$0xff]   ;;  %1836 = vmatpush3.bf16.msra.mxu0 %v2119_v3  ;;  %v2124_v8 = vld [vmem:[%s2522_s26 + $0x88] sm:$0xff]   ;;  %v2128_v12 = vld [vmem:[%s2522_s26 + $0x90] sm:$0xff]  }
  0x5c   : > { %1948 = vmatpush3.bf16.msra.mxu1 %v2120_v4  ;;  %1837 = vmatprep.subr.bf16.mxu0 %v2121_v5  ;;  %v2129_v13 = vld [vmem:[%s2522_s26 + $0x58] sm:$0xff]   ;;  %v2133_v17 = vld [vmem:[%s2522_s26 + $0x60] sm:$0xff]   ;;  %v2137_v21 = vld [vmem:[%s2522_s26 + $0x68] sm:$0xff]  }
  0x5d   : > { %1949 = vmatprep.subr.bf16.mxu1 %v2122_v6  ;;  %v2130_v14 = vld [vmem:[%s2522_s26 + $0xd8] sm:$0xff]   ;;  %v2134_v18 = vld [vmem:[%s2522_s26 + $0xe0] sm:$0xff]   ;;  %v2138_v22 = vld [vmem:[%s2522_s26 + $0xe8] sm:$0xff]  }
  0x5e   : > { %v2131_v15 = vld [vmem:[%s2522_s26 + $0x18] sm:$0xff]   ;;  %v2135_v19 = vld [vmem:[%s2522_s26 + $0x20] sm:$0xff]   ;;  %v2139_v23 = vld [vmem:[%s2522_s26 + $0x28] sm:$0xff]  }
  0x5f   : > { %1838 = vmatpush3.bf16.msra.mxu0 %v2123_v7  ;;  %v2132_v16 = vld [vmem:[%s2522_s26 + $0x98] sm:$0xff]   ;;  %v2136_v20 = vld [vmem:[%s2522_s26 + $0xa0] sm:$0xff]   ;;  %v2140_v24 = vld [vmem:[%s2522_s26 + $0xa8] sm:$0xff]  }
  0x60   : > { %1950 = vmatpush3.bf16.msra.mxu1 %v2124_v8  ;;  %1839 = vmatprep.subr.bf16.mxu0 %v2125_v9  ;;  %v2141_v25 = vld [vmem:[%s2522_s26 + $0x70] sm:$0xff]   ;;  %v2145_v29 = vld [vmem:[%s2522_s26 + $0x78] sm:$0xff]  }
  0x61   : > { %1951 = vmatprep.subr.bf16.mxu1 %v2126_v10  ;;  %v2142_v26 = vld [vmem:[%s2522_s26 + $0xf0] sm:$0xff]   ;;  %v2146_v30 = vld [vmem:[%s2522_s26 + $0xf8] sm:$0xff]  }
  0x62   : > { %v2143_v27 = vld [vmem:[%s2522_s26 + $0x30] sm:$0xff]   ;;  %v2147_v31 = vld [vmem:[%s2522_s26 + $0x38] sm:$0xff]  }
  0x63   : > { %1840 = vmatpush3.bf16.msra.mxu0 %v2127_v11  ;;  %v2144_v28 = vld [vmem:[%s2522_s26 + $0xb0] sm:$0xff]   ;;  %v2148_v32 = vld [vmem:[%s2522_s26 + $0xb8] sm:$0xff]  }
  0x64   : > { %1952 = vmatpush3.bf16.msra.mxu1 %v2128_v12  ;;  %1841 = vmatprep.subr.bf16.mxu0 %v2129_v13  ;;  %v2149_v33 = vld [vmem:[%s2529_s12] ss:$16 sps:$4 sm:$0xff]   ;;  %v2151_v34 = vld [vmem:[%s2529_s12 + $0x4] ss:$16 sps:$4 sm:$0xff]   ;;  %v2152_v35 = vld [vmem:[%s2529_s12 + $0x8] ss:$16 sps:$4 sm:$0xff]  }
  0x65   : > { %1953 = vmatprep.subr.bf16.mxu1 %v2130_v14  ;;  %v2154_v36 = vld [vmem:[%s2529_s12 + $0xc] ss:$16 sps:$4 sm:$0xff]   ;;  %1140 = vmatprep.mubr.bf16.mxu0 %v2151_v34  ;;  %v2155_v37 = vld [vmem:[%s2529_s12 + $0x24] ss:$16 sps:$4 sm:$0xff]   ;;  %v2159_v39 = vld [vmem:[%s2529_s12 + $0x20] ss:$16 sps:$4 sm:$0xff]  }
  0x66   : > { %1301 = vmatprep.mubr.bf16.mxu1 %v2154_v36  ;;  %v2157_v38 = vld [vmem:[%s2529_s12 + $0x2c] ss:$16 sps:$4 sm:$0xff]   ;;  %v2160_v40 = vld [vmem:[%s2529_s12 + $0x28] ss:$16 sps:$4 sm:$0xff]   ;;  %v2161_v41 = vld [vmem:[%s2529_s12 + $0x44] ss:$16 sps:$4 sm:$0xff]  }
  0x67   : > { %1842 = vmatpush3.bf16.msra.mxu0 %v2131_v15  ;;  %v2163_v42 = vld [vmem:[%s2529_s12 + $0x4c] ss:$16 sps:$4 sm:$0xff]   ;;  %v2165_v43 = vld [vmem:[%s2529_s12 + $0x40] ss:$16 sps:$4 sm:$0xff]   ;;  %v2166_v44 = vld [vmem:[%s2529_s12 + $0x48] ss:$16 sps:$4 sm:$0xff]  }
  0x68   : > { %1954 = vmatpush3.bf16.msra.mxu1 %v2132_v16  ;;  %1843 = vmatprep.subr.bf16.mxu0 %v2133_v17  ;;  %v2167_v45 = vld [vmem:[%s2529_s12 + $0x64] ss:$16 sps:$4 sm:$0xff]   ;;  %v2169_v46 = vld [vmem:[%s2529_s12 + $0x6c] ss:$16 sps:$4 sm:$0xff]   ;;  %v2171_v47 = vld [vmem:[%s2529_s12 + $0x60] ss:$16 sps:$4 sm:$0xff]  }
  0x69   : > { %1955 = vmatprep.subr.bf16.mxu1 %v2134_v18  ;;  %v2172_v48 = vld [vmem:[%s2529_s12 + $0x68] ss:$16 sps:$4 sm:$0xff]   ;;  %v2173_v49 = vld [vmem:[%s2529_s12 + $0x84] ss:$16 sps:$4 sm:$0xff]   ;;  %v2175_v50 = vld [vmem:[%s2529_s12 + $0x8c] ss:$16 sps:$4 sm:$0xff]  }
  0x6a   : > { %v2177_v51 = vld [vmem:[%s2529_s12 + $0x80] ss:$16 sps:$4 sm:$0xff]   ;;  %v2178_v52 = vld [vmem:[%s2529_s12 + $0x88] ss:$16 sps:$4 sm:$0xff]   ;;  %v2179_v53 = vld [vmem:[%s2529_s12 + $0xa4] ss:$16 sps:$4 sm:$0xff]  }
  0x6b   : > { %1844 = vmatpush3.bf16.msra.mxu0 %v2135_v19  ;;  %v2181_v54 = vld [vmem:[%s2529_s12 + $0xac] ss:$16 sps:$4 sm:$0xff]   ;;  %v2183_v55 = vld [vmem:[%s2529_s12 + $0xa0] ss:$16 sps:$4 sm:$0xff]   ;;  %v2184_v56 = vld [vmem:[%s2529_s12 + $0xa8] ss:$16 sps:$4 sm:$0xff]  }
  0x6c   : > { %1956 = vmatpush3.bf16.msra.mxu1 %v2136_v20  ;;  %1845 = vmatprep.subr.bf16.mxu0 %v2137_v21  ;;  %v2185_v57 = vld [vmem:[%s2529_s12 + $0xc4] ss:$16 sps:$4 sm:$0xff]   ;;  %v2187_v58 = vld [vmem:[%s2529_s12 + $0xcc] ss:$16 sps:$4 sm:$0xff]   ;;  %v2189_v59 = vld [vmem:[%s2529_s12 + $0xc0] ss:$16 sps:$4 sm:$0xff]  }
  0x6d   : > { %1957 = vmatprep.subr.bf16.mxu1 %v2138_v22  ;;  %v2190_v60 = vld [vmem:[%s2529_s12 + $0xc8] ss:$16 sps:$4 sm:$0xff]   ;;  %v2191_v61 = vld [vmem:[%s2529_s12 + $0xe4] ss:$16 sps:$4 sm:$0xff]   ;;  %v2193_v62 = vld [vmem:[%s2529_s12 + $0xec] ss:$16 sps:$4 sm:$0xff]  }
  0x6e   : > { %v2195_v63 = vld [vmem:[%s2529_s12 + $0xe0] ss:$16 sps:$4 sm:$0xff]   ;;  %v2196_v0 = vld [vmem:[%s2529_s12 + $0xe8] ss:$16 sps:$4 sm:$0xff]   ;;  %v2197_v1 = vld [vmem:[%s2529_s12 + $0x104] ss:$16 sps:$4 sm:$0xff]  }
  0x6f   : > { %1846 = vmatpush3.bf16.msra.mxu0 %v2139_v23  ;;  %v2199_v2 = vld [vmem:[%s2529_s12 + $0x10c] ss:$16 sps:$4 sm:$0xff]   ;;  %v2201_v3 = vld [vmem:[%s2529_s12 + $0x100] ss:$16 sps:$4 sm:$0xff]   ;;  %v2202_v4 = vld [vmem:[%s2529_s12 + $0x108] ss:$16 sps:$4 sm:$0xff]  }
  0x70   : > { %1958 = vmatpush3.bf16.msra.mxu1 %v2140_v24  ;;  %1847 = vmatprep.subr.bf16.mxu0 %v2141_v25  ;;  %v2203_v5 = vld [vmem:[%s2529_s12 + $0x124] ss:$16 sps:$4 sm:$0xff]   ;;  %v2205_v6 = vld [vmem:[%s2529_s12 + $0x12c] ss:$16 sps:$4 sm:$0xff]   ;;  %v2207_v7 = vld [vmem:[%s2529_s12 + $0x120] ss:$16 sps:$4 sm:$0xff]  }
  0x71   : > { %1959 = vmatprep.subr.bf16.mxu1 %v2142_v26  ;;  %v2208_v8 = vld [vmem:[%s2529_s12 + $0x128] ss:$16 sps:$4 sm:$0xff]   ;;  %v2209_v9 = vld [vmem:[%s2529_s12 + $0x144] ss:$16 sps:$4 sm:$0xff]   ;;  %v2211_v10 = vld [vmem:[%s2529_s12 + $0x14c] ss:$16 sps:$4 sm:$0xff]  }
  0x72   : > { %v2213_v11 = vld [vmem:[%s2529_s12 + $0x140] ss:$16 sps:$4 sm:$0xff]   ;;  %v2214_v12 = vld [vmem:[%s2529_s12 + $0x148] ss:$16 sps:$4 sm:$0xff]   ;;  %v2215_v13 = vld [vmem:[%s2529_s12 + $0x164] ss:$16 sps:$4 sm:$0xff]  }
  0x73   : > { %1848 = vmatpush3.bf16.msra.mxu0 %v2143_v27  ;;  %v2217_v14 = vld [vmem:[%s2529_s12 + $0x16c] ss:$16 sps:$4 sm:$0xff]   ;;  %v2219_v15 = vld [vmem:[%s2529_s12 + $0x160] ss:$16 sps:$4 sm:$0xff]   ;;  %v2220_v16 = vld [vmem:[%s2529_s12 + $0x168] ss:$16 sps:$4 sm:$0xff]  }
  0x74   : > { %1960 = vmatpush3.bf16.msra.mxu1 %v2144_v28  ;;  %1849 = vmatprep.subr.bf16.mxu0 %v2145_v29  ;;  %v2221_v17 = vld [vmem:[%s2529_s12 + $0x184] ss:$16 sps:$4 sm:$0xff]   ;;  %v2223_v18 = vld [vmem:[%s2529_s12 + $0x18c] ss:$16 sps:$4 sm:$0xff]   ;;  %v2225_v19 = vld [vmem:[%s2529_s12 + $0x180] ss:$16 sps:$4 sm:$0xff]  }
  0x75   : > { %1961 = vmatprep.subr.bf16.mxu1 %v2146_v30  ;;  %v2226_v20 = vld [vmem:[%s2529_s12 + $0x188] ss:$16 sps:$4 sm:$0xff]   ;;  %v2227_v21 = vld [vmem:[%s2529_s12 + $0x1a4] ss:$16 sps:$4 sm:$0xff]   ;;  %v2229_v22 = vld [vmem:[%s2529_s12 + $0x1ac] ss:$16 sps:$4 sm:$0xff]  }
  0x76   : > { %v2231_v23 = vld [vmem:[%s2529_s12 + $0x1a0] ss:$16 sps:$4 sm:$0xff]   ;;  %v2232_v24 = vld [vmem:[%s2529_s12 + $0x1a8] ss:$16 sps:$4 sm:$0xff]   ;;  %v2233_v25 = vld [vmem:[%s2529_s12 + $0x1c4] ss:$16 sps:$4 sm:$0xff]  }
  0x77   : > { %1850 = vmatpush3.bf16.msra.mxu0 %v2147_v31  ;;  %v2235_v26 = vld [vmem:[%s2529_s12 + $0x1cc] ss:$16 sps:$4 sm:$0xff]   ;;  %v2237_v27 = vld [vmem:[%s2529_s12 + $0x1c0] ss:$16 sps:$4 sm:$0xff]   ;;  %v2238_v28 = vld [vmem:[%s2529_s12 + $0x1c8] ss:$16 sps:$4 sm:$0xff]  }
  0x78   : > { %1962 = vmatpush3.bf16.msra.mxu1 %v2148_v32  ;;  %v2239_v29 = vld [vmem:[%s2529_s12 + $0x1e4] ss:$16 sps:$4 sm:$0xff]   ;;  %v2241_v30 = vld [vmem:[%s2529_s12 + $0x1ec] ss:$16 sps:$4 sm:$0xff]   ;;  %v2243_v31 = vld [vmem:[%s2529_s12 + $0x1e0] ss:$16 sps:$4 sm:$0xff]  }
  0x79   : > { %v2244_v32 = vld [vmem:[%s2529_s12 + $0x1e8] ss:$16 sps:$4 sm:$0xff]  }
  0x7a   : > { %1141 = vmatmul.mubr.bf16.vlgmr.msra.gmra.mrb[0].mxu0 %v2149_v33 }
  0x7b   : > { %1302 = vmatmul.mubr.bf16.vlgmr.msra.gmra.mrb[0].mxu1 %v2152_v35  ;;  %1148 = vmatprep.mubr.bf16.mxu0 %v2155_v37 }
  0x7c   : > { %1309 = vmatprep.mubr.bf16.mxu1 %v2157_v38 }
  0x82   : > { %1149 = vmatmul.mubr.bf16.gmra.mrb[4].mxu0 %v2159_v39 }
  0x83   : > { %1310 = vmatmul.mubr.bf16.gmra.mrb[4].mxu1 %v2160_v40  ;;  %1156 = vmatprep.mubr.bf16.mxu0 %v2161_v41 }
  0x84   : > { %1317 = vmatprep.mubr.bf16.mxu1 %v2163_v42  ;;  %v436_v42 = vld [vmem:[%s2527_s30] sm:$0xff] }
  0x8a   : > { %1157 = vmatmul.mubr.bf16.gmra.mrb[8].mxu0 %v2165_v43 }
  0x8b   : > { %1318 = vmatmul.mubr.bf16.gmra.mrb[8].mxu1 %v2166_v44  ;;  %1164 = vmatprep.mubr.bf16.mxu0 %v2167_v45 }
  0x8c   : > { %1325 = vmatprep.mubr.bf16.mxu1 %v2169_v46 }
  0x92   : > { %1165 = vmatmul.mubr.bf16.gmra.mrb[12].mxu0 %v2171_v47  ;;  %v437_v47 = vld [vmem:[%s2527_s30 + $0x8] sm:$0xff] }
  0x93   : > { %1326 = vmatmul.mubr.bf16.gmra.mrb[12].mxu1 %v2172_v48  ;;  %1172 = vmatprep.mubr.bf16.mxu0 %v2173_v49 }
  0x94   : > { %1333 = vmatprep.mubr.bf16.mxu1 %v2175_v50 }
  0x9a   : > { %1173 = vmatmul.mubr.bf16.gmra.mrb[16].mxu0 %v2177_v51 }
  0x9b   : > { %1334 = vmatmul.mubr.bf16.gmra.mrb[16].mxu1 %v2178_v52  ;;  %1180 = vmatprep.mubr.bf16.mxu0 %v2179_v53 }
  0x9c   : > { %1341 = vmatprep.mubr.bf16.mxu1 %v2181_v54 }
  0xa2   : > { %1181 = vmatmul.mubr.bf16.gmra.mrb[20].mxu0 %v2183_v55 }
  0xa3   : > { %1342 = vmatmul.mubr.bf16.gmra.mrb[20].mxu1 %v2184_v56  ;;  %1188 = vmatprep.mubr.bf16.mxu0 %v2185_v57 }
  0xa4   : > { %1349 = vmatprep.mubr.bf16.mxu1 %v2187_v58 }
  0xaa   : > { %1189 = vmatmul.mubr.bf16.gmra.mrb[24].mxu0 %v2189_v59 }
  0xab   : > { %1350 = vmatmul.mubr.bf16.gmra.mrb[24].mxu1 %v2190_v60  ;;  %1196 = vmatprep.mubr.bf16.mxu0 %v2191_v61  ;;  %v438_v60 = vld [vmem:[%s2527_s30 + $0x10] sm:$0xff] }
  0xac   : > { %1357 = vmatprep.mubr.bf16.mxu1 %v2193_v62 }
  0xb2   : > { %1197 = vmatmul.mubr.bf16.gmra.mrb[28].mxu0 %v2195_v63 }
  0xb3   : > { %1358 = vmatmul.mubr.bf16.gmra.mrb[28].mxu1 %v2196_v0  ;;  %1204 = vmatprep.mubr.bf16.mxu0 %v2197_v1  ;;  %v439_v1 = vld [vmem:[%s2527_s30 + $0x18] sm:$0xff] }
  0xb4   : > { %1365 = vmatprep.mubr.bf16.mxu1 %v2199_v2 }
  0xba   : > { %1205 = vmatmul.mubr.bf16.gmra.mrb[32].mxu0 %v2201_v3 }
  0xbb   : > { %1366 = vmatmul.mubr.bf16.gmra.mrb[32].mxu1 %v2202_v4  ;;  %1212 = vmatprep.mubr.bf16.mxu0 %v2203_v5 }
  0xbc   : > { %1373 = vmatprep.mubr.bf16.mxu1 %v2205_v6 }
  0xc2   : > { %1213 = vmatmul.mubr.bf16.gmra.mrb[36].mxu0 %v2207_v7 }
  0xc3   : > { %1374 = vmatmul.mubr.bf16.gmra.mrb[36].mxu1 %v2208_v8  ;;  %1220 = vmatprep.mubr.bf16.mxu0 %v2209_v9 }
  0xc4   : > { %1381 = vmatprep.mubr.bf16.mxu1 %v2211_v10 }
  0xca   : > { %1221 = vmatmul.mubr.bf16.gmra.mrb[40].mxu0 %v2213_v11 }
  0xcb   : > { %1382 = vmatmul.mubr.bf16.gmra.mrb[40].mxu1 %v2214_v12  ;;  %1228 = vmatprep.mubr.bf16.mxu0 %v2215_v13 }
  0xcc   : > { %1389 = vmatprep.mubr.bf16.mxu1 %v2217_v14  ;;  %v440_v14 = vld [vmem:[%s2527_s30 + $0x20] sm:$0xff] }
  0xd2   : > { %1229 = vmatmul.mubr.bf16.gmra.mrb[44].mxu0 %v2219_v15 }
  0xd3   : > { %1390 = vmatmul.mubr.bf16.gmra.mrb[44].mxu1 %v2220_v16  ;;  %1236 = vmatprep.mubr.bf16.mxu0 %v2221_v17 }
  0xd4   : > { %1397 = vmatprep.mubr.bf16.mxu1 %v2223_v18 }
  0xda   : > { %1237 = vmatmul.mubr.bf16.gmra.mrb[48].mxu0 %v2225_v19  ;;  %v441_v19 = vld [vmem:[%s2527_s30 + $0x28] sm:$0xff] }
  0xdb   : > { %1398 = vmatmul.mubr.bf16.gmra.mrb[48].mxu1 %v2226_v20  ;;  %1244 = vmatprep.mubr.bf16.mxu0 %v2227_v21 }
  0xdc   : > { %1405 = vmatprep.mubr.bf16.mxu1 %v2229_v22 }
  0xe2   : > { %1245 = vmatmul.mubr.bf16.gmra.mrb[52].mxu0 %v2231_v23 }
  0xe3   : > { %1406 = vmatmul.mubr.bf16.gmra.mrb[52].mxu1 %v2232_v24  ;;  %1252 = vmatprep.mubr.bf16.mxu0 %v2233_v25 }
  0xe4   : > { %1413 = vmatprep.mubr.bf16.mxu1 %v2235_v26 }
  0xea   : > { %1253 = vmatmul.mubr.bf16.gmra.mrb[56].mxu0 %v2237_v27 }
  0xeb   : > { %1414 = vmatmul.mubr.bf16.gmra.mrb[56].mxu1 %v2238_v28  ;;  %1260 = vmatprep.mubr.bf16.mxu0 %v2239_v29 }
  0xec   : > { %1421 = vmatprep.mubr.bf16.mxu1 %v2241_v30 }
  0xf2   : > { %1261 = vmatmul.mubr.bf16.gmra.mrb[60].mxu0 %v2243_v31 }
  0xf3   : > { %1422 = vmatmul.mubr.bf16.gmra.mrb[60].mxu1 %v2244_v32  ;;  %v442_v32 = vld [vmem:[%s2527_s30 + $0x30] sm:$0xff] }
 0x14d   : > { %v1851_v33 = vpop.f32.mrb[0].mxu0 }
 0x14e   : > { %v1963_v34 = vpop.f32.mrb[0].mxu1  ;;  %v1852_v35 = vpop.f32.mrb[1].mxu0 }
 0x14f   : > { %v1853_v36 = vadd.f32 %v1852_v35, %v1851_v33  ;;  %v1964_v37 = vpop.f32.mrb[1].mxu1  ;;  %v1854_v38 = vpop.f32.mrb[2].mxu0 }
 0x150   : > { %v1965_v39 = vadd.f32 %v1964_v37, %v1963_v34  ;;  %v1966_v40 = vpop.f32.mrb[2].mxu1  ;;  %v1855_v41 = vpop.f32.mrb[3].mxu0  ;;  %v443_v37 = vld [vmem:[%s2527_s30 + $0x38] sm:$0xff] }
 0x151   : > { %v1856_v43 = vadd.f32 %v1855_v41, %v1854_v38  ;;  %v1967_v44 = vpop.f32.mrb[3].mxu1 }
 0x152   : > { %v1304_v45 = vadd.f32 %v1965_v39, %v1853_v36  ;;  %v1968_v46 = vadd.f32 %v1967_v44, %v1966_v40 }
 0x154   : > { %v1430_v48 = vadd.f32 %v1304_v45, %v436_v42  ;;  %v1307_v49 = vadd.f32 %v1968_v46, %v1856_v43 }
 0x155   : > { %v1857_v50 = vpop.f32.mrb[4].mxu0 }
 0x156   : > { %1462 = vst [vmem:[%s2527_s30] sm:$0xff] %v1430_v48  ;;  %v1431_v51 = vadd.f32 %v1307_v49, %v437_v47  ;;  %v1969_v52 = vpop.f32.mrb[4].mxu1  ;;  %v1858_v53 = vpop.f32.mrb[5].mxu0 }
 0x157   : > { %v1859_v54 = vadd.f32 %v1858_v53, %v1857_v50  ;;  %v1970_v55 = vpop.f32.mrb[5].mxu1  ;;  %v1860_v56 = vpop.f32.mrb[6].mxu0  ;;  %v444_v50 = vld [vmem:[%s2527_s30 + $0x40] sm:$0xff] }
 0x158   : > { %1463 = vst [vmem:[%s2527_s30 + $0x8] sm:$0xff] %v1431_v51  ;;  %v1971_v57 = vadd.f32 %v1970_v55, %v1969_v52  ;;  %v1972_v58 = vpop.f32.mrb[6].mxu1  ;;  %v1861_v59 = vpop.f32.mrb[7].mxu0  ;;  %v445_v55 = vld [vmem:[%s2527_s30 + $0x48] sm:$0xff] }
 0x159   : > { %v1862_v61 = vadd.f32 %v1861_v59, %v1860_v56  ;;  %v1973_v62 = vpop.f32.mrb[7].mxu1 }
 0x15a   : > { %v1312_v63 = vadd.f32 %v1971_v57, %v1859_v54  ;;  %v1974_v0 = vadd.f32 %v1973_v62, %v1972_v58 }
 0x15c   : > { %v1432_v2 = vadd.f32 %v1312_v63, %v438_v60  ;;  %v1315_v3 = vadd.f32 %v1974_v0, %v1862_v61 }
 0x15d   : > { %v1863_v4 = vpop.f32.mrb[8].mxu0 }
 0x15e   : > { %1464 = vst [vmem:[%s2527_s30 + $0x10] sm:$0xff] %v1432_v2  ;;  %v1433_v5 = vadd.f32 %v1315_v3, %v439_v1  ;;  %v1975_v6 = vpop.f32.mrb[8].mxu1  ;;  %v1864_v7 = vpop.f32.mrb[9].mxu0 }
 0x15f   : > { %v1865_v8 = vadd.f32 %v1864_v7, %v1863_v4  ;;  %v1976_v9 = vpop.f32.mrb[9].mxu1  ;;  %v1866_v10 = vpop.f32.mrb[10].mxu0  ;;  %v446_v4 = vld [vmem:[%s2527_s30 + $0x50] sm:$0xff] }
 0x160   : > { %1465 = vst [vmem:[%s2527_s30 + $0x18] sm:$0xff] %v1433_v5  ;;  %v1977_v11 = vadd.f32 %v1976_v9, %v1975_v6  ;;  %v1978_v12 = vpop.f32.mrb[10].mxu1  ;;  %v1867_v13 = vpop.f32.mrb[11].mxu0  ;;  %v447_v9 = vld [vmem:[%s2527_s30 + $0x58] sm:$0xff] }
 0x161   : > { %v1868_v15 = vadd.f32 %v1867_v13, %v1866_v10  ;;  %v1979_v16 = vpop.f32.mrb[11].mxu1 }
 0x162   : > { %v1320_v17 = vadd.f32 %v1977_v11, %v1865_v8  ;;  %v1980_v18 = vadd.f32 %v1979_v16, %v1978_v12 }
 0x164   : > { %v1434_v20 = vadd.f32 %v1320_v17, %v440_v14  ;;  %v1323_v21 = vadd.f32 %v1980_v18, %v1868_v15 }
 0x165   : > { %v1869_v22 = vpop.f32.mrb[12].mxu0 }
 0x166   : > { %1466 = vst [vmem:[%s2527_s30 + $0x20] sm:$0xff] %v1434_v20  ;;  %v1435_v23 = vadd.f32 %v1323_v21, %v441_v19  ;;  %v1981_v24 = vpop.f32.mrb[12].mxu1  ;;  %v1870_v25 = vpop.f32.mrb[13].mxu0 }
 0x167   : > { %v1871_v26 = vadd.f32 %v1870_v25, %v1869_v22  ;;  %v1982_v27 = vpop.f32.mrb[13].mxu1  ;;  %v1872_v28 = vpop.f32.mrb[14].mxu0  ;;  %v448_v22 = vld [vmem:[%s2527_s30 + $0x60] sm:$0xff] }
 0x168   : > { %1467 = vst [vmem:[%s2527_s30 + $0x28] sm:$0xff] %v1435_v23  ;;  %v1983_v29 = vadd.f32 %v1982_v27, %v1981_v24  ;;  %v1984_v30 = vpop.f32.mrb[14].mxu1  ;;  %v1873_v31 = vpop.f32.mrb[15].mxu0  ;;  %v449_v27 = vld [vmem:[%s2527_s30 + $0x68] sm:$0xff] }
 0x169   : > { %v1874_v33 = vadd.f32 %v1873_v31, %v1872_v28  ;;  %v1985_v34 = vpop.f32.mrb[15].mxu1 }
 0x16a   : > { %v1328_v35 = vadd.f32 %v1983_v29, %v1871_v26  ;;  %v1986_v36 = vadd.f32 %v1985_v34, %v1984_v30 }
 0x16c   : > { %v1436_v38 = vadd.f32 %v1328_v35, %v442_v32  ;;  %v1331_v39 = vadd.f32 %v1986_v36, %v1874_v33 }
 0x16d   : > { %v1875_v40 = vpop.f32.mrb[16].mxu0 }
 0x16e   : > { %1468 = vst [vmem:[%s2527_s30 + $0x30] sm:$0xff] %v1436_v38  ;;  %v1437_v41 = vadd.f32 %v1331_v39, %v443_v37  ;;  %v1987_v42 = vpop.f32.mrb[16].mxu1  ;;  %v1876_v43 = vpop.f32.mrb[17].mxu0 }
 0x16f   : > { %v1877_v44 = vadd.f32 %v1876_v43, %v1875_v40  ;;  %v1988_v45 = vpop.f32.mrb[17].mxu1  ;;  %v1878_v46 = vpop.f32.mrb[18].mxu0  ;;  %v450_v40 = vld [vmem:[%s2527_s30 + $0x70] sm:$0xff] }
 0x170   : > { %1469 = vst [vmem:[%s2527_s30 + $0x38] sm:$0xff] %v1437_v41  ;;  %v1989_v47 = vadd.f32 %v1988_v45, %v1987_v42  ;;  %v1990_v48 = vpop.f32.mrb[18].mxu1  ;;  %v1879_v49 = vpop.f32.mrb[19].mxu0  ;;  %v451_v45 = vld [vmem:[%s2527_s30 + $0x78] sm:$0xff] }
 0x171   : > { %v1880_v51 = vadd.f32 %v1879_v49, %v1878_v46  ;;  %v1991_v52 = vpop.f32.mrb[19].mxu1 }
 0x172   : > { %v1336_v53 = vadd.f32 %v1989_v47, %v1877_v44  ;;  %v1992_v54 = vadd.f32 %v1991_v52, %v1990_v48 }
 0x174   : > { %v1438_v56 = vadd.f32 %v1336_v53, %v444_v50  ;;  %v1339_v57 = vadd.f32 %v1992_v54, %v1880_v51 }
 0x175   : > { %v1881_v58 = vpop.f32.mrb[20].mxu0 }
 0x176   : > { %1470 = vst [vmem:[%s2527_s30 + $0x40] sm:$0xff] %v1438_v56  ;;  %v1439_v59 = vadd.f32 %v1339_v57, %v445_v55  ;;  %v1993_v60 = vpop.f32.mrb[20].mxu1  ;;  %v1882_v61 = vpop.f32.mrb[21].mxu0 }
 0x177   : > { %v1883_v62 = vadd.f32 %v1882_v61, %v1881_v58  ;;  %v1994_v63 = vpop.f32.mrb[21].mxu1  ;;  %v1884_v0 = vpop.f32.mrb[22].mxu0  ;;  %v452_v58 = vld [vmem:[%s2527_s30 + $0x80] sm:$0xff] }
 0x178   : > { %1471 = vst [vmem:[%s2527_s30 + $0x48] sm:$0xff] %v1439_v59  ;;  %v1995_v1 = vadd.f32 %v1994_v63, %v1993_v60  ;;  %v1996_v2 = vpop.f32.mrb[22].mxu1  ;;  %v1885_v3 = vpop.f32.mrb[23].mxu0  ;;  %v453_v63 = vld [vmem:[%s2527_s30 + $0x88] sm:$0xff] }
 0x179   : > { %v1886_v5 = vadd.f32 %v1885_v3, %v1884_v0  ;;  %v1997_v6 = vpop.f32.mrb[23].mxu1 }
 0x17a   : > { %v1344_v7 = vadd.f32 %v1995_v1, %v1883_v62  ;;  %v1998_v8 = vadd.f32 %v1997_v6, %v1996_v2 }
 0x17c   : > { %v1440_v10 = vadd.f32 %v1344_v7, %v446_v4  ;;  %v1347_v11 = vadd.f32 %v1998_v8, %v1886_v5 }
 0x17d   : > { %v1887_v12 = vpop.f32.mrb[24].mxu0 }
 0x17e   : > { %1472 = vst [vmem:[%s2527_s30 + $0x50] sm:$0xff] %v1440_v10  ;;  %v1441_v13 = vadd.f32 %v1347_v11, %v447_v9  ;;  %v1999_v14 = vpop.f32.mrb[24].mxu1  ;;  %v1888_v15 = vpop.f32.mrb[25].mxu0 }
 0x17f   : > { %v1889_v16 = vadd.f32 %v1888_v15, %v1887_v12  ;;  %v2000_v17 = vpop.f32.mrb[25].mxu1  ;;  %v1890_v18 = vpop.f32.mrb[26].mxu0  ;;  %v454_v12 = vld [vmem:[%s2527_s30 + $0x90] sm:$0xff] }
 0x180   : > { %1473 = vst [vmem:[%s2527_s30 + $0x58] sm:$0xff] %v1441_v13  ;;  %v2001_v19 = vadd.f32 %v2000_v17, %v1999_v14  ;;  %v2002_v20 = vpop.f32.mrb[26].mxu1  ;;  %v1891_v21 = vpop.f32.mrb[27].mxu0  ;;  %v455_v17 = vld [vmem:[%s2527_s30 + $0x98] sm:$0xff] }
 0x181   : > { %v1892_v23 = vadd.f32 %v1891_v21, %v1890_v18  ;;  %v2003_v24 = vpop.f32.mrb[27].mxu1 }
 0x182   : > { %v1352_v25 = vadd.f32 %v2001_v19, %v1889_v16  ;;  %v2004_v26 = vadd.f32 %v2003_v24, %v2002_v20 }
 0x184   : > { %v1442_v28 = vadd.f32 %v1352_v25, %v448_v22  ;;  %v1355_v29 = vadd.f32 %v2004_v26, %v1892_v23 }
 0x185   : > { %v1893_v30 = vpop.f32.mrb[28].mxu0 }
 0x186   : > { %1474 = vst [vmem:[%s2527_s30 + $0x60] sm:$0xff] %v1442_v28  ;;  %v1443_v31 = vadd.f32 %v1355_v29, %v449_v27  ;;  %v2005_v32 = vpop.f32.mrb[28].mxu1  ;;  %v1894_v33 = vpop.f32.mrb[29].mxu0 }
 0x187   : > { %v1895_v34 = vadd.f32 %v1894_v33, %v1893_v30  ;;  %v2006_v35 = vpop.f32.mrb[29].mxu1  ;;  %v1896_v36 = vpop.f32.mrb[30].mxu0  ;;  %v456_v30 = vld [vmem:[%s2527_s30 + $0xa0] sm:$0xff] }
 0x188   : > { %1475 = vst [vmem:[%s2527_s30 + $0x68] sm:$0xff] %v1443_v31  ;;  %v2007_v37 = vadd.f32 %v2006_v35, %v2005_v32  ;;  %v2008_v38 = vpop.f32.mrb[30].mxu1  ;;  %v1897_v39 = vpop.f32.mrb[31].mxu0  ;;  %v457_v35 = vld [vmem:[%s2527_s30 + $0xa8] sm:$0xff] }
 0x189   : > { %v1898_v41 = vadd.f32 %v1897_v39, %v1896_v36  ;;  %v2009_v42 = vpop.f32.mrb[31].mxu1 }
 0x18a   : > { %v1360_v43 = vadd.f32 %v2007_v37, %v1895_v34  ;;  %v2010_v44 = vadd.f32 %v2009_v42, %v2008_v38 }
 0x18c   : > { %v1444_v46 = vadd.f32 %v1360_v43, %v450_v40  ;;  %v1363_v47 = vadd.f32 %v2010_v44, %v1898_v41 }
 0x18d   : > { %v1899_v48 = vpop.f32.mrb[32].mxu0 }
 0x18e   : > { %1476 = vst [vmem:[%s2527_s30 + $0x70] sm:$0xff] %v1444_v46  ;;  %v1445_v49 = vadd.f32 %v1363_v47, %v451_v45  ;;  %v2011_v50 = vpop.f32.mrb[32].mxu1  ;;  %v1900_v51 = vpop.f32.mrb[33].mxu0 }
 0x18f   : > { %v1901_v52 = vadd.f32 %v1900_v51, %v1899_v48  ;;  %v2012_v53 = vpop.f32.mrb[33].mxu1  ;;  %v1902_v54 = vpop.f32.mrb[34].mxu0  ;;  %v458_v48 = vld [vmem:[%s2527_s30 + $0xb0] sm:$0xff] }
 0x190   : > { %1477 = vst [vmem:[%s2527_s30 + $0x78] sm:$0xff] %v1445_v49  ;;  %v2013_v55 = vadd.f32 %v2012_v53, %v2011_v50  ;;  %v2014_v56 = vpop.f32.mrb[34].mxu1  ;;  %v1903_v57 = vpop.f32.mrb[35].mxu0  ;;  %v459_v53 = vld [vmem:[%s2527_s30 + $0xb8] sm:$0xff] }
 0x191   : > { %v1904_v59 = vadd.f32 %v1903_v57, %v1902_v54  ;;  %v2015_v60 = vpop.f32.mrb[35].mxu1 }
 0x192   : > { %v1368_v61 = vadd.f32 %v2013_v55, %v1901_v52  ;;  %v2016_v62 = vadd.f32 %v2015_v60, %v2014_v56 }
 0x194   : > { %v1446_v0 = vadd.f32 %v1368_v61, %v452_v58  ;;  %v1371_v1 = vadd.f32 %v2016_v62, %v1904_v59 }
 0x195   : > { %v1905_v2 = vpop.f32.mrb[36].mxu0 }
 0x196   : > { %1478 = vst [vmem:[%s2527_s30 + $0x80] sm:$0xff] %v1446_v0  ;;  %v1447_v3 = vadd.f32 %v1371_v1, %v453_v63  ;;  %v2017_v4 = vpop.f32.mrb[36].mxu1  ;;  %v1906_v5 = vpop.f32.mrb[37].mxu0 }
 0x197   : > { %v1907_v6 = vadd.f32 %v1906_v5, %v1905_v2  ;;  %v2018_v7 = vpop.f32.mrb[37].mxu1  ;;  %v1908_v8 = vpop.f32.mrb[38].mxu0  ;;  %v460_v2 = vld [vmem:[%s2527_s30 + $0xc0] sm:$0xff] }
 0x198   : > { %1479 = vst [vmem:[%s2527_s30 + $0x88] sm:$0xff] %v1447_v3  ;;  %v2019_v9 = vadd.f32 %v2018_v7, %v2017_v4  ;;  %v2020_v10 = vpop.f32.mrb[38].mxu1  ;;  %v1909_v11 = vpop.f32.mrb[39].mxu0  ;;  %v461_v7 = vld [vmem:[%s2527_s30 + $0xc8] sm:$0xff] }
 0x199   : > { %v1910_v13 = vadd.f32 %v1909_v11, %v1908_v8  ;;  %v2021_v14 = vpop.f32.mrb[39].mxu1 }
 0x19a   : > { %v1376_v15 = vadd.f32 %v2019_v9, %v1907_v6  ;;  %v2022_v16 = vadd.f32 %v2021_v14, %v2020_v10 }
 0x19c   : > { %v1448_v18 = vadd.f32 %v1376_v15, %v454_v12  ;;  %v1379_v19 = vadd.f32 %v2022_v16, %v1910_v13 }
 0x19d   : > { %v1911_v20 = vpop.f32.mrb[40].mxu0 }
 0x19e   : > { %1480 = vst [vmem:[%s2527_s30 + $0x90] sm:$0xff] %v1448_v18  ;;  %v1449_v21 = vadd.f32 %v1379_v19, %v455_v17  ;;  %v2023_v22 = vpop.f32.mrb[40].mxu1  ;;  %v1912_v23 = vpop.f32.mrb[41].mxu0 }
 0x19f   : > { %v1913_v24 = vadd.f32 %v1912_v23, %v1911_v20  ;;  %v2024_v25 = vpop.f32.mrb[41].mxu1  ;;  %v1914_v26 = vpop.f32.mrb[42].mxu0  ;;  %v462_v20 = vld [vmem:[%s2527_s30 + $0xd0] sm:$0xff] }
 0x1a0   : > { %1481 = vst [vmem:[%s2527_s30 + $0x98] sm:$0xff] %v1449_v21  ;;  %v2025_v27 = vadd.f32 %v2024_v25, %v2023_v22  ;;  %v2026_v28 = vpop.f32.mrb[42].mxu1  ;;  %v1915_v29 = vpop.f32.mrb[43].mxu0  ;;  %v463_v25 = vld [vmem:[%s2527_s30 + $0xd8] sm:$0xff] }
 0x1a1   : > { %v1916_v31 = vadd.f32 %v1915_v29, %v1914_v26  ;;  %v2027_v32 = vpop.f32.mrb[43].mxu1 }
 0x1a2   : > { %v1384_v33 = vadd.f32 %v2025_v27, %v1913_v24  ;;  %v2028_v34 = vadd.f32 %v2027_v32, %v2026_v28 }
 0x1a4   : > { %v1450_v36 = vadd.f32 %v1384_v33, %v456_v30  ;;  %v1387_v37 = vadd.f32 %v2028_v34, %v1916_v31 }
 0x1a5   : > { %v1917_v38 = vpop.f32.mrb[44].mxu0 }
 0x1a6   : > { %1482 = vst [vmem:[%s2527_s30 + $0xa0] sm:$0xff] %v1450_v36  ;;  %v1451_v39 = vadd.f32 %v1387_v37, %v457_v35  ;;  %v2029_v40 = vpop.f32.mrb[44].mxu1  ;;  %v1918_v41 = vpop.f32.mrb[45].mxu0 }
 0x1a7   : > { %v1919_v42 = vadd.f32 %v1918_v41, %v1917_v38  ;;  %v2030_v43 = vpop.f32.mrb[45].mxu1  ;;  %v1920_v44 = vpop.f32.mrb[46].mxu0  ;;  %v464_v38 = vld [vmem:[%s2527_s30 + $0xe0] sm:$0xff] }
 0x1a8   : > { %1483 = vst [vmem:[%s2527_s30 + $0xa8] sm:$0xff] %v1451_v39  ;;  %v2031_v45 = vadd.f32 %v2030_v43, %v2029_v40  ;;  %v2032_v46 = vpop.f32.mrb[46].mxu1  ;;  %v1921_v47 = vpop.f32.mrb[47].mxu0  ;;  %v465_v43 = vld [vmem:[%s2527_s30 + $0xe8] sm:$0xff] }
 0x1a9   : > { %v1922_v49 = vadd.f32 %v1921_v47, %v1920_v44  ;;  %v2033_v50 = vpop.f32.mrb[47].mxu1 }
 0x1aa   : > { %v1392_v51 = vadd.f32 %v2031_v45, %v1919_v42  ;;  %v2034_v52 = vadd.f32 %v2033_v50, %v2032_v46 }
 0x1ac   : > { %v1452_v54 = vadd.f32 %v1392_v51, %v458_v48  ;;  %v1395_v55 = vadd.f32 %v2034_v52, %v1922_v49 }
 0x1ad   : > { %v1923_v56 = vpop.f32.mrb[48].mxu0 }
 0x1ae   : > { %1484 = vst [vmem:[%s2527_s30 + $0xb0] sm:$0xff] %v1452_v54  ;;  %v1453_v57 = vadd.f32 %v1395_v55, %v459_v53  ;;  %v2035_v58 = vpop.f32.mrb[48].mxu1  ;;  %v1924_v59 = vpop.f32.mrb[49].mxu0 }
 0x1af   : > { %v1925_v60 = vadd.f32 %v1924_v59, %v1923_v56  ;;  %v2036_v61 = vpop.f32.mrb[49].mxu1  ;;  %v1926_v62 = vpop.f32.mrb[50].mxu0  ;;  %v466_v56 = vld [vmem:[%s2527_s30 + $0xf0] sm:$0xff] }
 0x1b0   : > { %1485 = vst [vmem:[%s2527_s30 + $0xb8] sm:$0xff] %v1453_v57  ;;  %v2037_v63 = vadd.f32 %v2036_v61, %v2035_v58  ;;  %v2038_v0 = vpop.f32.mrb[50].mxu1  ;;  %v1927_v1 = vpop.f32.mrb[51].mxu0  ;;  %v467_v61 = vld [vmem:[%s2527_s30 + $0xf8] sm:$0xff] }
 0x1b1   : > { %v1928_v3 = vadd.f32 %v1927_v1, %v1926_v62  ;;  %v2039_v4 = vpop.f32.mrb[51].mxu1  ;;  %v1498_v1 = vld [vmem:[%s2527_s30] sm:$0xff] (!%p1831_p13) }
 0x1b2   : > { %v1400_v5 = vadd.f32 %v2037_v63, %v1925_v60  ;;  %v2040_v6 = vadd.f32 %v2039_v4, %v2038_v0 }
 0x1b4   : > { %v1454_v8 = vadd.f32 %v1400_v5, %v460_v2  ;;  %v1403_v9 = vadd.f32 %v2040_v6, %v1928_v3  ;;  %v2729_v2 = vld [vmem:[%s2849_s2] ss:$0 sm:$0xff] (!%p1831_p13)  ;;  %v1499_v3 = vld [vmem:[%s2527_s30 + $0x8] sm:$0xff] (!%p1831_p13)  ;;  %v1500_v6 = vld [vmem:[%s2527_s30 + $0x10] sm:$0xff] (!%p1831_p13) }
 0x1b5   : > { %v1929_v10 = vpop.f32.mrb[52].mxu0  ;;  %v1537_v4 = vadd.f32 (!%p1831_p13), %v2729_v2, %v1498_v1  ;;  %v1538_v5 = vadd.f32 (!%p1831_p13), %v2729_v2, %v1499_v3 }
 0x1b6   : > { %1486 = vst [vmem:[%s2527_s30 + $0xc0] sm:$0xff] %v1454_v8  ;;  %v1455_v11 = vadd.f32 %v1403_v9, %v461_v7  ;;  %v2041_v12 = vpop.f32.mrb[52].mxu1  ;;  %v1930_v13 = vpop.f32.mrb[53].mxu0  ;;  %v1501_v7 = vld [vmem:[%s2527_s30 + $0x18] sm:$0xff] (!%p1831_p13)  ;;  %v1502_v8 = vld [vmem:[%s2527_s30 + $0x20] sm:$0xff] (!%p1831_p13)  ;;  %v1539_v9 = vadd.f32 (!%p1831_p13), %v2729_v2, %v1500_v6 }
 0x1b7   : > { %v1931_v14 = vadd.f32 %v1930_v13, %v1929_v10  ;;  %v2042_v15 = vpop.f32.mrb[53].mxu1  ;;  %v1932_v16 = vpop.f32.mrb[54].mxu0  ;;  %v1540_v10 = vadd.f32 (!%p1831_p13), %v2729_v2, %v1501_v7  ;;  %v1504_v13 = vld [vmem:[%s2527_s30 + $0x30] sm:$0xff] (!%p1831_p13)  ;;  %1569 = vst [vmem:[%s2527_s30] sm:$0xff] (!%p1831_p13), %v1537_v4  ;;  %1570 = vst [vmem:[%s2527_s30 + $0x8] sm:$0xff] (!%p1831_p13), %v1538_v5 }
 0x1b8   : > { %1487 = vst [vmem:[%s2527_s30 + $0xc8] sm:$0xff] %v1455_v11  ;;  %v2043_v17 = vadd.f32 %v2042_v15, %v2041_v12  ;;  %v2044_v18 = vpop.f32.mrb[54].mxu1  ;;  %v1933_v19 = vpop.f32.mrb[55].mxu0  ;;  %v1541_v11 = vadd.f32 (!%p1831_p13), %v2729_v2, %v1502_v8  ;;  %v1503_v12 = vld [vmem:[%s2527_s30 + $0x28] sm:$0xff] (!%p1831_p13)  ;;  %1571 = vst [vmem:[%s2527_s30 + $0x10] sm:$0xff] (!%p1831_p13), %v1539_v9 }
 0x1b9   : > { %v1934_v21 = vadd.f32 %v1933_v19, %v1932_v16  ;;  %v2045_v22 = vpop.f32.mrb[55].mxu1  ;;  %v1542_v15 = vadd.f32 (!%p1831_p13), %v2729_v2, %v1503_v12  ;;  %v1543_v16 = vadd.f32 (!%p1831_p13), %v2729_v2, %v1504_v13  ;;  %v1507_v19 = vld [vmem:[%s2527_s30 + $0x48] sm:$0xff] (!%p1831_p13)  ;;  %1572 = vst [vmem:[%s2527_s30 + $0x18] sm:$0xff] (!%p1831_p13), %v1540_v10 }
 0x1ba   : > { %v1408_v23 = vadd.f32 %v2043_v17, %v1931_v14  ;;  %v2046_v24 = vadd.f32 %v2045_v22, %v2044_v18  ;;  %v1505_v14 = vld [vmem:[%s2527_s30 + $0x38] sm:$0xff] (!%p1831_p13)  ;;  %v1506_v18 = vld [vmem:[%s2527_s30 + $0x40] sm:$0xff] (!%p1831_p13)  ;;  %1573 = vst [vmem:[%s2527_s30 + $0x20] sm:$0xff] (!%p1831_p13), %v1541_v11  ;;  %v1546_v22 = vadd.f32 (!%p1831_p13), %v2729_v2, %v1507_v19 }
 0x1bb   : > { %v1544_v17 = vadd.f32 (!%p1831_p13), %v2729_v2, %v1505_v14  ;;  %1574 = vst [vmem:[%s2527_s30 + $0x28] sm:$0xff] (!%p1831_p13), %v1542_v15  ;;  %1575 = vst [vmem:[%s2527_s30 + $0x30] sm:$0xff] (!%p1831_p13), %v1543_v16 }
 0x1bc   : > { %v1456_v26 = vadd.f32 %v1408_v23, %v462_v20  ;;  %v1411_v27 = vadd.f32 %v2046_v24, %v1934_v21  ;;  %v1508_v20 = vld [vmem:[%s2527_s30 + $0x50] sm:$0xff] (!%p1831_p13)  ;;  %v1545_v21 = vadd.f32 (!%p1831_p13), %v2729_v2, %v1506_v18  ;;  %v1509_v24 = vld [vmem:[%s2527_s30 + $0x58] sm:$0xff] (!%p1831_p13)  ;;  %1578 = vst [vmem:[%s2527_s30 + $0x48] sm:$0xff] (!%p1831_p13), %v1546_v22 }
 0x1bd   : > { %v1935_v28 = vpop.f32.mrb[56].mxu0  ;;  %v1547_v23 = vadd.f32 (!%p1831_p13), %v2729_v2, %v1508_v20  ;;  %1576 = vst [vmem:[%s2527_s30 + $0x38] sm:$0xff] (!%p1831_p13), %v1544_v17 }
 0x1be   : > { %1488 = vst [vmem:[%s2527_s30 + $0xd0] sm:$0xff] %v1456_v26  ;;  %v1457_v29 = vadd.f32 %v1411_v27, %v463_v25  ;;  %v2047_v30 = vpop.f32.mrb[56].mxu1  ;;  %v1936_v31 = vpop.f32.mrb[57].mxu0  ;;  %v1510_v25 = vld [vmem:[%s2527_s30 + $0x60] sm:$0xff] (!%p1831_p13)  ;;  %v1511_v26 = vld [vmem:[%s2527_s30 + $0x68] sm:$0xff] (!%p1831_p13)  ;;  %v1548_v27 = vadd.f32 (!%p1831_p13), %v2729_v2, %v1509_v24  ;;  %1577 = vst [vmem:[%s2527_s30 + $0x40] sm:$0xff] (!%p1831_p13), %v1545_v21 }
 0x1bf   : > { %v1937_v32 = vadd.f32 %v1936_v31, %v1935_v28  ;;  %v2048_v33 = vpop.f32.mrb[57].mxu1  ;;  %v1938_v34 = vpop.f32.mrb[58].mxu0  ;;  %v1549_v28 = vadd.f32 (!%p1831_p13), %v2729_v2, %v1510_v25  ;;  %v1513_v31 = vld [vmem:[%s2527_s30 + $0x78] sm:$0xff] (!%p1831_p13)  ;;  %1579 = vst [vmem:[%s2527_s30 + $0x50] sm:$0xff] (!%p1831_p13), %v1547_v23 }
 0x1c0   : > { %1489 = vst [vmem:[%s2527_s30 + $0xd8] sm:$0xff] %v1457_v29  ;;  %v2049_v35 = vadd.f32 %v2048_v33, %v2047_v30  ;;  %v2050_v36 = vpop.f32.mrb[58].mxu1  ;;  %v1939_v37 = vpop.f32.mrb[59].mxu0  ;;  %v1550_v29 = vadd.f32 (!%p1831_p13), %v2729_v2, %v1511_v26  ;;  %v1512_v30 = vld [vmem:[%s2527_s30 + $0x70] sm:$0xff] (!%p1831_p13)  ;;  %1580 = vst [vmem:[%s2527_s30 + $0x58] sm:$0xff] (!%p1831_p13), %v1548_v27 }
 0x1c1   : > { %v1940_v39 = vadd.f32 %v1939_v37, %v1938_v34  ;;  %v2051_v40 = vpop.f32.mrb[59].mxu1  ;;  %v1551_v33 = vadd.f32 (!%p1831_p13), %v2729_v2, %v1512_v30  ;;  %v1552_v34 = vadd.f32 (!%p1831_p13), %v2729_v2, %v1513_v31  ;;  %v1516_v37 = vld [vmem:[%s2527_s30 + $0x90] sm:$0xff] (!%p1831_p13)  ;;  %1581 = vst [vmem:[%s2527_s30 + $0x60] sm:$0xff] (!%p1831_p13), %v1549_v28 }
 0x1c2   : > { %v1416_v41 = vadd.f32 %v2049_v35, %v1937_v32  ;;  %v2052_v42 = vadd.f32 %v2051_v40, %v2050_v36  ;;  %v1514_v32 = vld [vmem:[%s2527_s30 + $0x80] sm:$0xff] (!%p1831_p13)  ;;  %v1515_v36 = vld [vmem:[%s2527_s30 + $0x88] sm:$0xff] (!%p1831_p13)  ;;  %1582 = vst [vmem:[%s2527_s30 + $0x68] sm:$0xff] (!%p1831_p13), %v1550_v29  ;;  %v1555_v40 = vadd.f32 (!%p1831_p13), %v2729_v2, %v1516_v37 }
 0x1c3   : > { %v1553_v35 = vadd.f32 (!%p1831_p13), %v2729_v2, %v1514_v32  ;;  %1583 = vst [vmem:[%s2527_s30 + $0x70] sm:$0xff] (!%p1831_p13), %v1551_v33  ;;  %1584 = vst [vmem:[%s2527_s30 + $0x78] sm:$0xff] (!%p1831_p13), %v1552_v34 }
 0x1c4   : > { %v1458_v44 = vadd.f32 %v1416_v41, %v464_v38  ;;  %v1419_v45 = vadd.f32 %v2052_v42, %v1940_v39  ;;  %v1517_v38 = vld [vmem:[%s2527_s30 + $0x98] sm:$0xff] (!%p1831_p13)  ;;  %v1554_v39 = vadd.f32 (!%p1831_p13), %v2729_v2, %v1515_v36  ;;  %v1518_v42 = vld [vmem:[%s2527_s30 + $0xa0] sm:$0xff] (!%p1831_p13)  ;;  %1587 = vst [vmem:[%s2527_s30 + $0x90] sm:$0xff] (!%p1831_p13), %v1555_v40 }
 0x1c5   : > { %v1941_v46 = vpop.f32.mrb[60].mxu0  ;;  %v1556_v41 = vadd.f32 (!%p1831_p13), %v2729_v2, %v1517_v38  ;;  %1585 = vst [vmem:[%s2527_s30 + $0x80] sm:$0xff] (!%p1831_p13), %v1553_v35 }
 0x1c6   : > { %1490 = vst [vmem:[%s2527_s30 + $0xe0] sm:$0xff] %v1458_v44  ;;  %v1459_v47 = vadd.f32 %v1419_v45, %v465_v43  ;;  %v2053_v48 = vpop.f32.mrb[60].mxu1  ;;  %v1942_v49 = vpop.f32.mrb[61].mxu0  ;;  %v1519_v43 = vld [vmem:[%s2527_s30 + $0xa8] sm:$0xff] (!%p1831_p13)  ;;  %v1520_v44 = vld [vmem:[%s2527_s30 + $0xb0] sm:$0xff] (!%p1831_p13)  ;;  %v1557_v45 = vadd.f32 (!%p1831_p13), %v2729_v2, %v1518_v42  ;;  %1586 = vst [vmem:[%s2527_s30 + $0x88] sm:$0xff] (!%p1831_p13), %v1554_v39 }
 0x1c7   : > { %v1943_v50 = vadd.f32 %v1942_v49, %v1941_v46  ;;  %v2054_v51 = vpop.f32.mrb[61].mxu1  ;;  %v1944_v52 = vpop.f32.mrb[62].mxu0  ;;  %v1558_v46 = vadd.f32 (!%p1831_p13), %v2729_v2, %v1519_v43  ;;  %v1522_v49 = vld [vmem:[%s2527_s30 + $0xc0] sm:$0xff] (!%p1831_p13)  ;;  %1588 = vst [vmem:[%s2527_s30 + $0x98] sm:$0xff] (!%p1831_p13), %v1556_v41 }
 0x1c8   : > { %1491 = vst [vmem:[%s2527_s30 + $0xe8] sm:$0xff] %v1459_v47  ;;  %v2055_v53 = vadd.f32 %v2054_v51, %v2053_v48  ;;  %v2056_v54 = vpop.f32.mrb[62].mxu1  ;;  %v1945_v55 = vpop.f32.mrb[63].mxu0  ;;  %v1559_v47 = vadd.f32 (!%p1831_p13), %v2729_v2, %v1520_v44  ;;  %v1521_v48 = vld [vmem:[%s2527_s30 + $0xb8] sm:$0xff] (!%p1831_p13)  ;;  %1589 = vst [vmem:[%s2527_s30 + $0xa0] sm:$0xff] (!%p1831_p13), %v1557_v45 }
 0x1c9   : > { %v1946_v57 = vadd.f32 %v1945_v55, %v1944_v52  ;;  %v2057_v58 = vpop.f32.mrb[63].mxu1  ;;  %v1560_v51 = vadd.f32 (!%p1831_p13), %v2729_v2, %v1521_v48  ;;  %v1561_v52 = vadd.f32 (!%p1831_p13), %v2729_v2, %v1522_v49  ;;  %v1525_v55 = vld [vmem:[%s2527_s30 + $0xd8] sm:$0xff] (!%p1831_p13)  ;;  %1590 = vst [vmem:[%s2527_s30 + $0xa8] sm:$0xff] (!%p1831_p13), %v1558_v46 }
 0x1ca   : > { %v1424_v59 = vadd.f32 %v2055_v53, %v1943_v50  ;;  %v2058_v60 = vadd.f32 %v2057_v58, %v2056_v54  ;;  %1497 = sbr.rel (%p1831_p13) target bundleno = 475 (0x1db), region = 63  ;;  %v1523_v50 = vld [vmem:[%s2527_s30 + $0xc8] sm:$0xff] (!%p1831_p13)  ;;  %v1524_v54 = vld [vmem:[%s2527_s30 + $0xd0] sm:$0xff] (!%p1831_p13)  ;;  %1591 = vst [vmem:[%s2527_s30 + $0xb0] sm:$0xff] (!%p1831_p13), %v1559_v47  ;;  %v1564_v58 = vadd.f32 (!%p1831_p13), %v2729_v2, %v1525_v55 }
 0x1cb   : > { %v1562_v53 = vadd.f32 (!%p1831_p13), %v2729_v2, %v1523_v50  ;;  %1592 = vst [vmem:[%s2527_s30 + $0xb8] sm:$0xff] (!%p1831_p13), %v1560_v51  ;;  %1593 = vst [vmem:[%s2527_s30 + $0xc0] sm:$0xff] (!%p1831_p13), %v1561_v52 }
 0x1cc   : > { %v1460_v62 = vadd.f32 %v1424_v59, %v466_v56  ;;  %v1427_v63 = vadd.f32 %v2058_v60, %v1946_v57  ;;  %v1563_v57 = vadd.f32 (!%p1831_p13), %v2729_v2, %v1524_v54  ;;  %1596 = vst [vmem:[%s2527_s30 + $0xd8] sm:$0xff] (!%p1831_p13), %v1564_v58 }
 0x1cd   : > { %v1526_v56 = vld [vmem:[%s2527_s30 + $0xe0] sm:$0xff] (!%p1831_p13)  ;;  %1594 = vst [vmem:[%s2527_s30 + $0xc8] sm:$0xff] (!%p1831_p13), %v1562_v53 }
 0x1ce   : > { %1492 = vst [vmem:[%s2527_s30 + $0xf0] sm:$0xff] %v1460_v62  ;;  %v1461_v0 = vadd.f32 %v1427_v63, %v467_v61  ;;  %v1565_v59 = vadd.f32 (!%p1831_p13), %v2729_v2, %v1526_v56  ;;  %1595 = vst [vmem:[%s2527_s30 + $0xd0] sm:$0xff] (!%p1831_p13), %v1563_v57 }
 0x1cf   : > { %v1527_v60 = vld [vmem:[%s2527_s30 + $0xe8] sm:$0xff] (!%p1831_p13) }
 0x1d0   : > { %1493 = vst [vmem:[%s2527_s30 + $0xf8] sm:$0xff] %v1461_v0  ;;  %v1566_v63 = vadd.f32 (!%p1831_p13), %v2729_v2, %v1527_v60  ;;  %1597 = vst [vmem:[%s2527_s30 + $0xe0] sm:$0xff] (!%p1831_p13), %v1565_v59 }
 0x1d2   : > { %1598 = vst [vmem:[%s2527_s30 + $0xe8] sm:$0xff] %v1566_v63 }
 0x1d5   : > { %v1528_v61 = vld [vmem:[%s2527_s30 + $0xf0] sm:$0xff] }
 0x1d6   : > { %v1567_v0 = vadd.f32 %v2729_v2, %v1528_v61 }
 0x1d7   : > { %v1529_v62 = vld [vmem:[%s2527_s30 + $0xf8] sm:$0xff] }
 0x1d8   : > { %v1568_v1 = vadd.f32 %v2729_v2, %v1529_v62  ;;  %1599 = vst [vmem:[%s2527_s30 + $0xf0] sm:$0xff] %v1567_v0 }
 0x1da   : > { %1600 = vst [vmem:[%s2527_s30 + $0xf8] sm:$0xff] %v1568_v1 }
 0x1db PF: > { %s13_s18 = sadd.s32 1, %s2299_s18   ;;  %s2851_s12 = smov %s2279_s13 }
 0x1dc   : > { %p10_p0 = scmp.ge.s32.totalorder %s13_s18, 8   ;;  %s2852_s13 = smov %s2373_s25 }
 0x1dd   : > { %s2853_s14 = smov %s2291_s16  ;;  %s2854_s15 = smov %s2295_s17 }
 0x1de   : > { %s2855_s16 = smov %s2858_s19  ;;  %s2856_s17 = smov %s2862_s20 }
 0x1df   :  { %12 = sbr.rel (!%p10_p0) target bundleno = 4 (0x4), region = 104 }

// kernel: snunet_forward.45
= control target key start
LH: loop header
LB: loop body
LE: loop exit
PB: predicated region body
PF: predicated region fallthrough
CT: control target
= control target key end

     0   :  { %s1646_s12 = smov 0   ;;  %s1648_s13 = smov 0   ;;  %s2059_s0 = inlined_call_operand.vmem [shape: bf16[512,1792], index: 0, kind: input, shape index: {}]   ;;  %s2060_s1 = inlined_call_operand.vmem [shape: bf16[1792,128], index: 1, kind: input, shape index: {}]   ;;  %s2061_s2 = inlined_call_operand.vmem [shape: f32[1,128], index: 2, kind: input, shape index: {}]   ;;  %s2062_s3 = inlined_call_operand.vmem [shape: f32[512,128], index: 3, kind: output, shape index: {}]  }
   0x1   :  { %s1650_s14 = smov 0   ;;  %s1652_s15 = smov 0  }
   0x2   :  { %s1654_s16 = smov 0   ;;  %s1656_s17 = smov 0  }
   0x3   :  { %s1658_s18 = smov 0  }
   0x4 LB: > { %s25_s19 = sadd.s32 1, %s1615_s16  ;;  %s32_s20 = sadd.s32 1, %s1619_s17  ;;  %s1623_s18 = sphi %s1658_s18, %s13_s18   ;;  %s1619_s17 = sphi %s1656_s17, %s2068_s17   ;;  %s1615_s16 = sphi %s1654_s16, %s2067_s16   ;;  %s1611_s15 = sphi %s1652_s15, %s2066_s15   ;;  %s1607_s14 = sphi %s1650_s14, %s2065_s14   ;;  %s1603_s13 = sphi %s1648_s13, %s2064_s13   ;;  %s1599_s12 = sphi %s1646_s12, %s2063_s12  }
   0x5   : > { %p26_p0 = scmp.ge.s32.totalorder %s25_s19, 7  ;;  %p48_p1 = scmp.ne.s32.totalorder %s1603_s13, %s1599_s12 }
   0x6   : > { %p49_p2 = scmp.eq.s32.totalorder %s1623_s18, 0  ;;  %s41_s24 = sadd.s32 1, %s1603_s13 }
   0x7   : > { %s2070_s19 = smov (%p26_p0, %s25_s19), 0  ;;  %s2072_s20 = smov (!%p26_p0, %s32_s20), %s1619_s17 }
   0x8   : > { %p50_p3 = por %p49_p2, %p48_p1  ;;  %p34_p4 = scmp.ge.s32.totalorder %s2072_s20, 2 }
   0x9   : > { %s37_s21 = ssub.s32 %s1615_s16, %s2070_s19  ;;  %p1254_p6 = scmp.ge.s32.totalorder %s1623_s18, 14 }
   0xa   : > { %s2074_s20 = smov (%p34_p4, %s2072_s20), 0 }
   0xb   : > { %s36_s22 = ssub.s32 %s1619_s17, %s2074_s20  ;;  %162 = sbr.rel (%p1254_p6) target bundleno = 42 (0x2a), region = 20 }
   0xc   : > { %s38_s23 = sor.u32 %s37_s21, %s36_s22 }
   0xd   : > { %p39_p5 = scmp.eq.s32.totalorder %s38_s23, 0 }
   0xf   : > { %s1697_s25 = scalar_select %p39_p5, %s1603_s13, %s41_s24  }
  0x12   : > { %165 = sbr.rel (!%p50_p3) target bundleno = 42 (0x2a), region = 24  ;;  %s167_s26 = sand.u32 (%p50_p3), 1, %s1603_s13  }
  0x13   : > { %s1257_s27 = sshll.u32 (%p50_p3), %s1615_s16, 1  ;;  %s1255_s28 = sshll.u32 (%p50_p3), %s167_s26, 8 }
  0x14   : > { %s1447_s29 = smul.u32 (%p50_p3), 448, %s1619_s17  ;;  %s1711_s8 = scalar_lea.vmem (%p50_p3), [#allocation2], %s1255_s28 }
  0x16   : > { %s173_s30 = sadd.s32 (%p50_p3), %s1447_s29, %s1257_s27 }
  0x17   : > { %s1259_s4 = sshll.u32 (%p50_p3), %s173_s30, 2 }
  0x18   : > { %s1706_s7 = scalar_lea.vmem (%p50_p3), %s2059_s0, %s1259_s4 }
  0x19   : > { %v265_v0 = vld [vmem:[%s1706_s7] sm:$0xff]  ;;  %v267_v1 = vld [vmem:[%s1706_s7 + $0x38] sm:$0xff]  ;;  %v269_v2 = vld [vmem:[%s1706_s7 + $0x70] sm:$0xff] }
  0x1a   : > { %266 = vst [vmem:[%s1711_s8] sm:$0xff] %v265_v0  ;;  %268 = vst [vmem:[%s1711_s8 + $0x8] sm:$0xff] %v267_v1  ;;  %v271_v3 = vld [vmem:[%s1706_s7 + $0xa8] sm:$0xff]  ;;  %v273_v4 = vld [vmem:[%s1706_s7 + $0xe0] sm:$0xff] }
  0x1b   : > { %270 = vst [vmem:[%s1711_s8 + $0x10] sm:$0xff] %v269_v2  ;;  %v275_v5 = vld [vmem:[%s1706_s7 + $0x118] sm:$0xff]  ;;  %272 = vst [vmem:[%s1711_s8 + $0x18] sm:$0xff] %v271_v3  ;;  %v277_v6 = vld [vmem:[%s1706_s7 + $0x150] sm:$0xff] }
  0x1c   : > { %274 = vst [vmem:[%s1711_s8 + $0x20] sm:$0xff] %v273_v4  ;;  %276 = vst [vmem:[%s1711_s8 + $0x28] sm:$0xff] %v275_v5  ;;  %v279_v7 = vld [vmem:[%s1706_s7 + $0x188] sm:$0xff]  ;;  %v281_v8 = vld [vmem:[%s1706_s7 + $0x1c0] sm:$0xff] }
  0x1d   : > { %278 = vst [vmem:[%s1711_s8 + $0x30] sm:$0xff] %v277_v6  ;;  %280 = vst [vmem:[%s1711_s8 + $0x38] sm:$0xff] %v279_v7  ;;  %v283_v9 = vld [vmem:[%s1706_s7 + $0x1f8] sm:$0xff]  ;;  %v285_v10 = vld [vmem:[%s1706_s7 + $0x230] sm:$0xff] }
  0x1e   : > { %282 = vst [vmem:[%s1711_s8 + $0x40] sm:$0xff] %v281_v8  ;;  %v287_v11 = vld [vmem:[%s1706_s7 + $0x268] sm:$0xff]  ;;  %284 = vst [vmem:[%s1711_s8 + $0x48] sm:$0xff] %v283_v9  ;;  %v289_v12 = vld [vmem:[%s1706_s7 + $0x2a0] sm:$0xff] }
  0x1f   : > { %286 = vst [vmem:[%s1711_s8 + $0x50] sm:$0xff] %v285_v10  ;;  %288 = vst [vmem:[%s1711_s8 + $0x58] sm:$0xff] %v287_v11  ;;  %v291_v13 = vld [vmem:[%s1706_s7 + $0x2d8] sm:$0xff]  ;;  %v293_v14 = vld [vmem:[%s1706_s7 + $0x310] sm:$0xff] }
  0x20   : > { %290 = vst [vmem:[%s1711_s8 + $0x60] sm:$0xff] %v289_v12  ;;  %292 = vst [vmem:[%s1711_s8 + $0x68] sm:$0xff] %v291_v13  ;;  %v295_v15 = vld [vmem:[%s1706_s7 + $0x348] sm:$0xff]  ;;  %v297_v16 = vld [vmem:[%s1706_s7 + $0x380] sm:$0xff] }
  0x21   : > { %294 = vst [vmem:[%s1711_s8 + $0x70] sm:$0xff] %v293_v14  ;;  %v299_v17 = vld [vmem:[%s1706_s7 + $0x3b8] sm:$0xff]  ;;  %296 = vst [vmem:[%s1711_s8 + $0x78] sm:$0xff] %v295_v15  ;;  %v301_v18 = vld [vmem:[%s1706_s7 + $0x3f0] sm:$0xff] }
  0x22   : > { %298 = vst [vmem:[%s1711_s8 + $0x80] sm:$0xff] %v297_v16  ;;  %300 = vst [vmem:[%s1711_s8 + $0x88] sm:$0xff] %v299_v17  ;;  %v303_v19 = vld [vmem:[%s1706_s7 + $0x428] sm:$0xff]  ;;  %v305_v20 = vld [vmem:[%s1706_s7 + $0x460] sm:$0xff] }
  0x23   : > { %302 = vst [vmem:[%s1711_s8 + $0x90] sm:$0xff] %v301_v18  ;;  %304 = vst [vmem:[%s1711_s8 + $0x98] sm:$0xff] %v303_v19  ;;  %v307_v21 = vld [vmem:[%s1706_s7 + $0x498] sm:$0xff]  ;;  %v309_v22 = vld [vmem:[%s1706_s7 + $0x4d0] sm:$0xff] }
  0x24   : > { %306 = vst [vmem:[%s1711_s8 + $0xa0] sm:$0xff] %v305_v20  ;;  %v311_v23 = vld [vmem:[%s1706_s7 + $0x508] sm:$0xff]  ;;  %308 = vst [vmem:[%s1711_s8 + $0xa8] sm:$0xff] %v307_v21  ;;  %v313_v24 = vld [vmem:[%s1706_s7 + $0x540] sm:$0xff] }
  0x25   : > { %310 = vst [vmem:[%s1711_s8 + $0xb0] sm:$0xff] %v309_v22  ;;  %312 = vst [vmem:[%s1711_s8 + $0xb8] sm:$0xff] %v311_v23  ;;  %v315_v25 = vld [vmem:[%s1706_s7 + $0x578] sm:$0xff]  ;;  %v317_v26 = vld [vmem:[%s1706_s7 + $0x5b0] sm:$0xff] }
  0x26   : > { %314 = vst [vmem:[%s1711_s8 + $0xc0] sm:$0xff] %v313_v24  ;;  %316 = vst [vmem:[%s1711_s8 + $0xc8] sm:$0xff] %v315_v25  ;;  %v319_v27 = vld [vmem:[%s1706_s7 + $0x5e8] sm:$0xff]  ;;  %v321_v28 = vld [vmem:[%s1706_s7 + $0x620] sm:$0xff] }
  0x27   : > { %318 = vst [vmem:[%s1711_s8 + $0xd0] sm:$0xff] %v317_v26  ;;  %v323_v29 = vld [vmem:[%s1706_s7 + $0x658] sm:$0xff]  ;;  %320 = vst [vmem:[%s1711_s8 + $0xd8] sm:$0xff] %v319_v27  ;;  %v325_v30 = vld [vmem:[%s1706_s7 + $0x690] sm:$0xff] }
  0x28   : > { %322 = vst [vmem:[%s1711_s8 + $0xe0] sm:$0xff] %v321_v28  ;;  %324 = vst [vmem:[%s1711_s8 + $0xe8] sm:$0xff] %v323_v29  ;;  %v327_v31 = vld [vmem:[%s1706_s7 + $0x6c8] sm:$0xff] }
  0x29   : > { %326 = vst [vmem:[%s1711_s8 + $0xf0] sm:$0xff] %v325_v30  ;;  %328 = vst [vmem:[%s1711_s8 + $0xf8] sm:$0xff] %v327_v31 }
  0x2a PF: > { %p1260_p7 = scmp.ge.s32.totalorder %s1623_s18, 1  ;;  %p345_p8 = scmp.lt.s32.totalorder %s1623_s18, 15 }
  0x2c   : > { %p346_p9 = pnand %p1260_p7, %p345_p8 }
  0x2d   : > { %s352_s9 = sand.u32 (!%p346_p9), 1, %s1599_s12   ;;  %s1262_s10 = sshll.u32 (!%p346_p9), %s1607_s14, 5 }
  0x2e   : > { %349 = sbr.rel (%p346_p9) target bundleno = 392 (0x188), region = 66  ;;  %s1261_s11 = sshll.u32 (!%p346_p9), %s352_s9, 8 }
  0x2f   : > { %p392_p10 = scmp.lt.s32.totalorder (!%p346_p9), %s1262_s10, 223  ;;  %s1264_s21 = sshll.u32 (!%p346_p9), %s1611_s15, 5 }
  0x30   : > { %p404_p11 = scmp.lt.s32.totalorder (!%p346_p9), %s1264_s21, 63  ;;  %s1789_s12 = scalar_lea.vmem (!%p346_p9), [#allocation2], %s1261_s11 }
  0x31   : > { %p1266_p12 = scmp.ne.s32.totalorder (!%p346_p9), %s1607_s14, 0 }
  0x35   : > { %s2076_s10 = smov (!%p392_p10, %s1262_s10), 223  ;;  %s2078_s21 = smov (!%p404_p11, %s1264_s21), 63 }
  0x36   : > { %s1263_s22 = sshll.u32 %s2076_s10, 2  ;;  %s1265_s27 = sshll.u32 %s2078_s21, 3  ;;  %v1625_v32 = vmov (!%p1266_p12), 0.0  }
  0x37   : > { %s1782_s26 = scalar_lea.vmem %s2060_s1, %s1263_s22  ;;  %s1787_s30 = scalar_lea.vmem %s2062_s3, %s1265_s27 }
  0x38   : > { %416 = sbr.rel (%p1266_p12) target bundleno = 72 (0x48), region = 74  ;;  %417 = vst [vmem:[%s1787_s30] sm:$0xff] (!%p1266_p12), %v1625_v32  ;;  %418 = vst [vmem:[%s1787_s30 + $0x8] sm:$0xff] (!%p1266_p12), %v1625_v32 }
  0x39   : > { %419 = vst [vmem:[%s1787_s30 + $0x10] sm:$0xff] (!%p1266_p12), %v1625_v32  ;;  %420 = vst [vmem:[%s1787_s30 + $0x18] sm:$0xff] (!%p1266_p12), %v1625_v32 }
  0x3a   : > { %421 = vst [vmem:[%s1787_s30 + $0x20] sm:$0xff] (!%p1266_p12), %v1625_v32  ;;  %422 = vst [vmem:[%s1787_s30 + $0x28] sm:$0xff] (!%p1266_p12), %v1625_v32 }
  0x3b   : > { %423 = vst [vmem:[%s1787_s30 + $0x30] sm:$0xff] (!%p1266_p12), %v1625_v32  ;;  %424 = vst [vmem:[%s1787_s30 + $0x38] sm:$0xff] (!%p1266_p12), %v1625_v32 }
  0x3c   : > { %425 = vst [vmem:[%s1787_s30 + $0x40] sm:$0xff] (!%p1266_p12), %v1625_v32  ;;  %426 = vst [vmem:[%s1787_s30 + $0x48] sm:$0xff] (!%p1266_p12), %v1625_v32 }
  0x3d   : > { %427 = vst [vmem:[%s1787_s30 + $0x50] sm:$0xff] (!%p1266_p12), %v1625_v32  ;;  %428 = vst [vmem:[%s1787_s30 + $0x58] sm:$0xff] (!%p1266_p12), %v1625_v32 }
  0x3e   : > { %429 = vst [vmem:[%s1787_s30 + $0x60] sm:$0xff] (!%p1266_p12), %v1625_v32  ;;  %430 = vst [vmem:[%s1787_s30 + $0x68] sm:$0xff] (!%p1266_p12), %v1625_v32 }
  0x3f   : > { %431 = vst [vmem:[%s1787_s30 + $0x70] sm:$0xff] %v1625_v32  ;;  %432 = vst [vmem:[%s1787_s30 + $0x78] sm:$0xff] %v1625_v32 }
  0x40   : > { %433 = vst [vmem:[%s1787_s30 + $0x80] sm:$0xff] %v1625_v32  ;;  %434 = vst [vmem:[%s1787_s30 + $0x88] sm:$0xff] %v1625_v32 }
  0x41   : > { %435 = vst [vmem:[%s1787_s30 + $0x90] sm:$0xff] %v1625_v32  ;;  %436 = vst [vmem:[%s1787_s30 + $0x98] sm:$0xff] %v1625_v32 }
  0x42   : > { %437 = vst [vmem:[%s1787_s30 + $0xa0] sm:$0xff] %v1625_v32  ;;  %438 = vst [vmem:[%s1787_s30 + $0xa8] sm:$0xff] %v1625_v32 }
  0x43   : > { %439 = vst [vmem:[%s1787_s30 + $0xb0] sm:$0xff] %v1625_v32  ;;  %440 = vst [vmem:[%s1787_s30 + $0xb8] sm:$0xff] %v1625_v32 }
  0x44   : > { %441 = vst [vmem:[%s1787_s30 + $0xc0] sm:$0xff] %v1625_v32  ;;  %442 = vst [vmem:[%s1787_s30 + $0xc8] sm:$0xff] %v1625_v32 }
  0x45   : > { %443 = vst [vmem:[%s1787_s30 + $0xd0] sm:$0xff] %v1625_v32  ;;  %444 = vst [vmem:[%s1787_s30 + $0xd8] sm:$0xff] %v1625_v32 }
  0x46   : > { %445 = vst [vmem:[%s1787_s30 + $0xe0] sm:$0xff] %v1625_v32  ;;  %446 = vst [vmem:[%s1787_s30 + $0xe8] sm:$0xff] %v1625_v32 }
  0x47   : > { %447 = vst [vmem:[%s1787_s30 + $0xf0] sm:$0xff] %v1625_v32  ;;  %448 = vst [vmem:[%s1787_s30 + $0xf8] sm:$0xff] %v1625_v32 }
  0x48 PF: > { %v1505_v33 = vld [vmem:[%s1782_s26 + $0x40] sm:$0xff]   ;;  %v1507_v35 = vld [vmem:[%s1782_s26 + $0x48] sm:$0xff]   ;;  %v1509_v37 = vld [vmem:[%s1782_s26 + $0x50] sm:$0xff]   ;;  %p1315_p13 = scmp.ne.s32.totalorder %s1607_s14, 6 }
  0x49   : > { %v1506_v34 = vld [vmem:[%s1782_s26] sm:$0xff]   ;;  %1319 = vmatprep.subr.bf16.mxu0 %v1505_v33  ;;  %1431 = vmatprep.subr.bf16.mxu1 %v1505_v33  ;;  %v1508_v36 = vld [vmem:[%s1782_s26 + $0x8] sm:$0xff]   ;;  %v1510_v38 = vld [vmem:[%s1782_s26 + $0x10] sm:$0xff]  }
  0x4a   : > { %1320 = vmatpush3.bf16.msra.mxu0 %v1506_v34  ;;  %1439 = vmatpush3.bf16.msra.mxu1 %v1506_v34  ;;  %v1511_v39 = vld [vmem:[%s1782_s26 + $0x58] sm:$0xff]   ;;  %v1513_v41 = vld [vmem:[%s1782_s26 + $0x60] sm:$0xff]   ;;  %v1515_v43 = vld [vmem:[%s1782_s26 + $0x68] sm:$0xff]  }
  0x4b   : > { %1321 = vmatprep.subr.bf16.mxu0 %v1507_v35  ;;  %1432 = vmatprep.subr.bf16.mxu1 %v1507_v35  ;;  %v1512_v40 = vld [vmem:[%s1782_s26 + $0x18] sm:$0xff]   ;;  %v1514_v42 = vld [vmem:[%s1782_s26 + $0x20] sm:$0xff]   ;;  %v1516_v46 = vld [vmem:[%s1782_s26 + $0x28] sm:$0xff]  }
  0x4c   : > { %v1523_v44 = vld [vmem:[%s1789_s12 + $0x4] ss:$8 sps:$4 sm:$0xff]   ;;  %v1517_v47 = vld [vmem:[%s1782_s26 + $0x70] sm:$0xff]   ;;  %v1519_v49 = vld [vmem:[%s1782_s26 + $0x78] sm:$0xff]  }
  0x4d   : > { %v1526_v45 = vld [vmem:[%s1789_s12 + $0x84] ss:$8 sps:$4 sm:$0xff]   ;;  %833 = vmatprep.mubr.bf16.mxu0 %v1523_v44  ;;  %v1518_v48 = vld [vmem:[%s1782_s26 + $0x30] sm:$0xff]   ;;  %v1520_v50 = vld [vmem:[%s1782_s26 + $0x38] sm:$0xff]  }
  0x4e   : > { %1322 = vmatpush3.bf16.msra.mxu0 %v1508_v36  ;;  %1440 = vmatpush3.bf16.msra.mxu1 %v1508_v36  ;;  %v1521_v51 = vld [vmem:[%s1789_s12] ss:$8 sps:$4 sm:$0xff]   ;;  %v1527_v53 = vld [vmem:[%s1789_s12 + $0x14] ss:$8 sps:$4 sm:$0xff]   ;;  %v1531_v55 = vld [vmem:[%s1789_s12 + $0x10] ss:$8 sps:$4 sm:$0xff]  }
  0x4f   : > { %1323 = vmatprep.subr.bf16.mxu0 %v1509_v37  ;;  %1433 = vmatprep.subr.bf16.mxu1 %v1509_v37  ;;  %v1524_v52 = vld [vmem:[%s1789_s12 + $0x80] ss:$8 sps:$4 sm:$0xff]   ;;  %v1529_v54 = vld [vmem:[%s1789_s12 + $0x94] ss:$8 sps:$4 sm:$0xff]   ;;  %v1532_v56 = vld [vmem:[%s1789_s12 + $0x90] ss:$8 sps:$4 sm:$0xff]  }
  0x50   : > { %897 = vmatprep.mubr.bf16.mxu1 %v1526_v45  ;;  %v1533_v57 = vld [vmem:[%s1789_s12 + $0x24] ss:$8 sps:$4 sm:$0xff]   ;;  %v1537_v59 = vld [vmem:[%s1789_s12 + $0x20] ss:$8 sps:$4 sm:$0xff]   ;;  %v1539_v61 = vld [vmem:[%s1789_s12 + $0x34] ss:$8 sps:$4 sm:$0xff]  }
  0x51   : > { %v1535_v58 = vld [vmem:[%s1789_s12 + $0xa4] ss:$8 sps:$4 sm:$0xff]   ;;  %v1538_v60 = vld [vmem:[%s1789_s12 + $0xa0] ss:$8 sps:$4 sm:$0xff]   ;;  %v1541_v62 = vld [vmem:[%s1789_s12 + $0xb4] ss:$8 sps:$4 sm:$0xff]  }
  0x52   : > { %1324 = vmatpush3.bf16.msra.mxu0 %v1510_v38  ;;  %1441 = vmatpush3.bf16.msra.mxu1 %v1510_v38  ;;  %v1543_v63 = vld [vmem:[%s1789_s12 + $0x30] ss:$8 sps:$4 sm:$0xff]   ;;  %v1545_v1 = vld [vmem:[%s1789_s12 + $0x44] ss:$8 sps:$4 sm:$0xff]   ;;  %v1549_v3 = vld [vmem:[%s1789_s12 + $0x40] ss:$8 sps:$4 sm:$0xff]  }
  0x53   : > { %1325 = vmatprep.subr.bf16.mxu0 %v1511_v39  ;;  %1434 = vmatprep.subr.bf16.mxu1 %v1511_v39  ;;  %v1544_v0 = vld [vmem:[%s1789_s12 + $0xb0] ss:$8 sps:$4 sm:$0xff]   ;;  %v1547_v2 = vld [vmem:[%s1789_s12 + $0xc4] ss:$8 sps:$4 sm:$0xff]   ;;  %v1550_v4 = vld [vmem:[%s1789_s12 + $0xc0] ss:$8 sps:$4 sm:$0xff]  }
  0x54   : > { %v1551_v5 = vld [vmem:[%s1789_s12 + $0x54] ss:$8 sps:$4 sm:$0xff]   ;;  %v1555_v7 = vld [vmem:[%s1789_s12 + $0x50] ss:$8 sps:$4 sm:$0xff]   ;;  %v1557_v9 = vld [vmem:[%s1789_s12 + $0x64] ss:$8 sps:$4 sm:$0xff]  }
  0x55   : > { %v1553_v6 = vld [vmem:[%s1789_s12 + $0xd4] ss:$8 sps:$4 sm:$0xff]   ;;  %v1556_v8 = vld [vmem:[%s1789_s12 + $0xd0] ss:$8 sps:$4 sm:$0xff]   ;;  %v1559_v10 = vld [vmem:[%s1789_s12 + $0xe4] ss:$8 sps:$4 sm:$0xff]  }
  0x56   : > { %1326 = vmatpush3.bf16.msra.mxu0 %v1512_v40  ;;  %1442 = vmatpush3.bf16.msra.mxu1 %v1512_v40  ;;  %v1561_v11 = vld [vmem:[%s1789_s12 + $0x60] ss:$8 sps:$4 sm:$0xff]   ;;  %v1563_v13 = vld [vmem:[%s1789_s12 + $0x74] ss:$8 sps:$4 sm:$0xff]   ;;  %v1567_v15 = vld [vmem:[%s1789_s12 + $0x70] ss:$8 sps:$4 sm:$0xff]  }
  0x57   : > { %1327 = vmatprep.subr.bf16.mxu0 %v1513_v41  ;;  %1435 = vmatprep.subr.bf16.mxu1 %v1513_v41  ;;  %v1562_v12 = vld [vmem:[%s1789_s12 + $0xe0] ss:$8 sps:$4 sm:$0xff]   ;;  %v1565_v14 = vld [vmem:[%s1789_s12 + $0xf4] ss:$8 sps:$4 sm:$0xff]   ;;  %v1568_v16 = vld [vmem:[%s1789_s12 + $0xf0] ss:$8 sps:$4 sm:$0xff]  }
  0x58   : > { %v449_v19 = vld [vmem:[%s1787_s30] sm:$0xff]  ;;  %v450_v27 = vld [vmem:[%s1787_s30 + $0x8] sm:$0xff]  ;;  %v451_v39 = vld [vmem:[%s1787_s30 + $0x10] sm:$0xff] }
  0x59   : > { %v465_v21 = vld [vmem:[%s1787_s30 + $0x80] sm:$0xff]  ;;  %v466_v29 = vld [vmem:[%s1787_s30 + $0x88] sm:$0xff]  ;;  %v467_v41 = vld [vmem:[%s1787_s30 + $0x90] sm:$0xff] }
  0x5a   : > { %1328 = vmatpush3.bf16.msra.mxu0 %v1514_v42  ;;  %1443 = vmatpush3.bf16.msra.mxu1 %v1514_v42 }
  0x5b   : > { %1329 = vmatprep.subr.bf16.mxu0 %v1515_v43  ;;  %1436 = vmatprep.subr.bf16.mxu1 %v1515_v43 }
  0x5e   : > { %1330 = vmatpush3.bf16.msra.mxu0 %v1516_v46  ;;  %1444 = vmatpush3.bf16.msra.mxu1 %v1516_v46 }
  0x5f   : > { %1331 = vmatprep.subr.bf16.mxu0 %v1517_v47  ;;  %1437 = vmatprep.subr.bf16.mxu1 %v1517_v47  ;;  %v452_v47 = vld [vmem:[%s1787_s30 + $0x18] sm:$0xff] }
  0x62   : > { %1332 = vmatpush3.bf16.msra.mxu0 %v1518_v48  ;;  %1445 = vmatpush3.bf16.msra.mxu1 %v1518_v48 }
  0x63   : > { %1333 = vmatprep.subr.bf16.mxu0 %v1519_v49  ;;  %1438 = vmatprep.subr.bf16.mxu1 %v1519_v49  ;;  %v468_v49 = vld [vmem:[%s1787_s30 + $0x98] sm:$0xff] }
  0x66   : > { %1334 = vmatpush3.bf16.msra.mxu0 %v1520_v50  ;;  %1446 = vmatpush3.bf16.msra.mxu1 %v1520_v50 }
  0x69   : > { %834 = vmatmul.mubr.bf16.vlgmr.msra.gmra.mrb[0].mxu0 %v1521_v51  ;;  %898 = vmatmul.mubr.bf16.vlgmr.msra.gmra.mrb[0].mxu1 %v1524_v52 }
  0x6a   : > { %841 = vmatprep.mubr.bf16.mxu0 %v1527_v53  ;;  %905 = vmatprep.mubr.bf16.mxu1 %v1529_v54 }
  0x71   : > { %842 = vmatmul.mubr.bf16.gmra.mrb[4].mxu0 %v1531_v55  ;;  %906 = vmatmul.mubr.bf16.gmra.mrb[4].mxu1 %v1532_v56 }
  0x72   : > { %849 = vmatprep.mubr.bf16.mxu0 %v1533_v57  ;;  %913 = vmatprep.mubr.bf16.mxu1 %v1535_v58 }
  0x79   : > { %850 = vmatmul.mubr.bf16.gmra.mrb[8].mxu0 %v1537_v59  ;;  %914 = vmatmul.mubr.bf16.gmra.mrb[8].mxu1 %v1538_v60  ;;  %v453_v59 = vld [vmem:[%s1787_s30 + $0x20] sm:$0xff] }
  0x7a   : > { %857 = vmatprep.mubr.bf16.mxu0 %v1539_v61  ;;  %921 = vmatprep.mubr.bf16.mxu1 %v1541_v62  ;;  %v469_v61 = vld [vmem:[%s1787_s30 + $0xa0] sm:$0xff] }
  0x81   : > { %858 = vmatmul.mubr.bf16.gmra.mrb[12].mxu0 %v1543_v63  ;;  %922 = vmatmul.mubr.bf16.gmra.mrb[12].mxu1 %v1544_v0 }
  0x82   : > { %865 = vmatprep.mubr.bf16.mxu0 %v1545_v1  ;;  %929 = vmatprep.mubr.bf16.mxu1 %v1547_v2 }
  0x89   : > { %866 = vmatmul.mubr.bf16.gmra.mrb[16].mxu0 %v1549_v3  ;;  %930 = vmatmul.mubr.bf16.gmra.mrb[16].mxu1 %v1550_v4  ;;  %v454_v3 = vld [vmem:[%s1787_s30 + $0x28] sm:$0xff] }
  0x8a   : > { %873 = vmatprep.mubr.bf16.mxu0 %v1551_v5  ;;  %937 = vmatprep.mubr.bf16.mxu1 %v1553_v6  ;;  %v470_v5 = vld [vmem:[%s1787_s30 + $0xa8] sm:$0xff] }
  0x91   : > { %874 = vmatmul.mubr.bf16.gmra.mrb[20].mxu0 %v1555_v7  ;;  %938 = vmatmul.mubr.bf16.gmra.mrb[20].mxu1 %v1556_v8 }
  0x92   : > { %881 = vmatprep.mubr.bf16.mxu0 %v1557_v9  ;;  %945 = vmatprep.mubr.bf16.mxu1 %v1559_v10 }
  0x99   : > { %882 = vmatmul.mubr.bf16.gmra.mrb[24].mxu0 %v1561_v11  ;;  %946 = vmatmul.mubr.bf16.gmra.mrb[24].mxu1 %v1562_v12 }
  0x9a   : > { %889 = vmatprep.mubr.bf16.mxu0 %v1563_v13  ;;  %953 = vmatprep.mubr.bf16.mxu1 %v1565_v14 }
  0xa1   : > { %890 = vmatmul.mubr.bf16.gmra.mrb[28].mxu0 %v1567_v15  ;;  %954 = vmatmul.mubr.bf16.gmra.mrb[28].mxu1 %v1568_v16  ;;  %v455_v15 = vld [vmem:[%s1787_s30 + $0x30] sm:$0xff] }
 0x13c   : > { %v1335_v17 = vpop.f32.mrb[0].mxu0  ;;  %v1383_v18 = vpop.f32.mrb[0].mxu1 }
 0x13d   : > { %v1336_v20 = vpop.f32.mrb[1].mxu0  ;;  %v1384_v22 = vpop.f32.mrb[1].mxu1 }
 0x13e   : > { %v1337_v23 = vadd.f32 %v1336_v20, %v1335_v17  ;;  %v1385_v24 = vadd.f32 %v1384_v22, %v1383_v18  ;;  %v1338_v25 = vpop.f32.mrb[2].mxu0  ;;  %v1386_v26 = vpop.f32.mrb[2].mxu1  ;;  %v471_v17 = vld [vmem:[%s1787_s30 + $0xb0] sm:$0xff] }
 0x13f   : > { %v1339_v28 = vpop.f32.mrb[3].mxu0  ;;  %v1387_v30 = vpop.f32.mrb[3].mxu1 }
 0x140   : > { %v962_v31 = vadd.f32 %v1337_v23, %v449_v19  ;;  %v978_v32 = vadd.f32 %v1385_v24, %v465_v21  ;;  %v1340_v33 = vadd.f32 %v1339_v28, %v1338_v25  ;;  %v1388_v34 = vadd.f32 %v1387_v30, %v1386_v26  ;;  %v456_v23 = vld [vmem:[%s1787_s30 + $0x38] sm:$0xff] }
 0x141   : > { %v472_v25 = vld [vmem:[%s1787_s30 + $0xb8] sm:$0xff] }
 0x142   : > { %994 = vst [vmem:[%s1787_s30] sm:$0xff] %v962_v31  ;;  %1010 = vst [vmem:[%s1787_s30 + $0x80] sm:$0xff] %v978_v32  ;;  %v963_v35 = vadd.f32 %v1340_v33, %v450_v27  ;;  %v979_v36 = vadd.f32 %v1388_v34, %v466_v29 }
 0x144   : > { %995 = vst [vmem:[%s1787_s30 + $0x8] sm:$0xff] %v963_v35  ;;  %1011 = vst [vmem:[%s1787_s30 + $0x88] sm:$0xff] %v979_v36  ;;  %v1341_v37 = vpop.f32.mrb[4].mxu0  ;;  %v1389_v38 = vpop.f32.mrb[4].mxu1  ;;  %v457_v35 = vld [vmem:[%s1787_s30 + $0x40] sm:$0xff] }
 0x145   : > { %v1342_v40 = vpop.f32.mrb[5].mxu0  ;;  %v1390_v42 = vpop.f32.mrb[5].mxu1 }
 0x146   : > { %v1343_v43 = vadd.f32 %v1342_v40, %v1341_v37  ;;  %v1391_v44 = vadd.f32 %v1390_v42, %v1389_v38  ;;  %v1344_v45 = vpop.f32.mrb[6].mxu0  ;;  %v1392_v46 = vpop.f32.mrb[6].mxu1  ;;  %v473_v37 = vld [vmem:[%s1787_s30 + $0xc0] sm:$0xff] }
 0x147   : > { %v1345_v48 = vpop.f32.mrb[7].mxu0  ;;  %v1393_v50 = vpop.f32.mrb[7].mxu1 }
 0x148   : > { %v964_v51 = vadd.f32 %v1343_v43, %v451_v39  ;;  %v980_v52 = vadd.f32 %v1391_v44, %v467_v41  ;;  %v1346_v53 = vadd.f32 %v1345_v48, %v1344_v45  ;;  %v1394_v54 = vadd.f32 %v1393_v50, %v1392_v46  ;;  %v458_v43 = vld [vmem:[%s1787_s30 + $0x48] sm:$0xff] }
 0x149   : > { %v474_v45 = vld [vmem:[%s1787_s30 + $0xc8] sm:$0xff] }
 0x14a   : > { %996 = vst [vmem:[%s1787_s30 + $0x10] sm:$0xff] %v964_v51  ;;  %1012 = vst [vmem:[%s1787_s30 + $0x90] sm:$0xff] %v980_v52  ;;  %v965_v55 = vadd.f32 %v1346_v53, %v452_v47  ;;  %v981_v56 = vadd.f32 %v1394_v54, %v468_v49 }
 0x14c   : > { %997 = vst [vmem:[%s1787_s30 + $0x18] sm:$0xff] %v965_v55  ;;  %1013 = vst [vmem:[%s1787_s30 + $0x98] sm:$0xff] %v981_v56  ;;  %v1347_v57 = vpop.f32.mrb[8].mxu0  ;;  %v1395_v58 = vpop.f32.mrb[8].mxu1  ;;  %v459_v55 = vld [vmem:[%s1787_s30 + $0x50] sm:$0xff] }
 0x14d   : > { %v1348_v60 = vpop.f32.mrb[9].mxu0  ;;  %v1396_v62 = vpop.f32.mrb[9].mxu1 }
 0x14e   : > { %v1349_v63 = vadd.f32 %v1348_v60, %v1347_v57  ;;  %v1397_v0 = vadd.f32 %v1396_v62, %v1395_v58  ;;  %v1350_v1 = vpop.f32.mrb[10].mxu0  ;;  %v1398_v2 = vpop.f32.mrb[10].mxu1  ;;  %v475_v57 = vld [vmem:[%s1787_s30 + $0xd0] sm:$0xff] }
 0x14f   : > { %v1351_v4 = vpop.f32.mrb[11].mxu0  ;;  %v1399_v6 = vpop.f32.mrb[11].mxu1 }
 0x150   : > { %v966_v7 = vadd.f32 %v1349_v63, %v453_v59  ;;  %v982_v8 = vadd.f32 %v1397_v0, %v469_v61  ;;  %v1352_v9 = vadd.f32 %v1351_v4, %v1350_v1  ;;  %v1400_v10 = vadd.f32 %v1399_v6, %v1398_v2  ;;  %v460_v63 = vld [vmem:[%s1787_s30 + $0x58] sm:$0xff] }
 0x151   : > { %v476_v1 = vld [vmem:[%s1787_s30 + $0xd8] sm:$0xff] }
 0x152   : > { %998 = vst [vmem:[%s1787_s30 + $0x20] sm:$0xff] %v966_v7  ;;  %1014 = vst [vmem:[%s1787_s30 + $0xa0] sm:$0xff] %v982_v8  ;;  %v967_v11 = vadd.f32 %v1352_v9, %v454_v3  ;;  %v983_v12 = vadd.f32 %v1400_v10, %v470_v5 }
 0x154   : > { %999 = vst [vmem:[%s1787_s30 + $0x28] sm:$0xff] %v967_v11  ;;  %1015 = vst [vmem:[%s1787_s30 + $0xa8] sm:$0xff] %v983_v12  ;;  %v1353_v13 = vpop.f32.mrb[12].mxu0  ;;  %v1401_v14 = vpop.f32.mrb[12].mxu1  ;;  %v461_v11 = vld [vmem:[%s1787_s30 + $0x60] sm:$0xff] }
 0x155   : > { %v1354_v16 = vpop.f32.mrb[13].mxu0  ;;  %v1402_v18 = vpop.f32.mrb[13].mxu1 }
 0x156   : > { %v1355_v19 = vadd.f32 %v1354_v16, %v1353_v13  ;;  %v1403_v20 = vadd.f32 %v1402_v18, %v1401_v14  ;;  %v1356_v21 = vpop.f32.mrb[14].mxu0  ;;  %v1404_v22 = vpop.f32.mrb[14].mxu1  ;;  %v477_v13 = vld [vmem:[%s1787_s30 + $0xe0] sm:$0xff] }
 0x157   : > { %v1357_v24 = vpop.f32.mrb[15].mxu0  ;;  %v1405_v26 = vpop.f32.mrb[15].mxu1 }
 0x158   : > { %v968_v27 = vadd.f32 %v1355_v19, %v455_v15  ;;  %v984_v28 = vadd.f32 %v1403_v20, %v471_v17  ;;  %v1358_v29 = vadd.f32 %v1357_v24, %v1356_v21  ;;  %v1406_v30 = vadd.f32 %v1405_v26, %v1404_v22  ;;  %v462_v19 = vld [vmem:[%s1787_s30 + $0x68] sm:$0xff] }
 0x159   : > { %v478_v21 = vld [vmem:[%s1787_s30 + $0xe8] sm:$0xff] }
 0x15a   : > { %1000 = vst [vmem:[%s1787_s30 + $0x30] sm:$0xff] %v968_v27  ;;  %1016 = vst [vmem:[%s1787_s30 + $0xb0] sm:$0xff] %v984_v28  ;;  %v969_v31 = vadd.f32 %v1358_v29, %v456_v23  ;;  %v985_v32 = vadd.f32 %v1406_v30, %v472_v25 }
 0x15c   : > { %1001 = vst [vmem:[%s1787_s30 + $0x38] sm:$0xff] %v969_v31  ;;  %1017 = vst [vmem:[%s1787_s30 + $0xb8] sm:$0xff] %v985_v32  ;;  %v1359_v33 = vpop.f32.mrb[16].mxu0  ;;  %v1407_v34 = vpop.f32.mrb[16].mxu1  ;;  %v463_v31 = vld [vmem:[%s1787_s30 + $0x70] sm:$0xff] }
 0x15d   : > { %v1360_v36 = vpop.f32.mrb[17].mxu0  ;;  %v1408_v38 = vpop.f32.mrb[17].mxu1 }
 0x15e   : > { %v1361_v39 = vadd.f32 %v1360_v36, %v1359_v33  ;;  %v1409_v40 = vadd.f32 %v1408_v38, %v1407_v34  ;;  %v1362_v41 = vpop.f32.mrb[18].mxu0  ;;  %v1410_v42 = vpop.f32.mrb[18].mxu1  ;;  %v479_v33 = vld [vmem:[%s1787_s30 + $0xf0] sm:$0xff] }
 0x15f   : > { %v1363_v44 = vpop.f32.mrb[19].mxu0  ;;  %v1411_v46 = vpop.f32.mrb[19].mxu1 }
 0x160   : > { %v970_v47 = vadd.f32 %v1361_v39, %v457_v35  ;;  %v986_v48 = vadd.f32 %v1409_v40, %v473_v37  ;;  %v1364_v49 = vadd.f32 %v1363_v44, %v1362_v41  ;;  %v1412_v50 = vadd.f32 %v1411_v46, %v1410_v42  ;;  %v464_v39 = vld [vmem:[%s1787_s30 + $0x78] sm:$0xff] }
 0x161   : > { %v480_v41 = vld [vmem:[%s1787_s30 + $0xf8] sm:$0xff] }
 0x162   : > { %1002 = vst [vmem:[%s1787_s30 + $0x40] sm:$0xff] %v970_v47  ;;  %1018 = vst [vmem:[%s1787_s30 + $0xc0] sm:$0xff] %v986_v48  ;;  %v971_v51 = vadd.f32 %v1364_v49, %v458_v43  ;;  %v987_v52 = vadd.f32 %v1412_v50, %v474_v45  ;;  %v1030_v49 = vld [vmem:[%s1787_s30] sm:$0xff] (!%p1315_p13) }
 0x163   : > { %v1941_v50 = vld [vmem:[%s2061_s2] ss:$0 sm:$0xff] (!%p1315_p13) }
 0x164   : > { %1003 = vst [vmem:[%s1787_s30 + $0x48] sm:$0xff] %v971_v51  ;;  %1019 = vst [vmem:[%s1787_s30 + $0xc8] sm:$0xff] %v987_v52  ;;  %v1365_v53 = vpop.f32.mrb[20].mxu0  ;;  %v1413_v54 = vpop.f32.mrb[20].mxu1  ;;  %v1031_v51 = vld [vmem:[%s1787_s30 + $0x8] sm:$0xff] (!%p1315_p13)  ;;  %v1069_v52 = vadd.f32 (!%p1315_p13), %v1941_v50, %v1030_v49 }
 0x165   : > { %v1366_v56 = vpop.f32.mrb[21].mxu0  ;;  %v1414_v58 = vpop.f32.mrb[21].mxu1 }
 0x166   : > { %v1367_v59 = vadd.f32 %v1366_v56, %v1365_v53  ;;  %v1415_v60 = vadd.f32 %v1414_v58, %v1413_v54  ;;  %v1368_v61 = vpop.f32.mrb[22].mxu0  ;;  %v1416_v62 = vpop.f32.mrb[22].mxu1  ;;  %v1070_v53 = vadd.f32 (!%p1315_p13), %v1941_v50, %v1031_v51  ;;  %v1032_v54 = vld [vmem:[%s1787_s30 + $0x10] sm:$0xff] (!%p1315_p13)  ;;  %v1034_v56 = vld [vmem:[%s1787_s30 + $0x20] sm:$0xff] (!%p1315_p13)  ;;  %1101 = vst [vmem:[%s1787_s30] sm:$0xff] (!%p1315_p13), %v1069_v52 }
 0x167   : > { %v1369_v0 = vpop.f32.mrb[23].mxu0  ;;  %v1417_v2 = vpop.f32.mrb[23].mxu1 }
 0x168   : > { %v972_v3 = vadd.f32 %v1367_v59, %v459_v55  ;;  %v988_v4 = vadd.f32 %v1415_v60, %v475_v57  ;;  %v1370_v5 = vadd.f32 %v1369_v0, %v1368_v61  ;;  %v1418_v6 = vadd.f32 %v1417_v2, %v1416_v62  ;;  %v1033_v55 = vld [vmem:[%s1787_s30 + $0x18] sm:$0xff] (!%p1315_p13)  ;;  %v1035_v60 = vld [vmem:[%s1787_s30 + $0x28] sm:$0xff] (!%p1315_p13)  ;;  %v1036_v61 = vld [vmem:[%s1787_s30 + $0x30] sm:$0xff] (!%p1315_p13)  ;;  %1102 = vst [vmem:[%s1787_s30 + $0x8] sm:$0xff] (!%p1315_p13), %v1070_v53 }
 0x169   : > { %v1071_v57 = vadd.f32 (!%p1315_p13), %v1941_v50, %v1032_v54  ;;  %v1072_v58 = vadd.f32 (!%p1315_p13), %v1941_v50, %v1033_v55  ;;  %v1073_v59 = vadd.f32 (!%p1315_p13), %v1941_v50, %v1034_v56  ;;  %v1037_v62 = vld [vmem:[%s1787_s30 + $0x38] sm:$0xff] (!%p1315_p13)  ;;  %v1075_v0 = vadd.f32 (!%p1315_p13), %v1941_v50, %v1036_v61  ;;  %v1038_v2 = vld [vmem:[%s1787_s30 + $0x40] sm:$0xff] (!%p1315_p13) }
 0x16a   : > { %1004 = vst [vmem:[%s1787_s30 + $0x50] sm:$0xff] %v972_v3  ;;  %1020 = vst [vmem:[%s1787_s30 + $0xd0] sm:$0xff] %v988_v4  ;;  %v973_v7 = vadd.f32 %v1370_v5, %v460_v63  ;;  %v989_v8 = vadd.f32 %v1418_v6, %v476_v1  ;;  %v1074_v63 = vadd.f32 (!%p1315_p13), %v1941_v50, %v1035_v60 }
 0x16b   : > { %v1076_v1 = vadd.f32 (!%p1315_p13), %v1941_v50, %v1037_v62  ;;  %v1039_v3 = vld [vmem:[%s1787_s30 + $0x48] sm:$0xff] (!%p1315_p13)  ;;  %1103 = vst [vmem:[%s1787_s30 + $0x10] sm:$0xff] (!%p1315_p13), %v1071_v57  ;;  %1104 = vst [vmem:[%s1787_s30 + $0x18] sm:$0xff] (!%p1315_p13), %v1072_v58  ;;  %v1077_v5 = vadd.f32 (!%p1315_p13), %v1941_v50, %v1038_v2 }
 0x16c   : > { %1005 = vst [vmem:[%s1787_s30 + $0x58] sm:$0xff] %v973_v7  ;;  %1021 = vst [vmem:[%s1787_s30 + $0xd8] sm:$0xff] %v989_v8  ;;  %v1371_v9 = vpop.f32.mrb[24].mxu0  ;;  %v1419_v10 = vpop.f32.mrb[24].mxu1  ;;  %v1078_v6 = vadd.f32 (!%p1315_p13), %v1941_v50, %v1039_v3 }
 0x16d   : > { %v1372_v12 = vpop.f32.mrb[25].mxu0  ;;  %v1420_v14 = vpop.f32.mrb[25].mxu1  ;;  %1105 = vst [vmem:[%s1787_s30 + $0x20] sm:$0xff] (!%p1315_p13), %v1073_v59  ;;  %1106 = vst [vmem:[%s1787_s30 + $0x28] sm:$0xff] (!%p1315_p13), %v1074_v63 }
 0x16e   : > { %v1373_v15 = vadd.f32 %v1372_v12, %v1371_v9  ;;  %v1421_v16 = vadd.f32 %v1420_v14, %v1419_v10  ;;  %v1374_v17 = vpop.f32.mrb[26].mxu0  ;;  %v1422_v18 = vpop.f32.mrb[26].mxu1  ;;  %1107 = vst [vmem:[%s1787_s30 + $0x30] sm:$0xff] (!%p1315_p13), %v1075_v0  ;;  %1108 = vst [vmem:[%s1787_s30 + $0x38] sm:$0xff] (!%p1315_p13), %v1076_v1 }
 0x16f   : > { %v1375_v20 = vpop.f32.mrb[27].mxu0  ;;  %v1423_v22 = vpop.f32.mrb[27].mxu1  ;;  %1109 = vst [vmem:[%s1787_s30 + $0x40] sm:$0xff] (!%p1315_p13), %v1077_v5  ;;  %1110 = vst [vmem:[%s1787_s30 + $0x48] sm:$0xff] (!%p1315_p13), %v1078_v6 }
 0x170   : > { %v974_v23 = vadd.f32 %v1373_v15, %v461_v11  ;;  %v990_v24 = vadd.f32 %v1421_v16, %v477_v13  ;;  %v1376_v25 = vadd.f32 %v1375_v20, %v1374_v17  ;;  %v1424_v26 = vadd.f32 %v1423_v22, %v1422_v18  ;;  %v1046_v16 = vld [vmem:[%s1787_s30 + $0x80] sm:$0xff] (!%p1315_p13)  ;;  %v1047_v20 = vld [vmem:[%s1787_s30 + $0x88] sm:$0xff] (!%p1315_p13)  ;;  %v1049_v22 = vld [vmem:[%s1787_s30 + $0x98] sm:$0xff] (!%p1315_p13) }
 0x171   : > { %v1040_v4 = vld [vmem:[%s1787_s30 + $0x50] sm:$0xff] (!%p1315_p13) }
 0x172   : > { %1006 = vst [vmem:[%s1787_s30 + $0x60] sm:$0xff] %v974_v23  ;;  %1022 = vst [vmem:[%s1787_s30 + $0xe0] sm:$0xff] %v990_v24  ;;  %v975_v27 = vadd.f32 %v1376_v25, %v462_v19  ;;  %v991_v28 = vadd.f32 %v1424_v26, %v478_v21  ;;  %v1079_v7 = vadd.f32 (!%p1315_p13), %v1941_v50, %v1040_v4  ;;  %v1048_v21 = vld [vmem:[%s1787_s30 + $0x90] sm:$0xff] (!%p1315_p13)  ;;  %v1050_v26 = vld [vmem:[%s1787_s30 + $0xa0] sm:$0xff] (!%p1315_p13) }
 0x173   : > { %v1041_v8 = vld [vmem:[%s1787_s30 + $0x58] sm:$0xff] (!%p1315_p13)  ;;  %v1085_v19 = vadd.f32 (!%p1315_p13), %v1941_v50, %v1046_v16  ;;  %v1086_v23 = vadd.f32 (!%p1315_p13), %v1941_v50, %v1047_v20  ;;  %v1087_v24 = vadd.f32 (!%p1315_p13), %v1941_v50, %v1048_v21  ;;  %v1088_v25 = vadd.f32 (!%p1315_p13), %v1941_v50, %v1049_v22 }
 0x174   : > { %1007 = vst [vmem:[%s1787_s30 + $0x68] sm:$0xff] %v975_v27  ;;  %1023 = vst [vmem:[%s1787_s30 + $0xe8] sm:$0xff] %v991_v28  ;;  %v1377_v29 = vpop.f32.mrb[28].mxu0  ;;  %v1425_v30 = vpop.f32.mrb[28].mxu1  ;;  %v1080_v11 = vadd.f32 (!%p1315_p13), %v1941_v50, %v1041_v8  ;;  %v1051_v27 = vld [vmem:[%s1787_s30 + $0xa8] sm:$0xff] (!%p1315_p13)  ;;  %v1052_v28 = vld [vmem:[%s1787_s30 + $0xb0] sm:$0xff] (!%p1315_p13) }
 0x175   : > { %v1378_v32 = vpop.f32.mrb[29].mxu0  ;;  %v1426_v34 = vpop.f32.mrb[29].mxu1  ;;  %1111 = vst [vmem:[%s1787_s30 + $0x50] sm:$0xff] (!%p1315_p13), %v1079_v7  ;;  %1117 = vst [vmem:[%s1787_s30 + $0x80] sm:$0xff] (!%p1315_p13), %v1085_v19 }
 0x176   : > { %v1379_v35 = vadd.f32 %v1378_v32, %v1377_v29  ;;  %v1427_v36 = vadd.f32 %v1426_v34, %v1425_v30  ;;  %v1380_v37 = vpop.f32.mrb[30].mxu0  ;;  %v1428_v38 = vpop.f32.mrb[30].mxu1  ;;  %1029 = sbr.rel (%p1315_p13) target bundleno = 392 (0x188), region = 78  ;;  %1112 = vst [vmem:[%s1787_s30 + $0x58] sm:$0xff] (!%p1315_p13), %v1080_v11  ;;  %v1089_v29 = vadd.f32 (!%p1315_p13), %v1941_v50, %v1050_v26  ;;  %v1090_v30 = vadd.f32 (!%p1315_p13), %v1941_v50, %v1051_v27  ;;  %v1053_v32 = vld [vmem:[%s1787_s30 + $0xb8] sm:$0xff] (!%p1315_p13)  ;;  %v1055_v34 = vld [vmem:[%s1787_s30 + $0xc8] sm:$0xff] (!%p1315_p13) }
 0x177   : > { %v1381_v40 = vpop.f32.mrb[31].mxu0  ;;  %v1429_v42 = vpop.f32.mrb[31].mxu1  ;;  %1118 = vst [vmem:[%s1787_s30 + $0x88] sm:$0xff] (!%p1315_p13), %v1086_v23  ;;  %1119 = vst [vmem:[%s1787_s30 + $0x90] sm:$0xff] (!%p1315_p13), %v1087_v24 }
 0x178   : > { %v976_v43 = vadd.f32 %v1379_v35, %v463_v31  ;;  %v992_v44 = vadd.f32 %v1427_v36, %v479_v33  ;;  %v1382_v45 = vadd.f32 %v1381_v40, %v1380_v37  ;;  %v1430_v46 = vadd.f32 %v1429_v42, %v1428_v38  ;;  %v1054_v33 = vld [vmem:[%s1787_s30 + $0xc0] sm:$0xff] (!%p1315_p13)  ;;  %1120 = vst [vmem:[%s1787_s30 + $0x98] sm:$0xff] (!%p1315_p13), %v1088_v25  ;;  %v1056_v38 = vld [vmem:[%s1787_s30 + $0xd0] sm:$0xff] (!%p1315_p13) }
 0x179   : > { %v1042_v9 = vld [vmem:[%s1787_s30 + $0x60] sm:$0xff] (!%p1315_p13)  ;;  %v1091_v31 = vadd.f32 (!%p1315_p13), %v1941_v50, %v1052_v28  ;;  %v1092_v35 = vadd.f32 (!%p1315_p13), %v1941_v50, %v1053_v32  ;;  %v1093_v36 = vadd.f32 (!%p1315_p13), %v1941_v50, %v1054_v33  ;;  %v1094_v37 = vadd.f32 (!%p1315_p13), %v1941_v50, %v1055_v34  ;;  %1121 = vst [vmem:[%s1787_s30 + $0xa0] sm:$0xff] (!%p1315_p13), %v1089_v29 }
 0x17a   : > { %1008 = vst [vmem:[%s1787_s30 + $0x70] sm:$0xff] %v976_v43  ;;  %1024 = vst [vmem:[%s1787_s30 + $0xf0] sm:$0xff] %v992_v44  ;;  %v977_v47 = vadd.f32 %v1382_v45, %v464_v39  ;;  %v993_v48 = vadd.f32 %v1430_v46, %v480_v41  ;;  %v1081_v12 = vadd.f32 (!%p1315_p13), %v1941_v50, %v1042_v9  ;;  %v1057_v39 = vld [vmem:[%s1787_s30 + $0xd8] sm:$0xff] (!%p1315_p13)  ;;  %v1058_v40 = vld [vmem:[%s1787_s30 + $0xe0] sm:$0xff] (!%p1315_p13) }
 0x17b   : > { %v1043_v10 = vld [vmem:[%s1787_s30 + $0x68] sm:$0xff] (!%p1315_p13)  ;;  %1122 = vst [vmem:[%s1787_s30 + $0xa8] sm:$0xff] (!%p1315_p13), %v1090_v30  ;;  %1123 = vst [vmem:[%s1787_s30 + $0xb0] sm:$0xff] (!%p1315_p13), %v1091_v31  ;;  %v1095_v41 = vadd.f32 (!%p1315_p13), %v1941_v50, %v1056_v38  ;;  %v1096_v42 = vadd.f32 (!%p1315_p13), %v1941_v50, %v1057_v39  ;;  %v1097_v43 = vadd.f32 (!%p1315_p13), %v1941_v50, %v1058_v40 }
 0x17c   : > { %1009 = vst [vmem:[%s1787_s30 + $0x78] sm:$0xff] %v977_v47  ;;  %1025 = vst [vmem:[%s1787_s30 + $0xf8] sm:$0xff] %v993_v48  ;;  %v1082_v13 = vadd.f32 (!%p1315_p13), %v1941_v50, %v1043_v10  ;;  %v1059_v44 = vld [vmem:[%s1787_s30 + $0xe8] sm:$0xff] (!%p1315_p13) }
 0x17d   : > { %1113 = vst [vmem:[%s1787_s30 + $0x60] sm:$0xff] %v1081_v12  ;;  %1124 = vst [vmem:[%s1787_s30 + $0xb8] sm:$0xff] %v1092_v35  ;;  %v1098_v47 = vadd.f32 %v1941_v50, %v1059_v44 }
 0x17e   : > { %1114 = vst [vmem:[%s1787_s30 + $0x68] sm:$0xff] %v1082_v13  ;;  %1125 = vst [vmem:[%s1787_s30 + $0xc0] sm:$0xff] %v1093_v36 }
 0x17f   : > { %1126 = vst [vmem:[%s1787_s30 + $0xc8] sm:$0xff] %v1094_v37  ;;  %1127 = vst [vmem:[%s1787_s30 + $0xd0] sm:$0xff] %v1095_v41 }
 0x180   : > { %1128 = vst [vmem:[%s1787_s30 + $0xd8] sm:$0xff] %v1096_v42  ;;  %1129 = vst [vmem:[%s1787_s30 + $0xe0] sm:$0xff] %v1097_v43 }
 0x181   : > { %v1044_v14 = vld [vmem:[%s1787_s30 + $0x70] sm:$0xff]  ;;  %1130 = vst [vmem:[%s1787_s30 + $0xe8] sm:$0xff] %v1098_v47 }
 0x182   : > { %v1083_v17 = vadd.f32 %v1941_v50, %v1044_v14  ;;  %v1060_v45 = vld [vmem:[%s1787_s30 + $0xf0] sm:$0xff] }
 0x183   : > { %v1045_v15 = vld [vmem:[%s1787_s30 + $0x78] sm:$0xff]  ;;  %v1099_v48 = vadd.f32 %v1941_v50, %v1060_v45 }
 0x184   : > { %v1084_v18 = vadd.f32 %v1941_v50, %v1045_v15  ;;  %1115 = vst [vmem:[%s1787_s30 + $0x70] sm:$0xff] %v1083_v17  ;;  %v1061_v46 = vld [vmem:[%s1787_s30 + $0xf8] sm:$0xff] }
 0x185   : > { %v1100_v49 = vadd.f32 %v1941_v50, %v1061_v46  ;;  %1131 = vst [vmem:[%s1787_s30 + $0xf0] sm:$0xff] %v1099_v48 }
 0x186   : > { %1116 = vst [vmem:[%s1787_s30 + $0x78] sm:$0xff] %v1084_v18 }
 0x187   : > { %1132 = vst [vmem:[%s1787_s30 + $0xf8] sm:$0xff] %v1100_v49 }
 0x188 PF: > { %s13_s18 = sadd.s32 1, %s1623_s18   ;;  %s2063_s12 = smov %s1603_s13 }
 0x189   : > { %p10_p0 = scmp.ge.s32.totalorder %s13_s18, 16   ;;  %s2064_s13 = smov %s1697_s25 }
 0x18a   : > { %s2065_s14 = smov %s1615_s16  ;;  %s2066_s15 = smov %s1619_s17 }
 0x18b   : > { %s2067_s16 = smov %s2070_s19  ;;  %s2068_s17 = smov %s2074_s20 }
 0x18c   :  { %12 = sbr.rel (!%p10_p0) target bundleno = 4 (0x4), region = 119 }

// kernel: snunet_forward.50
= control target key start
LH: loop header
LB: loop body
LE: loop exit
PB: predicated region body
PF: predicated region fallthrough
CT: control target
= control target key end

     0   :  { %s2322_s12 = smov 0   ;;  %s2324_s13 = smov 0   ;;  %s2847_s0 = inlined_call_operand.vmem [shape: bf16[512,2048], index: 0, kind: input, shape index: {}]   ;;  %s2848_s1 = inlined_call_operand.vmem [shape: bf16[2048,128], index: 1, kind: input, shape index: {}]   ;;  %s2849_s2 = inlined_call_operand.vmem [shape: f32[1,128], index: 2, kind: input, shape index: {}]   ;;  %s2850_s3 = inlined_call_operand.vmem [shape: f32[512,128], index: 3, kind: output, shape index: {}]  }
   0x1   :  { %s2326_s14 = smov 0   ;;  %s2328_s15 = smov 0  }
   0x2   :  { %s2330_s16 = smov 0   ;;  %s2332_s17 = smov 0  }
   0x3   :  { %s2334_s18 = smov 0  }
   0x4 LB: > { %s25_s19 = sadd.s32 1, %s2291_s16  ;;  %s32_s20 = sadd.s32 1, %s2295_s17  ;;  %s2299_s18 = sphi %s2334_s18, %s13_s18   ;;  %s2295_s17 = sphi %s2332_s17, %s2856_s17   ;;  %s2291_s16 = sphi %s2330_s16, %s2855_s16   ;;  %s2287_s15 = sphi %s2328_s15, %s2854_s15   ;;  %s2283_s14 = sphi %s2326_s14, %s2853_s14   ;;  %s2279_s13 = sphi %s2324_s13, %s2852_s13   ;;  %s2275_s12 = sphi %s2322_s12, %s2851_s12  }
   0x5   : > { %p26_p0 = scmp.ge.s32.totalorder %s25_s19, 4  ;;  %p48_p1 = scmp.ne.s32.totalorder %s2279_s13, %s2275_s12 }
   0x6   : > { %p49_p2 = scmp.eq.s32.totalorder %s2299_s18, 0  ;;  %s41_s24 = sadd.s32 1, %s2279_s13 }
   0x7   : > { %s2858_s19 = smov (%p26_p0, %s25_s19), 0  ;;  %s2860_s20 = smov (!%p26_p0, %s32_s20), %s2295_s17 }
   0x8   : > { %p50_p3 = por %p49_p2, %p48_p1  ;;  %p34_p4 = scmp.ge.s32.totalorder %s2860_s20, 2 }
   0x9   : > { %s37_s21 = ssub.s32 %s2291_s16, %s2858_s19  ;;  %p1722_p6 = scmp.ge.s32.totalorder %s2299_s18, 8 }
   0xa   : > { %s2862_s20 = smov (%p34_p4, %s2860_s20), 0 }
   0xb   : > { %s36_s22 = ssub.s32 %s2295_s17, %s2862_s20  ;;  %162 = sbr.rel (%p1722_p6) target bundleno = 57 (0x39), region = 20 }
   0xc   : > { %s38_s23 = sor.u32 %s37_s21, %s36_s22 }
   0xd   : > { %p39_p5 = scmp.eq.s32.totalorder %s38_s23, 0 }
   0xf   : > { %s2373_s25 = scalar_select %p39_p5, %s2279_s13, %s41_s24  }
  0x12   : > { %165 = sbr.rel (!%p50_p3) target bundleno = 57 (0x39), region = 24  ;;  %s167_s26 = sand.u32 (%p50_p3), 1, %s2279_s13  }
  0x13   : > { %s1725_s27 = sshll.u32 (%p50_p3), %s2291_s16, 2  ;;  %s1723_s28 = sshll.u32 (%p50_p3), %s167_s26, 9 }
  0x14   : > { %s1835_s29 = sshll.u32 (%p50_p3), %s2295_s17, 9  ;;  %s2387_s8 = scalar_lea.vmem (%p50_p3), [#allocation2], %s1723_s28 }
  0x15   : > { %s173_s30 = sadd.s32 (%p50_p3), %s1835_s29, %s1725_s27 }
  0x16   : > { %s1727_s4 = sshll.u32 (%p50_p3), %s173_s30, 2 }
  0x17   : > { %s2382_s7 = scalar_lea.vmem (%p50_p3), %s2847_s0, %s1727_s4 }
  0x18   : > { %v188_v0 = vld [vmem:[%s2382_s7] sm:$0xff] (%p50_p3)  ;;  %v190_v1 = vld [vmem:[%s2382_s7 + $0x8] sm:$0xff] (%p50_p3) }
  0x19   : > { %v192_v2 = vld [vmem:[%s2382_s7 + $0x40] sm:$0xff]  ;;  %189 = vst [vmem:[%s2387_s8] sm:$0xff] %v188_v0  ;;  %191 = vst [vmem:[%s2387_s8 + $0x8] sm:$0xff] %v190_v1  ;;  %v194_v3 = vld [vmem:[%s2382_s7 + $0x48] sm:$0xff] }
  0x1a   : > { %193 = vst [vmem:[%s2387_s8 + $0x10] sm:$0xff] %v192_v2  ;;  %v196_v4 = vld [vmem:[%s2382_s7 + $0x80] sm:$0xff]  ;;  %v198_v5 = vld [vmem:[%s2382_s7 + $0x88] sm:$0xff]  ;;  %195 = vst [vmem:[%s2387_s8 + $0x18] sm:$0xff] %v194_v3 }
  0x1b   : > { %197 = vst [vmem:[%s2387_s8 + $0x20] sm:$0xff] %v196_v4  ;;  %199 = vst [vmem:[%s2387_s8 + $0x28] sm:$0xff] %v198_v5  ;;  %v200_v6 = vld [vmem:[%s2382_s7 + $0xc0] sm:$0xff]  ;;  %v202_v7 = vld [vmem:[%s2382_s7 + $0xc8] sm:$0xff] }
  0x1c   : > { %v204_v8 = vld [vmem:[%s2382_s7 + $0x100] sm:$0xff]  ;;  %201 = vst [vmem:[%s2387_s8 + $0x30] sm:$0xff] %v200_v6  ;;  %203 = vst [vmem:[%s2387_s8 + $0x38] sm:$0xff] %v202_v7  ;;  %v206_v9 = vld [vmem:[%s2382_s7 + $0x108] sm:$0xff] }
  0x1d   : > { %205 = vst [vmem:[%s2387_s8 + $0x40] sm:$0xff] %v204_v8  ;;  %v208_v10 = vld [vmem:[%s2382_s7 + $0x140] sm:$0xff]  ;;  %v210_v11 = vld [vmem:[%s2382_s7 + $0x148] sm:$0xff]  ;;  %207 = vst [vmem:[%s2387_s8 + $0x48] sm:$0xff] %v206_v9 }
  0x1e   : > { %209 = vst [vmem:[%s2387_s8 + $0x50] sm:$0xff] %v208_v10  ;;  %211 = vst [vmem:[%s2387_s8 + $0x58] sm:$0xff] %v210_v11  ;;  %v212_v12 = vld [vmem:[%s2382_s7 + $0x180] sm:$0xff]  ;;  %v214_v13 = vld [vmem:[%s2382_s7 + $0x188] sm:$0xff] }
  0x1f   : > { %v216_v14 = vld [vmem:[%s2382_s7 + $0x1c0] sm:$0xff]  ;;  %213 = vst [vmem:[%s2387_s8 + $0x60] sm:$0xff] %v212_v12  ;;  %215 = vst [vmem:[%s2387_s8 + $0x68] sm:$0xff] %v214_v13  ;;  %v218_v15 = vld [vmem:[%s2382_s7 + $0x1c8] sm:$0xff] }
  0x20   : > { %217 = vst [vmem:[%s2387_s8 + $0x70] sm:$0xff] %v216_v14  ;;  %v220_v16 = vld [vmem:[%s2382_s7 + $0x200] sm:$0xff]  ;;  %v222_v17 = vld [vmem:[%s2382_s7 + $0x208] sm:$0xff]  ;;  %219 = vst [vmem:[%s2387_s8 + $0x78] sm:$0xff] %v218_v15 }
  0x21   : > { %221 = vst [vmem:[%s2387_s8 + $0x80] sm:$0xff] %v220_v16  ;;  %223 = vst [vmem:[%s2387_s8 + $0x88] sm:$0xff] %v222_v17  ;;  %v224_v18 = vld [vmem:[%s2382_s7 + $0x240] sm:$0xff]  ;;  %v226_v19 = vld [vmem:[%s2382_s7 + $0x248] sm:$0xff] }
  0x22   : > { %v228_v20 = vld [vmem:[%s2382_s7 + $0x280] sm:$0xff]  ;;  %225 = vst [vmem:[%s2387_s8 + $0x90] sm:$0xff] %v224_v18  ;;  %227 = vst [vmem:[%s2387_s8 + $0x98] sm:$0xff] %v226_v19  ;;  %v230_v21 = vld [vmem:[%s2382_s7 + $0x288] sm:$0xff] }
  0x23   : > { %229 = vst [vmem:[%s2387_s8 + $0xa0] sm:$0xff] %v228_v20  ;;  %v232_v22 = vld [vmem:[%s2382_s7 + $0x2c0] sm:$0xff]  ;;  %v234_v23 = vld [vmem:[%s2382_s7 + $0x2c8] sm:$0xff]  ;;  %231 = vst [vmem:[%s2387_s8 + $0xa8] sm:$0xff] %v230_v21 }
  0x24   : > { %233 = vst [vmem:[%s2387_s8 + $0xb0] sm:$0xff] %v232_v22  ;;  %235 = vst [vmem:[%s2387_s8 + $0xb8] sm:$0xff] %v234_v23  ;;  %v236_v24 = vld [vmem:[%s2382_s7 + $0x300] sm:$0xff]  ;;  %v238_v25 = vld [vmem:[%s2382_s7 + $0x308] sm:$0xff] }
  0x25   : > { %v240_v26 = vld [vmem:[%s2382_s7 + $0x340] sm:$0xff]  ;;  %237 = vst [vmem:[%s2387_s8 + $0xc0] sm:$0xff] %v236_v24  ;;  %239 = vst [vmem:[%s2387_s8 + $0xc8] sm:$0xff] %v238_v25  ;;  %v242_v27 = vld [vmem:[%s2382_s7 + $0x348] sm:$0xff] }
  0x26   : > { %241 = vst [vmem:[%s2387_s8 + $0xd0] sm:$0xff] %v240_v26  ;;  %v244_v28 = vld [vmem:[%s2382_s7 + $0x380] sm:$0xff]  ;;  %v246_v29 = vld [vmem:[%s2382_s7 + $0x388] sm:$0xff]  ;;  %243 = vst [vmem:[%s2387_s8 + $0xd8] sm:$0xff] %v242_v27 }
  0x27   : > { %245 = vst [vmem:[%s2387_s8 + $0xe0] sm:$0xff] %v244_v28  ;;  %247 = vst [vmem:[%s2387_s8 + $0xe8] sm:$0xff] %v246_v29  ;;  %v248_v30 = vld [vmem:[%s2382_s7 + $0x3c0] sm:$0xff]  ;;  %v250_v31 = vld [vmem:[%s2382_s7 + $0x3c8] sm:$0xff] }
  0x28   : > { %v252_v32 = vld [vmem:[%s2382_s7 + $0x400] sm:$0xff]  ;;  %249 = vst [vmem:[%s2387_s8 + $0xf0] sm:$0xff] %v248_v30  ;;  %251 = vst [vmem:[%s2387_s8 + $0xf8] sm:$0xff] %v250_v31  ;;  %v254_v33 = vld [vmem:[%s2382_s7 + $0x408] sm:$0xff] }
  0x29   : > { %253 = vst [vmem:[%s2387_s8 + $0x100] sm:$0xff] %v252_v32  ;;  %v256_v34 = vld [vmem:[%s2382_s7 + $0x440] sm:$0xff]  ;;  %v258_v35 = vld [vmem:[%s2382_s7 + $0x448] sm:$0xff]  ;;  %255 = vst [vmem:[%s2387_s8 + $0x108] sm:$0xff] %v254_v33 }
  0x2a   : > { %257 = vst [vmem:[%s2387_s8 + $0x110] sm:$0xff] %v256_v34  ;;  %259 = vst [vmem:[%s2387_s8 + $0x118] sm:$0xff] %v258_v35  ;;  %v260_v36 = vld [vmem:[%s2382_s7 + $0x480] sm:$0xff]  ;;  %v262_v37 = vld [vmem:[%s2382_s7 + $0x488] sm:$0xff] }
  0x2b   : > { %v264_v38 = vld [vmem:[%s2382_s7 + $0x4c0] sm:$0xff]  ;;  %261 = vst [vmem:[%s2387_s8 + $0x120] sm:$0xff] %v260_v36  ;;  %263 = vst [vmem:[%s2387_s8 + $0x128] sm:$0xff] %v262_v37  ;;  %v266_v39 = vld [vmem:[%s2382_s7 + $0x4c8] sm:$0xff] }
  0x2c   : > { %265 = vst [vmem:[%s2387_s8 + $0x130] sm:$0xff] %v264_v38  ;;  %v268_v40 = vld [vmem:[%s2382_s7 + $0x500] sm:$0xff]  ;;  %v270_v41 = vld [vmem:[%s2382_s7 + $0x508] sm:$0xff]  ;;  %267 = vst [vmem:[%s2387_s8 + $0x138] sm:$0xff] %v266_v39 }
  0x2d   : > { %269 = vst [vmem:[%s2387_s8 + $0x140] sm:$0xff] %v268_v40  ;;  %271 = vst [vmem:[%s2387_s8 + $0x148] sm:$0xff] %v270_v41  ;;  %v272_v42 = vld [vmem:[%s2382_s7 + $0x540] sm:$0xff]  ;;  %v274_v43 = vld [vmem:[%s2382_s7 + $0x548] sm:$0xff] }
  0x2e   : > { %v276_v44 = vld [vmem:[%s2382_s7 + $0x580] sm:$0xff]  ;;  %273 = vst [vmem:[%s2387_s8 + $0x150] sm:$0xff] %v272_v42  ;;  %275 = vst [vmem:[%s2387_s8 + $0x158] sm:$0xff] %v274_v43  ;;  %v278_v45 = vld [vmem:[%s2382_s7 + $0x588] sm:$0xff] }
  0x2f   : > { %277 = vst [vmem:[%s2387_s8 + $0x160] sm:$0xff] %v276_v44  ;;  %v280_v46 = vld [vmem:[%s2382_s7 + $0x5c0] sm:$0xff]  ;;  %v282_v47 = vld [vmem:[%s2382_s7 + $0x5c8] sm:$0xff]  ;;  %279 = vst [vmem:[%s2387_s8 + $0x168] sm:$0xff] %v278_v45 }
  0x30   : > { %281 = vst [vmem:[%s2387_s8 + $0x170] sm:$0xff] %v280_v46  ;;  %283 = vst [vmem:[%s2387_s8 + $0x178] sm:$0xff] %v282_v47  ;;  %v284_v48 = vld [vmem:[%s2382_s7 + $0x600] sm:$0xff]  ;;  %v286_v49 = vld [vmem:[%s2382_s7 + $0x608] sm:$0xff] }
  0x31   : > { %v288_v50 = vld [vmem:[%s2382_s7 + $0x640] sm:$0xff]  ;;  %285 = vst [vmem:[%s2387_s8 + $0x180] sm:$0xff] %v284_v48  ;;  %287 = vst [vmem:[%s2387_s8 + $0x188] sm:$0xff] %v286_v49  ;;  %v290_v51 = vld [vmem:[%s2382_s7 + $0x648] sm:$0xff] }
  0x32   : > { %289 = vst [vmem:[%s2387_s8 + $0x190] sm:$0xff] %v288_v50  ;;  %v292_v52 = vld [vmem:[%s2382_s7 + $0x680] sm:$0xff]  ;;  %v294_v53 = vld [vmem:[%s2382_s7 + $0x688] sm:$0xff]  ;;  %291 = vst [vmem:[%s2387_s8 + $0x198] sm:$0xff] %v290_v51 }
  0x33   : > { %293 = vst [vmem:[%s2387_s8 + $0x1a0] sm:$0xff] %v292_v52  ;;  %295 = vst [vmem:[%s2387_s8 + $0x1a8] sm:$0xff] %v294_v53  ;;  %v296_v54 = vld [vmem:[%s2382_s7 + $0x6c0] sm:$0xff]  ;;  %v298_v55 = vld [vmem:[%s2382_s7 + $0x6c8] sm:$0xff] }
  0x34   : > { %v300_v56 = vld [vmem:[%s2382_s7 + $0x700] sm:$0xff]  ;;  %297 = vst [vmem:[%s2387_s8 + $0x1b0] sm:$0xff] %v296_v54  ;;  %299 = vst [vmem:[%s2387_s8 + $0x1b8] sm:$0xff] %v298_v55  ;;  %v302_v57 = vld [vmem:[%s2382_s7 + $0x708] sm:$0xff] }
  0x35   : > { %301 = vst [vmem:[%s2387_s8 + $0x1c0] sm:$0xff] %v300_v56  ;;  %v304_v58 = vld [vmem:[%s2382_s7 + $0x740] sm:$0xff]  ;;  %v306_v59 = vld [vmem:[%s2382_s7 + $0x748] sm:$0xff]  ;;  %303 = vst [vmem:[%s2387_s8 + $0x1c8] sm:$0xff] %v302_v57 }
  0x36   : > { %305 = vst [vmem:[%s2387_s8 + $0x1d0] sm:$0xff] %v304_v58  ;;  %307 = vst [vmem:[%s2387_s8 + $0x1d8] sm:$0xff] %v306_v59  ;;  %v308_v60 = vld [vmem:[%s2382_s7 + $0x780] sm:$0xff]  ;;  %v310_v61 = vld [vmem:[%s2382_s7 + $0x788] sm:$0xff] }
  0x37   : > { %v312_v62 = vld [vmem:[%s2382_s7 + $0x7c0] sm:$0xff]  ;;  %309 = vst [vmem:[%s2387_s8 + $0x1e0] sm:$0xff] %v308_v60  ;;  %311 = vst [vmem:[%s2387_s8 + $0x1e8] sm:$0xff] %v310_v61  ;;  %v314_v63 = vld [vmem:[%s2382_s7 + $0x7c8] sm:$0xff] }
  0x38   : > { %313 = vst [vmem:[%s2387_s8 + $0x1f0] sm:$0xff] %v312_v62  ;;  %315 = vst [vmem:[%s2387_s8 + $0x1f8] sm:$0xff] %v314_v63 }
  0x39 PF: > { %p1728_p7 = scmp.ge.s32.totalorder %s2299_s18, 1  ;;  %p332_p8 = scmp.lt.s32.totalorder %s2299_s18, 9 }
  0x3b   : > { %p333_p9 = pnand %p1728_p7, %p332_p8 }
  0x3c   : > { %s339_s9 = sand.u32 (!%p333_p9), 1, %s2275_s12   ;;  %s1730_s10 = sshll.u32 (!%p333_p9), %s2283_s14, 6 }
  0x3d   : > { %336 = sbr.rel (%p333_p9) target bundleno = 474 (0x1da), region = 51  ;;  %s1729_s11 = sshll.u32 (!%p333_p9), %s339_s9, 9 }
  0x3e   : > { %p379_p10 = scmp.lt.s32.totalorder (!%p333_p9), %s1730_s10, 255  ;;  %s1732_s21 = sshll.u32 (!%p333_p9), %s2287_s15, 5 }
  0x3f   : > { %p391_p11 = scmp.lt.s32.totalorder (!%p333_p9), %s1732_s21, 63  ;;  %s2529_s12 = scalar_lea.vmem (!%p333_p9), [#allocation2], %s1729_s11 }
  0x40   : > { %p1734_p12 = scmp.ne.s32.totalorder (!%p333_p9), %s2283_s14, 0 }
  0x44   : > { %s2864_s10 = smov (!%p379_p10, %s1730_s10), 255  ;;  %s2866_s21 = smov (!%p391_p11, %s1732_s21), 63 }
  0x45   : > { %s1731_s22 = sshll.u32 %s2864_s10, 2  ;;  %s1733_s27 = sshll.u32 %s2866_s21, 3  ;;  %v2301_v0 = vmov (!%p1734_p12), 0.0  }
  0x46   : > { %s2522_s26 = scalar_lea.vmem %s2848_s1, %s1731_s22  ;;  %s2527_s30 = scalar_lea.vmem %s2850_s3, %s1733_s27 }
  0x47   : > { %403 = sbr.rel (%p1734_p12) target bundleno = 87 (0x57), region = 59  ;;  %404 = vst [vmem:[%s2527_s30] sm:$0xff] (!%p1734_p12), %v2301_v0  ;;  %405 = vst [vmem:[%s2527_s30 + $0x8] sm:$0xff] (!%p1734_p12), %v2301_v0 }
  0x48   : > { %406 = vst [vmem:[%s2527_s30 + $0x10] sm:$0xff] (!%p1734_p12), %v2301_v0  ;;  %407 = vst [vmem:[%s2527_s30 + $0x18] sm:$0xff] (!%p1734_p12), %v2301_v0 }
  0x49   : > { %408 = vst [vmem:[%s2527_s30 + $0x20] sm:$0xff] (!%p1734_p12), %v2301_v0  ;;  %409 = vst [vmem:[%s2527_s30 + $0x28] sm:$0xff] (!%p1734_p12), %v2301_v0 }
  0x4a   : > { %410 = vst [vmem:[%s2527_s30 + $0x30] sm:$0xff] (!%p1734_p12), %v2301_v0  ;;  %411 = vst [vmem:[%s2527_s30 + $0x38] sm:$0xff] (!%p1734_p12), %v2301_v0 }
  0x4b   : > { %412 = vst [vmem:[%s2527_s30 + $0x40] sm:$0xff] (!%p1734_p12), %v2301_v0  ;;  %413 = vst [vmem:[%s2527_s30 + $0x48] sm:$0xff] (!%p1734_p12), %v2301_v0 }
  0x4c   : > { %414 = vst [vmem:[%s2527_s30 + $0x50] sm:$0xff] (!%p1734_p12), %v2301_v0  ;;  %415 = vst [vmem:[%s2527_s30 + $0x58] sm:$0xff] (!%p1734_p12), %v2301_v0 }
  0x4d   : > { %416 = vst [vmem:[%s2527_s30 + $0x60] sm:$0xff] (!%p1734_p12), %v2301_v0  ;;  %417 = vst [vmem:[%s2527_s30 + $0x68] sm:$0xff] (!%p1734_p12), %v2301_v0 }
  0x4e   : > { %418 = vst [vmem:[%s2527_s30 + $0x70] sm:$0xff] %v2301_v0  ;;  %419 = vst [vmem:[%s2527_s30 + $0x78] sm:$0xff] %v2301_v0 }
  0x4f   : > { %420 = vst [vmem:[%s2527_s30 + $0x80] sm:$0xff] %v2301_v0  ;;  %421 = vst [vmem:[%s2527_s30 + $0x88] sm:$0xff] %v2301_v0 }
  0x50   : > { %422 = vst [vmem:[%s2527_s30 + $0x90] sm:$0xff] %v2301_v0  ;;  %423 = vst [vmem:[%s2527_s30 + $0x98] sm:$0xff] %v2301_v0 }
  0x51   : > { %424 = vst [vmem:[%s2527_s30 + $0xa0] sm:$0xff] %v2301_v0  ;;  %425 = vst [vmem:[%s2527_s30 + $0xa8] sm:$0xff] %v2301_v0 }
  0x52   : > { %426 = vst [vmem:[%s2527_s30 + $0xb0] sm:$0xff] %v2301_v0  ;;  %427 = vst [vmem:[%s2527_s30 + $0xb8] sm:$0xff] %v2301_v0 }
  0x53   : > { %428 = vst [vmem:[%s2527_s30 + $0xc0] sm:$0xff] %v2301_v0  ;;  %429 = vst [vmem:[%s2527_s30 + $0xc8] sm:$0xff] %v2301_v0 }
  0x54   : > { %430 = vst [vmem:[%s2527_s30 + $0xd0] sm:$0xff] %v2301_v0  ;;  %431 = vst [vmem:[%s2527_s30 + $0xd8] sm:$0xff] %v2301_v0 }
  0x55   : > { %432 = vst [vmem:[%s2527_s30 + $0xe0] sm:$0xff] %v2301_v0  ;;  %433 = vst [vmem:[%s2527_s30 + $0xe8] sm:$0xff] %v2301_v0 }
  0x56   : > { %434 = vst [vmem:[%s2527_s30 + $0xf0] sm:$0xff] %v2301_v0  ;;  %435 = vst [vmem:[%s2527_s30 + $0xf8] sm:$0xff] %v2301_v0 }
  0x57 PF: > { %v2117_v1 = vld [vmem:[%s2522_s26 + $0x40] sm:$0xff]   ;;  %v2121_v5 = vld [vmem:[%s2522_s26 + $0x48] sm:$0xff]   ;;  %v2125_v9 = vld [vmem:[%s2522_s26 + $0x50] sm:$0xff]   ;;  %p1831_p13 = scmp.ne.s32.totalorder %s2283_s14, 3 }
  0x58   : > { %v2118_v2 = vld [vmem:[%s2522_s26 + $0xc0] sm:$0xff]   ;;  %1836 = vmatprep.subr.bf16.mxu0 %v2117_v1  ;;  %v2122_v6 = vld [vmem:[%s2522_s26 + $0xc8] sm:$0xff]   ;;  %v2126_v10 = vld [vmem:[%s2522_s26 + $0xd0] sm:$0xff]  }
  0x59   : > { %v2119_v3 = vld [vmem:[%s2522_s26] sm:$0xff]   ;;  %1948 = vmatprep.subr.bf16.mxu1 %v2118_v2  ;;  %v2123_v7 = vld [vmem:[%s2522_s26 + $0x8] sm:$0xff]   ;;  %v2127_v11 = vld [vmem:[%s2522_s26 + $0x10] sm:$0xff]  }
  0x5a   : > { %v2120_v4 = vld [vmem:[%s2522_s26 + $0x80] sm:$0xff]   ;;  %1837 = vmatpush3.bf16.msra.mxu0 %v2119_v3  ;;  %v2124_v8 = vld [vmem:[%s2522_s26 + $0x88] sm:$0xff]   ;;  %v2128_v12 = vld [vmem:[%s2522_s26 + $0x90] sm:$0xff]  }
  0x5b   : > { %1949 = vmatpush3.bf16.msra.mxu1 %v2120_v4  ;;  %1838 = vmatprep.subr.bf16.mxu0 %v2121_v5  ;;  %v2129_v13 = vld [vmem:[%s2522_s26 + $0x58] sm:$0xff]   ;;  %v2133_v17 = vld [vmem:[%s2522_s26 + $0x60] sm:$0xff]   ;;  %v2137_v21 = vld [vmem:[%s2522_s26 + $0x68] sm:$0xff]  }
  0x5c   : > { %1950 = vmatprep.subr.bf16.mxu1 %v2122_v6  ;;  %v2130_v14 = vld [vmem:[%s2522_s26 + $0xd8] sm:$0xff]   ;;  %v2134_v18 = vld [vmem:[%s2522_s26 + $0xe0] sm:$0xff]   ;;  %v2138_v22 = vld [vmem:[%s2522_s26 + $0xe8] sm:$0xff]  }
  0x5d   : > { %v2131_v15 = vld [vmem:[%s2522_s26 + $0x18] sm:$0xff]   ;;  %v2135_v19 = vld [vmem:[%s2522_s26 + $0x20] sm:$0xff]   ;;  %v2139_v23 = vld [vmem:[%s2522_s26 + $0x28] sm:$0xff]  }
  0x5e   : > { %1839 = vmatpush3.bf16.msra.mxu0 %v2123_v7  ;;  %v2132_v16 = vld [vmem:[%s2522_s26 + $0x98] sm:$0xff]   ;;  %v2136_v20 = vld [vmem:[%s2522_s26 + $0xa0] sm:$0xff]   ;;  %v2140_v24 = vld [vmem:[%s2522_s26 + $0xa8] sm:$0xff]  }
  0x5f   : > { %1951 = vmatpush3.bf16.msra.mxu1 %v2124_v8  ;;  %1840 = vmatprep.subr.bf16.mxu0 %v2125_v9  ;;  %v2141_v25 = vld [vmem:[%s2522_s26 + $0x70] sm:$0xff]   ;;  %v2145_v29 = vld [vmem:[%s2522_s26 + $0x78] sm:$0xff]  }
  0x60   : > { %1952 = vmatprep.subr.bf16.mxu1 %v2126_v10  ;;  %v2142_v26 = vld [vmem:[%s2522_s26 + $0xf0] sm:$0xff]   ;;  %v2146_v30 = vld [vmem:[%s2522_s26 + $0xf8] sm:$0xff]  }
  0x61   : > { %v2143_v27 = vld [vmem:[%s2522_s26 + $0x30] sm:$0xff]   ;;  %v2147_v31 = vld [vmem:[%s2522_s26 + $0x38] sm:$0xff]  }
  0x62   : > { %1841 = vmatpush3.bf16.msra.mxu0 %v2127_v11  ;;  %v2144_v28 = vld [vmem:[%s2522_s26 + $0xb0] sm:$0xff]   ;;  %v2148_v32 = vld [vmem:[%s2522_s26 + $0xb8] sm:$0xff]  }
  0x63   : > { %1953 = vmatpush3.bf16.msra.mxu1 %v2128_v12  ;;  %1842 = vmatprep.subr.bf16.mxu0 %v2129_v13  ;;  %v2149_v33 = vld [vmem:[%s2529_s12] ss:$16 sps:$4 sm:$0xff]   ;;  %v2151_v34 = vld [vmem:[%s2529_s12 + $0x4] ss:$16 sps:$4 sm:$0xff]   ;;  %v2152_v35 = vld [vmem:[%s2529_s12 + $0x8] ss:$16 sps:$4 sm:$0xff]  }
  0x64   : > { %1954 = vmatprep.subr.bf16.mxu1 %v2130_v14  ;;  %v2154_v36 = vld [vmem:[%s2529_s12 + $0xc] ss:$16 sps:$4 sm:$0xff]   ;;  %1140 = vmatprep.mubr.bf16.mxu0 %v2151_v34  ;;  %v2155_v37 = vld [vmem:[%s2529_s12 + $0x24] ss:$16 sps:$4 sm:$0xff]   ;;  %v2159_v39 = vld [vmem:[%s2529_s12 + $0x20] ss:$16 sps:$4 sm:$0xff]  }
  0x65   : > { %1301 = vmatprep.mubr.bf16.mxu1 %v2154_v36  ;;  %v2157_v38 = vld [vmem:[%s2529_s12 + $0x2c] ss:$16 sps:$4 sm:$0xff]   ;;  %v2160_v40 = vld [vmem:[%s2529_s12 + $0x28] ss:$16 sps:$4 sm:$0xff]   ;;  %v2161_v41 = vld [vmem:[%s2529_s12 + $0x44] ss:$16 sps:$4 sm:$0xff]  }
  0x66   : > { %1843 = vmatpush3.bf16.msra.mxu0 %v2131_v15  ;;  %v2163_v42 = vld [vmem:[%s2529_s12 + $0x4c] ss:$16 sps:$4 sm:$0xff]   ;;  %v2165_v43 = vld [vmem:[%s2529_s12 + $0x40] ss:$16 sps:$4 sm:$0xff]   ;;  %v2166_v44 = vld [vmem:[%s2529_s12 + $0x48] ss:$16 sps:$4 sm:$0xff]  }
  0x67   : > { %1955 = vmatpush3.bf16.msra.mxu1 %v2132_v16  ;;  %1844 = vmatprep.subr.bf16.mxu0 %v2133_v17  ;;  %v2167_v45 = vld [vmem:[%s2529_s12 + $0x64] ss:$16 sps:$4 sm:$0xff]   ;;  %v2169_v46 = vld [vmem:[%s2529_s12 + $0x6c] ss:$16 sps:$4 sm:$0xff]   ;;  %v2171_v47 = vld [vmem:[%s2529_s12 + $0x60] ss:$16 sps:$4 sm:$0xff]  }
  0x68   : > { %1956 = vmatprep.subr.bf16.mxu1 %v2134_v18  ;;  %v2172_v48 = vld [vmem:[%s2529_s12 + $0x68] ss:$16 sps:$4 sm:$0xff]   ;;  %v2173_v49 = vld [vmem:[%s2529_s12 + $0x84] ss:$16 sps:$4 sm:$0xff]   ;;  %v2175_v50 = vld [vmem:[%s2529_s12 + $0x8c] ss:$16 sps:$4 sm:$0xff]  }
  0x69   : > { %v2177_v51 = vld [vmem:[%s2529_s12 + $0x80] ss:$16 sps:$4 sm:$0xff]   ;;  %v2178_v52 = vld [vmem:[%s2529_s12 + $0x88] ss:$16 sps:$4 sm:$0xff]   ;;  %v2179_v53 = vld [vmem:[%s2529_s12 + $0xa4] ss:$16 sps:$4 sm:$0xff]  }
  0x6a   : > { %1845 = vmatpush3.bf16.msra.mxu0 %v2135_v19  ;;  %v2181_v54 = vld [vmem:[%s2529_s12 + $0xac] ss:$16 sps:$4 sm:$0xff]   ;;  %v2183_v55 = vld [vmem:[%s2529_s12 + $0xa0] ss:$16 sps:$4 sm:$0xff]   ;;  %v2184_v56 = vld [vmem:[%s2529_s12 + $0xa8] ss:$16 sps:$4 sm:$0xff]  }
  0x6b   : > { %1957 = vmatpush3.bf16.msra.mxu1 %v2136_v20  ;;  %1846 = vmatprep.subr.bf16.mxu0 %v2137_v21  ;;  %v2185_v57 = vld [vmem:[%s2529_s12 + $0xc4] ss:$16 sps:$4 sm:$0xff]   ;;  %v2187_v58 = vld [vmem:[%s2529_s12 + $0xcc] ss:$16 sps:$4 sm:$0xff]   ;;  %v2189_v59 = vld [vmem:[%s2529_s12 + $0xc0] ss:$16 sps:$4 sm:$0xff]  }
  0x6c   : > { %1958 = vmatprep.subr.bf16.mxu1 %v2138_v22  ;;  %v2190_v60 = vld [vmem:[%s2529_s12 + $0xc8] ss:$16 sps:$4 sm:$0xff]   ;;  %v2191_v61 = vld [vmem:[%s2529_s12 + $0xe4] ss:$16 sps:$4 sm:$0xff]   ;;  %v2193_v62 = vld [vmem:[%s2529_s12 + $0xec] ss:$16 sps:$4 sm:$0xff]  }
  0x6d   : > { %v2195_v63 = vld [vmem:[%s2529_s12 + $0xe0] ss:$16 sps:$4 sm:$0xff]   ;;  %v2196_v0 = vld [vmem:[%s2529_s12 + $0xe8] ss:$16 sps:$4 sm:$0xff]   ;;  %v2197_v1 = vld [vmem:[%s2529_s12 + $0x104] ss:$16 sps:$4 sm:$0xff]  }
  0x6e   : > { %1847 = vmatpush3.bf16.msra.mxu0 %v2139_v23  ;;  %v2199_v2 = vld [vmem:[%s2529_s12 + $0x10c] ss:$16 sps:$4 sm:$0xff]   ;;  %v2201_v3 = vld [vmem:[%s2529_s12 + $0x100] ss:$16 sps:$4 sm:$0xff]   ;;  %v2202_v4 = vld [vmem:[%s2529_s12 + $0x108] ss:$16 sps:$4 sm:$0xff]  }
  0x6f   : > { %1959 = vmatpush3.bf16.msra.mxu1 %v2140_v24  ;;  %1848 = vmatprep.subr.bf16.mxu0 %v2141_v25  ;;  %v2203_v5 = vld [vmem:[%s2529_s12 + $0x124] ss:$16 sps:$4 sm:$0xff]   ;;  %v2205_v6 = vld [vmem:[%s2529_s12 + $0x12c] ss:$16 sps:$4 sm:$0xff]   ;;  %v2207_v7 = vld [vmem:[%s2529_s12 + $0x120] ss:$16 sps:$4 sm:$0xff]  }
  0x70   : > { %1960 = vmatprep.subr.bf16.mxu1 %v2142_v26  ;;  %v2208_v8 = vld [vmem:[%s2529_s12 + $0x128] ss:$16 sps:$4 sm:$0xff]   ;;  %v2209_v9 = vld [vmem:[%s2529_s12 + $0x144] ss:$16 sps:$4 sm:$0xff]   ;;  %v2211_v10 = vld [vmem:[%s2529_s12 + $0x14c] ss:$16 sps:$4 sm:$0xff]  }
  0x71   : > { %v2213_v11 = vld [vmem:[%s2529_s12 + $0x140] ss:$16 sps:$4 sm:$0xff]   ;;  %v2214_v12 = vld [vmem:[%s2529_s12 + $0x148] ss:$16 sps:$4 sm:$0xff]   ;;  %v2215_v13 = vld [vmem:[%s2529_s12 + $0x164] ss:$16 sps:$4 sm:$0xff]  }
  0x72   : > { %1849 = vmatpush3.bf16.msra.mxu0 %v2143_v27  ;;  %v2217_v14 = vld [vmem:[%s2529_s12 + $0x16c] ss:$16 sps:$4 sm:$0xff]   ;;  %v2219_v15 = vld [vmem:[%s2529_s12 + $0x160] ss:$16 sps:$4 sm:$0xff]   ;;  %v2220_v16 = vld [vmem:[%s2529_s12 + $0x168] ss:$16 sps:$4 sm:$0xff]  }
  0x73   : > { %1961 = vmatpush3.bf16.msra.mxu1 %v2144_v28  ;;  %1850 = vmatprep.subr.bf16.mxu0 %v2145_v29  ;;  %v2221_v17 = vld [vmem:[%s2529_s12 + $0x184] ss:$16 sps:$4 sm:$0xff]   ;;  %v2223_v18 = vld [vmem:[%s2529_s12 + $0x18c] ss:$16 sps:$4 sm:$0xff]   ;;  %v2225_v19 = vld [vmem:[%s2529_s12 + $0x180] ss:$16 sps:$4 sm:$0xff]  }
  0x74   : > { %1962 = vmatprep.subr.bf16.mxu1 %v2146_v30  ;;  %v2226_v20 = vld [vmem:[%s2529_s12 + $0x188] ss:$16 sps:$4 sm:$0xff]   ;;  %v2227_v21 = vld [vmem:[%s2529_s12 + $0x1a4] ss:$16 sps:$4 sm:$0xff]   ;;  %v2229_v22 = vld [vmem:[%s2529_s12 + $0x1ac] ss:$16 sps:$4 sm:$0xff]  }
  0x75   : > { %v2231_v23 = vld [vmem:[%s2529_s12 + $0x1a0] ss:$16 sps:$4 sm:$0xff]   ;;  %v2232_v24 = vld [vmem:[%s2529_s12 + $0x1a8] ss:$16 sps:$4 sm:$0xff]   ;;  %v2233_v25 = vld [vmem:[%s2529_s12 + $0x1c4] ss:$16 sps:$4 sm:$0xff]  }
  0x76   : > { %1851 = vmatpush3.bf16.msra.mxu0 %v2147_v31  ;;  %v2235_v26 = vld [vmem:[%s2529_s12 + $0x1cc] ss:$16 sps:$4 sm:$0xff]   ;;  %v2237_v27 = vld [vmem:[%s2529_s12 + $0x1c0] ss:$16 sps:$4 sm:$0xff]   ;;  %v2238_v28 = vld [vmem:[%s2529_s12 + $0x1c8] ss:$16 sps:$4 sm:$0xff]  }
  0x77   : > { %1963 = vmatpush3.bf16.msra.mxu1 %v2148_v32  ;;  %v2239_v29 = vld [vmem:[%s2529_s12 + $0x1e4] ss:$16 sps:$4 sm:$0xff]   ;;  %v2241_v30 = vld [vmem:[%s2529_s12 + $0x1ec] ss:$16 sps:$4 sm:$0xff]   ;;  %v2243_v31 = vld [vmem:[%s2529_s12 + $0x1e0] ss:$16 sps:$4 sm:$0xff]  }
  0x78   : > { %v2244_v32 = vld [vmem:[%s2529_s12 + $0x1e8] ss:$16 sps:$4 sm:$0xff]  }
  0x79   : > { %1141 = vmatmul.mubr.bf16.vlgmr.msra.gmra.mrb[0].mxu0 %v2149_v33 }
  0x7a   : > { %1302 = vmatmul.mubr.bf16.vlgmr.msra.gmra.mrb[0].mxu1 %v2152_v35  ;;  %1148 = vmatprep.mubr.bf16.mxu0 %v2155_v37 }
  0x7b   : > { %1309 = vmatprep.mubr.bf16.mxu1 %v2157_v38 }
  0x81   : > { %1149 = vmatmul.mubr.bf16.gmra.mrb[4].mxu0 %v2159_v39 }
  0x82   : > { %1310 = vmatmul.mubr.bf16.gmra.mrb[4].mxu1 %v2160_v40  ;;  %1156 = vmatprep.mubr.bf16.mxu0 %v2161_v41 }
  0x83   : > { %1317 = vmatprep.mubr.bf16.mxu1 %v2163_v42  ;;  %v436_v42 = vld [vmem:[%s2527_s30] sm:$0xff] }
  0x89   : > { %1157 = vmatmul.mubr.bf16.gmra.mrb[8].mxu0 %v2165_v43 }
  0x8a   : > { %1318 = vmatmul.mubr.bf16.gmra.mrb[8].mxu1 %v2166_v44  ;;  %1164 = vmatprep.mubr.bf16.mxu0 %v2167_v45 }
  0x8b   : > { %1325 = vmatprep.mubr.bf16.mxu1 %v2169_v46 }
  0x91   : > { %1165 = vmatmul.mubr.bf16.gmra.mrb[12].mxu0 %v2171_v47  ;;  %v437_v47 = vld [vmem:[%s2527_s30 + $0x8] sm:$0xff] }
  0x92   : > { %1326 = vmatmul.mubr.bf16.gmra.mrb[12].mxu1 %v2172_v48  ;;  %1172 = vmatprep.mubr.bf16.mxu0 %v2173_v49 }
  0x93   : > { %1333 = vmatprep.mubr.bf16.mxu1 %v2175_v50 }
  0x99   : > { %1173 = vmatmul.mubr.bf16.gmra.mrb[16].mxu0 %v2177_v51 }
  0x9a   : > { %1334 = vmatmul.mubr.bf16.gmra.mrb[16].mxu1 %v2178_v52  ;;  %1180 = vmatprep.mubr.bf16.mxu0 %v2179_v53 }
  0x9b   : > { %1341 = vmatprep.mubr.bf16.mxu1 %v2181_v54 }
  0xa1   : > { %1181 = vmatmul.mubr.bf16.gmra.mrb[20].mxu0 %v2183_v55 }
  0xa2   : > { %1342 = vmatmul.mubr.bf16.gmra.mrb[20].mxu1 %v2184_v56  ;;  %1188 = vmatprep.mubr.bf16.mxu0 %v2185_v57 }
  0xa3   : > { %1349 = vmatprep.mubr.bf16.mxu1 %v2187_v58 }
  0xa9   : > { %1189 = vmatmul.mubr.bf16.gmra.mrb[24].mxu0 %v2189_v59 }
  0xaa   : > { %1350 = vmatmul.mubr.bf16.gmra.mrb[24].mxu1 %v2190_v60  ;;  %1196 = vmatprep.mubr.bf16.mxu0 %v2191_v61  ;;  %v438_v60 = vld [vmem:[%s2527_s30 + $0x10] sm:$0xff] }
  0xab   : > { %1357 = vmatprep.mubr.bf16.mxu1 %v2193_v62 }
  0xb1   : > { %1197 = vmatmul.mubr.bf16.gmra.mrb[28].mxu0 %v2195_v63 }
  0xb2   : > { %1358 = vmatmul.mubr.bf16.gmra.mrb[28].mxu1 %v2196_v0  ;;  %1204 = vmatprep.mubr.bf16.mxu0 %v2197_v1  ;;  %v439_v1 = vld [vmem:[%s2527_s30 + $0x18] sm:$0xff] }
  0xb3   : > { %1365 = vmatprep.mubr.bf16.mxu1 %v2199_v2 }
  0xb9   : > { %1205 = vmatmul.mubr.bf16.gmra.mrb[32].mxu0 %v2201_v3 }
  0xba   : > { %1366 = vmatmul.mubr.bf16.gmra.mrb[32].mxu1 %v2202_v4  ;;  %1212 = vmatprep.mubr.bf16.mxu0 %v2203_v5 }
  0xbb   : > { %1373 = vmatprep.mubr.bf16.mxu1 %v2205_v6 }
  0xc1   : > { %1213 = vmatmul.mubr.bf16.gmra.mrb[36].mxu0 %v2207_v7 }
  0xc2   : > { %1374 = vmatmul.mubr.bf16.gmra.mrb[36].mxu1 %v2208_v8  ;;  %1220 = vmatprep.mubr.bf16.mxu0 %v2209_v9 }
  0xc3   : > { %1381 = vmatprep.mubr.bf16.mxu1 %v2211_v10 }
  0xc9   : > { %1221 = vmatmul.mubr.bf16.gmra.mrb[40].mxu0 %v2213_v11 }
  0xca   : > { %1382 = vmatmul.mubr.bf16.gmra.mrb[40].mxu1 %v2214_v12  ;;  %1228 = vmatprep.mubr.bf16.mxu0 %v2215_v13 }
  0xcb   : > { %1389 = vmatprep.mubr.bf16.mxu1 %v2217_v14  ;;  %v440_v14 = vld [vmem:[%s2527_s30 + $0x20] sm:$0xff] }
  0xd1   : > { %1229 = vmatmul.mubr.bf16.gmra.mrb[44].mxu0 %v2219_v15 }
  0xd2   : > { %1390 = vmatmul.mubr.bf16.gmra.mrb[44].mxu1 %v2220_v16  ;;  %1236 = vmatprep.mubr.bf16.mxu0 %v2221_v17 }
  0xd3   : > { %1397 = vmatprep.mubr.bf16.mxu1 %v2223_v18 }
  0xd9   : > { %1237 = vmatmul.mubr.bf16.gmra.mrb[48].mxu0 %v2225_v19  ;;  %v441_v19 = vld [vmem:[%s2527_s30 + $0x28] sm:$0xff] }
  0xda   : > { %1398 = vmatmul.mubr.bf16.gmra.mrb[48].mxu1 %v2226_v20  ;;  %1244 = vmatprep.mubr.bf16.mxu0 %v2227_v21 }
  0xdb   : > { %1405 = vmatprep.mubr.bf16.mxu1 %v2229_v22 }
  0xe1   : > { %1245 = vmatmul.mubr.bf16.gmra.mrb[52].mxu0 %v2231_v23 }
  0xe2   : > { %1406 = vmatmul.mubr.bf16.gmra.mrb[52].mxu1 %v2232_v24  ;;  %1252 = vmatprep.mubr.bf16.mxu0 %v2233_v25 }
  0xe3   : > { %1413 = vmatprep.mubr.bf16.mxu1 %v2235_v26 }
  0xe9   : > { %1253 = vmatmul.mubr.bf16.gmra.mrb[56].mxu0 %v2237_v27 }
  0xea   : > { %1414 = vmatmul.mubr.bf16.gmra.mrb[56].mxu1 %v2238_v28  ;;  %1260 = vmatprep.mubr.bf16.mxu0 %v2239_v29 }
  0xeb   : > { %1421 = vmatprep.mubr.bf16.mxu1 %v2241_v30 }
  0xf1   : > { %1261 = vmatmul.mubr.bf16.gmra.mrb[60].mxu0 %v2243_v31 }
  0xf2   : > { %1422 = vmatmul.mubr.bf16.gmra.mrb[60].mxu1 %v2244_v32  ;;  %v442_v32 = vld [vmem:[%s2527_s30 + $0x30] sm:$0xff] }
 0x14c   : > { %v1852_v33 = vpop.f32.mrb[0].mxu0 }
 0x14d   : > { %v1964_v34 = vpop.f32.mrb[0].mxu1  ;;  %v1853_v35 = vpop.f32.mrb[1].mxu0 }
 0x14e   : > { %v1854_v36 = vadd.f32 %v1853_v35, %v1852_v33  ;;  %v1965_v37 = vpop.f32.mrb[1].mxu1  ;;  %v1855_v38 = vpop.f32.mrb[2].mxu0 }
 0x14f   : > { %v1966_v39 = vadd.f32 %v1965_v37, %v1964_v34  ;;  %v1967_v40 = vpop.f32.mrb[2].mxu1  ;;  %v1856_v41 = vpop.f32.mrb[3].mxu0  ;;  %v443_v37 = vld [vmem:[%s2527_s30 + $0x38] sm:$0xff] }
 0x150   : > { %v1857_v43 = vadd.f32 %v1856_v41, %v1855_v38  ;;  %v1968_v44 = vpop.f32.mrb[3].mxu1 }
 0x151   : > { %v1304_v45 = vadd.f32 %v1966_v39, %v1854_v36  ;;  %v1969_v46 = vadd.f32 %v1968_v44, %v1967_v40 }
 0x153   : > { %v1430_v48 = vadd.f32 %v1304_v45, %v436_v42  ;;  %v1307_v49 = vadd.f32 %v1969_v46, %v1857_v43 }
 0x154   : > { %v1858_v50 = vpop.f32.mrb[4].mxu0 }
 0x155   : > { %1462 = vst [vmem:[%s2527_s30] sm:$0xff] %v1430_v48  ;;  %v1431_v51 = vadd.f32 %v1307_v49, %v437_v47  ;;  %v1970_v52 = vpop.f32.mrb[4].mxu1  ;;  %v1859_v53 = vpop.f32.mrb[5].mxu0 }
 0x156   : > { %v1860_v54 = vadd.f32 %v1859_v53, %v1858_v50  ;;  %v1971_v55 = vpop.f32.mrb[5].mxu1  ;;  %v1861_v56 = vpop.f32.mrb[6].mxu0  ;;  %v444_v50 = vld [vmem:[%s2527_s30 + $0x40] sm:$0xff] }
 0x157   : > { %1463 = vst [vmem:[%s2527_s30 + $0x8] sm:$0xff] %v1431_v51  ;;  %v1972_v57 = vadd.f32 %v1971_v55, %v1970_v52  ;;  %v1973_v58 = vpop.f32.mrb[6].mxu1  ;;  %v1862_v59 = vpop.f32.mrb[7].mxu0  ;;  %v445_v55 = vld [vmem:[%s2527_s30 + $0x48] sm:$0xff] }
 0x158   : > { %v1863_v61 = vadd.f32 %v1862_v59, %v1861_v56  ;;  %v1974_v62 = vpop.f32.mrb[7].mxu1 }
 0x159   : > { %v1312_v63 = vadd.f32 %v1972_v57, %v1860_v54  ;;  %v1975_v0 = vadd.f32 %v1974_v62, %v1973_v58 }
 0x15b   : > { %v1432_v2 = vadd.f32 %v1312_v63, %v438_v60  ;;  %v1315_v3 = vadd.f32 %v1975_v0, %v1863_v61 }
 0x15c   : > { %v1864_v4 = vpop.f32.mrb[8].mxu0 }
 0x15d   : > { %1464 = vst [vmem:[%s2527_s30 + $0x10] sm:$0xff] %v1432_v2  ;;  %v1433_v5 = vadd.f32 %v1315_v3, %v439_v1  ;;  %v1976_v6 = vpop.f32.mrb[8].mxu1  ;;  %v1865_v7 = vpop.f32.mrb[9].mxu0 }
 0x15e   : > { %v1866_v8 = vadd.f32 %v1865_v7, %v1864_v4  ;;  %v1977_v9 = vpop.f32.mrb[9].mxu1  ;;  %v1867_v10 = vpop.f32.mrb[10].mxu0  ;;  %v446_v4 = vld [vmem:[%s2527_s30 + $0x50] sm:$0xff] }
 0x15f   : > { %1465 = vst [vmem:[%s2527_s30 + $0x18] sm:$0xff] %v1433_v5  ;;  %v1978_v11 = vadd.f32 %v1977_v9, %v1976_v6  ;;  %v1979_v12 = vpop.f32.mrb[10].mxu1  ;;  %v1868_v13 = vpop.f32.mrb[11].mxu0  ;;  %v447_v9 = vld [vmem:[%s2527_s30 + $0x58] sm:$0xff] }
 0x160   : > { %v1869_v15 = vadd.f32 %v1868_v13, %v1867_v10  ;;  %v1980_v16 = vpop.f32.mrb[11].mxu1 }
 0x161   : > { %v1320_v17 = vadd.f32 %v1978_v11, %v1866_v8  ;;  %v1981_v18 = vadd.f32 %v1980_v16, %v1979_v12 }
 0x163   : > { %v1434_v20 = vadd.f32 %v1320_v17, %v440_v14  ;;  %v1323_v21 = vadd.f32 %v1981_v18, %v1869_v15 }
 0x164   : > { %v1870_v22 = vpop.f32.mrb[12].mxu0 }
 0x165   : > { %1466 = vst [vmem:[%s2527_s30 + $0x20] sm:$0xff] %v1434_v20  ;;  %v1435_v23 = vadd.f32 %v1323_v21, %v441_v19  ;;  %v1982_v24 = vpop.f32.mrb[12].mxu1  ;;  %v1871_v25 = vpop.f32.mrb[13].mxu0 }
 0x166   : > { %v1872_v26 = vadd.f32 %v1871_v25, %v1870_v22  ;;  %v1983_v27 = vpop.f32.mrb[13].mxu1  ;;  %v1873_v28 = vpop.f32.mrb[14].mxu0  ;;  %v448_v22 = vld [vmem:[%s2527_s30 + $0x60] sm:$0xff] }
 0x167   : > { %1467 = vst [vmem:[%s2527_s30 + $0x28] sm:$0xff] %v1435_v23  ;;  %v1984_v29 = vadd.f32 %v1983_v27, %v1982_v24  ;;  %v1985_v30 = vpop.f32.mrb[14].mxu1  ;;  %v1874_v31 = vpop.f32.mrb[15].mxu0  ;;  %v449_v27 = vld [vmem:[%s2527_s30 + $0x68] sm:$0xff] }
 0x168   : > { %v1875_v33 = vadd.f32 %v1874_v31, %v1873_v28  ;;  %v1986_v34 = vpop.f32.mrb[15].mxu1 }
 0x169   : > { %v1328_v35 = vadd.f32 %v1984_v29, %v1872_v26  ;;  %v1987_v36 = vadd.f32 %v1986_v34, %v1985_v30 }
 0x16b   : > { %v1436_v38 = vadd.f32 %v1328_v35, %v442_v32  ;;  %v1331_v39 = vadd.f32 %v1987_v36, %v1875_v33 }
 0x16c   : > { %v1876_v40 = vpop.f32.mrb[16].mxu0 }
 0x16d   : > { %1468 = vst [vmem:[%s2527_s30 + $0x30] sm:$0xff] %v1436_v38  ;;  %v1437_v41 = vadd.f32 %v1331_v39, %v443_v37  ;;  %v1988_v42 = vpop.f32.mrb[16].mxu1  ;;  %v1877_v43 = vpop.f32.mrb[17].mxu0 }
 0x16e   : > { %v1878_v44 = vadd.f32 %v1877_v43, %v1876_v40  ;;  %v1989_v45 = vpop.f32.mrb[17].mxu1  ;;  %v1879_v46 = vpop.f32.mrb[18].mxu0  ;;  %v450_v40 = vld [vmem:[%s2527_s30 + $0x70] sm:$0xff] }
 0x16f   : > { %1469 = vst [vmem:[%s2527_s30 + $0x38] sm:$0xff] %v1437_v41  ;;  %v1990_v47 = vadd.f32 %v1989_v45, %v1988_v42  ;;  %v1991_v48 = vpop.f32.mrb[18].mxu1  ;;  %v1880_v49 = vpop.f32.mrb[19].mxu0  ;;  %v451_v45 = vld [vmem:[%s2527_s30 + $0x78] sm:$0xff] }
 0x170   : > { %v1881_v51 = vadd.f32 %v1880_v49, %v1879_v46  ;;  %v1992_v52 = vpop.f32.mrb[19].mxu1 }
 0x171   : > { %v1336_v53 = vadd.f32 %v1990_v47, %v1878_v44  ;;  %v1993_v54 = vadd.f32 %v1992_v52, %v1991_v48 }
 0x173   : > { %v1438_v56 = vadd.f32 %v1336_v53, %v444_v50  ;;  %v1339_v57 = vadd.f32 %v1993_v54, %v1881_v51 }
 0x174   : > { %v1882_v58 = vpop.f32.mrb[20].mxu0 }
 0x175   : > { %1470 = vst [vmem:[%s2527_s30 + $0x40] sm:$0xff] %v1438_v56  ;;  %v1439_v59 = vadd.f32 %v1339_v57, %v445_v55  ;;  %v1994_v60 = vpop.f32.mrb[20].mxu1  ;;  %v1883_v61 = vpop.f32.mrb[21].mxu0 }
 0x176   : > { %v1884_v62 = vadd.f32 %v1883_v61, %v1882_v58  ;;  %v1995_v63 = vpop.f32.mrb[21].mxu1  ;;  %v1885_v0 = vpop.f32.mrb[22].mxu0  ;;  %v452_v58 = vld [vmem:[%s2527_s30 + $0x80] sm:$0xff] }
 0x177   : > { %1471 = vst [vmem:[%s2527_s30 + $0x48] sm:$0xff] %v1439_v59  ;;  %v1996_v1 = vadd.f32 %v1995_v63, %v1994_v60  ;;  %v1997_v2 = vpop.f32.mrb[22].mxu1  ;;  %v1886_v3 = vpop.f32.mrb[23].mxu0  ;;  %v453_v63 = vld [vmem:[%s2527_s30 + $0x88] sm:$0xff] }
 0x178   : > { %v1887_v5 = vadd.f32 %v1886_v3, %v1885_v0  ;;  %v1998_v6 = vpop.f32.mrb[23].mxu1 }
 0x179   : > { %v1344_v7 = vadd.f32 %v1996_v1, %v1884_v62  ;;  %v1999_v8 = vadd.f32 %v1998_v6, %v1997_v2 }
 0x17b   : > { %v1440_v10 = vadd.f32 %v1344_v7, %v446_v4  ;;  %v1347_v11 = vadd.f32 %v1999_v8, %v1887_v5 }
 0x17c   : > { %v1888_v12 = vpop.f32.mrb[24].mxu0 }
 0x17d   : > { %1472 = vst [vmem:[%s2527_s30 + $0x50] sm:$0xff] %v1440_v10  ;;  %v1441_v13 = vadd.f32 %v1347_v11, %v447_v9  ;;  %v2000_v14 = vpop.f32.mrb[24].mxu1  ;;  %v1889_v15 = vpop.f32.mrb[25].mxu0 }
 0x17e   : > { %v1890_v16 = vadd.f32 %v1889_v15, %v1888_v12  ;;  %v2001_v17 = vpop.f32.mrb[25].mxu1  ;;  %v1891_v18 = vpop.f32.mrb[26].mxu0  ;;  %v454_v12 = vld [vmem:[%s2527_s30 + $0x90] sm:$0xff] }
 0x17f   : > { %1473 = vst [vmem:[%s2527_s30 + $0x58] sm:$0xff] %v1441_v13  ;;  %v2002_v19 = vadd.f32 %v2001_v17, %v2000_v14  ;;  %v2003_v20 = vpop.f32.mrb[26].mxu1  ;;  %v1892_v21 = vpop.f32.mrb[27].mxu0  ;;  %v455_v17 = vld [vmem:[%s2527_s30 + $0x98] sm:$0xff] }
 0x180   : > { %v1893_v23 = vadd.f32 %v1892_v21, %v1891_v18  ;;  %v2004_v24 = vpop.f32.mrb[27].mxu1 }
 0x181   : > { %v1352_v25 = vadd.f32 %v2002_v19, %v1890_v16  ;;  %v2005_v26 = vadd.f32 %v2004_v24, %v2003_v20 }
 0x183   : > { %v1442_v28 = vadd.f32 %v1352_v25, %v448_v22  ;;  %v1355_v29 = vadd.f32 %v2005_v26, %v1893_v23 }
 0x184   : > { %v1894_v30 = vpop.f32.mrb[28].mxu0 }
 0x185   : > { %1474 = vst [vmem:[%s2527_s30 + $0x60] sm:$0xff] %v1442_v28  ;;  %v1443_v31 = vadd.f32 %v1355_v29, %v449_v27  ;;  %v2006_v32 = vpop.f32.mrb[28].mxu1  ;;  %v1895_v33 = vpop.f32.mrb[29].mxu0 }
 0x186   : > { %v1896_v34 = vadd.f32 %v1895_v33, %v1894_v30  ;;  %v2007_v35 = vpop.f32.mrb[29].mxu1  ;;  %v1897_v36 = vpop.f32.mrb[30].mxu0  ;;  %v456_v30 = vld [vmem:[%s2527_s30 + $0xa0] sm:$0xff] }
 0x187   : > { %1475 = vst [vmem:[%s2527_s30 + $0x68] sm:$0xff] %v1443_v31  ;;  %v2008_v37 = vadd.f32 %v2007_v35, %v2006_v32  ;;  %v2009_v38 = vpop.f32.mrb[30].mxu1  ;;  %v1898_v39 = vpop.f32.mrb[31].mxu0  ;;  %v457_v35 = vld [vmem:[%s2527_s30 + $0xa8] sm:$0xff] }
 0x188   : > { %v1899_v41 = vadd.f32 %v1898_v39, %v1897_v36  ;;  %v2010_v42 = vpop.f32.mrb[31].mxu1 }
 0x189   : > { %v1360_v43 = vadd.f32 %v2008_v37, %v1896_v34  ;;  %v2011_v44 = vadd.f32 %v2010_v42, %v2009_v38 }
 0x18b   : > { %v1444_v46 = vadd.f32 %v1360_v43, %v450_v40  ;;  %v1363_v47 = vadd.f32 %v2011_v44, %v1899_v41 }
 0x18c   : > { %v1900_v48 = vpop.f32.mrb[32].mxu0 }
 0x18d   : > { %1476 = vst [vmem:[%s2527_s30 + $0x70] sm:$0xff] %v1444_v46  ;;  %v1445_v49 = vadd.f32 %v1363_v47, %v451_v45  ;;  %v2012_v50 = vpop.f32.mrb[32].mxu1  ;;  %v1901_v51 = vpop.f32.mrb[33].mxu0 }
 0x18e   : > { %v1902_v52 = vadd.f32 %v1901_v51, %v1900_v48  ;;  %v2013_v53 = vpop.f32.mrb[33].mxu1  ;;  %v1903_v54 = vpop.f32.mrb[34].mxu0  ;;  %v458_v48 = vld [vmem:[%s2527_s30 + $0xb0] sm:$0xff] }
 0x18f   : > { %1477 = vst [vmem:[%s2527_s30 + $0x78] sm:$0xff] %v1445_v49  ;;  %v2014_v55 = vadd.f32 %v2013_v53, %v2012_v50  ;;  %v2015_v56 = vpop.f32.mrb[34].mxu1  ;;  %v1904_v57 = vpop.f32.mrb[35].mxu0  ;;  %v459_v53 = vld [vmem:[%s2527_s30 + $0xb8] sm:$0xff] }
 0x190   : > { %v1905_v59 = vadd.f32 %v1904_v57, %v1903_v54  ;;  %v2016_v60 = vpop.f32.mrb[35].mxu1 }
 0x191   : > { %v1368_v61 = vadd.f32 %v2014_v55, %v1902_v52  ;;  %v2017_v62 = vadd.f32 %v2016_v60, %v2015_v56 }
 0x193   : > { %v1446_v0 = vadd.f32 %v1368_v61, %v452_v58  ;;  %v1371_v1 = vadd.f32 %v2017_v62, %v1905_v59 }
 0x194   : > { %v1906_v2 = vpop.f32.mrb[36].mxu0 }
 0x195   : > { %1478 = vst [vmem:[%s2527_s30 + $0x80] sm:$0xff] %v1446_v0  ;;  %v1447_v3 = vadd.f32 %v1371_v1, %v453_v63  ;;  %v2018_v4 = vpop.f32.mrb[36].mxu1  ;;  %v1907_v5 = vpop.f32.mrb[37].mxu0 }
 0x196   : > { %v1908_v6 = vadd.f32 %v1907_v5, %v1906_v2  ;;  %v2019_v7 = vpop.f32.mrb[37].mxu1  ;;  %v1909_v8 = vpop.f32.mrb[38].mxu0  ;;  %v460_v2 = vld [vmem:[%s2527_s30 + $0xc0] sm:$0xff] }
 0x197   : > { %1479 = vst [vmem:[%s2527_s30 + $0x88] sm:$0xff] %v1447_v3  ;;  %v2020_v9 = vadd.f32 %v2019_v7, %v2018_v4  ;;  %v2021_v10 = vpop.f32.mrb[38].mxu1  ;;  %v1910_v11 = vpop.f32.mrb[39].mxu0  ;;  %v461_v7 = vld [vmem:[%s2527_s30 + $0xc8] sm:$0xff] }
 0x198   : > { %v1911_v13 = vadd.f32 %v1910_v11, %v1909_v8  ;;  %v2022_v14 = vpop.f32.mrb[39].mxu1 }
 0x199   : > { %v1376_v15 = vadd.f32 %v2020_v9, %v1908_v6  ;;  %v2023_v16 = vadd.f32 %v2022_v14, %v2021_v10 }
 0x19b   : > { %v1448_v18 = vadd.f32 %v1376_v15, %v454_v12  ;;  %v1379_v19 = vadd.f32 %v2023_v16, %v1911_v13 }
 0x19c   : > { %v1912_v20 = vpop.f32.mrb[40].mxu0 }
 0x19d   : > { %1480 = vst [vmem:[%s2527_s30 + $0x90] sm:$0xff] %v1448_v18  ;;  %v1449_v21 = vadd.f32 %v1379_v19, %v455_v17  ;;  %v2024_v22 = vpop.f32.mrb[40].mxu1  ;;  %v1913_v23 = vpop.f32.mrb[41].mxu0 }
 0x19e   : > { %v1914_v24 = vadd.f32 %v1913_v23, %v1912_v20  ;;  %v2025_v25 = vpop.f32.mrb[41].mxu1  ;;  %v1915_v26 = vpop.f32.mrb[42].mxu0  ;;  %v462_v20 = vld [vmem:[%s2527_s30 + $0xd0] sm:$0xff] }
 0x19f   : > { %1481 = vst [vmem:[%s2527_s30 + $0x98] sm:$0xff] %v1449_v21  ;;  %v2026_v27 = vadd.f32 %v2025_v25, %v2024_v22  ;;  %v2027_v28 = vpop.f32.mrb[42].mxu1  ;;  %v1916_v29 = vpop.f32.mrb[43].mxu0  ;;  %v463_v25 = vld [vmem:[%s2527_s30 + $0xd8] sm:$0xff] }
 0x1a0   : > { %v1917_v31 = vadd.f32 %v1916_v29, %v1915_v26  ;;  %v2028_v32 = vpop.f32.mrb[43].mxu1 }
 0x1a1   : > { %v1384_v33 = vadd.f32 %v2026_v27, %v1914_v24  ;;  %v2029_v34 = vadd.f32 %v2028_v32, %v2027_v28 }
 0x1a3   : > { %v1450_v36 = vadd.f32 %v1384_v33, %v456_v30  ;;  %v1387_v37 = vadd.f32 %v2029_v34, %v1917_v31 }
 0x1a4   : > { %v1918_v38 = vpop.f32.mrb[44].mxu0 }
 0x1a5   : > { %1482 = vst [vmem:[%s2527_s30 + $0xa0] sm:$0xff] %v1450_v36  ;;  %v1451_v39 = vadd.f32 %v1387_v37, %v457_v35  ;;  %v2030_v40 = vpop.f32.mrb[44].mxu1  ;;  %v1919_v41 = vpop.f32.mrb[45].mxu0 }
 0x1a6   : > { %v1920_v42 = vadd.f32 %v1919_v41, %v1918_v38  ;;  %v2031_v43 = vpop.f32.mrb[45].mxu1  ;;  %v1921_v44 = vpop.f32.mrb[46].mxu0  ;;  %v464_v38 = vld [vmem:[%s2527_s30 + $0xe0] sm:$0xff] }
 0x1a7   : > { %1483 = vst [vmem:[%s2527_s30 + $0xa8] sm:$0xff] %v1451_v39  ;;  %v2032_v45 = vadd.f32 %v2031_v43, %v2030_v40  ;;  %v2033_v46 = vpop.f32.mrb[46].mxu1  ;;  %v1922_v47 = vpop.f32.mrb[47].mxu0  ;;  %v465_v43 = vld [vmem:[%s2527_s30 + $0xe8] sm:$0xff] }
 0x1a8   : > { %v1923_v49 = vadd.f32 %v1922_v47, %v1921_v44  ;;  %v2034_v50 = vpop.f32.mrb[47].mxu1 }
 0x1a9   : > { %v1392_v51 = vadd.f32 %v2032_v45, %v1920_v42  ;;  %v2035_v52 = vadd.f32 %v2034_v50, %v2033_v46 }
 0x1ab   : > { %v1452_v54 = vadd.f32 %v1392_v51, %v458_v48  ;;  %v1395_v55 = vadd.f32 %v2035_v52, %v1923_v49 }
 0x1ac   : > { %v1924_v56 = vpop.f32.mrb[48].mxu0 }
 0x1ad   : > { %1484 = vst [vmem:[%s2527_s30 + $0xb0] sm:$0xff] %v1452_v54  ;;  %v1453_v57 = vadd.f32 %v1395_v55, %v459_v53  ;;  %v2036_v58 = vpop.f32.mrb[48].mxu1  ;;  %v1925_v59 = vpop.f32.mrb[49].mxu0 }
 0x1ae   : > { %v1926_v60 = vadd.f32 %v1925_v59, %v1924_v56  ;;  %v2037_v61 = vpop.f32.mrb[49].mxu1  ;;  %v1927_v62 = vpop.f32.mrb[50].mxu0  ;;  %v466_v56 = vld [vmem:[%s2527_s30 + $0xf0] sm:$0xff] }
 0x1af   : > { %1485 = vst [vmem:[%s2527_s30 + $0xb8] sm:$0xff] %v1453_v57  ;;  %v2038_v63 = vadd.f32 %v2037_v61, %v2036_v58  ;;  %v2039_v0 = vpop.f32.mrb[50].mxu1  ;;  %v1928_v1 = vpop.f32.mrb[51].mxu0  ;;  %v467_v61 = vld [vmem:[%s2527_s30 + $0xf8] sm:$0xff] }
 0x1b0   : > { %v1929_v3 = vadd.f32 %v1928_v1, %v1927_v62  ;;  %v2040_v4 = vpop.f32.mrb[51].mxu1  ;;  %v1498_v1 = vld [vmem:[%s2527_s30] sm:$0xff] (!%p1831_p13) }
 0x1b1   : > { %v1400_v5 = vadd.f32 %v2038_v63, %v1926_v60  ;;  %v2041_v6 = vadd.f32 %v2040_v4, %v2039_v0 }
 0x1b3   : > { %v1454_v8 = vadd.f32 %v1400_v5, %v460_v2  ;;  %v1403_v9 = vadd.f32 %v2041_v6, %v1929_v3  ;;  %v2729_v2 = vld [vmem:[%s2849_s2] ss:$0 sm:$0xff] (!%p1831_p13)  ;;  %v1499_v3 = vld [vmem:[%s2527_s30 + $0x8] sm:$0xff] (!%p1831_p13)  ;;  %v1500_v6 = vld [vmem:[%s2527_s30 + $0x10] sm:$0xff] (!%p1831_p13) }
 0x1b4   : > { %v1930_v10 = vpop.f32.mrb[52].mxu0  ;;  %v1537_v4 = vadd.f32 (!%p1831_p13), %v2729_v2, %v1498_v1  ;;  %v1538_v5 = vadd.f32 (!%p1831_p13), %v2729_v2, %v1499_v3 }
 0x1b5   : > { %1486 = vst [vmem:[%s2527_s30 + $0xc0] sm:$0xff] %v1454_v8  ;;  %v1455_v11 = vadd.f32 %v1403_v9, %v461_v7  ;;  %v2042_v12 = vpop.f32.mrb[52].mxu1  ;;  %v1931_v13 = vpop.f32.mrb[53].mxu0  ;;  %v1501_v7 = vld [vmem:[%s2527_s30 + $0x18] sm:$0xff] (!%p1831_p13)  ;;  %v1502_v8 = vld [vmem:[%s2527_s30 + $0x20] sm:$0xff] (!%p1831_p13)  ;;  %v1539_v9 = vadd.f32 (!%p1831_p13), %v2729_v2, %v1500_v6 }
 0x1b6   : > { %v1932_v14 = vadd.f32 %v1931_v13, %v1930_v10  ;;  %v2043_v15 = vpop.f32.mrb[53].mxu1  ;;  %v1933_v16 = vpop.f32.mrb[54].mxu0  ;;  %v1540_v10 = vadd.f32 (!%p1831_p13), %v2729_v2, %v1501_v7  ;;  %v1504_v13 = vld [vmem:[%s2527_s30 + $0x30] sm:$0xff] (!%p1831_p13)  ;;  %1569 = vst [vmem:[%s2527_s30] sm:$0xff] (!%p1831_p13), %v1537_v4  ;;  %1570 = vst [vmem:[%s2527_s30 + $0x8] sm:$0xff] (!%p1831_p13), %v1538_v5 }
 0x1b7   : > { %1487 = vst [vmem:[%s2527_s30 + $0xc8] sm:$0xff] %v1455_v11  ;;  %v2044_v17 = vadd.f32 %v2043_v15, %v2042_v12  ;;  %v2045_v18 = vpop.f32.mrb[54].mxu1  ;;  %v1934_v19 = vpop.f32.mrb[55].mxu0  ;;  %v1541_v11 = vadd.f32 (!%p1831_p13), %v2729_v2, %v1502_v8  ;;  %v1503_v12 = vld [vmem:[%s2527_s30 + $0x28] sm:$0xff] (!%p1831_p13)  ;;  %1571 = vst [vmem:[%s2527_s30 + $0x10] sm:$0xff] (!%p1831_p13), %v1539_v9 }
 0x1b8   : > { %v1935_v21 = vadd.f32 %v1934_v19, %v1933_v16  ;;  %v2046_v22 = vpop.f32.mrb[55].mxu1  ;;  %v1542_v15 = vadd.f32 (!%p1831_p13), %v2729_v2, %v1503_v12  ;;  %v1543_v16 = vadd.f32 (!%p1831_p13), %v2729_v2, %v1504_v13  ;;  %v1507_v19 = vld [vmem:[%s2527_s30 + $0x48] sm:$0xff] (!%p1831_p13)  ;;  %1572 = vst [vmem:[%s2527_s30 + $0x18] sm:$0xff] (!%p1831_p13), %v1540_v10 }
 0x1b9   : > { %v1408_v23 = vadd.f32 %v2044_v17, %v1932_v14  ;;  %v2047_v24 = vadd.f32 %v2046_v22, %v2045_v18  ;;  %v1505_v14 = vld [vmem:[%s2527_s30 + $0x38] sm:$0xff] (!%p1831_p13)  ;;  %v1506_v18 = vld [vmem:[%s2527_s30 + $0x40] sm:$0xff] (!%p1831_p13)  ;;  %1573 = vst [vmem:[%s2527_s30 + $0x20] sm:$0xff] (!%p1831_p13), %v1541_v11  ;;  %v1546_v22 = vadd.f32 (!%p1831_p13), %v2729_v2, %v1507_v19 }
 0x1ba   : > { %v1544_v17 = vadd.f32 (!%p1831_p13), %v2729_v2, %v1505_v14  ;;  %1574 = vst [vmem:[%s2527_s30 + $0x28] sm:$0xff] (!%p1831_p13), %v1542_v15  ;;  %1575 = vst [vmem:[%s2527_s30 + $0x30] sm:$0xff] (!%p1831_p13), %v1543_v16 }
 0x1bb   : > { %v1456_v26 = vadd.f32 %v1408_v23, %v462_v20  ;;  %v1411_v27 = vadd.f32 %v2047_v24, %v1935_v21  ;;  %v1508_v20 = vld [vmem:[%s2527_s30 + $0x50] sm:$0xff] (!%p1831_p13)  ;;  %v1545_v21 = vadd.f32 (!%p1831_p13), %v2729_v2, %v1506_v18  ;;  %v1509_v24 = vld [vmem:[%s2527_s30 + $0x58] sm:$0xff] (!%p1831_p13)  ;;  %1578 = vst [vmem:[%s2527_s30 + $0x48] sm:$0xff] (!%p1831_p13), %v1546_v22 }
 0x1bc   : > { %v1936_v28 = vpop.f32.mrb[56].mxu0  ;;  %v1547_v23 = vadd.f32 (!%p1831_p13), %v2729_v2, %v1508_v20  ;;  %1576 = vst [vmem:[%s2527_s30 + $0x38] sm:$0xff] (!%p1831_p13), %v1544_v17 }
 0x1bd   : > { %1488 = vst [vmem:[%s2527_s30 + $0xd0] sm:$0xff] %v1456_v26  ;;  %v1457_v29 = vadd.f32 %v1411_v27, %v463_v25  ;;  %v2048_v30 = vpop.f32.mrb[56].mxu1  ;;  %v1937_v31 = vpop.f32.mrb[57].mxu0  ;;  %v1510_v25 = vld [vmem:[%s2527_s30 + $0x60] sm:$0xff] (!%p1831_p13)  ;;  %v1511_v26 = vld [vmem:[%s2527_s30 + $0x68] sm:$0xff] (!%p1831_p13)  ;;  %v1548_v27 = vadd.f32 (!%p1831_p13), %v2729_v2, %v1509_v24  ;;  %1577 = vst [vmem:[%s2527_s30 + $0x40] sm:$0xff] (!%p1831_p13), %v1545_v21 }
 0x1be   : > { %v1938_v32 = vadd.f32 %v1937_v31, %v1936_v28  ;;  %v2049_v33 = vpop.f32.mrb[57].mxu1  ;;  %v1939_v34 = vpop.f32.mrb[58].mxu0  ;;  %v1549_v28 = vadd.f32 (!%p1831_p13), %v2729_v2, %v1510_v25  ;;  %v1513_v31 = vld [vmem:[%s2527_s30 + $0x78] sm:$0xff] (!%p1831_p13)  ;;  %1579 = vst [vmem:[%s2527_s30 + $0x50] sm:$0xff] (!%p1831_p13), %v1547_v23 }
 0x1bf   : > { %1489 = vst [vmem:[%s2527_s30 + $0xd8] sm:$0xff] %v1457_v29  ;;  %v2050_v35 = vadd.f32 %v2049_v33, %v2048_v30  ;;  %v2051_v36 = vpop.f32.mrb[58].mxu1  ;;  %v1940_v37 = vpop.f32.mrb[59].mxu0  ;;  %v1550_v29 = vadd.f32 (!%p1831_p13), %v2729_v2, %v1511_v26  ;;  %v1512_v30 = vld [vmem:[%s2527_s30 + $0x70] sm:$0xff] (!%p1831_p13)  ;;  %1580 = vst [vmem:[%s2527_s30 + $0x58] sm:$0xff] (!%p1831_p13), %v1548_v27 }
 0x1c0   : > { %v1941_v39 = vadd.f32 %v1940_v37, %v1939_v34  ;;  %v2052_v40 = vpop.f32.mrb[59].mxu1  ;;  %v1551_v33 = vadd.f32 (!%p1831_p13), %v2729_v2, %v1512_v30  ;;  %v1552_v34 = vadd.f32 (!%p1831_p13), %v2729_v2, %v1513_v31  ;;  %v1516_v37 = vld [vmem:[%s2527_s30 + $0x90] sm:$0xff] (!%p1831_p13)  ;;  %1581 = vst [vmem:[%s2527_s30 + $0x60] sm:$0xff] (!%p1831_p13), %v1549_v28 }
 0x1c1   : > { %v1416_v41 = vadd.f32 %v2050_v35, %v1938_v32  ;;  %v2053_v42 = vadd.f32 %v2052_v40, %v2051_v36  ;;  %v1514_v32 = vld [vmem:[%s2527_s30 + $0x80] sm:$0xff] (!%p1831_p13)  ;;  %v1515_v36 = vld [vmem:[%s2527_s30 + $0x88] sm:$0xff] (!%p1831_p13)  ;;  %1582 = vst [vmem:[%s2527_s30 + $0x68] sm:$0xff] (!%p1831_p13), %v1550_v29  ;;  %v1555_v40 = vadd.f32 (!%p1831_p13), %v2729_v2, %v1516_v37 }
 0x1c2   : > { %v1553_v35 = vadd.f32 (!%p1831_p13), %v2729_v2, %v1514_v32  ;;  %1583 = vst [vmem:[%s2527_s30 + $0x70] sm:$0xff] (!%p1831_p13), %v1551_v33  ;;  %1584 = vst [vmem:[%s2527_s30 + $0x78] sm:$0xff] (!%p1831_p13), %v1552_v34 }
 0x1c3   : > { %v1458_v44 = vadd.f32 %v1416_v41, %v464_v38  ;;  %v1419_v45 = vadd.f32 %v2053_v42, %v1941_v39  ;;  %v1517_v38 = vld [vmem:[%s2527_s30 + $0x98] sm:$0xff] (!%p1831_p13)  ;;  %v1554_v39 = vadd.f32 (!%p1831_p13), %v2729_v2, %v1515_v36  ;;  %v1518_v42 = vld [vmem:[%s2527_s30 + $0xa0] sm:$0xff] (!%p1831_p13)  ;;  %1587 = vst [vmem:[%s2527_s30 + $0x90] sm:$0xff] (!%p1831_p13), %v1555_v40 }
 0x1c4   : > { %v1942_v46 = vpop.f32.mrb[60].mxu0  ;;  %v1556_v41 = vadd.f32 (!%p1831_p13), %v2729_v2, %v1517_v38  ;;  %1585 = vst [vmem:[%s2527_s30 + $0x80] sm:$0xff] (!%p1831_p13), %v1553_v35 }
 0x1c5   : > { %1490 = vst [vmem:[%s2527_s30 + $0xe0] sm:$0xff] %v1458_v44  ;;  %v1459_v47 = vadd.f32 %v1419_v45, %v465_v43  ;;  %v2054_v48 = vpop.f32.mrb[60].mxu1  ;;  %v1943_v49 = vpop.f32.mrb[61].mxu0  ;;  %v1519_v43 = vld [vmem:[%s2527_s30 + $0xa8] sm:$0xff] (!%p1831_p13)  ;;  %v1520_v44 = vld [vmem:[%s2527_s30 + $0xb0] sm:$0xff] (!%p1831_p13)  ;;  %v1557_v45 = vadd.f32 (!%p1831_p13), %v2729_v2, %v1518_v42  ;;  %1586 = vst [vmem:[%s2527_s30 + $0x88] sm:$0xff] (!%p1831_p13), %v1554_v39 }
 0x1c6   : > { %v1944_v50 = vadd.f32 %v1943_v49, %v1942_v46  ;;  %v2055_v51 = vpop.f32.mrb[61].mxu1  ;;  %v1945_v52 = vpop.f32.mrb[62].mxu0  ;;  %v1558_v46 = vadd.f32 (!%p1831_p13), %v2729_v2, %v1519_v43  ;;  %v1522_v49 = vld [vmem:[%s2527_s30 + $0xc0] sm:$0xff] (!%p1831_p13)  ;;  %1588 = vst [vmem:[%s2527_s30 + $0x98] sm:$0xff] (!%p1831_p13), %v1556_v41 }
 0x1c7   : > { %1491 = vst [vmem:[%s2527_s30 + $0xe8] sm:$0xff] %v1459_v47  ;;  %v2056_v53 = vadd.f32 %v2055_v51, %v2054_v48  ;;  %v2057_v54 = vpop.f32.mrb[62].mxu1  ;;  %v1946_v55 = vpop.f32.mrb[63].mxu0  ;;  %v1559_v47 = vadd.f32 (!%p1831_p13), %v2729_v2, %v1520_v44  ;;  %v1521_v48 = vld [vmem:[%s2527_s30 + $0xb8] sm:$0xff] (!%p1831_p13)  ;;  %1589 = vst [vmem:[%s2527_s30 + $0xa0] sm:$0xff] (!%p1831_p13), %v1557_v45 }
 0x1c8   : > { %v1947_v57 = vadd.f32 %v1946_v55, %v1945_v52  ;;  %v2058_v58 = vpop.f32.mrb[63].mxu1  ;;  %v1560_v51 = vadd.f32 (!%p1831_p13), %v2729_v2, %v1521_v48  ;;  %v1561_v52 = vadd.f32 (!%p1831_p13), %v2729_v2, %v1522_v49  ;;  %v1525_v55 = vld [vmem:[%s2527_s30 + $0xd8] sm:$0xff] (!%p1831_p13)  ;;  %1590 = vst [vmem:[%s2527_s30 + $0xa8] sm:$0xff] (!%p1831_p13), %v1558_v46 }
 0x1c9   : > { %v1424_v59 = vadd.f32 %v2056_v53, %v1944_v50  ;;  %v2059_v60 = vadd.f32 %v2058_v58, %v2057_v54  ;;  %1497 = sbr.rel (%p1831_p13) target bundleno = 474 (0x1da), region = 63  ;;  %v1523_v50 = vld [vmem:[%s2527_s30 + $0xc8] sm:$0xff] (!%p1831_p13)  ;;  %v1524_v54 = vld [vmem:[%s2527_s30 + $0xd0] sm:$0xff] (!%p1831_p13)  ;;  %1591 = vst [vmem:[%s2527_s30 + $0xb0] sm:$0xff] (!%p1831_p13), %v1559_v47  ;;  %v1564_v58 = vadd.f32 (!%p1831_p13), %v2729_v2, %v1525_v55 }
 0x1ca   : > { %v1562_v53 = vadd.f32 (!%p1831_p13), %v2729_v2, %v1523_v50  ;;  %1592 = vst [vmem:[%s2527_s30 + $0xb8] sm:$0xff] (!%p1831_p13), %v1560_v51  ;;  %1593 = vst [vmem:[%s2527_s30 + $0xc0] sm:$0xff] (!%p1831_p13), %v1561_v52 }
 0x1cb   : > { %v1460_v62 = vadd.f32 %v1424_v59, %v466_v56  ;;  %v1427_v63 = vadd.f32 %v2059_v60, %v1947_v57  ;;  %v1563_v57 = vadd.f32 (!%p1831_p13), %v2729_v2, %v1524_v54  ;;  %1596 = vst [vmem:[%s2527_s30 + $0xd8] sm:$0xff] (!%p1831_p13), %v1564_v58 }
 0x1cc   : > { %v1526_v56 = vld [vmem:[%s2527_s30 + $0xe0] sm:$0xff] (!%p1831_p13)  ;;  %1594 = vst [vmem:[%s2527_s30 + $0xc8] sm:$0xff] (!%p1831_p13), %v1562_v53 }
 0x1cd   : > { %1492 = vst [vmem:[%s2527_s30 + $0xf0] sm:$0xff] %v1460_v62  ;;  %v1461_v0 = vadd.f32 %v1427_v63, %v467_v61  ;;  %v1565_v59 = vadd.f32 (!%p1831_p13), %v2729_v2, %v1526_v56  ;;  %1595 = vst [vmem:[%s2527_s30 + $0xd0] sm:$0xff] (!%p1831_p13), %v1563_v57 }
 0x1ce   : > { %v1527_v60 = vld [vmem:[%s2527_s30 + $0xe8] sm:$0xff] (!%p1831_p13) }
 0x1cf   : > { %1493 = vst [vmem:[%s2527_s30 + $0xf8] sm:$0xff] %v1461_v0  ;;  %v1566_v63 = vadd.f32 (!%p1831_p13), %v2729_v2, %v1527_v60  ;;  %1597 = vst [vmem:[%s2527_s30 + $0xe0] sm:$0xff] (!%p1831_p13), %v1565_v59 }
 0x1d1   : > { %1598 = vst [vmem:[%s2527_s30 + $0xe8] sm:$0xff] %v1566_v63 }
 0x1d4   : > { %v1528_v61 = vld [vmem:[%s2527_s30 + $0xf0] sm:$0xff] }
 0x1d5   : > { %v1567_v0 = vadd.f32 %v2729_v2, %v1528_v61 }
 0x1d6   : > { %v1529_v62 = vld [vmem:[%s2527_s30 + $0xf8] sm:$0xff] }
 0x1d7   : > { %v1568_v1 = vadd.f32 %v2729_v2, %v1529_v62  ;;  %1599 = vst [vmem:[%s2527_s30 + $0xf0] sm:$0xff] %v1567_v0 }
 0x1d9   : > { %1600 = vst [vmem:[%s2527_s30 + $0xf8] sm:$0xff] %v1568_v1 }
 0x1da PF: > { %s13_s18 = sadd.s32 1, %s2299_s18   ;;  %s2851_s12 = smov %s2279_s13 }
 0x1db   : > { %p10_p0 = scmp.ge.s32.totalorder %s13_s18, 10   ;;  %s2852_s13 = smov %s2373_s25 }
 0x1dc   : > { %s2853_s14 = smov %s2291_s16  ;;  %s2854_s15 = smov %s2295_s17 }
 0x1dd   : > { %s2855_s16 = smov %s2858_s19  ;;  %s2856_s17 = smov %s2862_s20 }
 0x1de   :  { %12 = sbr.rel (!%p10_p0) target bundleno = 4 (0x4), region = 104 }

</bundles_post_ra>
